<compile_context>
chip_gen: v7x
topology: tpu7x:2x2x1
jax: 0.10.0
libtpu: 0.0.40
codegen_flags: <defaults>
</compile_context>

<pallas_src>
import functools

import jax
import jax.numpy as jnp
from jax import lax
from jax.experimental import pallas as pl
from jax.experimental.pallas import tpu as pltpu


_SQRT1_2 = 0.7071067811865476


def _erf(x):
    # Abramowitz & Stegun 7.1.26 polynomial, |err| <= 1.5e-7.  Uses only exp /
    # approx-reciprocal (EUP) + VPU ops -> guaranteed Mosaic lowering.
    a1, a2, a3, a4, a5 = (0.254829592, -0.284496736, 1.421413741,
                          -1.453152027, 1.061405429)
    p = 0.3275911
    ax = jnp.abs(x)
    t = pl.reciprocal(1.0 + p * ax, approx=True)       # EUP slot, frees VALU
    poly = ((((a5 * t + a4) * t + a3) * t + a2) * t + a1) * t
    y = 1.0 - poly * jnp.exp(-ax * ax)
    return jnp.where(x >= 0.0, y, -y)


def _gelu(x):
    # Exact (erf-based) GELU, matching torch.nn.GELU() default.
    return 0.5 * x * (1.0 + _erf(x * _SQRT1_2))


def _msdwffn_kernel(x_ref, m_ref, w1_ref, b1_ref, dww_ref, dwb_ref,
                    w2_ref, bo_ref, o_ref, *, Wp, HWp, groups):
    """One batch element: fc1+BN1+GELU -> per-group (multiscale dwconv +
    residual -> GELU -> BN2 -> partial fc2 accumulation) -> +BN3 bias.
    All BN folded into w1/b1/w2/bo.  Spatial axis is halo-padded, so no per-tap
    border masks are needed; only one halo-zeroing multiply of a1."""
    x = x_ref[0]                                            # (C, HWp) bf16

    # ---- fc1 (BN1 folded, bf16 MXU) + exact GELU + single halo-zeroing mask --
    z1 = jnp.dot(w1_ref[...], x, preferred_element_type=jnp.float32)
    a1 = _gelu(z1 + b1_ref[...]) * m_ref[...]               # (Hd, HWp) f32

    dww = dww_ref[...]                                      # (Hd, Kmax*Kmax) f32
    dwb = dwb_ref[...]                                      # (Hd, 1) f32

    out_acc = None
    # TODO(synk): lax.fori_loop(unroll=True) channel sub-chunking of this loop to
    # bound accumulator live ranges for very large Cg*HWp working sets.
    for (cs, ce, K) in groups:                              # static python unroll
        ag = a1[cs:ce, :]                                   # (Cg, HWp) f32
        P = K // 2
        center = P * K + P
        # residual merged with the center tap: ag*(1 + w_center) + bias
        acc = ag * (1.0 + dww[cs:ce, center:center + 1]) + dwb[cs:ce, :]
        for ka in range(K):
            for kb in range(K):
                di, dj = ka - P, kb - P
                if di == 0 and dj == 0:
                    continue
                tap = ka * K + kb
                wt = dww[cs:ce, tap:tap + 1]                # (Cg, 1)
                s = di * Wp + dj                            # flat spatial shift
                # shifted[p] = ag[p + s]; halo of a1 is zero, so no border mask,
                # and valid positions never read wrapped / lane-pad lanes.
                shifted = pltpu.roll(ag, shift=(-s) % HWp, axis=1)
                acc = acc + wt * shifted
        # ---- GELU -> BN2 -> partial fc2 (BN2/BN3 folded into w2f) -----------
        a2g = _gelu(acc).astype(w2_ref.dtype)               # (Cg, HWp) bf16
        contrib = jnp.dot(w2_ref[:, cs:ce], a2g,
                          preferred_element_type=jnp.float32)   # (C, HWp) f32
        out_acc = contrib if out_acc is None else out_acc + contrib

    o_ref[0] = out_acc + bo_ref[...]                        # lane-dense store


def _bn_fold(gamma, beta, mean, var, eps):
    s = gamma / jnp.sqrt(var + eps)
    return s, beta - mean * s


def _vmem_limit_bytes():
    try:
        cap = int(pltpu.get_tpu_info().vmem_capacity_bytes)
    except Exception:
        return 32 * 1024 * 1024
    if cap <= 64 * 1024 * 1024:
        # 64 MiB-VMEM parts (v7x-class): leave headroom for compiler temporaries.
        return max(32 * 1024 * 1024, cap * 5 // 8)
    return int(min(cap * 3 // 4, 100 * 1024 * 1024))


def msdwffn_forward(x, params, *, scale=(1, 3, 5, 7), eps=1e-5):
    """Fused MultiScaleDWFFN forward (inference-mode BatchNorm).

    x: (N, dim, H, W) float32, NCHW as in PyTorch.  Returns (N, dim, H, W)."""
    f32, bf16 = jnp.float32, jnp.bfloat16
    N, C, H, W = x.shape
    Hd = params['w1'].shape[0]
    n_sc = len(scale)

    # per-group channel counts, exactly as in MultiScaleDWConv.__init__
    ch0 = Hd - Hd // n_sc * (n_sc - 1)
    chans = [ch0] + [Hd // n_sc] * (n_sc - 1)
    bounds = []
    cs = 0
    for cg, K in zip(chans, scale):
        bounds.append((cs, cs + cg, int(K)))
        cs += cg
    assert cs == Hd
    Kmax = max(scale)
    P = Kmax // 2

    # ---- halo-padded, lane-padded spatial layout ------------------------------
    Hp, Wp = H + 2 * P, W + 2 * P
    HWv = Hp * Wp
    HWp = ((HWv + 127) // 128) * 128                   # lane-dense blocks

    # ---- fold the three BatchNorms into the 1x1 convs (once, host side) ------
    s1, b1 = _bn_fold(*params['bn1'], eps)             # (Hd,)
    s2, b2 = _bn_fold(*params['bn2'], eps)             # (Hd,)
    s3, b3 = _bn_fold(*params['bn3'], eps)             # (C,)
    w1 = params['w1'].reshape(Hd, C).astype(f32)
    w2 = params['w2'].reshape(C, Hd).astype(f32)
    w1f = (s1[:, None] * w1).astype(bf16)                          # (Hd, C)
    b1f = b1.reshape(Hd, 1).astype(f32)                            # (Hd, 1)
    w2f = ((s3[:, None] * w2) * s2[None, :]).astype(bf16)          # (C, Hd)
    boutf = (s3 * (w2 @ b2) + b3).reshape(C, 1).astype(f32)        # (C, 1)

    # ---- pack multi-scale depthwise weights into one (Hd, Kmax^2) table ------
    dww = jnp.zeros((Hd, Kmax * Kmax), dtype=f32)
    dwb = jnp.zeros((Hd,), dtype=f32)
    for g, (csg, ceg, K) in enumerate(bounds):
        wg = params['dw_w'][g].reshape(ceg - csg, K * K).astype(f32)
        dww = dww.at[csg:ceg, :K * K].set(wg)
        dwb = dwb.at[csg:ceg].set(params['dw_b'][g].astype(f32))
    dwb = dwb.reshape(Hd, 1)

    # ---- halo-pad + lane-pad the input; bf16 for the MXU / halved DMA --------
    x_pad = jnp.pad(x.astype(f32), ((0, 0), (0, 0), (P, P), (P, P)))
    x_pad = x_pad.reshape(N, C, HWv)
    if HWp != HWv:
        x_pad = jnp.pad(x_pad, ((0, 0), (0, 0), (0, HWp - HWv)))
    x_pad = x_pad.astype(bf16)

    # validity mask: 1.0 at interior (non-halo, non-lane-pad) positions
    pidx = jnp.arange(HWp, dtype=jnp.int32)
    r, c = pidx // Wp, pidx % Wp
    valid = (pidx < HWv) & (r >= P) & (r < P + H) & (c >= P) & (c < P + W)
    halo_mask = valid.astype(f32).reshape(1, HWp)

    kernel = functools.partial(_msdwffn_kernel, Wp=Wp, HWp=HWp,
                               groups=tuple(bounds))

    taps = sum((e - s_) * K * K for s_, e, K in bounds)
    cost = pl.CostEstimate(
        flops=int(N * HWp * (4 * Hd * C + 2 * taps + 12 * Hd)),
        transcendentals=int(2 * N * Hd * HWp),
        bytes_accessed=int(N * HWp * (2 * C + 4 * C)
                           + 2 * (Hd * C + C * Hd)
                           + 4 * (Hd * (Kmax * Kmax + 2) + 2 * C + HWp)),
    )

    out = pl.pallas_call(
        kernel,
        out_shape=jax.ShapeDtypeStruct((N, C, HWp), f32),
        grid_spec=pltpu.PrefetchScalarGridSpec(
            num_scalar_prefetch=0,
            grid=(N,),
            in_specs=[
                pl.BlockSpec((1, C, HWp), lambda n: (n, 0, 0)),    # x (bf16)
                pl.BlockSpec((1, HWp), lambda n: (0, 0)),          # halo mask
                pl.BlockSpec((Hd, C), lambda n: (0, 0)),           # fc1 weight (BN1 folded, bf16)
                pl.BlockSpec((Hd, 1), lambda n: (0, 0)),           # fc1 bias
                pl.BlockSpec((Hd, Kmax * Kmax), lambda n: (0, 0)), # dw weights
                pl.BlockSpec((Hd, 1), lambda n: (0, 0)),           # dw bias
                pl.BlockSpec((C, Hd), lambda n: (0, 0)),           # fc2 weight (BN2/BN3 folded, bf16)
                pl.BlockSpec((C, 1), lambda n: (0, 0)),            # output bias
            ],
            out_specs=pl.BlockSpec((1, C, HWp), lambda n: (n, 0, 0)),
        ),
        compiler_params=pltpu.CompilerParams(
            dimension_semantics=("parallel",),
            vmem_limit_bytes=_vmem_limit_bytes()),
        cost_estimate=cost,
    )(x_pad, halo_mask, w1f, b1f, dww, dwb, w2f, boutf)

    # drop lane pad, un-flatten, and strip the halo rows/cols
    out = out[:, :, :HWv].reshape(N, C, Hp, Wp)
    return out[:, :, P:P + H, P:P + W]


# ----------------------------- pure-JAX reference -----------------------------
def msdwffn_reference(x, params, *, scale=(1, 3, 5, 7), eps=1e-5):
    N, C, H, W = x.shape
    Hd = params['w1'].shape[0]
    hp = jax.lax.Precision.HIGHEST

    def bn(y, stats):
        gamma, beta, mean, var = stats
        s = gamma / jnp.sqrt(var + eps)
        return y * s.reshape(1, -1, 1, 1) + (beta - mean * s).reshape(1, -1, 1, 1)

    y = jnp.einsum('oc,nchw->nohw', params['w1'].reshape(Hd, C), x, precision=hp)
    y = jax.nn.gelu(bn(y, params['bn1']), approximate=False)

    outs, cs = [], 0
    for g, K in enumerate(scale):
        wg = params['dw_w'][g]                       # (Cg, 1, K, K)
        Cg = wg.shape[0]
        yg = y[:, cs:cs + Cg]
        og = lax.conv_general_dilated(
            yg, wg, window_strides=(1, 1),
            padding=[(K // 2, K // 2), (K // 2, K // 2)],
            dimension_numbers=('NCHW', 'OIHW', 'NCHW'),
            feature_group_count=Cg, precision=hp)
        outs.append(og + params['dw_b'][g].reshape(1, -1, 1, 1))
        cs += Cg
    y = jnp.concatenate(outs, axis=1) + y

    y = bn(jax.nn.gelu(y, approximate=False), params['bn2'])
    y = jnp.einsum('oc,nchw->nohw', params['w2'].reshape(C, Hd), y, precision=hp)
    return bn(y, params['bn3'])


if __name__ == "__main__":
    key = jax.random.PRNGKey(0)
    N, DIM, HID, H, W = 2, 16, 32, 16, 16
    SCALE = (1, 3, 5, 7)

    keys = jax.random.split(key, 16)
    it = iter(keys)

    def normal(k, shape, s):
        return s * jax.random.normal(k, shape, dtype=jnp.float32)

    def bn_params(k, c):
        k1, k2, k3, k4 = jax.random.split(k, 4)
        gamma = 1.0 + 0.1 * jax.random.normal(k1, (c,), dtype=jnp.float32)
        beta = 0.1 * jax.random.normal(k2, (c,), dtype=jnp.float32)
        mean = 0.1 * jax.random.normal(k3, (c,), dtype=jnp.float32)
        var = 0.6 + 0.3 * jax.random.uniform(k4, (c,), dtype=jnp.float32)
        return (gamma, beta, mean, var)

    n_sc = len(SCALE)
    ch0 = HID - HID // n_sc * (n_sc - 1)
    chans = [ch0] + [HID // n_sc] * (n_sc - 1)

    params = {
        'w1': normal(next(it), (HID, DIM, 1, 1), 0.25),
        'bn1': bn_params(next(it), HID),
        'dw_w': [normal(next(it), (cg, 1, K, K), 0.5 / K)
                 for cg, K in zip(chans, SCALE)],
        'dw_b': [normal(next(it), (cg,), 0.1) for cg in chans],
        'bn2': bn_params(next(it), HID),
        'w2': normal(next(it), (DIM, HID, 1, 1), 0.15),
        'bn3': bn_params(next(it), DIM),
    }

    x = jax.random.normal(next(it), (N, DIM, H, W), dtype=jnp.float32)

    y = msdwffn_forward(x, params, scale=SCALE)
    y = jax.block_until_ready(y)

    y_ref = msdwffn_reference(x, params, scale=SCALE)
    assert y.shape == (N, DIM, H, W)
    err = float(jnp.max(jnp.abs(y - y_ref)))
    # Tolerance accommodates bf16 MXU operands (~2^-9 relative input quantization
    # propagated through two matmuls) plus the erf polynomial / approx-reciprocal
    # error.  Structural errors (wrong shift direction, missing halo zeroing,
    # BN mis-folding) would be orders of magnitude larger (>= 0.3).
    assert err < 1e-1, f"mismatch vs reference: max abs err {err}"
    print("KERNEL_OK")
</pallas_src>

<mosaic_0001>
module attributes {stable_mosaic.version = 11 : i64} {
  func.func @_msdwffn_kernel(%arg0: i32, %arg1: memref<1x16x512xbf16, #tpu.memory_space<vmem>>, %arg2: memref<1x512xf32, #tpu.memory_space<vmem>>, %arg3: memref<32x16xbf16, #tpu.memory_space<vmem>>, %arg4: memref<32x1xf32, #tpu.memory_space<vmem>>, %arg5: memref<32x49xf32, #tpu.memory_space<vmem>>, %arg6: memref<32x1xf32, #tpu.memory_space<vmem>>, %arg7: memref<16x32xbf16, #tpu.memory_space<vmem>>, %arg8: memref<16x1xf32, #tpu.memory_space<vmem>>, %arg9: memref<1x16x512xf32, #tpu.memory_space<vmem>>) attributes {dimension_semantics = [#tpu.dimension_semantics<parallel>], iteration_bounds = array<i64: 2>, scalar_prefetch = 0 : i64, scratch_operands = 0 : i64, tpu.core_type = #tpu.core_type<tc>, window_params = [{transform_indices = @transform_0, window_bounds = array<i64: 1, 16, 512>}, {pipeline_mode = #tpu.pipeline_mode<synchronous>, transform_indices = @transform_1, window_bounds = array<i64: 1, 512>}, {pipeline_mode = #tpu.pipeline_mode<synchronous>, transform_indices = @transform_2, window_bounds = array<i64: 32, 16>}, {pipeline_mode = #tpu.pipeline_mode<synchronous>, transform_indices = @transform_3, window_bounds = array<i64: 32, 1>}, {pipeline_mode = #tpu.pipeline_mode<synchronous>, transform_indices = @transform_4, window_bounds = array<i64: 32, 49>}, {pipeline_mode = #tpu.pipeline_mode<synchronous>, transform_indices = @transform_5, window_bounds = array<i64: 32, 1>}, {pipeline_mode = #tpu.pipeline_mode<synchronous>, transform_indices = @transform_6, window_bounds = array<i64: 16, 32>}, {pipeline_mode = #tpu.pipeline_mode<synchronous>, transform_indices = @transform_7, window_bounds = array<i64: 16, 1>}, {transform_indices = @transform_8, window_bounds = array<i64: 1, 16, 512>}]} {
    %c0 = arith.constant 0 : index
    %c0_0 = arith.constant 0 : index
    %c0_1 = arith.constant 0 : index
    %0 = vector.load %arg1[%c0, %c0_0, %c0_1] : memref<1x16x512xbf16, #tpu.memory_space<vmem>>, vector<1x16x512xbf16>
    %1 = vector.shape_cast %0 : vector<1x16x512xbf16> to vector<16x512xbf16>
    %c0_2 = arith.constant 0 : index
    %c0_3 = arith.constant 0 : index
    %2 = vector.load %arg3[%c0_2, %c0_3] : memref<32x16xbf16, #tpu.memory_space<vmem>>, vector<32x16xbf16>
    %cst = arith.constant dense<0.000000e+00> : vector<32x512xf32>
    %3 = tpu.matmul %2, %1, %cst {dimension_numbers = #tpu.dot_dimension_numbers<[1], [0], [0], [1], [0, 0, 1, 1], [], []>} : vector<32x16xbf16>, vector<16x512xbf16>, vector<32x512xf32> -> vector<32x512xf32>
    %c0_4 = arith.constant 0 : index
    %c0_5 = arith.constant 0 : index
    %4 = vector.load %arg4[%c0_4, %c0_5] : memref<32x1xf32, #tpu.memory_space<vmem>>, vector<32x1xf32>
    %5 = vector.broadcast %4 : vector<32x1xf32> to vector<32x512xf32>
    %6 = arith.addf %3, %5 : vector<32x512xf32>
    %cst_6 = arith.constant 5.000000e-01 : f32
    %7 = vector.broadcast %cst_6 : f32 to vector<32x512xf32>
    %8 = arith.mulf %7, %6 : vector<32x512xf32>
    %cst_7 = arith.constant 0.707106769 : f32
    %9 = vector.broadcast %cst_7 : f32 to vector<32x512xf32>
    %10 = arith.mulf %6, %9 : vector<32x512xf32>
    %11 = math.absf %10 : vector<32x512xf32>
    %cst_8 = arith.constant 0.327591091 : f32
    %12 = vector.broadcast %cst_8 : f32 to vector<32x512xf32>
    %13 = arith.mulf %12, %11 : vector<32x512xf32>
    %cst_9 = arith.constant 1.000000e+00 : f32
    %14 = vector.broadcast %cst_9 : f32 to vector<32x512xf32>
    %15 = arith.addf %14, %13 : vector<32x512xf32>
    %16 = tpu.reciprocal %15 {approx = true} : vector<32x512xf32> -> vector<32x512xf32>
    %cst_10 = arith.constant 1.06140542 : f32
    %17 = vector.broadcast %cst_10 : f32 to vector<32x512xf32>
    %18 = arith.mulf %17, %16 : vector<32x512xf32>
    %cst_11 = arith.constant -1.45315206 : f32
    %19 = vector.broadcast %cst_11 : f32 to vector<32x512xf32>
    %20 = arith.addf %18, %19 : vector<32x512xf32>
    %21 = arith.mulf %20, %16 : vector<32x512xf32>
    %cst_12 = arith.constant 1.42141378 : f32
    %22 = vector.broadcast %cst_12 : f32 to vector<32x512xf32>
    %23 = arith.addf %21, %22 : vector<32x512xf32>
    %24 = arith.mulf %23, %16 : vector<32x512xf32>
    %cst_13 = arith.constant -0.284496725 : f32
    %25 = vector.broadcast %cst_13 : f32 to vector<32x512xf32>
    %26 = arith.addf %24, %25 : vector<32x512xf32>
    %27 = arith.mulf %26, %16 : vector<32x512xf32>
    %cst_14 = arith.constant 0.254829586 : f32
    %28 = vector.broadcast %cst_14 : f32 to vector<32x512xf32>
    %29 = arith.addf %27, %28 : vector<32x512xf32>
    %30 = arith.mulf %29, %16 : vector<32x512xf32>
    %cst_15 = arith.constant 0.000000e+00 : f32
    %31 = vector.broadcast %cst_15 : f32 to vector<32x512xf32>
    %32 = arith.subf %31, %11 : vector<32x512xf32>
    %33 = arith.mulf %32, %11 : vector<32x512xf32>
    %34 = math.exp %33 : vector<32x512xf32>
    %35 = arith.mulf %30, %34 : vector<32x512xf32>
    %cst_16 = arith.constant 1.000000e+00 : f32
    %36 = vector.broadcast %cst_16 : f32 to vector<32x512xf32>
    %37 = arith.subf %36, %35 : vector<32x512xf32>
    %cst_17 = arith.constant 0.000000e+00 : f32
    %38 = vector.broadcast %cst_17 : f32 to vector<32x512xf32>
    %39 = arith.cmpf oge, %10, %38 : vector<32x512xf32>
    %cst_18 = arith.constant 0.000000e+00 : f32
    %40 = vector.broadcast %cst_18 : f32 to vector<32x512xf32>
    %41 = arith.subf %40, %37 : vector<32x512xf32>
    %42 = arith.select %39, %37, %41 : vector<32x512xi1>, vector<32x512xf32>
    %cst_19 = arith.constant 1.000000e+00 : f32
    %43 = vector.broadcast %cst_19 : f32 to vector<32x512xf32>
    %44 = arith.addf %43, %42 : vector<32x512xf32>
    %45 = arith.mulf %8, %44 : vector<32x512xf32>
    %c0_20 = arith.constant 0 : index
    %c0_21 = arith.constant 0 : index
    %46 = vector.load %arg2[%c0_20, %c0_21] : memref<1x512xf32, #tpu.memory_space<vmem>>, vector<1x512xf32>
    %47 = vector.broadcast %46 : vector<1x512xf32> to vector<32x512xf32>
    %48 = arith.mulf %45, %47 : vector<32x512xf32>
    %c0_22 = arith.constant 0 : index
    %c0_23 = arith.constant 0 : index
    %49 = vector.load %arg5[%c0_22, %c0_23] : memref<32x49xf32, #tpu.memory_space<vmem>>, vector<32x49xf32>
    %c0_24 = arith.constant 0 : index
    %c0_25 = arith.constant 0 : index
    %50 = vector.load %arg6[%c0_24, %c0_25] : memref<32x1xf32, #tpu.memory_space<vmem>>, vector<32x1xf32>
    %51 = vector.extract_strided_slice %48 {offsets = [0, 0], sizes = [8, 512], strides = [1, 1]} : vector<32x512xf32> to vector<8x512xf32>
    %52 = vector.extract_strided_slice %49 {offsets = [0, 0], sizes = [8, 1], strides = [1, 1]} : vector<32x49xf32> to vector<8x1xf32>
    %cst_26 = arith.constant 1.000000e+00 : f32
    %53 = vector.broadcast %cst_26 : f32 to vector<8x1xf32>
    %54 = arith.addf %53, %52 : vector<8x1xf32>
    %55 = vector.broadcast %54 : vector<8x1xf32> to vector<8x512xf32>
    %56 = arith.mulf %51, %55 : vector<8x512xf32>
    %57 = vector.extract_strided_slice %50 {offsets = [0, 0], sizes = [8, 1], strides = [1, 1]} : vector<32x1xf32> to vector<8x1xf32>
    %58 = vector.broadcast %57 : vector<8x1xf32> to vector<8x512xf32>
    %59 = arith.addf %56, %58 : vector<8x512xf32>
    %cst_27 = arith.constant 5.000000e-01 : f32
    %60 = vector.broadcast %cst_27 : f32 to vector<8x512xf32>
    %61 = arith.mulf %60, %59 : vector<8x512xf32>
    %cst_28 = arith.constant 0.707106769 : f32
    %62 = vector.broadcast %cst_28 : f32 to vector<8x512xf32>
    %63 = arith.mulf %59, %62 : vector<8x512xf32>
    %64 = math.absf %63 : vector<8x512xf32>
    %cst_29 = arith.constant 0.327591091 : f32
    %65 = vector.broadcast %cst_29 : f32 to vector<8x512xf32>
    %66 = arith.mulf %65, %64 : vector<8x512xf32>
    %cst_30 = arith.constant 1.000000e+00 : f32
    %67 = vector.broadcast %cst_30 : f32 to vector<8x512xf32>
    %68 = arith.addf %67, %66 : vector<8x512xf32>
    %69 = tpu.reciprocal %68 {approx = true} : vector<8x512xf32> -> vector<8x512xf32>
    %cst_31 = arith.constant 1.06140542 : f32
    %70 = vector.broadcast %cst_31 : f32 to vector<8x512xf32>
    %71 = arith.mulf %70, %69 : vector<8x512xf32>
    %cst_32 = arith.constant -1.45315206 : f32
    %72 = vector.broadcast %cst_32 : f32 to vector<8x512xf32>
    %73 = arith.addf %71, %72 : vector<8x512xf32>
    %74 = arith.mulf %73, %69 : vector<8x512xf32>
    %cst_33 = arith.constant 1.42141378 : f32
    %75 = vector.broadcast %cst_33 : f32 to vector<8x512xf32>
    %76 = arith.addf %74, %75 : vector<8x512xf32>
    %77 = arith.mulf %76, %69 : vector<8x512xf32>
    %cst_34 = arith.constant -0.284496725 : f32
    %78 = vector.broadcast %cst_34 : f32 to vector<8x512xf32>
    %79 = arith.addf %77, %78 : vector<8x512xf32>
    %80 = arith.mulf %79, %69 : vector<8x512xf32>
    %cst_35 = arith.constant 0.254829586 : f32
    %81 = vector.broadcast %cst_35 : f32 to vector<8x512xf32>
    %82 = arith.addf %80, %81 : vector<8x512xf32>
    %83 = arith.mulf %82, %69 : vector<8x512xf32>
    %cst_36 = arith.constant 0.000000e+00 : f32
    %84 = vector.broadcast %cst_36 : f32 to vector<8x512xf32>
    %85 = arith.subf %84, %64 : vector<8x512xf32>
    %86 = arith.mulf %85, %64 : vector<8x512xf32>
    %87 = math.exp %86 : vector<8x512xf32>
    %88 = arith.mulf %83, %87 : vector<8x512xf32>
    %cst_37 = arith.constant 1.000000e+00 : f32
    %89 = vector.broadcast %cst_37 : f32 to vector<8x512xf32>
    %90 = arith.subf %89, %88 : vector<8x512xf32>
    %cst_38 = arith.constant 0.000000e+00 : f32
    %91 = vector.broadcast %cst_38 : f32 to vector<8x512xf32>
    %92 = arith.cmpf oge, %63, %91 : vector<8x512xf32>
    %cst_39 = arith.constant 0.000000e+00 : f32
    %93 = vector.broadcast %cst_39 : f32 to vector<8x512xf32>
    %94 = arith.subf %93, %90 : vector<8x512xf32>
    %95 = arith.select %92, %90, %94 : vector<8x512xi1>, vector<8x512xf32>
    %cst_40 = arith.constant 1.000000e+00 : f32
    %96 = vector.broadcast %cst_40 : f32 to vector<8x512xf32>
    %97 = arith.addf %96, %95 : vector<8x512xf32>
    %98 = arith.mulf %61, %97 : vector<8x512xf32>
    %99 = arith.truncf %98 : vector<8x512xf32> to vector<8x512xbf16>
    %c0_41 = arith.constant 0 : index
    %c0_42 = arith.constant 0 : index
    %100 = vector.load %arg7[%c0_41, %c0_42] : memref<16x32xbf16, #tpu.memory_space<vmem>>, vector<16x8xbf16>
    %cst_43 = arith.constant dense<0.000000e+00> : vector<16x512xf32>
    %101 = tpu.matmul %100, %99, %cst_43 {dimension_numbers = #tpu.dot_dimension_numbers<[1], [0], [0], [1], [0, 0, 1, 1], [], []>} : vector<16x8xbf16>, vector<8x512xbf16>, vector<16x512xf32> -> vector<16x512xf32>
    %102 = vector.extract_strided_slice %48 {offsets = [8, 0], sizes = [8, 512], strides = [1, 1]} : vector<32x512xf32> to vector<8x512xf32>
    %103 = vector.extract_strided_slice %49 {offsets = [8, 4], sizes = [8, 1], strides = [1, 1]} : vector<32x49xf32> to vector<8x1xf32>
    %cst_44 = arith.constant 1.000000e+00 : f32
    %104 = vector.broadcast %cst_44 : f32 to vector<8x1xf32>
    %105 = arith.addf %104, %103 : vector<8x1xf32>
    %106 = vector.broadcast %105 : vector<8x1xf32> to vector<8x512xf32>
    %107 = arith.mulf %102, %106 : vector<8x512xf32>
    %108 = vector.extract_strided_slice %50 {offsets = [8, 0], sizes = [8, 1], strides = [1, 1]} : vector<32x1xf32> to vector<8x1xf32>
    %109 = vector.broadcast %108 : vector<8x1xf32> to vector<8x512xf32>
    %110 = arith.addf %107, %109 : vector<8x512xf32>
    %111 = vector.extract_strided_slice %49 {offsets = [8, 0], sizes = [8, 1], strides = [1, 1]} : vector<32x49xf32> to vector<8x1xf32>
    %c23_i32 = arith.constant 23 : i32
    %112 = tpu.dynamic_rotate %102 by %c23_i32 dim 1 : vector<8x512xf32>, i32 -> vector<8x512xf32>
    %113 = vector.broadcast %111 : vector<8x1xf32> to vector<8x512xf32>
    %114 = arith.mulf %113, %112 : vector<8x512xf32>
    %115 = arith.addf %110, %114 : vector<8x512xf32>
    %116 = vector.extract_strided_slice %49 {offsets = [8, 1], sizes = [8, 1], strides = [1, 1]} : vector<32x49xf32> to vector<8x1xf32>
    %c22_i32 = arith.constant 22 : i32
    %117 = tpu.dynamic_rotate %102 by %c22_i32 dim 1 : vector<8x512xf32>, i32 -> vector<8x512xf32>
    %118 = vector.broadcast %116 : vector<8x1xf32> to vector<8x512xf32>
    %119 = arith.mulf %118, %117 : vector<8x512xf32>
    %120 = arith.addf %115, %119 : vector<8x512xf32>
    %121 = vector.extract_strided_slice %49 {offsets = [8, 2], sizes = [8, 1], strides = [1, 1]} : vector<32x49xf32> to vector<8x1xf32>
    %c21_i32 = arith.constant 21 : i32
    %122 = tpu.dynamic_rotate %102 by %c21_i32 dim 1 : vector<8x512xf32>, i32 -> vector<8x512xf32>
    %123 = vector.broadcast %121 : vector<8x1xf32> to vector<8x512xf32>
    %124 = arith.mulf %123, %122 : vector<8x512xf32>
    %125 = arith.addf %120, %124 : vector<8x512xf32>
    %126 = vector.extract_strided_slice %49 {offsets = [8, 3], sizes = [8, 1], strides = [1, 1]} : vector<32x49xf32> to vector<8x1xf32>
    %c1_i32 = arith.constant 1 : i32
    %127 = tpu.dynamic_rotate %102 by %c1_i32 dim 1 : vector<8x512xf32>, i32 -> vector<8x512xf32>
    %128 = vector.broadcast %126 : vector<8x1xf32> to vector<8x512xf32>
    %129 = arith.mulf %128, %127 : vector<8x512xf32>
    %130 = arith.addf %125, %129 : vector<8x512xf32>
    %131 = vector.extract_strided_slice %49 {offsets = [8, 5], sizes = [8, 1], strides = [1, 1]} : vector<32x49xf32> to vector<8x1xf32>
    %c511_i32 = arith.constant 511 : i32
    %132 = tpu.dynamic_rotate %102 by %c511_i32 dim 1 : vector<8x512xf32>, i32 -> vector<8x512xf32>
    %133 = vector.broadcast %131 : vector<8x1xf32> to vector<8x512xf32>
    %134 = arith.mulf %133, %132 : vector<8x512xf32>
    %135 = arith.addf %130, %134 : vector<8x512xf32>
    %136 = vector.extract_strided_slice %49 {offsets = [8, 6], sizes = [8, 1], strides = [1, 1]} : vector<32x49xf32> to vector<8x1xf32>
    %c491_i32 = arith.constant 491 : i32
    %137 = tpu.dynamic_rotate %102 by %c491_i32 dim 1 : vector<8x512xf32>, i32 -> vector<8x512xf32>
    %138 = vector.broadcast %136 : vector<8x1xf32> to vector<8x512xf32>
    %139 = arith.mulf %138, %137 : vector<8x512xf32>
    %140 = arith.addf %135, %139 : vector<8x512xf32>
    %141 = vector.extract_strided_slice %49 {offsets = [8, 7], sizes = [8, 1], strides = [1, 1]} : vector<32x49xf32> to vector<8x1xf32>
    %c490_i32 = arith.constant 490 : i32
    %142 = tpu.dynamic_rotate %102 by %c490_i32 dim 1 : vector<8x512xf32>, i32 -> vector<8x512xf32>
    %143 = vector.broadcast %141 : vector<8x1xf32> to vector<8x512xf32>
    %144 = arith.mulf %143, %142 : vector<8x512xf32>
    %145 = arith.addf %140, %144 : vector<8x512xf32>
    %146 = vector.extract_strided_slice %49 {offsets = [8, 8], sizes = [8, 1], strides = [1, 1]} : vector<32x49xf32> to vector<8x1xf32>
    %c489_i32 = arith.constant 489 : i32
    %147 = tpu.dynamic_rotate %102 by %c489_i32 dim 1 : vector<8x512xf32>, i32 -> vector<8x512xf32>
    %148 = vector.broadcast %146 : vector<8x1xf32> to vector<8x512xf32>
    %149 = arith.mulf %148, %147 : vector<8x512xf32>
    %150 = arith.addf %145, %149 : vector<8x512xf32>
    %cst_45 = arith.constant 5.000000e-01 : f32
    %151 = vector.broadcast %cst_45 : f32 to vector<8x512xf32>
    %152 = arith.mulf %151, %150 : vector<8x512xf32>
    %cst_46 = arith.constant 0.707106769 : f32
    %153 = vector.broadcast %cst_46 : f32 to vector<8x512xf32>
    %154 = arith.mulf %150, %153 : vector<8x512xf32>
    %155 = math.absf %154 : vector<8x512xf32>
    %cst_47 = arith.constant 0.327591091 : f32
    %156 = vector.broadcast %cst_47 : f32 to vector<8x512xf32>
    %157 = arith.mulf %156, %155 : vector<8x512xf32>
    %cst_48 = arith.constant 1.000000e+00 : f32
    %158 = vector.broadcast %cst_48 : f32 to vector<8x512xf32>
    %159 = arith.addf %158, %157 : vector<8x512xf32>
    %160 = tpu.reciprocal %159 {approx = true} : vector<8x512xf32> -> vector<8x512xf32>
    %cst_49 = arith.constant 1.06140542 : f32
    %161 = vector.broadcast %cst_49 : f32 to vector<8x512xf32>
    %162 = arith.mulf %161, %160 : vector<8x512xf32>
    %cst_50 = arith.constant -1.45315206 : f32
    %163 = vector.broadcast %cst_50 : f32 to vector<8x512xf32>
    %164 = arith.addf %162, %163 : vector<8x512xf32>
    %165 = arith.mulf %164, %160 : vector<8x512xf32>
    %cst_51 = arith.constant 1.42141378 : f32
    %166 = vector.broadcast %cst_51 : f32 to vector<8x512xf32>
    %167 = arith.addf %165, %166 : vector<8x512xf32>
    %168 = arith.mulf %167, %160 : vector<8x512xf32>
    %cst_52 = arith.constant -0.284496725 : f32
    %169 = vector.broadcast %cst_52 : f32 to vector<8x512xf32>
    %170 = arith.addf %168, %169 : vector<8x512xf32>
    %171 = arith.mulf %170, %160 : vector<8x512xf32>
    %cst_53 = arith.constant 0.254829586 : f32
    %172 = vector.broadcast %cst_53 : f32 to vector<8x512xf32>
    %173 = arith.addf %171, %172 : vector<8x512xf32>
    %174 = arith.mulf %173, %160 : vector<8x512xf32>
    %cst_54 = arith.constant 0.000000e+00 : f32
    %175 = vector.broadcast %cst_54 : f32 to vector<8x512xf32>
    %176 = arith.subf %175, %155 : vector<8x512xf32>
    %177 = arith.mulf %176, %155 : vector<8x512xf32>
    %178 = math.exp %177 : vector<8x512xf32>
    %179 = arith.mulf %174, %178 : vector<8x512xf32>
    %cst_55 = arith.constant 1.000000e+00 : f32
    %180 = vector.broadcast %cst_55 : f32 to vector<8x512xf32>
    %181 = arith.subf %180, %179 : vector<8x512xf32>
    %cst_56 = arith.constant 0.000000e+00 : f32
    %182 = vector.broadcast %cst_56 : f32 to vector<8x512xf32>
    %183 = arith.cmpf oge, %154, %182 : vector<8x512xf32>
    %cst_57 = arith.constant 0.000000e+00 : f32
    %184 = vector.broadcast %cst_57 : f32 to vector<8x512xf32>
    %185 = arith.subf %184, %181 : vector<8x512xf32>
    %186 = arith.select %183, %181, %185 : vector<8x512xi1>, vector<8x512xf32>
    %cst_58 = arith.constant 1.000000e+00 : f32
    %187 = vector.broadcast %cst_58 : f32 to vector<8x512xf32>
    %188 = arith.addf %187, %186 : vector<8x512xf32>
    %189 = arith.mulf %152, %188 : vector<8x512xf32>
    %190 = arith.truncf %189 : vector<8x512xf32> to vector<8x512xbf16>
    %c0_59 = arith.constant 0 : index
    %c8 = arith.constant 8 : index
    %191 = vector.load %arg7[%c0_59, %c8] : memref<16x32xbf16, #tpu.memory_space<vmem>>, vector<16x8xbf16>
    %cst_60 = arith.constant dense<0.000000e+00> : vector<16x512xf32>
    %192 = tpu.matmul %191, %190, %cst_60 {dimension_numbers = #tpu.dot_dimension_numbers<[1], [0], [0], [1], [0, 0, 1, 1], [], []>} : vector<16x8xbf16>, vector<8x512xbf16>, vector<16x512xf32> -> vector<16x512xf32>
    %193 = arith.addf %101, %192 : vector<16x512xf32>
    %194 = vector.extract_strided_slice %48 {offsets = [16, 0], sizes = [8, 512], strides = [1, 1]} : vector<32x512xf32> to vector<8x512xf32>
    %195 = vector.extract_strided_slice %49 {offsets = [16, 12], sizes = [8, 1], strides = [1, 1]} : vector<32x49xf32> to vector<8x1xf32>
    %cst_61 = arith.constant 1.000000e+00 : f32
    %196 = vector.broadcast %cst_61 : f32 to vector<8x1xf32>
    %197 = arith.addf %196, %195 : vector<8x1xf32>
    %198 = vector.broadcast %197 : vector<8x1xf32> to vector<8x512xf32>
    %199 = arith.mulf %194, %198 : vector<8x512xf32>
    %200 = vector.extract_strided_slice %50 {offsets = [16, 0], sizes = [8, 1], strides = [1, 1]} : vector<32x1xf32> to vector<8x1xf32>
    %201 = vector.broadcast %200 : vector<8x1xf32> to vector<8x512xf32>
    %202 = arith.addf %199, %201 : vector<8x512xf32>
    %203 = vector.extract_strided_slice %49 {offsets = [16, 0], sizes = [8, 1], strides = [1, 1]} : vector<32x49xf32> to vector<8x1xf32>
    %c46_i32 = arith.constant 46 : i32
    %204 = tpu.dynamic_rotate %194 by %c46_i32 dim 1 : vector<8x512xf32>, i32 -> vector<8x512xf32>
    %205 = vector.broadcast %203 : vector<8x1xf32> to vector<8x512xf32>
    %206 = arith.mulf %205, %204 : vector<8x512xf32>
    %207 = arith.addf %202, %206 : vector<8x512xf32>
    %208 = vector.extract_strided_slice %49 {offsets = [16, 1], sizes = [8, 1], strides = [1, 1]} : vector<32x49xf32> to vector<8x1xf32>
    %c45_i32 = arith.constant 45 : i32
    %209 = tpu.dynamic_rotate %194 by %c45_i32 dim 1 : vector<8x512xf32>, i32 -> vector<8x512xf32>
    %210 = vector.broadcast %208 : vector<8x1xf32> to vector<8x512xf32>
    %211 = arith.mulf %210, %209 : vector<8x512xf32>
    %212 = arith.addf %207, %211 : vector<8x512xf32>
    %213 = vector.extract_strided_slice %49 {offsets = [16, 2], sizes = [8, 1], strides = [1, 1]} : vector<32x49xf32> to vector<8x1xf32>
    %c44_i32 = arith.constant 44 : i32
    %214 = tpu.dynamic_rotate %194 by %c44_i32 dim 1 : vector<8x512xf32>, i32 -> vector<8x512xf32>
    %215 = vector.broadcast %213 : vector<8x1xf32> to vector<8x512xf32>
    %216 = arith.mulf %215, %214 : vector<8x512xf32>
    %217 = arith.addf %212, %216 : vector<8x512xf32>
    %218 = vector.extract_strided_slice %49 {offsets = [16, 3], sizes = [8, 1], strides = [1, 1]} : vector<32x49xf32> to vector<8x1xf32>
    %c43_i32 = arith.constant 43 : i32
    %219 = tpu.dynamic_rotate %194 by %c43_i32 dim 1 : vector<8x512xf32>, i32 -> vector<8x512xf32>
    %220 = vector.broadcast %218 : vector<8x1xf32> to vector<8x512xf32>
    %221 = arith.mulf %220, %219 : vector<8x512xf32>
    %222 = arith.addf %217, %221 : vector<8x512xf32>
    %223 = vector.extract_strided_slice %49 {offsets = [16, 4], sizes = [8, 1], strides = [1, 1]} : vector<32x49xf32> to vector<8x1xf32>
    %c42_i32 = arith.constant 42 : i32
    %224 = tpu.dynamic_rotate %194 by %c42_i32 dim 1 : vector<8x512xf32>, i32 -> vector<8x512xf32>
    %225 = vector.broadcast %223 : vector<8x1xf32> to vector<8x512xf32>
    %226 = arith.mulf %225, %224 : vector<8x512xf32>
    %227 = arith.addf %222, %226 : vector<8x512xf32>
    %228 = vector.extract_strided_slice %49 {offsets = [16, 5], sizes = [8, 1], strides = [1, 1]} : vector<32x49xf32> to vector<8x1xf32>
    %c24_i32 = arith.constant 24 : i32
    %229 = tpu.dynamic_rotate %194 by %c24_i32 dim 1 : vector<8x512xf32>, i32 -> vector<8x512xf32>
    %230 = vector.broadcast %228 : vector<8x1xf32> to vector<8x512xf32>
    %231 = arith.mulf %230, %229 : vector<8x512xf32>
    %232 = arith.addf %227, %231 : vector<8x512xf32>
    %233 = vector.extract_strided_slice %49 {offsets = [16, 6], sizes = [8, 1], strides = [1, 1]} : vector<32x49xf32> to vector<8x1xf32>
    %c23_i32_62 = arith.constant 23 : i32
    %234 = tpu.dynamic_rotate %194 by %c23_i32_62 dim 1 : vector<8x512xf32>, i32 -> vector<8x512xf32>
    %235 = vector.broadcast %233 : vector<8x1xf32> to vector<8x512xf32>
    %236 = arith.mulf %235, %234 : vector<8x512xf32>
    %237 = arith.addf %232, %236 : vector<8x512xf32>
    %238 = vector.extract_strided_slice %49 {offsets = [16, 7], sizes = [8, 1], strides = [1, 1]} : vector<32x49xf32> to vector<8x1xf32>
    %c22_i32_63 = arith.constant 22 : i32
    %239 = tpu.dynamic_rotate %194 by %c22_i32_63 dim 1 : vector<8x512xf32>, i32 -> vector<8x512xf32>
    %240 = vector.broadcast %238 : vector<8x1xf32> to vector<8x512xf32>
    %241 = arith.mulf %240, %239 : vector<8x512xf32>
    %242 = arith.addf %237, %241 : vector<8x512xf32>
    %243 = vector.extract_strided_slice %49 {offsets = [16, 8], sizes = [8, 1], strides = [1, 1]} : vector<32x49xf32> to vector<8x1xf32>
    %c21_i32_64 = arith.constant 21 : i32
    %244 = tpu.dynamic_rotate %194 by %c21_i32_64 dim 1 : vector<8x512xf32>, i32 -> vector<8x512xf32>
    %245 = vector.broadcast %243 : vector<8x1xf32> to vector<8x512xf32>
    %246 = arith.mulf %245, %244 : vector<8x512xf32>
    %247 = arith.addf %242, %246 : vector<8x512xf32>
    %248 = vector.extract_strided_slice %49 {offsets = [16, 9], sizes = [8, 1], strides = [1, 1]} : vector<32x49xf32> to vector<8x1xf32>
    %c20_i32 = arith.constant 20 : i32
    %249 = tpu.dynamic_rotate %194 by %c20_i32 dim 1 : vector<8x512xf32>, i32 -> vector<8x512xf32>
    %250 = vector.broadcast %248 : vector<8x1xf32> to vector<8x512xf32>
    %251 = arith.mulf %250, %249 : vector<8x512xf32>
    %252 = arith.addf %247, %251 : vector<8x512xf32>
    %253 = vector.extract_strided_slice %49 {offsets = [16, 10], sizes = [8, 1], strides = [1, 1]} : vector<32x49xf32> to vector<8x1xf32>
    %c2_i32 = arith.constant 2 : i32
    %254 = tpu.dynamic_rotate %194 by %c2_i32 dim 1 : vector<8x512xf32>, i32 -> vector<8x512xf32>
    %255 = vector.broadcast %253 : vector<8x1xf32> to vector<8x512xf32>
    %256 = arith.mulf %255, %254 : vector<8x512xf32>
    %257 = arith.addf %252, %256 : vector<8x512xf32>
    %258 = vector.extract_strided_slice %49 {offsets = [16, 11], sizes = [8, 1], strides = [1, 1]} : vector<32x49xf32> to vector<8x1xf32>
    %c1_i32_65 = arith.constant 1 : i32
    %259 = tpu.dynamic_rotate %194 by %c1_i32_65 dim 1 : vector<8x512xf32>, i32 -> vector<8x512xf32>
    %260 = vector.broadcast %258 : vector<8x1xf32> to vector<8x512xf32>
    %261 = arith.mulf %260, %259 : vector<8x512xf32>
    %262 = arith.addf %257, %261 : vector<8x512xf32>
    %263 = vector.extract_strided_slice %49 {offsets = [16, 13], sizes = [8, 1], strides = [1, 1]} : vector<32x49xf32> to vector<8x1xf32>
    %c511_i32_66 = arith.constant 511 : i32
    %264 = tpu.dynamic_rotate %194 by %c511_i32_66 dim 1 : vector<8x512xf32>, i32 -> vector<8x512xf32>
    %265 = vector.broadcast %263 : vector<8x1xf32> to vector<8x512xf32>
    %266 = arith.mulf %265, %264 : vector<8x512xf32>
    %267 = arith.addf %262, %266 : vector<8x512xf32>
    %268 = vector.extract_strided_slice %49 {offsets = [16, 14], sizes = [8, 1], strides = [1, 1]} : vector<32x49xf32> to vector<8x1xf32>
    %c510_i32 = arith.constant 510 : i32
    %269 = tpu.dynamic_rotate %194 by %c510_i32 dim 1 : vector<8x512xf32>, i32 -> vector<8x512xf32>
    %270 = vector.broadcast %268 : vector<8x1xf32> to vector<8x512xf32>
    %271 = arith.mulf %270, %269 : vector<8x512xf32>
    %272 = arith.addf %267, %271 : vector<8x512xf32>
    %273 = vector.extract_strided_slice %49 {offsets = [16, 15], sizes = [8, 1], strides = [1, 1]} : vector<32x49xf32> to vector<8x1xf32>
    %c492_i32 = arith.constant 492 : i32
    %274 = tpu.dynamic_rotate %194 by %c492_i32 dim 1 : vector<8x512xf32>, i32 -> vector<8x512xf32>
    %275 = vector.broadcast %273 : vector<8x1xf32> to vector<8x512xf32>
    %276 = arith.mulf %275, %274 : vector<8x512xf32>
    %277 = arith.addf %272, %276 : vector<8x512xf32>
    %278 = vector.extract_strided_slice %49 {offsets = [16, 16], sizes = [8, 1], strides = [1, 1]} : vector<32x49xf32> to vector<8x1xf32>
    %c491_i32_67 = arith.constant 491 : i32
    %279 = tpu.dynamic_rotate %194 by %c491_i32_67 dim 1 : vector<8x512xf32>, i32 -> vector<8x512xf32>
    %280 = vector.broadcast %278 : vector<8x1xf32> to vector<8x512xf32>
    %281 = arith.mulf %280, %279 : vector<8x512xf32>
    %282 = arith.addf %277, %281 : vector<8x512xf32>
    %283 = vector.extract_strided_slice %49 {offsets = [16, 17], sizes = [8, 1], strides = [1, 1]} : vector<32x49xf32> to vector<8x1xf32>
    %c490_i32_68 = arith.constant 490 : i32
    %284 = tpu.dynamic_rotate %194 by %c490_i32_68 dim 1 : vector<8x512xf32>, i32 -> vector<8x512xf32>
    %285 = vector.broadcast %283 : vector<8x1xf32> to vector<8x512xf32>
    %286 = arith.mulf %285, %284 : vector<8x512xf32>
    %287 = arith.addf %282, %286 : vector<8x512xf32>
    %288 = vector.extract_strided_slice %49 {offsets = [16, 18], sizes = [8, 1], strides = [1, 1]} : vector<32x49xf32> to vector<8x1xf32>
    %c489_i32_69 = arith.constant 489 : i32
    %289 = tpu.dynamic_rotate %194 by %c489_i32_69 dim 1 : vector<8x512xf32>, i32 -> vector<8x512xf32>
    %290 = vector.broadcast %288 : vector<8x1xf32> to vector<8x512xf32>
    %291 = arith.mulf %290, %289 : vector<8x512xf32>
    %292 = arith.addf %287, %291 : vector<8x512xf32>
    %293 = vector.extract_strided_slice %49 {offsets = [16, 19], sizes = [8, 1], strides = [1, 1]} : vector<32x49xf32> to vector<8x1xf32>
    %c488_i32 = arith.constant 488 : i32
    %294 = tpu.dynamic_rotate %194 by %c488_i32 dim 1 : vector<8x512xf32>, i32 -> vector<8x512xf32>
    %295 = vector.broadcast %293 : vector<8x1xf32> to vector<8x512xf32>
    %296 = arith.mulf %295, %294 : vector<8x512xf32>
    %297 = arith.addf %292, %296 : vector<8x512xf32>
    %298 = vector.extract_strided_slice %49 {offsets = [16, 20], sizes = [8, 1], strides = [1, 1]} : vector<32x49xf32> to vector<8x1xf32>
    %c470_i32 = arith.constant 470 : i32
    %299 = tpu.dynamic_rotate %194 by %c470_i32 dim 1 : vector<8x512xf32>, i32 -> vector<8x512xf32>
    %300 = vector.broadcast %298 : vector<8x1xf32> to vector<8x512xf32>
    %301 = arith.mulf %300, %299 : vector<8x512xf32>
    %302 = arith.addf %297, %301 : vector<8x512xf32>
    %303 = vector.extract_strided_slice %49 {offsets = [16, 21], sizes = [8, 1], strides = [1, 1]} : vector<32x49xf32> to vector<8x1xf32>
    %c469_i32 = arith.constant 469 : i32
    %304 = tpu.dynamic_rotate %194 by %c469_i32 dim 1 : vector<8x512xf32>, i32 -> vector<8x512xf32>
    %305 = vector.broadcast %303 : vector<8x1xf32> to vector<8x512xf32>
    %306 = arith.mulf %305, %304 : vector<8x512xf32>
    %307 = arith.addf %302, %306 : vector<8x512xf32>
    %308 = vector.extract_strided_slice %49 {offsets = [16, 22], sizes = [8, 1], strides = [1, 1]} : vector<32x49xf32> to vector<8x1xf32>
    %c468_i32 = arith.constant 468 : i32
    %309 = tpu.dynamic_rotate %194 by %c468_i32 dim 1 : vector<8x512xf32>, i32 -> vector<8x512xf32>
    %310 = vector.broadcast %308 : vector<8x1xf32> to vector<8x512xf32>
    %311 = arith.mulf %310, %309 : vector<8x512xf32>
    %312 = arith.addf %307, %311 : vector<8x512xf32>
    %313 = vector.extract_strided_slice %49 {offsets = [16, 23], sizes = [8, 1], strides = [1, 1]} : vector<32x49xf32> to vector<8x1xf32>
    %c467_i32 = arith.constant 467 : i32
    %314 = tpu.dynamic_rotate %194 by %c467_i32 dim 1 : vector<8x512xf32>, i32 -> vector<8x512xf32>
    %315 = vector.broadcast %313 : vector<8x1xf32> to vector<8x512xf32>
    %316 = arith.mulf %315, %314 : vector<8x512xf32>
    %317 = arith.addf %312, %316 : vector<8x512xf32>
    %318 = vector.extract_strided_slice %49 {offsets = [16, 24], sizes = [8, 1], strides = [1, 1]} : vector<32x49xf32> to vector<8x1xf32>
    %c466_i32 = arith.constant 466 : i32
    %319 = tpu.dynamic_rotate %194 by %c466_i32 dim 1 : vector<8x512xf32>, i32 -> vector<8x512xf32>
    %320 = vector.broadcast %318 : vector<8x1xf32> to vector<8x512xf32>
    %321 = arith.mulf %320, %319 : vector<8x512xf32>
    %322 = arith.addf %317, %321 : vector<8x512xf32>
    %cst_70 = arith.constant 5.000000e-01 : f32
    %323 = vector.broadcast %cst_70 : f32 to vector<8x512xf32>
    %324 = arith.mulf %323, %322 : vector<8x512xf32>
    %cst_71 = arith.constant 0.707106769 : f32
    %325 = vector.broadcast %cst_71 : f32 to vector<8x512xf32>
    %326 = arith.mulf %322, %325 : vector<8x512xf32>
    %327 = math.absf %326 : vector<8x512xf32>
    %cst_72 = arith.constant 0.327591091 : f32
    %328 = vector.broadcast %cst_72 : f32 to vector<8x512xf32>
    %329 = arith.mulf %328, %327 : vector<8x512xf32>
    %cst_73 = arith.constant 1.000000e+00 : f32
    %330 = vector.broadcast %cst_73 : f32 to vector<8x512xf32>
    %331 = arith.addf %330, %329 : vector<8x512xf32>
    %332 = tpu.reciprocal %331 {approx = true} : vector<8x512xf32> -> vector<8x512xf32>
    %cst_74 = arith.constant 1.06140542 : f32
    %333 = vector.broadcast %cst_74 : f32 to vector<8x512xf32>
    %334 = arith.mulf %333, %332 : vector<8x512xf32>
    %cst_75 = arith.constant -1.45315206 : f32
    %335 = vector.broadcast %cst_75 : f32 to vector<8x512xf32>
    %336 = arith.addf %334, %335 : vector<8x512xf32>
    %337 = arith.mulf %336, %332 : vector<8x512xf32>
    %cst_76 = arith.constant 1.42141378 : f32
    %338 = vector.broadcast %cst_76 : f32 to vector<8x512xf32>
    %339 = arith.addf %337, %338 : vector<8x512xf32>
    %340 = arith.mulf %339, %332 : vector<8x512xf32>
    %cst_77 = arith.constant -0.284496725 : f32
    %341 = vector.broadcast %cst_77 : f32 to vector<8x512xf32>
    %342 = arith.addf %340, %341 : vector<8x512xf32>
    %343 = arith.mulf %342, %332 : vector<8x512xf32>
    %cst_78 = arith.constant 0.254829586 : f32
    %344 = vector.broadcast %cst_78 : f32 to vector<8x512xf32>
    %345 = arith.addf %343, %344 : vector<8x512xf32>
    %346 = arith.mulf %345, %332 : vector<8x512xf32>
    %cst_79 = arith.constant 0.000000e+00 : f32
    %347 = vector.broadcast %cst_79 : f32 to vector<8x512xf32>
    %348 = arith.subf %347, %327 : vector<8x512xf32>
    %349 = arith.mulf %348, %327 : vector<8x512xf32>
    %350 = math.exp %349 : vector<8x512xf32>
    %351 = arith.mulf %346, %350 : vector<8x512xf32>
    %cst_80 = arith.constant 1.000000e+00 : f32
    %352 = vector.broadcast %cst_80 : f32 to vector<8x512xf32>
    %353 = arith.subf %352, %351 : vector<8x512xf32>
    %cst_81 = arith.constant 0.000000e+00 : f32
    %354 = vector.broadcast %cst_81 : f32 to vector<8x512xf32>
    %355 = arith.cmpf oge, %326, %354 : vector<8x512xf32>
    %cst_82 = arith.constant 0.000000e+00 : f32
    %356 = vector.broadcast %cst_82 : f32 to vector<8x512xf32>
    %357 = arith.subf %356, %353 : vector<8x512xf32>
    %358 = arith.select %355, %353, %357 : vector<8x512xi1>, vector<8x512xf32>
    %cst_83 = arith.constant 1.000000e+00 : f32
    %359 = vector.broadcast %cst_83 : f32 to vector<8x512xf32>
    %360 = arith.addf %359, %358 : vector<8x512xf32>
    %361 = arith.mulf %324, %360 : vector<8x512xf32>
    %362 = arith.truncf %361 : vector<8x512xf32> to vector<8x512xbf16>
    %c0_84 = arith.constant 0 : index
    %c16 = arith.constant 16 : index
    %363 = vector.load %arg7[%c0_84, %c16] : memref<16x32xbf16, #tpu.memory_space<vmem>>, vector<16x8xbf16>
    %cst_85 = arith.constant dense<0.000000e+00> : vector<16x512xf32>
    %364 = tpu.matmul %363, %362, %cst_85 {dimension_numbers = #tpu.dot_dimension_numbers<[1], [0], [0], [1], [0, 0, 1, 1], [], []>} : vector<16x8xbf16>, vector<8x512xbf16>, vector<16x512xf32> -> vector<16x512xf32>
    %365 = arith.addf %193, %364 : vector<16x512xf32>
    %366 = vector.extract_strided_slice %48 {offsets = [24, 0], sizes = [8, 512], strides = [1, 1]} : vector<32x512xf32> to vector<8x512xf32>
    %367 = vector.extract_strided_slice %49 {offsets = [24, 24], sizes = [8, 1], strides = [1, 1]} : vector<32x49xf32> to vector<8x1xf32>
    %cst_86 = arith.constant 1.000000e+00 : f32
    %368 = vector.broadcast %cst_86 : f32 to vector<8x1xf32>
    %369 = arith.addf %368, %367 : vector<8x1xf32>
    %370 = vector.broadcast %369 : vector<8x1xf32> to vector<8x512xf32>
    %371 = arith.mulf %366, %370 : vector<8x512xf32>
    %372 = vector.extract_strided_slice %50 {offsets = [24, 0], sizes = [8, 1], strides = [1, 1]} : vector<32x1xf32> to vector<8x1xf32>
    %373 = vector.broadcast %372 : vector<8x1xf32> to vector<8x512xf32>
    %374 = arith.addf %371, %373 : vector<8x512xf32>
    %375 = vector.extract_strided_slice %49 {offsets = [24, 0], sizes = [8, 1], strides = [1, 1]} : vector<32x49xf32> to vector<8x1xf32>
    %c69_i32 = arith.constant 69 : i32
    %376 = tpu.dynamic_rotate %366 by %c69_i32 dim 1 : vector<8x512xf32>, i32 -> vector<8x512xf32>
    %377 = vector.broadcast %375 : vector<8x1xf32> to vector<8x512xf32>
    %378 = arith.mulf %377, %376 : vector<8x512xf32>
    %379 = arith.addf %374, %378 : vector<8x512xf32>
    %380 = vector.extract_strided_slice %49 {offsets = [24, 1], sizes = [8, 1], strides = [1, 1]} : vector<32x49xf32> to vector<8x1xf32>
    %c68_i32 = arith.constant 68 : i32
    %381 = tpu.dynamic_rotate %366 by %c68_i32 dim 1 : vector<8x512xf32>, i32 -> vector<8x512xf32>
    %382 = vector.broadcast %380 : vector<8x1xf32> to vector<8x512xf32>
    %383 = arith.mulf %382, %381 : vector<8x512xf32>
    %384 = arith.addf %379, %383 : vector<8x512xf32>
    %385 = vector.extract_strided_slice %49 {offsets = [24, 2], sizes = [8, 1], strides = [1, 1]} : vector<32x49xf32> to vector<8x1xf32>
    %c67_i32 = arith.constant 67 : i32
    %386 = tpu.dynamic_rotate %366 by %c67_i32 dim 1 : vector<8x512xf32>, i32 -> vector<8x512xf32>
    %387 = vector.broadcast %385 : vector<8x1xf32> to vector<8x512xf32>
    %388 = arith.mulf %387, %386 : vector<8x512xf32>
    %389 = arith.addf %384, %388 : vector<8x512xf32>
    %390 = vector.extract_strided_slice %49 {offsets = [24, 3], sizes = [8, 1], strides = [1, 1]} : vector<32x49xf32> to vector<8x1xf32>
    %c66_i32 = arith.constant 66 : i32
    %391 = tpu.dynamic_rotate %366 by %c66_i32 dim 1 : vector<8x512xf32>, i32 -> vector<8x512xf32>
    %392 = vector.broadcast %390 : vector<8x1xf32> to vector<8x512xf32>
    %393 = arith.mulf %392, %391 : vector<8x512xf32>
    %394 = arith.addf %389, %393 : vector<8x512xf32>
    %395 = vector.extract_strided_slice %49 {offsets = [24, 4], sizes = [8, 1], strides = [1, 1]} : vector<32x49xf32> to vector<8x1xf32>
    %c65_i32 = arith.constant 65 : i32
    %396 = tpu.dynamic_rotate %366 by %c65_i32 dim 1 : vector<8x512xf32>, i32 -> vector<8x512xf32>
    %397 = vector.broadcast %395 : vector<8x1xf32> to vector<8x512xf32>
    %398 = arith.mulf %397, %396 : vector<8x512xf32>
    %399 = arith.addf %394, %398 : vector<8x512xf32>
    %400 = vector.extract_strided_slice %49 {offsets = [24, 5], sizes = [8, 1], strides = [1, 1]} : vector<32x49xf32> to vector<8x1xf32>
    %c64_i32 = arith.constant 64 : i32
    %401 = tpu.dynamic_rotate %366 by %c64_i32 dim 1 : vector<8x512xf32>, i32 -> vector<8x512xf32>
    %402 = vector.broadcast %400 : vector<8x1xf32> to vector<8x512xf32>
    %403 = arith.mulf %402, %401 : vector<8x512xf32>
    %404 = arith.addf %399, %403 : vector<8x512xf32>
    %405 = vector.extract_strided_slice %49 {offsets = [24, 6], sizes = [8, 1], strides = [1, 1]} : vector<32x49xf32> to vector<8x1xf32>
    %c63_i32 = arith.constant 63 : i32
    %406 = tpu.dynamic_rotate %366 by %c63_i32 dim 1 : vector<8x512xf32>, i32 -> vector<8x512xf32>
    %407 = vector.broadcast %405 : vector<8x1xf32> to vector<8x512xf32>
    %408 = arith.mulf %407, %406 : vector<8x512xf32>
    %409 = arith.addf %404, %408 : vector<8x512xf32>
    %410 = vector.extract_strided_slice %49 {offsets = [24, 7], sizes = [8, 1], strides = [1, 1]} : vector<32x49xf32> to vector<8x1xf32>
    %c47_i32 = arith.constant 47 : i32
    %411 = tpu.dynamic_rotate %366 by %c47_i32 dim 1 : vector<8x512xf32>, i32 -> vector<8x512xf32>
    %412 = vector.broadcast %410 : vector<8x1xf32> to vector<8x512xf32>
    %413 = arith.mulf %412, %411 : vector<8x512xf32>
    %414 = arith.addf %409, %413 : vector<8x512xf32>
    %415 = vector.extract_strided_slice %49 {offsets = [24, 8], sizes = [8, 1], strides = [1, 1]} : vector<32x49xf32> to vector<8x1xf32>
    %c46_i32_87 = arith.constant 46 : i32
    %416 = tpu.dynamic_rotate %366 by %c46_i32_87 dim 1 : vector<8x512xf32>, i32 -> vector<8x512xf32>
    %417 = vector.broadcast %415 : vector<8x1xf32> to vector<8x512xf32>
    %418 = arith.mulf %417, %416 : vector<8x512xf32>
    %419 = arith.addf %414, %418 : vector<8x512xf32>
    %420 = vector.extract_strided_slice %49 {offsets = [24, 9], sizes = [8, 1], strides = [1, 1]} : vector<32x49xf32> to vector<8x1xf32>
    %c45_i32_88 = arith.constant 45 : i32
    %421 = tpu.dynamic_rotate %366 by %c45_i32_88 dim 1 : vector<8x512xf32>, i32 -> vector<8x512xf32>
    %422 = vector.broadcast %420 : vector<8x1xf32> to vector<8x512xf32>
    %423 = arith.mulf %422, %421 : vector<8x512xf32>
    %424 = arith.addf %419, %423 : vector<8x512xf32>
    %425 = vector.extract_strided_slice %49 {offsets = [24, 10], sizes = [8, 1], strides = [1, 1]} : vector<32x49xf32> to vector<8x1xf32>
    %c44_i32_89 = arith.constant 44 : i32
    %426 = tpu.dynamic_rotate %366 by %c44_i32_89 dim 1 : vector<8x512xf32>, i32 -> vector<8x512xf32>
    %427 = vector.broadcast %425 : vector<8x1xf32> to vector<8x512xf32>
    %428 = arith.mulf %427, %426 : vector<8x512xf32>
    %429 = arith.addf %424, %428 : vector<8x512xf32>
    %430 = vector.extract_strided_slice %49 {offsets = [24, 11], sizes = [8, 1], strides = [1, 1]} : vector<32x49xf32> to vector<8x1xf32>
    %c43_i32_90 = arith.constant 43 : i32
    %431 = tpu.dynamic_rotate %366 by %c43_i32_90 dim 1 : vector<8x512xf32>, i32 -> vector<8x512xf32>
    %432 = vector.broadcast %430 : vector<8x1xf32> to vector<8x512xf32>
    %433 = arith.mulf %432, %431 : vector<8x512xf32>
    %434 = arith.addf %429, %433 : vector<8x512xf32>
    %435 = vector.extract_strided_slice %49 {offsets = [24, 12], sizes = [8, 1], strides = [1, 1]} : vector<32x49xf32> to vector<8x1xf32>
    %c42_i32_91 = arith.constant 42 : i32
    %436 = tpu.dynamic_rotate %366 by %c42_i32_91 dim 1 : vector<8x512xf32>, i32 -> vector<8x512xf32>
    %437 = vector.broadcast %435 : vector<8x1xf32> to vector<8x512xf32>
    %438 = arith.mulf %437, %436 : vector<8x512xf32>
    %439 = arith.addf %434, %438 : vector<8x512xf32>
    %440 = vector.extract_strided_slice %49 {offsets = [24, 13], sizes = [8, 1], strides = [1, 1]} : vector<32x49xf32> to vector<8x1xf32>
    %c41_i32 = arith.constant 41 : i32
    %441 = tpu.dynamic_rotate %366 by %c41_i32 dim 1 : vector<8x512xf32>, i32 -> vector<8x512xf32>
    %442 = vector.broadcast %440 : vector<8x1xf32> to vector<8x512xf32>
    %443 = arith.mulf %442, %441 : vector<8x512xf32>
    %444 = arith.addf %439, %443 : vector<8x512xf32>
    %445 = vector.extract_strided_slice %49 {offsets = [24, 14], sizes = [8, 1], strides = [1, 1]} : vector<32x49xf32> to vector<8x1xf32>
    %c25_i32 = arith.constant 25 : i32
    %446 = tpu.dynamic_rotate %366 by %c25_i32 dim 1 : vector<8x512xf32>, i32 -> vector<8x512xf32>
    %447 = vector.broadcast %445 : vector<8x1xf32> to vector<8x512xf32>
    %448 = arith.mulf %447, %446 : vector<8x512xf32>
    %449 = arith.addf %444, %448 : vector<8x512xf32>
    %450 = vector.extract_strided_slice %49 {offsets = [24, 15], sizes = [8, 1], strides = [1, 1]} : vector<32x49xf32> to vector<8x1xf32>
    %c24_i32_92 = arith.constant 24 : i32
    %451 = tpu.dynamic_rotate %366 by %c24_i32_92 dim 1 : vector<8x512xf32>, i32 -> vector<8x512xf32>
    %452 = vector.broadcast %450 : vector<8x1xf32> to vector<8x512xf32>
    %453 = arith.mulf %452, %451 : vector<8x512xf32>
    %454 = arith.addf %449, %453 : vector<8x512xf32>
    %455 = vector.extract_strided_slice %49 {offsets = [24, 16], sizes = [8, 1], strides = [1, 1]} : vector<32x49xf32> to vector<8x1xf32>
    %c23_i32_93 = arith.constant 23 : i32
    %456 = tpu.dynamic_rotate %366 by %c23_i32_93 dim 1 : vector<8x512xf32>, i32 -> vector<8x512xf32>
    %457 = vector.broadcast %455 : vector<8x1xf32> to vector<8x512xf32>
    %458 = arith.mulf %457, %456 : vector<8x512xf32>
    %459 = arith.addf %454, %458 : vector<8x512xf32>
    %460 = vector.extract_strided_slice %49 {offsets = [24, 17], sizes = [8, 1], strides = [1, 1]} : vector<32x49xf32> to vector<8x1xf32>
    %c22_i32_94 = arith.constant 22 : i32
    %461 = tpu.dynamic_rotate %366 by %c22_i32_94 dim 1 : vector<8x512xf32>, i32 -> vector<8x512xf32>
    %462 = vector.broadcast %460 : vector<8x1xf32> to vector<8x512xf32>
    %463 = arith.mulf %462, %461 : vector<8x512xf32>
    %464 = arith.addf %459, %463 : vector<8x512xf32>
    %465 = vector.extract_strided_slice %49 {offsets = [24, 18], sizes = [8, 1], strides = [1, 1]} : vector<32x49xf32> to vector<8x1xf32>
    %c21_i32_95 = arith.constant 21 : i32
    %466 = tpu.dynamic_rotate %366 by %c21_i32_95 dim 1 : vector<8x512xf32>, i32 -> vector<8x512xf32>
    %467 = vector.broadcast %465 : vector<8x1xf32> to vector<8x512xf32>
    %468 = arith.mulf %467, %466 : vector<8x512xf32>
    %469 = arith.addf %464, %468 : vector<8x512xf32>
    %470 = vector.extract_strided_slice %49 {offsets = [24, 19], sizes = [8, 1], strides = [1, 1]} : vector<32x49xf32> to vector<8x1xf32>
    %c20_i32_96 = arith.constant 20 : i32
    %471 = tpu.dynamic_rotate %366 by %c20_i32_96 dim 1 : vector<8x512xf32>, i32 -> vector<8x512xf32>
    %472 = vector.broadcast %470 : vector<8x1xf32> to vector<8x512xf32>
    %473 = arith.mulf %472, %471 : vector<8x512xf32>
    %474 = arith.addf %469, %473 : vector<8x512xf32>
    %475 = vector.extract_strided_slice %49 {offsets = [24, 20], sizes = [8, 1], strides = [1, 1]} : vector<32x49xf32> to vector<8x1xf32>
    %c19_i32 = arith.constant 19 : i32
    %476 = tpu.dynamic_rotate %366 by %c19_i32 dim 1 : vector<8x512xf32>, i32 -> vector<8x512xf32>
    %477 = vector.broadcast %475 : vector<8x1xf32> to vector<8x512xf32>
    %478 = arith.mulf %477, %476 : vector<8x512xf32>
    %479 = arith.addf %474, %478 : vector<8x512xf32>
    %480 = vector.extract_strided_slice %49 {offsets = [24, 21], sizes = [8, 1], strides = [1, 1]} : vector<32x49xf32> to vector<8x1xf32>
    %c3_i32 = arith.constant 3 : i32
    %481 = tpu.dynamic_rotate %366 by %c3_i32 dim 1 : vector<8x512xf32>, i32 -> vector<8x512xf32>
    %482 = vector.broadcast %480 : vector<8x1xf32> to vector<8x512xf32>
    %483 = arith.mulf %482, %481 : vector<8x512xf32>
    %484 = arith.addf %479, %483 : vector<8x512xf32>
    %485 = vector.extract_strided_slice %49 {offsets = [24, 22], sizes = [8, 1], strides = [1, 1]} : vector<32x49xf32> to vector<8x1xf32>
    %c2_i32_97 = arith.constant 2 : i32
    %486 = tpu.dynamic_rotate %366 by %c2_i32_97 dim 1 : vector<8x512xf32>, i32 -> vector<8x512xf32>
    %487 = vector.broadcast %485 : vector<8x1xf32> to vector<8x512xf32>
    %488 = arith.mulf %487, %486 : vector<8x512xf32>
    %489 = arith.addf %484, %488 : vector<8x512xf32>
    %490 = vector.extract_strided_slice %49 {offsets = [24, 23], sizes = [8, 1], strides = [1, 1]} : vector<32x49xf32> to vector<8x1xf32>
    %c1_i32_98 = arith.constant 1 : i32
    %491 = tpu.dynamic_rotate %366 by %c1_i32_98 dim 1 : vector<8x512xf32>, i32 -> vector<8x512xf32>
    %492 = vector.broadcast %490 : vector<8x1xf32> to vector<8x512xf32>
    %493 = arith.mulf %492, %491 : vector<8x512xf32>
    %494 = arith.addf %489, %493 : vector<8x512xf32>
    %495 = vector.extract_strided_slice %49 {offsets = [24, 25], sizes = [8, 1], strides = [1, 1]} : vector<32x49xf32> to vector<8x1xf32>
    %c511_i32_99 = arith.constant 511 : i32
    %496 = tpu.dynamic_rotate %366 by %c511_i32_99 dim 1 : vector<8x512xf32>, i32 -> vector<8x512xf32>
    %497 = vector.broadcast %495 : vector<8x1xf32> to vector<8x512xf32>
    %498 = arith.mulf %497, %496 : vector<8x512xf32>
    %499 = arith.addf %494, %498 : vector<8x512xf32>
    %500 = vector.extract_strided_slice %49 {offsets = [24, 26], sizes = [8, 1], strides = [1, 1]} : vector<32x49xf32> to vector<8x1xf32>
    %c510_i32_100 = arith.constant 510 : i32
    %501 = tpu.dynamic_rotate %366 by %c510_i32_100 dim 1 : vector<8x512xf32>, i32 -> vector<8x512xf32>
    %502 = vector.broadcast %500 : vector<8x1xf32> to vector<8x512xf32>
    %503 = arith.mulf %502, %501 : vector<8x512xf32>
    %504 = arith.addf %499, %503 : vector<8x512xf32>
    %505 = vector.extract_strided_slice %49 {offsets = [24, 27], sizes = [8, 1], strides = [1, 1]} : vector<32x49xf32> to vector<8x1xf32>
    %c509_i32 = arith.constant 509 : i32
    %506 = tpu.dynamic_rotate %366 by %c509_i32 dim 1 : vector<8x512xf32>, i32 -> vector<8x512xf32>
    %507 = vector.broadcast %505 : vector<8x1xf32> to vector<8x512xf32>
    %508 = arith.mulf %507, %506 : vector<8x512xf32>
    %509 = arith.addf %504, %508 : vector<8x512xf32>
    %510 = vector.extract_strided_slice %49 {offsets = [24, 28], sizes = [8, 1], strides = [1, 1]} : vector<32x49xf32> to vector<8x1xf32>
    %c493_i32 = arith.constant 493 : i32
    %511 = tpu.dynamic_rotate %366 by %c493_i32 dim 1 : vector<8x512xf32>, i32 -> vector<8x512xf32>
    %512 = vector.broadcast %510 : vector<8x1xf32> to vector<8x512xf32>
    %513 = arith.mulf %512, %511 : vector<8x512xf32>
    %514 = arith.addf %509, %513 : vector<8x512xf32>
    %515 = vector.extract_strided_slice %49 {offsets = [24, 29], sizes = [8, 1], strides = [1, 1]} : vector<32x49xf32> to vector<8x1xf32>
    %c492_i32_101 = arith.constant 492 : i32
    %516 = tpu.dynamic_rotate %366 by %c492_i32_101 dim 1 : vector<8x512xf32>, i32 -> vector<8x512xf32>
    %517 = vector.broadcast %515 : vector<8x1xf32> to vector<8x512xf32>
    %518 = arith.mulf %517, %516 : vector<8x512xf32>
    %519 = arith.addf %514, %518 : vector<8x512xf32>
    %520 = vector.extract_strided_slice %49 {offsets = [24, 30], sizes = [8, 1], strides = [1, 1]} : vector<32x49xf32> to vector<8x1xf32>
    %c491_i32_102 = arith.constant 491 : i32
    %521 = tpu.dynamic_rotate %366 by %c491_i32_102 dim 1 : vector<8x512xf32>, i32 -> vector<8x512xf32>
    %522 = vector.broadcast %520 : vector<8x1xf32> to vector<8x512xf32>
    %523 = arith.mulf %522, %521 : vector<8x512xf32>
    %524 = arith.addf %519, %523 : vector<8x512xf32>
    %525 = vector.extract_strided_slice %49 {offsets = [24, 31], sizes = [8, 1], strides = [1, 1]} : vector<32x49xf32> to vector<8x1xf32>
    %c490_i32_103 = arith.constant 490 : i32
    %526 = tpu.dynamic_rotate %366 by %c490_i32_103 dim 1 : vector<8x512xf32>, i32 -> vector<8x512xf32>
    %527 = vector.broadcast %525 : vector<8x1xf32> to vector<8x512xf32>
    %528 = arith.mulf %527, %526 : vector<8x512xf32>
    %529 = arith.addf %524, %528 : vector<8x512xf32>
    %530 = vector.extract_strided_slice %49 {offsets = [24, 32], sizes = [8, 1], strides = [1, 1]} : vector<32x49xf32> to vector<8x1xf32>
    %c489_i32_104 = arith.constant 489 : i32
    %531 = tpu.dynamic_rotate %366 by %c489_i32_104 dim 1 : vector<8x512xf32>, i32 -> vector<8x512xf32>
    %532 = vector.broadcast %530 : vector<8x1xf32> to vector<8x512xf32>
    %533 = arith.mulf %532, %531 : vector<8x512xf32>
    %534 = arith.addf %529, %533 : vector<8x512xf32>
    %535 = vector.extract_strided_slice %49 {offsets = [24, 33], sizes = [8, 1], strides = [1, 1]} : vector<32x49xf32> to vector<8x1xf32>
    %c488_i32_105 = arith.constant 488 : i32
    %536 = tpu.dynamic_rotate %366 by %c488_i32_105 dim 1 : vector<8x512xf32>, i32 -> vector<8x512xf32>
    %537 = vector.broadcast %535 : vector<8x1xf32> to vector<8x512xf32>
    %538 = arith.mulf %537, %536 : vector<8x512xf32>
    %539 = arith.addf %534, %538 : vector<8x512xf32>
    %540 = vector.extract_strided_slice %49 {offsets = [24, 34], sizes = [8, 1], strides = [1, 1]} : vector<32x49xf32> to vector<8x1xf32>
    %c487_i32 = arith.constant 487 : i32
    %541 = tpu.dynamic_rotate %366 by %c487_i32 dim 1 : vector<8x512xf32>, i32 -> vector<8x512xf32>
    %542 = vector.broadcast %540 : vector<8x1xf32> to vector<8x512xf32>
    %543 = arith.mulf %542, %541 : vector<8x512xf32>
    %544 = arith.addf %539, %543 : vector<8x512xf32>
    %545 = vector.extract_strided_slice %49 {offsets = [24, 35], sizes = [8, 1], strides = [1, 1]} : vector<32x49xf32> to vector<8x1xf32>
    %c471_i32 = arith.constant 471 : i32
    %546 = tpu.dynamic_rotate %366 by %c471_i32 dim 1 : vector<8x512xf32>, i32 -> vector<8x512xf32>
    %547 = vector.broadcast %545 : vector<8x1xf32> to vector<8x512xf32>
    %548 = arith.mulf %547, %546 : vector<8x512xf32>
    %549 = arith.addf %544, %548 : vector<8x512xf32>
    %550 = vector.extract_strided_slice %49 {offsets = [24, 36], sizes = [8, 1], strides = [1, 1]} : vector<32x49xf32> to vector<8x1xf32>
    %c470_i32_106 = arith.constant 470 : i32
    %551 = tpu.dynamic_rotate %366 by %c470_i32_106 dim 1 : vector<8x512xf32>, i32 -> vector<8x512xf32>
    %552 = vector.broadcast %550 : vector<8x1xf32> to vector<8x512xf32>
    %553 = arith.mulf %552, %551 : vector<8x512xf32>
    %554 = arith.addf %549, %553 : vector<8x512xf32>
    %555 = vector.extract_strided_slice %49 {offsets = [24, 37], sizes = [8, 1], strides = [1, 1]} : vector<32x49xf32> to vector<8x1xf32>
    %c469_i32_107 = arith.constant 469 : i32
    %556 = tpu.dynamic_rotate %366 by %c469_i32_107 dim 1 : vector<8x512xf32>, i32 -> vector<8x512xf32>
    %557 = vector.broadcast %555 : vector<8x1xf32> to vector<8x512xf32>
    %558 = arith.mulf %557, %556 : vector<8x512xf32>
    %559 = arith.addf %554, %558 : vector<8x512xf32>
    %560 = vector.extract_strided_slice %49 {offsets = [24, 38], sizes = [8, 1], strides = [1, 1]} : vector<32x49xf32> to vector<8x1xf32>
    %c468_i32_108 = arith.constant 468 : i32
    %561 = tpu.dynamic_rotate %366 by %c468_i32_108 dim 1 : vector<8x512xf32>, i32 -> vector<8x512xf32>
    %562 = vector.broadcast %560 : vector<8x1xf32> to vector<8x512xf32>
    %563 = arith.mulf %562, %561 : vector<8x512xf32>
    %564 = arith.addf %559, %563 : vector<8x512xf32>
    %565 = vector.extract_strided_slice %49 {offsets = [24, 39], sizes = [8, 1], strides = [1, 1]} : vector<32x49xf32> to vector<8x1xf32>
    %c467_i32_109 = arith.constant 467 : i32
    %566 = tpu.dynamic_rotate %366 by %c467_i32_109 dim 1 : vector<8x512xf32>, i32 -> vector<8x512xf32>
    %567 = vector.broadcast %565 : vector<8x1xf32> to vector<8x512xf32>
    %568 = arith.mulf %567, %566 : vector<8x512xf32>
    %569 = arith.addf %564, %568 : vector<8x512xf32>
    %570 = vector.extract_strided_slice %49 {offsets = [24, 40], sizes = [8, 1], strides = [1, 1]} : vector<32x49xf32> to vector<8x1xf32>
    %c466_i32_110 = arith.constant 466 : i32
    %571 = tpu.dynamic_rotate %366 by %c466_i32_110 dim 1 : vector<8x512xf32>, i32 -> vector<8x512xf32>
    %572 = vector.broadcast %570 : vector<8x1xf32> to vector<8x512xf32>
    %573 = arith.mulf %572, %571 : vector<8x512xf32>
    %574 = arith.addf %569, %573 : vector<8x512xf32>
    %575 = vector.extract_strided_slice %49 {offsets = [24, 41], sizes = [8, 1], strides = [1, 1]} : vector<32x49xf32> to vector<8x1xf32>
    %c465_i32 = arith.constant 465 : i32
    %576 = tpu.dynamic_rotate %366 by %c465_i32 dim 1 : vector<8x512xf32>, i32 -> vector<8x512xf32>
    %577 = vector.broadcast %575 : vector<8x1xf32> to vector<8x512xf32>
    %578 = arith.mulf %577, %576 : vector<8x512xf32>
    %579 = arith.addf %574, %578 : vector<8x512xf32>
    %580 = vector.extract_strided_slice %49 {offsets = [24, 42], sizes = [8, 1], strides = [1, 1]} : vector<32x49xf32> to vector<8x1xf32>
    %c449_i32 = arith.constant 449 : i32
    %581 = tpu.dynamic_rotate %366 by %c449_i32 dim 1 : vector<8x512xf32>, i32 -> vector<8x512xf32>
    %582 = vector.broadcast %580 : vector<8x1xf32> to vector<8x512xf32>
    %583 = arith.mulf %582, %581 : vector<8x512xf32>
    %584 = arith.addf %579, %583 : vector<8x512xf32>
    %585 = vector.extract_strided_slice %49 {offsets = [24, 43], sizes = [8, 1], strides = [1, 1]} : vector<32x49xf32> to vector<8x1xf32>
    %c448_i32 = arith.constant 448 : i32
    %586 = tpu.dynamic_rotate %366 by %c448_i32 dim 1 : vector<8x512xf32>, i32 -> vector<8x512xf32>
    %587 = vector.broadcast %585 : vector<8x1xf32> to vector<8x512xf32>
    %588 = arith.mulf %587, %586 : vector<8x512xf32>
    %589 = arith.addf %584, %588 : vector<8x512xf32>
    %590 = vector.extract_strided_slice %49 {offsets = [24, 44], sizes = [8, 1], strides = [1, 1]} : vector<32x49xf32> to vector<8x1xf32>
    %c447_i32 = arith.constant 447 : i32
    %591 = tpu.dynamic_rotate %366 by %c447_i32 dim 1 : vector<8x512xf32>, i32 -> vector<8x512xf32>
    %592 = vector.broadcast %590 : vector<8x1xf32> to vector<8x512xf32>
    %593 = arith.mulf %592, %591 : vector<8x512xf32>
    %594 = arith.addf %589, %593 : vector<8x512xf32>
    %595 = vector.extract_strided_slice %49 {offsets = [24, 45], sizes = [8, 1], strides = [1, 1]} : vector<32x49xf32> to vector<8x1xf32>
    %c446_i32 = arith.constant 446 : i32
    %596 = tpu.dynamic_rotate %366 by %c446_i32 dim 1 : vector<8x512xf32>, i32 -> vector<8x512xf32>
    %597 = vector.broadcast %595 : vector<8x1xf32> to vector<8x512xf32>
    %598 = arith.mulf %597, %596 : vector<8x512xf32>
    %599 = arith.addf %594, %598 : vector<8x512xf32>
    %600 = vector.extract_strided_slice %49 {offsets = [24, 46], sizes = [8, 1], strides = [1, 1]} : vector<32x49xf32> to vector<8x1xf32>
    %c445_i32 = arith.constant 445 : i32
    %601 = tpu.dynamic_rotate %366 by %c445_i32 dim 1 : vector<8x512xf32>, i32 -> vector<8x512xf32>
    %602 = vector.broadcast %600 : vector<8x1xf32> to vector<8x512xf32>
    %603 = arith.mulf %602, %601 : vector<8x512xf32>
    %604 = arith.addf %599, %603 : vector<8x512xf32>
    %605 = vector.extract_strided_slice %49 {offsets = [24, 47], sizes = [8, 1], strides = [1, 1]} : vector<32x49xf32> to vector<8x1xf32>
    %c444_i32 = arith.constant 444 : i32
    %606 = tpu.dynamic_rotate %366 by %c444_i32 dim 1 : vector<8x512xf32>, i32 -> vector<8x512xf32>
    %607 = vector.broadcast %605 : vector<8x1xf32> to vector<8x512xf32>
    %608 = arith.mulf %607, %606 : vector<8x512xf32>
    %609 = arith.addf %604, %608 : vector<8x512xf32>
    %610 = vector.extract_strided_slice %49 {offsets = [24, 48], sizes = [8, 1], strides = [1, 1]} : vector<32x49xf32> to vector<8x1xf32>
    %c443_i32 = arith.constant 443 : i32
    %611 = tpu.dynamic_rotate %366 by %c443_i32 dim 1 : vector<8x512xf32>, i32 -> vector<8x512xf32>
    %612 = vector.broadcast %610 : vector<8x1xf32> to vector<8x512xf32>
    %613 = arith.mulf %612, %611 : vector<8x512xf32>
    %614 = arith.addf %609, %613 : vector<8x512xf32>
    %cst_111 = arith.constant 5.000000e-01 : f32
    %615 = vector.broadcast %cst_111 : f32 to vector<8x512xf32>
    %616 = arith.mulf %615, %614 : vector<8x512xf32>
    %cst_112 = arith.constant 0.707106769 : f32
    %617 = vector.broadcast %cst_112 : f32 to vector<8x512xf32>
    %618 = arith.mulf %614, %617 : vector<8x512xf32>
    %619 = math.absf %618 : vector<8x512xf32>
    %cst_113 = arith.constant 0.327591091 : f32
    %620 = vector.broadcast %cst_113 : f32 to vector<8x512xf32>
    %621 = arith.mulf %620, %619 : vector<8x512xf32>
    %cst_114 = arith.constant 1.000000e+00 : f32
    %622 = vector.broadcast %cst_114 : f32 to vector<8x512xf32>
    %623 = arith.addf %622, %621 : vector<8x512xf32>
    %624 = tpu.reciprocal %623 {approx = true} : vector<8x512xf32> -> vector<8x512xf32>
    %cst_115 = arith.constant 1.06140542 : f32
    %625 = vector.broadcast %cst_115 : f32 to vector<8x512xf32>
    %626 = arith.mulf %625, %624 : vector<8x512xf32>
    %cst_116 = arith.constant -1.45315206 : f32
    %627 = vector.broadcast %cst_116 : f32 to vector<8x512xf32>
    %628 = arith.addf %626, %627 : vector<8x512xf32>
    %629 = arith.mulf %628, %624 : vector<8x512xf32>
    %cst_117 = arith.constant 1.42141378 : f32
    %630 = vector.broadcast %cst_117 : f32 to vector<8x512xf32>
    %631 = arith.addf %629, %630 : vector<8x512xf32>
    %632 = arith.mulf %631, %624 : vector<8x512xf32>
    %cst_118 = arith.constant -0.284496725 : f32
    %633 = vector.broadcast %cst_118 : f32 to vector<8x512xf32>
    %634 = arith.addf %632, %633 : vector<8x512xf32>
    %635 = arith.mulf %634, %624 : vector<8x512xf32>
    %cst_119 = arith.constant 0.254829586 : f32
    %636 = vector.broadcast %cst_119 : f32 to vector<8x512xf32>
    %637 = arith.addf %635, %636 : vector<8x512xf32>
    %638 = arith.mulf %637, %624 : vector<8x512xf32>
    %cst_120 = arith.constant 0.000000e+00 : f32
    %639 = vector.broadcast %cst_120 : f32 to vector<8x512xf32>
    %640 = arith.subf %639, %619 : vector<8x512xf32>
    %641 = arith.mulf %640, %619 : vector<8x512xf32>
    %642 = math.exp %641 : vector<8x512xf32>
    %643 = arith.mulf %638, %642 : vector<8x512xf32>
    %cst_121 = arith.constant 1.000000e+00 : f32
    %644 = vector.broadcast %cst_121 : f32 to vector<8x512xf32>
    %645 = arith.subf %644, %643 : vector<8x512xf32>
    %cst_122 = arith.constant 0.000000e+00 : f32
    %646 = vector.broadcast %cst_122 : f32 to vector<8x512xf32>
    %647 = arith.cmpf oge, %618, %646 : vector<8x512xf32>
    %cst_123 = arith.constant 0.000000e+00 : f32
    %648 = vector.broadcast %cst_123 : f32 to vector<8x512xf32>
    %649 = arith.subf %648, %645 : vector<8x512xf32>
    %650 = arith.select %647, %645, %649 : vector<8x512xi1>, vector<8x512xf32>
    %cst_124 = arith.constant 1.000000e+00 : f32
    %651 = vector.broadcast %cst_124 : f32 to vector<8x512xf32>
    %652 = arith.addf %651, %650 : vector<8x512xf32>
    %653 = arith.mulf %616, %652 : vector<8x512xf32>
    %654 = arith.truncf %653 : vector<8x512xf32> to vector<8x512xbf16>
    %c0_125 = arith.constant 0 : index
    %c24 = arith.constant 24 : index
    %655 = vector.load %arg7[%c0_125, %c24] : memref<16x32xbf16, #tpu.memory_space<vmem>>, vector<16x8xbf16>
    %cst_126 = arith.constant dense<0.000000e+00> : vector<16x512xf32>
    %656 = tpu.matmul %655, %654, %cst_126 {dimension_numbers = #tpu.dot_dimension_numbers<[1], [0], [0], [1], [0, 0, 1, 1], [], []>} : vector<16x8xbf16>, vector<8x512xbf16>, vector<16x512xf32> -> vector<16x512xf32>
    %657 = arith.addf %365, %656 : vector<16x512xf32>
    %c0_127 = arith.constant 0 : index
    %c0_128 = arith.constant 0 : index
    %658 = vector.load %arg8[%c0_127, %c0_128] : memref<16x1xf32, #tpu.memory_space<vmem>>, vector<16x1xf32>
    %659 = vector.broadcast %658 : vector<16x1xf32> to vector<16x512xf32>
    %660 = arith.addf %657, %659 : vector<16x512xf32>
    %c0_129 = arith.constant 0 : index
    %c0_130 = arith.constant 0 : index
    %c0_131 = arith.constant 0 : index
    %661 = vector.load %arg9[%c0_129, %c0_130, %c0_131] : memref<1x16x512xf32, #tpu.memory_space<vmem>>, vector<1x16x512xf32>
    %662 = vector.shape_cast %661 : vector<1x16x512xf32> to vector<16x512xf32>
    %663 = vector.shape_cast %660 : vector<16x512xf32> to vector<1x16x512xf32>
    tpu.vector_store %arg9[%c0_129, %c0_130, %c0_131], %663 {strides = array<i32>} : memref<1x16x512xf32, #tpu.memory_space<vmem>>, vector<1x16x512xf32>,
    return
  }
  func.func @transform_0(%arg0: i32) -> (i32, i32, i32) {
    %c0_i32 = arith.constant 0 : i32
    %c0_i32_0 = arith.constant 0 : i32
    %c0_i32_1 = arith.constant 0 : i32
    return %arg0, %c0_i32, %c0_i32_0 : i32, i32, i32
  }
  func.func @transform_1(%arg0: i32) -> (i32, i32) {
    %c0_i32 = arith.constant 0 : i32
    %c0_i32_0 = arith.constant 0 : i32
    %c0_i32_1 = arith.constant 0 : i32
    return %c0_i32, %c0_i32_0 : i32, i32
  }
  func.func @transform_2(%arg0: i32) -> (i32, i32) {
    %c0_i32 = arith.constant 0 : i32
    %c0_i32_0 = arith.constant 0 : i32
    %c0_i32_1 = arith.constant 0 : i32
    return %c0_i32, %c0_i32_0 : i32, i32
  }
  func.func @transform_3(%arg0: i32) -> (i32, i32) {
    %c0_i32 = arith.constant 0 : i32
    %c0_i32_0 = arith.constant 0 : i32
    %c0_i32_1 = arith.constant 0 : i32
    return %c0_i32, %c0_i32_0 : i32, i32
  }
  func.func @transform_4(%arg0: i32) -> (i32, i32) {
    %c0_i32 = arith.constant 0 : i32
    %c0_i32_0 = arith.constant 0 : i32
    %c0_i32_1 = arith.constant 0 : i32
    return %c0_i32, %c0_i32_0 : i32, i32
  }
  func.func @transform_5(%arg0: i32) -> (i32, i32) {
    %c0_i32 = arith.constant 0 : i32
    %c0_i32_0 = arith.constant 0 : i32
    %c0_i32_1 = arith.constant 0 : i32
    return %c0_i32, %c0_i32_0 : i32, i32
  }
  func.func @transform_6(%arg0: i32) -> (i32, i32) {
    %c0_i32 = arith.constant 0 : i32
    %c0_i32_0 = arith.constant 0 : i32
    %c0_i32_1 = arith.constant 0 : i32
    return %c0_i32, %c0_i32_0 : i32, i32
  }
  func.func @transform_7(%arg0: i32) -> (i32, i32) {
    %c0_i32 = arith.constant 0 : i32
    %c0_i32_0 = arith.constant 0 : i32
    %c0_i32_1 = arith.constant 0 : i32
    return %c0_i32, %c0_i32_0 : i32, i32
  }
  func.func @transform_8(%arg0: i32) -> (i32, i32, i32) {
    %c0_i32 = arith.constant 0 : i32
    %c0_i32_0 = arith.constant 0 : i32
    %c0_i32_1 = arith.constant 0 : i32
    return %arg0, %c0_i32, %c0_i32_0 : i32, i32, i32
  }
}

</mosaic_0001>

<bundles_post_ra>
// kernel: tpu_custom_call.1
= control target key start
LH: loop header
LB: loop body
LE: loop exit
PB: predicated region body
PF: predicated region fallthrough
CT: control target
= control target key end

     0   :  { %s8492_s0 = inlined_call_operand.vmem [shape: bf16[2,16,512], index: 0, kind: input, shape index: {}]   ;;  %s8493_s1 = inlined_call_operand.vmem [shape: f32[1,512], index: 1, kind: input, shape index: {}]   ;;  %s8494_s2 = inlined_call_operand.vmem [shape: bf16[32,16], index: 2, kind: input, shape index: {}]   ;;  %s8495_s3 = inlined_call_operand.vmem [shape: f32[32,1], index: 3, kind: input, shape index: {}]   ;;  %s8496_s4 = inlined_call_operand.vmem [shape: f32[32,49], index: 4, kind: input, shape index: {}]   ;;  %s8497_s5 = inlined_call_operand.vmem [shape: f32[32,1], index: 5, kind: input, shape index: {}]   ;;  %s8498_s6 = inlined_call_operand.vmem [shape: bf16[16,32], index: 6, kind: input, shape index: {}]   ;;  %s8499_s7 = inlined_call_operand.vmem [shape: f32[16,1], index: 7, kind: input, shape index: {}]   ;;  %s8500_s8 = inlined_call_operand.hbm [shape: f32[2,16,512], index: 8, kind: output, shape index: {}]  }
   0x1   :  { %8837 = sst [smem:[#allocation162_spill]] %s8492_s0 }
   0x2   :  { %8838 = sst [smem:[#allocation163_spill]] %s8493_s1 }
   0x3   :  { %8839 = sst [smem:[#allocation164_spill]] %s8494_s2 }
   0x4   :  { %8840 = sst [smem:[#allocation165_spill]] %s8495_s3 }
   0x5   :  { %8841 = sst [smem:[#allocation166_spill]] %s8497_s5 }
   0x6   :  { %8842 = sst [smem:[#allocation167_spill]] %s8500_s8 }
   0x7   :  { %13 = vsyncpa [#allocation3], 0 }
   0x8   :  { %15 = vsyncpa [#allocation3 + $0x1], 0  ;;  %s4538_s27 = smov 0   ;;  %s4540_s28 = smov 0  }
   0x9   :  { %s4542_s29 = smov 0   ;;  %s4544_s30 = smov 0  }
   0xa LB: > { %8843 = sst [smem:[#allocation5_spill]] %s4380_s27  ;;  %s4559_s9 = sadd.s32 4294967295, %s4392_s30   ;;  %s4392_s30 = sphi %s4544_s30, %s9435_s30   ;;  %s4388_s29 = sphi %s4542_s29, %s9437_s29   ;;  %s4384_s28 = sphi %s4540_s28, %s9439_s28   ;;  %s4380_s27 = sphi %s4538_s27, %s9438_s27  }
   0xb   : > { %8844 = sst [smem:[#allocation6_spill]] %s4388_s29  ;;  %s3923_s10 = sadd.s32 4294967294, %s4392_s30  }
   0xc   : > { %8845 = sst [smem:[#allocation7_spill]] %s4392_s30  ;;  %s4563_s11 = sadd.s32 1, %s4392_s30  }
   0xd   : > { %8846 = sst [smem:[#allocation8_spill]] %s4559_s9  ;;  %s201_s12 = sadd.s32 1, %s4388_s29 }
   0xe   : > { %8847 = sst [smem:[#allocation9_spill]] %s4563_s11  ;;  %s198_s13 = ssub.s32 %s4392_s30, %s4563_s11 }
   0xf   : > { %p211_p0 = scmp.ne.s32.totalorder %s4388_s29, %s4384_s28  ;;  %p199_p1 = scmp.eq.s32.totalorder %s198_s13, 0 }
  0x10   : > { %p212_p2 = scmp.eq.s32.totalorder %s4559_s9, 1  ;;  %p217_p3 = scmp.ne.s32.totalorder %s4384_s28, %s4380_s27 }
  0x11   : > { %p218_p4 = scmp.eq.s32.totalorder %s3923_s10, 1  ;;  %p3926_p7 = scmp.ge.s32.totalorder %s4392_s30, 1 }
  0x12   : > { %s4574_s14 = scalar_select %p199_p1, %s4388_s29, %s201_s12  }
  0x13   : > { %p4576_p5 = por %p212_p2, %p211_p0  ;;  %p4580_p6 = por %p218_p4, %p217_p3 }
  0x14   : > { %8848 = sst [smem:[#allocation10_spill]] %s4574_s14  ;;  %p265_p8 = scmp.lt.s32.totalorder %s4392_s30, 3 }
  0x15   : > { %s8849_s15 = scalar_select %p4576_p5, 1, 0 }
  0x16   : > { %s8851_s16 = scalar_select %p4580_p6, 1, 0 }
  0x17   : > { %8850 = sst [smem:[#allocation11_spill]] %s8849_s15  ;;  %p266_p9 = pnand %p3926_p7, %p265_p8 }
  0x18   : > { %8852 = sst [smem:[#allocation12_spill]] %s8851_s16 }
  0x19   : > { %269 = sbr.rel (%p266_p9) target bundleno = 1653 (0x675), region = 52 }
  0x20   : > { %p299_p10 = scmp.lt.s32.totalorder %s4559_s9, 1  ;;  %v8528_v0 = vmov 0   ;;  %s8853_s3 = sld [smem:[#allocation165_spill]]  ;;  %vm367_vm0 = vcmask 130048   ;;  %v935_v13 = vld [vmem:[%s8496_s4 + $0x8] sm:$0xff]  ;;  %v4192_v14 = vld [vmem:[%s8498_s6] sm:$0xff]  }
  0x21   : > { %406 = vmatprep.mubr.bf16.mxu0 %v8528_v0  ;;  %459 = vmatprep.mubr.bf16.mxu1 %v8528_v0  ;;  %s8854_s0 = sld [smem:[#allocation162_spill]]  ;;  %s8855_s2 = sld [smem:[#allocation164_spill]]  ;;  %v4630_v15 = vld [vmem:[%s8496_s4 + $0x10] sm:$0xff]  ;;  %v8527_v17 = vmov 12   ;;  %v8526_v18 = vmov 1   ;;  %v8520_v19 = vmov 13  }
  0x22   : > { %s300_s17 = scalar_select %p299_p10, %s4559_s9, 1  ;;  %4125 = vset.pattern.permute.xlu0 %v8528_v0  ;;  %4126 = vset.pattern.permute.xlu1 %v8528_v0  ;;  %v1612_v16 = vadd.f32 1.0, %v4630_v15  ;;  %v8519_v20 = vmov 14  }
  0x23   : > { %s8856_s5 = sld [smem:[#allocation166_spill]]  ;;  %s4395_s18 = smov 120  }
  0x24   : > { %s3962_s22 = sshll.u32 %s300_s17, 5  ;;  %s8857_s1 = sld [smem:[#allocation163_spill]] }
  0x25   : > { %s8555_s21 = smov 22   ;;  %s8503_s23 = smov 21  }
  0x26   : > { %v313_v1 = vld [vmem:[%s8853_s3] sm:$0xff]  ;;  %v315_v2 = vld [vmem:[%s8853_s3 + $0x10] sm:$0xff]  ;;  %v314_v3 = vld [vmem:[%s8853_s3 + $0x8] sm:$0xff]  ;;  %s8505_s24 = smov 1   ;;  %s8507_s25 = smov 127  }
  0x27   : > { %319 = vperm.xlu0 %4125, %v313_v1   ;;  %329 = vperm.xlu1 %4126, %v315_v2   ;;  %s303_s10 = scalar_lea.vmem %s8854_s0, %s3962_s22  ;;  %v316_v4 = vld [vmem:[%s8853_s3 + $0x18] sm:$0xff]  ;;  %v4190_v9 = vld [vmem:[%s8855_s2] sm:$0xff]   ;;  %v4191_v12 = vld [vmem:[%s8855_s2 + $0x8] sm:$0xff]   ;;  %s8567_s22 = smov 23  }
  0x28   : > { %v4184_v5 = vld [vmem:[%s303_s10 + $0x4] ss:$16 sps:$4 sm:$0xff]   ;;  %v4186_v6 = vld [vmem:[%s303_s10 + $0xc] ss:$16 sps:$4 sm:$0xff]   ;;  %v4188_v7 = vld [vmem:[%s303_s10] ss:$16 sps:$4 sm:$0xff]  }
  0x29   : > { %374 = vmatprep.subr.bf16.mxu0 %v4184_v5  ;;  %v4189_v8 = vld [vmem:[%s303_s10 + $0x8] ss:$16 sps:$4 sm:$0xff]   ;;  %427 = vmatprep.subr.bf16.mxu1 %v4186_v6  ;;  %v938_v10 = vld [vmem:[%s8856_s5] sm:$0xff]  ;;  %s8531_s26 = smov 107   ;;  %s8513_s10 = smov 106  }
  0x2a   : > { %375 = vmatpush1.bf16.msra.mxu0 %v4188_v7  ;;  %428 = vmatpush1.bf16.msra.mxu1 %v4189_v8  ;;  %v939_v11 = vld [vmem:[%s8856_s5 + $0x8] sm:$0xff]  ;;  %s8515_s12 = smov 105   ;;  %s8509_s13 = smov 46  }
  0x2b   : > { %324 = vperm.xlu0 %4125, %v314_v3   ;;  %334 = vperm.xlu1 %4126, %v316_v4   ;;  %s8501_s17 = smov 44   ;;  %s8606_s19 = smov 42  }
  0x2c   : > { %s8583_s20 = smov 24   ;;  %s8958_s0 = smov 104  }
  0x2d   : > { %3936 = vmatmul.mubr.msk.bf16.vlgmr.msra.gmra.mrb[0].mxu0 %vm367_vm0, %v4190_v9  ;;  %3938 = vmatmul.mubr.msk.bf16.vlgmr.msra.gmra.mrb[0].mxu1 %vm367_vm0, %v4190_v9  ;;  %s8965_s2 = smov 45   ;;  %s8972_s3 = smov 85  }
  0x2e   : > { %469 = vmatprep.mubr.bf16.mxu1 %v8528_v0  ;;  %416 = vmatprep.mubr.bf16.mxu0 %v8528_v0  ;;  %s8981_s14 = smov 43   ;;  %s8986_s29 = smov 42  }
  0x2f   : > { %954 = vperm.xlu1 %4126, %v938_v10   ;;  %4127 = vset.pattern.permute.xlu0 %v8526_v18  ;;  %s8988_s11 = smov 83   ;;  %s8994_s16 = smov 82  }
  0x30   : > { %1132 = vperm.xlu0 %4127, %v935_v13   ;;  %s8717_s27 = smov 41   ;;  %s4446_s15 = smov 112  }
  0x31   : > { %s9004_s8 = smov 69   ;;  %s8709_s30 = smov 25  }
  0x32   : > { %s9047_s9 = smov 66  }
  0x33   : > { %1083 = vperm.xlu1 %4126, %v939_v11  }
  0x34   : > { %4130 = vset.pattern.permute.xlu0 %v8520_v19 }
  0x35   : > { %3939 = vmatmul.mubr.msk.bf16.gmra.mrb[4].mxu1 %vm367_vm0, %v4191_v12  ;;  %3937 = vmatmul.mubr.msk.bf16.gmra.mrb[4].mxu0 %vm367_vm0, %v4191_v12 }
  0x36   : > { %1457 = vmatprep.mubr.bf16.mxu0 %v8528_v0  ;;  %1500 = vmatprep.mubr.bf16.mxu1 %v8528_v0 }
  0x37   : > { %1107 = vperm.xlu1 %4126, %v935_v13   ;;  %1941 = vperm.xlu0 %4130, %v4630_v15  }
  0x3b   : > { %1406 = vrot.lane.b32.xlu1 %v4192_v14, %s4395_s18  ;;  %4131 = vset.pattern.permute.xlu0 %v8519_v20  ;;  %s8619_s18 = smov 43  }
  0x3c   : > { %4128 = vset.pattern.permute.xlu1 %v8527_v17  ;;  %1966 = vperm.xlu0 %4131, %v4630_v15  }
  0x3f   : > { %1615 = vperm.xlu1 %4128, %v1612_v16  }
  0x43   : > { %4129 = vset.pattern.permute.xlu1 %v8526_v18 }
  0x44   : > { %1671 = vperm.xlu1 %4129, %v4630_v15  }
  0xa6   : > { %v4643_v21 = vpop.permute.xlu0 %319  ;;  %v4696_v56 = vpop.permute.xlu1 %329 }
  0xaa   : > { %v325_v28 = vpop.permute.xlu0 %324 }
 0x100   : > { %v4645_v22 = vpop.f32.mrb[0].mxu0  ;;  %v4647_v23 = vpop.f32.mrb[0].mxu1 }
 0x101   : > { %v4649_v24 = vpop.f32.mrb[1].mxu0  ;;  %v4651_v25 = vpop.f32.mrb[1].mxu1 }
 0x102   : > { %v412_v26 = vpop.f32.mrb[2].mxu0  ;;  %v465_v27 = vpop.f32.mrb[2].mxu1 }
 0x103   : > { %v414_v29 = vpop.f32.mrb[3].mxu0  ;;  %v467_v30 = vpop.f32.mrb[3].mxu1  ;;  %v4655_v33 = vadd.f32 %v412_v26, %v325_v28  ;;  %v4661_v36 = vadd.f32 %v465_v27, %v325_v28 }
 0x104   : > { %v4670_v40 = vadd.f32 %v414_v29, %v325_v28  ;;  %v4680_v45 = vadd.f32 %v467_v30, %v325_v28 }
 0x105   : > { %v4668_v39 = vmul.f32 0.70710677, %v4655_v33  ;;  %v4677_v43 = vmul.f32 0.70710677, %v4661_v36 }
 0x106   : > { %v4684_v47 = vmul.f32 0.70710677, %v4670_v40  ;;  %v4690_v52 = vmul.f32 0.70710677, %v4680_v45 }
 0x107   : > { %v516_v44 = vand.u32 2147483647, %v4668_v39  ;;  %v518_v46 = vand.u32 2147483647, %v4677_v43  ;;  %vm820_vm1 = vcmp.ge.f32.partialorder %v4668_v39, 0.0  ;;  %vm822_vm2 = vcmp.ge.f32.partialorder %v4677_v43, 0.0 }
 0x108   : > { %v471_v31 = vpop.f32.mrb[4].mxu1  ;;  %v4653_v32 = vpop.f32.mrb[4].mxu0  ;;  %v4687_v50 = vand.u32 2147483647, %v4684_v47  ;;  %v4694_v55 = vand.u32 2147483647, %v4690_v52 }
 0x109   : > { %v4657_v34 = vpop.f32.mrb[5].mxu0  ;;  %v4659_v35 = vpop.f32.mrb[5].mxu1  ;;  %v532_v48 = vmul.f32 0.3275911, %v516_v44  ;;  %v534_v49 = vmul.f32 0.3275911, %v518_v46  ;;  %v4700_v59 = vadd.f32 %v471_v31, %v4696_v56 }
 0x10a   : > { %v4663_v37 = vpop.f32.mrb[6].mxu0  ;;  %v4665_v38 = vpop.f32.mrb[6].mxu1  ;;  %v533_v54 = vmul.f32 0.3275911, %v4687_v50  ;;  %v535_v58 = vmul.f32 0.3275911, %v4694_v55 }
 0x10b   : > { %v4672_v41 = vpop.f32.mrb[7].mxu0  ;;  %v4674_v42 = vpop.f32.mrb[7].mxu1  ;;  %v548_v51 = vadd.f32 1.0, %v532_v48  ;;  %v550_v53 = vadd.f32 1.0, %v534_v49  ;;  %v724_v61 = vsub.f32 0.0, %v516_v44  ;;  %v726_v63 = vsub.f32 0.0, %v518_v46 }
 0x10c   : > { %v549_v57 = vadd.f32 1.0, %v533_v54  ;;  %v551_v60 = vadd.f32 1.0, %v535_v58  ;;  %v4703_v62 = vmul.f32 0.70710677, %v4700_v59  ;;  %v8521_v48 = vlaneseq }
 0x10d   : > { %4193 = vrcp.f32 %v548_v51  ;;  %v740_v3 = vmul.f32 %v724_v61, %v516_v44  ;;  %v742_v6 = vmul.f32 %v726_v63, %v518_v46  ;;  %vm821_vm3 = vcmp.ge.f32.partialorder %v4684_v47, 0.0 }
 0x10e   : > { %4195 = vrcp.f32 %v550_v53  ;;  %v4706_v1 = vand.u32 2147483647, %v4703_v62  ;;  %vm823_vm4 = vcmp.ge.f32.partialorder %v4690_v52, 0.0  ;;  %vm826_vm5 = vcmp.ge.f32.partialorder %v4703_v62, 0.0 }
 0x10f   : > { %4197 = vrcp.f32 %v549_v57  ;;  %v760_v11 = vmul.f32 1.442695, %v740_v3  ;;  %v764_v14 = vmul.f32 1.442695, %v742_v6 }
 0x110   : > { %4199 = vrcp.f32 %v551_v60  ;;  %v538_v8 = vmul.f32 0.3275911, %v4706_v1  ;;  %v4717_v60 = vshrl.u32 %v8521_v48, 7 }
 0x111   : > { %4201 = vpow2.f32 %v760_v11 }
 0x112   : > { %v554_v27 = vadd.f32 1.0, %v538_v8  ;;  %4203 = vpow2.f32 %v764_v14  ;;  %v900_v11 = vsub.s32 0, %v4717_v60  ;;  %v727_v14 = vsub.f32 0.0, %v4694_v55 }
 0x114   : > { %4205 = vrcp.f32 %v554_v27 }
 0x117   : > { %v4194_v2 = vpop.eup %4193 }
 0x118   : > { %v4196_v4 = vpop.eup %4195  ;;  %v580_v5 = vmul.f32 1.0614054, %v4194_v2 }
 0x119   : > { %v582_v7 = vmul.f32 1.0614054, %v4196_v4  ;;  %v4709_v10 = vpop.eup %4197 }
 0x11a   : > { %v596_v9 = vadd.f32 -1.4531521, %v580_v5  ;;  %v581_v26 = vmul.f32 1.0614054, %v4709_v10  ;;  %v4712_v28 = vpop.eup %4199 }
 0x11b   : > { %v598_v12 = vadd.f32 -1.4531521, %v582_v7  ;;  %v583_v44 = vmul.f32 1.0614054, %v4712_v28  ;;  %v725_v7 = vsub.f32 0.0, %v4687_v50 }
 0x11c   : > { %v612_v13 = vmul.f32 %v4194_v2, %v596_v9  ;;  %v597_v31 = vadd.f32 -1.4531521, %v581_v26  ;;  %v4202_v9 = vpop.eup %4201  ;;  %v4727_v26 = vld [vmem:[%s8857_s1] sm:$0xf]  ;;  %s8964_s1 = smov 86  }
 0x11d   : > { %v614_v16 = vmul.f32 %v4196_v4, %v598_v12  ;;  %v599_v54 = vadd.f32 -1.4531521, %v583_v44  ;;  %v730_v44 = vsub.f32 0.0, %v4706_v1 }
 0x11e   : > { %v628_v29 = vadd.f32 1.4214138, %v612_v13  ;;  %v613_v51 = vmul.f32 %v4709_v10, %v597_v31 }
 0x11f   : > { %v630_v30 = vadd.f32 1.4214138, %v614_v16  ;;  %v615_v5 = vmul.f32 %v4712_v28, %v599_v54  ;;  %v4204_v16 = vpop.eup %4203 }
 0x120   : > { %v644_v46 = vmul.f32 %v4194_v2, %v628_v29  ;;  %v629_v63 = vadd.f32 1.4214138, %v613_v51  ;;  %v4739_v51 = vrot.slane %v4727_v26, %v900_v11 }
 0x121   : > { %v646_v49 = vmul.f32 %v4196_v4, %v630_v30  ;;  %v631_v29 = vadd.f32 1.4214138, %v615_v5  ;;  %v4729_v30 = vpop.eup %4205 }
 0x122   : > { %v660_v53 = vadd.f32 -0.28449672, %v644_v46  ;;  %v645_v13 = vmul.f32 %v4709_v10, %v629_v63  ;;  %v586_v63 = vmul.f32 1.0614054, %v4729_v30 }
 0x123   : > { %v662_v57 = vadd.f32 -0.28449672, %v646_v49  ;;  %v4736_v49 = vadd.f32 %v4653_v32, %v4696_v56  ;;  %v746_v32 = vmul.f32 %v730_v44, %v4706_v1  ;;  %v486_v1 = vmul.f32 0.5, %v4661_v36 }
 0x124   : > { %v676_v58 = vmul.f32 %v4194_v2, %v660_v53  ;;  %v661_v54 = vadd.f32 -0.28449672, %v645_v13 }
 0x125   : > { %v678_v61 = vmul.f32 %v4196_v4, %v662_v57  ;;  %v743_v57 = vmul.f32 %v727_v14, %v4694_v55  ;;  %v772_v43 = vmul.f32 1.442695, %v746_v32  ;;  %v4778_v32 = vadd.f32 %v4657_v34, %v4696_v56 }
 0x126   : > { %v692_v3 = vadd.f32 0.2548296, %v676_v58  ;;  %v484_v58 = vmul.f32 0.5, %v4655_v33  ;;  %v4791_v34 = vadd.f32 %v4659_v35, %v4696_v56 }
 0x127   : > { %v694_v6 = vadd.f32 0.2548296, %v678_v61  ;;  %v766_v11 = vmul.f32 1.442695, %v743_v57 }
 0x128   : > { %v708_v8 = vmul.f32 %v4194_v2, %v692_v3  ;;  %v741_v2 = vmul.f32 %v725_v7, %v4687_v50  ;;  %v647_v50 = vmul.f32 %v4712_v28, %v631_v29  ;;  %v602_v7 = vadd.f32 -1.4531521, %v586_v63 }
 0x129   : > { %v710_v12 = vmul.f32 %v4196_v4, %v694_v6  ;;  %v908_v4 = vsub.s32 2, %v4717_v60 }
 0x12a   : > { %v788_v27 = vmul.f32 %v4202_v9, %v708_v8  ;;  %v762_v5 = vmul.f32 1.442695, %v741_v2  ;;  %v4749_v8 = vmul.f32 0.70710677, %v4736_v49  ;;  %v677_v9 = vmul.f32 %v4709_v10, %v661_v54 }
 0x12b   : > { %v790_v31 = vmul.f32 %v4204_v16, %v710_v12  ;;  %v663_v13 = vadd.f32 -0.28449672, %v647_v50  ;;  %v618_v39 = vmul.f32 %v4729_v30, %v602_v7  ;;  %v4761_v54 = vrot.slane %v4727_v26, %v908_v4 }
 0x12c   : > { %v804_v46 = vsub.f32 1.0, %v788_v27  ;;  %v520_v14 = vand.u32 2147483647, %v4749_v8  ;;  %4207 = vpow2.f32 %v762_v5  ;;  %v693_v44 = vadd.f32 0.2548296, %v677_v9 }
 0x12d   : > { %v806_v53 = vsub.f32 1.0, %v790_v31  ;;  %v634_v27 = vadd.f32 1.4214138, %v618_v39  ;;  %4209 = vpow2.f32 %v766_v11  ;;  %v4787_v11 = vmul.f32 0.70710677, %v4778_v32 }
 0x12e   : > { %v836_v61 = vsub.f32 0.0, %v804_v46  ;;  %v536_v29 = vmul.f32 0.3275911, %v520_v14  ;;  %4211 = vpow2.f32 %v772_v43  ;;  %v728_v5 = vsub.f32 0.0, %v520_v14 }
 0x12f   : > { %v838_v3 = vsub.f32 0.0, %v806_v53  ;;  %vm824_vm6 = vcmp.ge.f32.partialorder %v4749_v8, 0.0  ;;  %vm825_vm7 = vcmp.ge.f32.partialorder %v4787_v11, 0.0 }
 0x130   : > { %v852_v6 = vsel %vm820_vm1, %v804_v46, %v836_v61  ;;  %v679_v46 = vmul.f32 %v4712_v28, %v663_v13  ;;  %v552_v57 = vadd.f32 1.0, %v536_v29  ;;  %v709_v61 = vmul.f32 %v4709_v10, %v693_v44 }
 0x131   : > { %v868_v55 = vadd.f32 1.0, %v852_v6  ;;  %v854_v33 = vsel %vm822_vm2, %v806_v53, %v838_v3  ;;  %v650_v53 = vmul.f32 %v4729_v30, %v634_v27  ;;  %v744_v9 = vmul.f32 %v728_v5, %v520_v14 }
 0x132   : > { %v870_v12 = vadd.f32 1.0, %v854_v33  ;;  %4213 = vrcp.f32 %v552_v57  ;;  %v695_v50 = vadd.f32 0.2548296, %v679_v46 }
 0x133   : > { %v884_v16 = vmul.f32 %v868_v55, %v484_v58  ;;  %v666_v36 = vadd.f32 -0.28449672, %v650_v53  ;;  %v768_v14 = vmul.f32 1.442695, %v744_v9 }
 0x134   : > { %v886_v2 = vmul.f32 %v870_v12, %v486_v1  ;;  %v711_v7 = vmul.f32 %v4712_v28, %v695_v50  ;;  %v4801_v1 = vmul.f32 0.70710677, %v4791_v34 }
 0x135   : > { %v4756_v31 = vmul.f32 %v4739_v51, %v884_v16  ;;  %v682_v4 = vmul.f32 %v4729_v30, %v666_v36  ;;  %v4798_v16 = vand.u32 2147483647, %v4787_v11  ;;  %4215 = vpow2.f32 %v768_v14 }
 0x136   : > { %v4768_v58 = vmul.f32 %v4761_v54, %v886_v2  ;;  %v4208_v3 = vpop.eup %4207  ;;  %v4810_v44 = vand.u32 2147483647, %v4801_v1  ;;  %vm827_vm8 = vcmp.ge.f32.partialorder %v4801_v1, 0.0  ;;  %v489_v11 = vmul.f32 0.5, %v4778_v32 }
 0x137   : > { %1118 = vrot.lane.b32.xlu0 %v4756_v31, %s8555_s21  ;;  %1090 = vrot.lane.b32.xlu1 %v4756_v31, %s8567_s22  ;;  %v698_v63 = vadd.f32 0.2548296, %v682_v4  ;;  %v789_v6 = vmul.f32 %v4208_v3, %v709_v61  ;;  %v4210_v10 = vpop.eup %4209  ;;  %v537_v2 = vmul.f32 0.3275911, %v4798_v16  ;;  %v904_v3 = vsub.s32 1, %v4717_v60 }
 0x138   : > { %v4212_v33 = vpop.eup %4211  ;;  %v791_v12 = vmul.f32 %v4210_v10, %v711_v7  ;;  %v539_v4 = vmul.f32 0.3275911, %v4810_v44  ;;  %v485_v7 = vmul.f32 0.5, %v4670_v40  ;;  %v912_v40 = vsub.s32 3, %v4717_v60 }
 0x139   : > { %v714_v55 = vmul.f32 %v4729_v30, %v698_v63  ;;  %v805_v28 = vsub.f32 1.0, %v789_v6  ;;  %v553_v50 = vadd.f32 1.0, %v537_v2  ;;  %v4406_v63 = vmov 24  }
 0x13a   : > { %v807_v56 = vsub.f32 1.0, %v791_v12  ;;  %4132 = vset.pattern.permute.xlu0 %v4406_v63  ;;  %4134 = vset.pattern.permute.xlu1 %v4406_v63  ;;  %v4826_v9 = vrot.slane %v4727_v26, %v904_v3  ;;  %v4839_v60 = vrot.slane %v4727_v26, %v912_v40  ;;  %v488_v26 = vmul.f32 0.5, %v4736_v49 }
 0x13b   : > { %1122 = vrot.lane.b32.xlu0 %v4768_v58, %s8555_s21  ;;  %1094 = vrot.lane.b32.xlu1 %v4768_v58, %s8567_s22  ;;  %v794_v30 = vmul.f32 %v4212_v33, %v714_v55  ;;  %v837_v35 = vsub.f32 0.0, %v805_v28  ;;  %4217 = vrcp.f32 %v553_v50  ;;  %v555_v33 = vadd.f32 1.0, %v539_v4 }
 0x13c   : > { %v4214_v13 = vpop.eup %4213  ;;  %v839_v53 = vsub.f32 0.0, %v807_v56  ;;  %v729_v3 = vsub.f32 0.0, %v4798_v16  ;;  %v491_v1 = vmul.f32 0.5, %v4791_v34 }
 0x13d   : > { %v584_v39 = vmul.f32 1.0614054, %v4214_v13  ;;  %v810_v27 = vsub.f32 1.0, %v794_v30  ;;  %v853_v46 = vsel %vm821_vm3, %v805_v28, %v837_v35  ;;  %v487_v30 = vmul.f32 0.5, %v4680_v45 }
 0x13e   : > { %v869_v61 = vadd.f32 1.0, %v853_v46  ;;  %v855_v5 = vsel %vm823_vm4, %v807_v56, %v839_v53  ;;  %4219 = vrcp.f32 %v555_v33 }
 0x13f   : > { %1147 = vrot.lane.b32.xlu0 %v4768_v58, %s8503_s23  ;;  %1143 = vrot.lane.b32.xlu1 %v4756_v31, %s8503_s23  ;;  %v600_v43 = vadd.f32 -1.4531521, %v584_v39  ;;  %v842_v36 = vsub.f32 0.0, %v810_v27  ;;  %v871_v55 = vadd.f32 1.0, %v855_v5  ;;  %v4216_v12 = vpop.eup %4215  ;;  %v490_v39 = vmul.f32 0.5, %v4700_v59 }
 0x140   : > { %v885_v10 = vmul.f32 %v869_v61, %v485_v7  ;;  %v745_v7 = vmul.f32 %v729_v3, %v4798_v16 }
 0x141   : > { %v616_v29 = vmul.f32 %v4214_v13, %v600_v43  ;;  %v858_v52 = vsel %vm826_vm5, %v810_v27, %v842_v36  ;;  %v887_v43 = vmul.f32 %v871_v55, %v487_v30 }
 0x142   : > { %v874_v14 = vadd.f32 1.0, %v858_v52  ;;  %v4836_v56 = vmul.f32 %v4826_v9, %v885_v10  ;;  %v731_v52 = vsub.f32 0.0, %v4810_v44  ;;  %v770_v55 = vmul.f32 1.442695, %v745_v7 }
 0x143   : > { %1172 = vrot.lane.b32.xlu0 %v4768_v58, %s8505_s24  ;;  %1168 = vrot.lane.b32.xlu1 %v4756_v31, %s8505_s24  ;;  %v632_v57 = vadd.f32 1.4214138, %v616_v29  ;;  %v4846_v29 = vmul.f32 %v4839_v60, %v887_v43 }
 0x144   : > { %v890_v45 = vmul.f32 %v874_v14, %v490_v39  ;;  %v747_v33 = vmul.f32 %v731_v52, %v4810_v44  ;;  %4221 = vpow2.f32 %v770_v55  ;;  %v335_v14 = vpop.permute.xlu1 %334 }
 0x145   : > { %v648_v47 = vmul.f32 %v4214_v13, %v632_v57  ;;  %v4218_v2 = vpop.eup %4217  ;;  %v4928_v3 = vadd.f32 %v4663_v37, %v335_v14  ;;  %v4940_v37 = vadd.f32 %v4672_v41, %v335_v14 }
 0x146   : > { %v4850_v46 = vmul.f32 %v4761_v54, %v890_v45  ;;  %v585_v36 = vmul.f32 1.0614054, %v4218_v2  ;;  %v774_v16 = vmul.f32 1.442695, %v747_v33  ;;  %v4956_v33 = vadd.f32 %v4674_v42, %v335_v14 }
 0x147   : > { %1197 = vrot.lane.b32.xlu0 %v4768_v58, %s8507_s25  ;;  %1193 = vrot.lane.b32.xlu1 %v4756_v31, %s8507_s25  ;;  %v664_v6 = vadd.f32 -0.28449672, %v648_v47  ;;  %v4937_v52 = vmul.f32 0.70710677, %v4928_v3  ;;  %v4953_v41 = vmul.f32 0.70710677, %v4940_v37 }
 0x148   : > { %8858 = vst [vmem:[#allocation13_spill] sm:$0xff] %v4850_v46  ;;  %v4220_v47 = vpop.eup %4219  ;;  %v601_v8 = vadd.f32 -1.4531521, %v585_v36  ;;  %4223 = vpow2.f32 %v774_v16  ;;  %v4913_v36 = vpop.permute.xlu1 %954 }
 0x149   : > { %v680_v62 = vmul.f32 %v4214_v13, %v664_v6  ;;  %v587_v50 = vmul.f32 1.0614054, %v4220_v47  ;;  %v4950_v55 = vand.u32 2147483647, %v4937_v52  ;;  %v4971_v42 = vand.u32 2147483647, %v4953_v41 }
 0x14a   : > { %v617_v4 = vmul.f32 %v4218_v2, %v601_v8  ;;  %vm828_vm10 = vcmp.ge.f32.partialorder %v4937_v52, 0.0  ;;  %vm829_vm11 = vcmp.ge.f32.partialorder %v4953_v41, 0.0  ;;  %v5185_v41 = vld [vmem:[%s8496_s4 + $0x8] sm:$0xff] }
 0x14b   : > { %1222 = vrot.lane.b32.xlu0 %v4768_v58, %s8531_s26  ;;  %1218 = vrot.lane.b32.xlu1 %v4756_v31, %s8531_s26  ;;  %v696_v28 = vadd.f32 0.2548296, %v680_v62  ;;  %v603_v63 = vadd.f32 -1.4531521, %v587_v50 }
 0x14c   : > { %v633_v5 = vadd.f32 1.4214138, %v617_v4  ;;  %v4925_v50 = vpop.permute.xlu1 %1083 }
 0x14d   : > { %v712_v35 = vmul.f32 %v4214_v13, %v696_v28  ;;  %v619_v6 = vmul.f32 %v4220_v47, %v603_v63 }
 0x14e   : > { %v649_v62 = vmul.f32 %v4218_v2, %v633_v5  ;;  %v4222_v45 = vpop.eup %4221 }
 0x14f   : > { %1247 = vrot.lane.b32.xlu0 %v4768_v58, %s8513_s10  ;;  %1243 = vrot.lane.b32.xlu1 %v4756_v31, %s8513_s10  ;;  %v792_v27 = vmul.f32 %v4216_v12, %v712_v35  ;;  %v635_v10 = vadd.f32 1.4214138, %v619_v6 }
 0x150   : > { %v665_v28 = vadd.f32 -0.28449672, %v649_v62  ;;  %v4942_v62 = vpop.permute.xlu1 %1107 }
 0x151   : > { %v808_v59 = vsub.f32 1.0, %v792_v27  ;;  %v651_v12 = vmul.f32 %v4220_v47, %v635_v10  ;;  %v4897_v27 = vadd.f32 %v4665_v38, %v335_v14 }
 0x152   : > { %v681_v40 = vmul.f32 %v4218_v2, %v665_v28  ;;  %v4962_v28 = vpop.permute.xlu0 %1132 }
 0x153   : > { %1272 = vrot.lane.b32.xlu0 %v4768_v58, %s8515_s12  ;;  %1268 = vrot.lane.b32.xlu1 %v4756_v31, %s8515_s12  ;;  %v840_v13 = vsub.f32 0.0, %v808_v59  ;;  %v667_v30 = vadd.f32 -0.28449672, %v651_v12 }
 0x154   : > { %v697_v44 = vadd.f32 0.2548296, %v681_v40  ;;  %v4967_v16 = vpop.permute.xlu1 %1406  ;;  %v540_v40 = vmul.f32 0.3275911, %v4950_v55 }
 0x155   : > { %v856_v53 = vsel %vm824_vm6, %v808_v59, %v840_v13  ;;  %v683_v39 = vmul.f32 %v4220_v47, %v667_v30  ;;  %8860 = vst [vmem:[#allocation15_spill] sm:$0xff] %v4967_v16  ;;  %v4974_v30 = vmul.f32 0.70710677, %v4956_v33 }
 0x156   : > { %v872_v57 = vadd.f32 1.0, %v856_v53  ;;  %v713_v35 = vmul.f32 %v4218_v2, %v697_v44  ;;  %v4224_v53 = vpop.eup %4223  ;;  %v4985_v14 = vpop.permute.xlu0 %1941 }
 0x157   : > { %1092 = vrot.lane.b32.xlu0 %v4836_v56, %s8567_s22  ;;  %1120 = vrot.lane.b32.xlu1 %v4836_v56, %s8555_s21  ;;  %v699_v43 = vadd.f32 0.2548296, %v683_v39  ;;  %8862 = vst [vmem:[#allocation17_spill] sm:$0xff] %v4985_v14  ;;  %vm831_vm12 = vcmp.ge.f32.partialorder %v4974_v30, 0.0 }
 0x158   : > { %v888_v61 = vmul.f32 %v872_v57, %v488_v26  ;;  %v793_v59 = vmul.f32 %v4222_v45, %v713_v35  ;;  %v4904_v26 = vmul.f32 0.70710677, %v4897_v27  ;;  %v556_v35 = vadd.f32 1.0, %v540_v40 }
 0x159   : > { %v715_v13 = vmul.f32 %v4220_v47, %v699_v43  ;;  %v541_v45 = vmul.f32 0.3275911, %v4971_v42 }
 0x15a   : > { %v4862_v49 = vmul.f32 %v4739_v51, %v888_v61  ;;  %v809_v38 = vsub.f32 1.0, %v793_v59  ;;  %v4911_v57 = vand.u32 2147483647, %v4904_v26  ;;  %v4990_v59 = vand.u32 2147483647, %v4974_v30 }
 0x15b   : > { %1096 = vrot.lane.b32.xlu0 %v4846_v29, %s8567_s22  ;;  %1124 = vrot.lane.b32.xlu1 %v4846_v29, %s8555_s21  ;;  %v795_v2 = vmul.f32 %v4224_v53, %v715_v13  ;;  %v4992_v13 = vpop.permute.xlu1 %1615  ;;  %vm830_vm9 = vcmp.ge.f32.partialorder %v4904_v26, 0.0 }
 0x15c   : > { %v841_v47 = vsub.f32 0.0, %v809_v38  ;;  %v542_v8 = vmul.f32 0.3275911, %v4911_v57  ;;  %8863 = vst [vmem:[#allocation18_spill] sm:$0xff] %v4992_v13  ;;  %v735_v13 = vsub.f32 0.0, %v4990_v59 }
 0x15d   : > { %v811_v61 = vsub.f32 1.0, %v795_v2  ;;  %v543_v2 = vmul.f32 0.3275911, %v4990_v59 }
 0x15e   : > { %v857_v4 = vsel %vm825_vm7, %v809_v38, %v841_v47  ;;  %v558_v5 = vadd.f32 1.0, %v542_v8  ;;  %v557_v38 = vadd.f32 1.0, %v541_v45 }
 0x15f   : > { %1635 = vrot.lane.b32.xlu0 %v4850_v46, %s8509_s13  ;;  %1145 = vrot.lane.b32.xlu1 %v4836_v56, %s8503_s23  ;;  %v843_v63 = vsub.f32 0.0, %v811_v61  ;;  %v873_v6 = vadd.f32 1.0, %v857_v4  ;;  %v5003_v47 = vpop.permute.xlu1 %1671  ;;  %v559_v4 = vadd.f32 1.0, %v543_v2 }
 0x160   : > { %4225 = vrcp.f32 %v558_v5  ;;  %8864 = vst [vmem:[#allocation19_spill] sm:$0xff] %v5003_v47 }
 0x161   : > { %v859_v7 = vsel %vm827_vm8, %v811_v61, %v843_v63  ;;  %v889_v32 = vmul.f32 %v873_v6, %v489_v11  ;;  %4227 = vrcp.f32 %v556_v35  ;;  %v5005_v61 = vpop.permute.xlu0 %1966  ;;  %v734_v11 = vsub.f32 0.0, %v4911_v57 }
 0x162   : > { %v875_v10 = vadd.f32 1.0, %v859_v7  ;;  %8865 = vst [vmem:[#allocation20_spill] sm:$0xff] %v5005_v61  ;;  %4229 = vrcp.f32 %v557_v38  ;;  %v733_v61 = vsub.f32 0.0, %v4971_v42 }
 0x163   : > { %1682 = vrot.lane.b32.xlu0 %v4862_v49, %s8501_s17  ;;  %1149 = vrot.lane.b32.xlu1 %v4846_v29, %s8503_s23  ;;  %v4965_v34 = vmul.f32 %v4826_v9, %v889_v32  ;;  %4231 = vrcp.f32 %v559_v4 }
 0x164   : > { %v891_v12 = vmul.f32 %v875_v10, %v491_v1  ;;  %v750_v10 = vmul.f32 %v734_v11, %v4911_v57 }
 0x165   : > { %8859 = vst [vmem:[#allocation14_spill] sm:$0xff] %v4965_v34 }
 0x166   : > { %v4983_v39 = vmul.f32 %v4839_v60, %v891_v12 }
 0x167   : > { %1686 = vrot.lane.b32.xlu0 %v4850_v46, %s8501_s17  ;;  %1170 = vrot.lane.b32.xlu1 %v4836_v56, %s8505_s24  ;;  %s8544_s17 = smov 20  }
 0x168   : > { %8861 = vst [vmem:[#allocation16_spill] sm:$0xff] %v4983_v39 }
 0x16a   : > { %v4980_v44 = vpop.eup %4225 }
 0x16b   : > { %1711 = vrot.lane.b32.xlu0 %v4850_v46, %s8619_s18  ;;  %1174 = vrot.lane.b32.xlu1 %v4846_v29, %s8505_s24  ;;  %v590_v43 = vmul.f32 1.0614054, %v4980_v44  ;;  %v5021_v7 = vpop.eup %4227 }
 0x16c   : > { %v588_v40 = vmul.f32 1.0614054, %v5021_v7  ;;  %v5034_v35 = vpop.eup %4229 }
 0x16d   : > { %v606_v53 = vadd.f32 -1.4531521, %v590_v43  ;;  %v589_v2 = vmul.f32 1.0614054, %v5034_v35 }
 0x16e   : > { %v604_v57 = vadd.f32 -1.4531521, %v588_v40 }
 0x16f   : > { %1736 = vrot.lane.b32.xlu0 %v4850_v46, %s8606_s19  ;;  %1195 = vrot.lane.b32.xlu1 %v4836_v56, %s8507_s25  ;;  %v622_v8 = vmul.f32 %v4980_v44, %v606_v53  ;;  %v780_v53 = vmul.f32 1.442695, %v750_v10 }
 0x170   : > { %v620_v10 = vmul.f32 %v5021_v7, %v604_v57 }
 0x171   : > { %v638_v6 = vadd.f32 1.4214138, %v622_v8  ;;  %v5045_v8 = vpop.eup %4231  ;;  %4233 = vpow2.f32 %v780_v53  ;;  %v732_v53 = vsub.f32 0.0, %v4950_v55 }
 0x172   : > { %v591_v40 = vmul.f32 1.0614054, %v5045_v8 }
 0x173   : > { %1761 = vrot.lane.b32.xlu0 %v4850_v46, %s8583_s20  ;;  %1199 = vrot.lane.b32.xlu1 %v4846_v29, %s8507_s25  ;;  %v654_v12 = vmul.f32 %v4980_v44, %v638_v6 }
 0x175   : > { %v670_v38 = vadd.f32 -0.28449672, %v654_v12  ;;  %v605_v12 = vadd.f32 -1.4531521, %v589_v2  ;;  %v607_v2 = vadd.f32 -1.4531521, %v591_v40 }
 0x177   : > { %1786 = vrot.lane.b32.xlu0 %v4850_v46, %s8567_s22  ;;  %1220 = vrot.lane.b32.xlu1 %v4836_v56, %s8531_s26  ;;  %v686_v6 = vmul.f32 %v4980_v44, %v670_v38  ;;  %v636_v38 = vadd.f32 1.4214138, %v620_v10  ;;  %v621_v57 = vmul.f32 %v5034_v35, %v605_v12  ;;  %v623_v14 = vmul.f32 %v5045_v8, %v607_v2 }
 0x179   : > { %v702_v48 = vadd.f32 0.2548296, %v686_v6  ;;  %v748_v6 = vmul.f32 %v732_v53, %v4950_v55  ;;  %v652_v12 = vmul.f32 %v5021_v7, %v636_v38  ;;  %v637_v40 = vadd.f32 1.4214138, %v621_v57 }
 0x17a   : > { %v749_v53 = vmul.f32 %v733_v61, %v4971_v42  ;;  %v639_v2 = vadd.f32 1.4214138, %v623_v14 }
 0x17b   : > { %1810 = vrot.lane.b32.xlu0 %v4850_v46, %s8555_s21  ;;  %1224 = vrot.lane.b32.xlu1 %v4846_v29, %s8531_s26  ;;  %v718_v0 = vmul.f32 %v4980_v44, %v702_v48  ;;  %v4234_v10 = vpop.eup %4233  ;;  %v776_v55 = vmul.f32 1.442695, %v748_v6  ;;  %v668_v38 = vadd.f32 -0.28449672, %v652_v12  ;;  %v653_v57 = vmul.f32 %v5034_v35, %v637_v40 }
 0x17c   : > { %v778_v61 = vmul.f32 1.442695, %v749_v53  ;;  %v751_v6 = vmul.f32 %v735_v13, %v4990_v59  ;;  %v655_v12 = vmul.f32 %v5045_v8, %v639_v2  ;;  %v8880_v53 = vmov 0   ;;  %v940_v2 = vld [vmem:[%s8856_s5 + $0x10] sm:$0xff] }
 0x17d   : > { %v798_v44 = vmul.f32 %v4234_v10, %v718_v0  ;;  %v934_v0 = vld [vmem:[%s8496_s4] sm:$0xff]  ;;  %4235 = vpow2.f32 %v776_v55  ;;  %v684_v14 = vmul.f32 %v5021_v7, %v668_v38  ;;  %v669_v10 = vadd.f32 -0.28449672, %v653_v57 }
 0x17e   : > { %v942_v40 = vadd.f32 1.0, %v934_v0  ;;  %4237 = vpow2.f32 %v778_v61  ;;  %v671_v13 = vadd.f32 -0.28449672, %v655_v12 }
 0x17f   : > { %1834 = vrot.lane.b32.xlu0 %v4850_v46, %s8503_s23  ;;  %1245 = vrot.lane.b32.xlu1 %v4836_v56, %s8513_s10  ;;  %s8542_s23 = smov 2   ;;  %v814_v42 = vsub.f32 1.0, %v798_v44  ;;  %v782_v44 = vmul.f32 1.442695, %v751_v6  ;;  %v700_v59 = vadd.f32 0.2548296, %v684_v14 }
 0x180   : > { %v687_v6 = vmul.f32 %v5045_v8, %v671_v13 }
 0x181   : > { %v846_v55 = vsub.f32 0.0, %v814_v42  ;;  %4239 = vpow2.f32 %v782_v44  ;;  %v716_v61 = vmul.f32 %v5021_v7, %v700_v59  ;;  %v5136_v7 = vld [vmem:[%s8496_s4 + $0x10] sm:$0xff] }
 0x183   : > { %1858 = vrot.lane.b32.xlu0 %v4850_v46, %s8544_s17  ;;  %1249 = vrot.lane.b32.xlu1 %v4846_v29, %s8513_s10  ;;  %v862_v0 = vsel %vm830_vm9, %v814_v42, %v846_v55  ;;  %v703_v55 = vadd.f32 0.2548296, %v687_v6 }
 0x187   : > { %1883 = vrot.lane.b32.xlu0 %v4850_v46, %s8542_s23  ;;  %1270 = vrot.lane.b32.xlu1 %v4836_v56, %s8515_s12  ;;  %v4236_v14 = vpop.eup %4235 }
 0x188   : > { %v4238_v44 = vpop.eup %4237 }
 0x18b   : > { %1908 = vrot.lane.b32.xlu0 %v4850_v46, %s8505_s24  ;;  %1274 = vrot.lane.b32.xlu1 %v4846_v29, %s8515_s12  ;;  %s8553_s24 = smov 126  }
 0x18f   : > { %1932 = vrot.lane.b32.xlu0 %v4850_v46, %s8507_s25  ;;  %1631 = vrot.lane.b32.xlu1 %v4862_v49, %s8509_s13  ;;  %s8511_s25 = smov 45   ;;  %s8551_s13 = smov 108  }
 0x193   : > { %1956 = vrot.lane.b32.xlu0 %v4850_v46, %s8553_s24  ;;  %1657 = vrot.lane.b32.xlu1 %v4862_v49, %s8511_s25 }
 0x197   : > { %1981 = vrot.lane.b32.xlu0 %v4850_v46, %s8551_s13  ;;  %1661 = vrot.lane.b32.xlu1 %v4850_v46, %s8511_s25 }
 0x19b   : > { %1659 = vrot.lane.b32.xlu0 %v4965_v34, %s8511_s25  ;;  %1707 = vrot.lane.b32.xlu1 %v4862_v49, %s8619_s18 }
 0x19f   : > { %1663 = vrot.lane.b32.xlu0 %v4983_v39, %s8511_s25  ;;  %1732 = vrot.lane.b32.xlu1 %v4862_v49, %s8606_s19  ;;  %s8517_s25 = smov 104  }
 0x1a3   : > { %2006 = vrot.lane.b32.xlu0 %v4850_v46, %s8531_s26  ;;  %1757 = vrot.lane.b32.xlu1 %v4862_v49, %s8583_s20  ;;  %s8538_s26 = smov 83  }
 0x1a7   : > { %2030 = vrot.lane.b32.xlu0 %v4850_v46, %s8513_s10  ;;  %1782 = vrot.lane.b32.xlu1 %v4862_v49, %s8567_s22  ;;  %s8866_s10 = smov 21  }
 0x1a9   : > { %v5012_v63 = vpop.permute.xlu0 %1118  ;;  %v5014_v5 = vpop.permute.xlu1 %1090 }
 0x1ab   : > { %2054 = vrot.lane.b32.xlu0 %v4850_v46, %s8515_s12  ;;  %1806 = vrot.lane.b32.xlu1 %v4862_v49, %s8555_s21  ;;  %s8522_s12 = smov 86   ;;  %s8597_s21 = smov 69  }
 0x1ad   : > { %v5023_v32 = vpop.permute.xlu0 %1122  ;;  %v5025_v1 = vpop.permute.xlu1 %1094 }
 0x1af   : > { %2078 = vrot.lane.b32.xlu0 %v4850_v46, %s8517_s25  ;;  %1830 = vrot.lane.b32.xlu1 %v4862_v49, %s8866_s10  ;;  %s8524_s25 = smov 85  }
 0x1b1   : > { %v5036_v43 = vpop.permute.xlu0 %1147  ;;  %v5038_v45 = vpop.permute.xlu1 %1143 }
 0x1b2   : > { %8867 = vst [vmem:[#allocation21_spill] sm:$0xff] %v5038_v45 }
 0x1b3   : > { %2103 = vrot.lane.b32.xlu0 %v4850_v46, %s8522_s12  ;;  %1854 = vrot.lane.b32.xlu1 %v4862_v49, %s8544_s17  ;;  %s8533_s12 = smov 84   ;;  %s8593_s17 = smov 68  }
 0x1b5   : > { %v5047_v4 = vpop.permute.xlu0 %1172  ;;  %v5049_v11 = vpop.permute.xlu1 %1168 }
 0x1b6   : > { %8868 = vst [vmem:[#allocation22_spill] sm:$0xff] %v5047_v4  ;;  %8869 = vst [vmem:[#allocation23_spill] sm:$0xff] %v5049_v11 }
 0x1b7   : > { %2128 = vrot.lane.b32.xlu0 %v4850_v46, %s8524_s25  ;;  %1879 = vrot.lane.b32.xlu1 %v4862_v49, %s8542_s23  ;;  %s8872_s25 = smov 1   ;;  %s8881_s23 = smov 46  }
 0x1b9   : > { %v5058_v20 = vpop.permute.xlu0 %1197  ;;  %v5060_v19 = vpop.permute.xlu1 %1193 }
 0x1ba   : > { %8870 = vst [vmem:[#allocation24_spill] sm:$0xff] %v5058_v20  ;;  %8871 = vst [vmem:[#allocation25_spill] sm:$0xff] %v5060_v19 }
 0x1bb   : > { %2153 = vrot.lane.b32.xlu0 %v4850_v46, %s8533_s12  ;;  %1904 = vrot.lane.b32.xlu1 %v4862_v49, %s8872_s25  ;;  %s8875_s12 = smov 127  }
 0x1bd   : > { %v5068_v18 = vpop.permute.xlu0 %1222  ;;  %v5070_v17 = vpop.permute.xlu1 %1218 }
 0x1be   : > { %8873 = vst [vmem:[#allocation26_spill] sm:$0xff] %v5068_v18  ;;  %8874 = vst [vmem:[#allocation27_spill] sm:$0xff] %v5070_v17 }
 0x1bf   : > { %2178 = vrot.lane.b32.xlu0 %v4850_v46, %s8538_s26  ;;  %1928 = vrot.lane.b32.xlu1 %v4862_v49, %s8875_s12  ;;  %s8548_s26 = smov 82  }
 0x1c1   : > { %v5081_v47 = vpop.permute.xlu0 %1247  ;;  %v5083_v48 = vpop.permute.xlu1 %1243 }
 0x1c2   : > { %8876 = vst [vmem:[#allocation28_spill] sm:$0xff] %v5081_v47  ;;  %8877 = vst [vmem:[#allocation29_spill] sm:$0xff] %v5083_v48 }
 0x1c3   : > { %2203 = vrot.lane.b32.xlu0 %v4850_v46, %s8548_s26  ;;  %1952 = vrot.lane.b32.xlu1 %v4862_v49, %s8553_s24  ;;  %s8883_s26 = smov 44   ;;  %s8904_s24 = smov 22  }
 0x1c5   : > { %v5092_v16 = vpop.permute.xlu0 %1272  ;;  %v5094_v48 = vpop.permute.xlu1 %1268 }
 0x1c6   : > { %8878 = vst [vmem:[#allocation30_spill] sm:$0xff] %v5092_v16  ;;  %8879 = vst [vmem:[#allocation31_spill] sm:$0xff] %v5094_v48  ;;  %v796_v16 = vmul.f32 %v4236_v14, %v716_v61  ;;  %v4240_v61 = vpop.eup %4239 }
 0x1c7   : > { %2213 = vperm.xlu0 %4132, %v4630_v15   ;;  %1977 = vrot.lane.b32.xlu1 %v4862_v49, %s8551_s13  ;;  %v685_v15 = vmul.f32 %v5034_v35, %v669_v10  ;;  %s8569_s13 = smov 67  }
 0x1c8   : > { %v812_v13 = vsub.f32 1.0, %v796_v16 }
 0x1c9   : > { %v5105_v46 = vpop.permute.xlu0 %1092  ;;  %v5107_v48 = vpop.permute.xlu1 %1120  ;;  %v701_v26 = vadd.f32 0.2548296, %v685_v15 }
 0x1cb   : > { %4133 = vset.pattern.permute.xlu0 %v8880_v53  ;;  %1633 = vrot.lane.b32.xlu1 %v4965_v34, %s8881_s23  ;;  %v878_v53 = vadd.f32 1.0, %v862_v0  ;;  %v717_v42 = vmul.f32 %v5034_v35, %v701_v26  ;;  %v719_v0 = vmul.f32 %v5045_v8, %v703_v55 }
 0x1cc   : > { %945 = vperm.xlu0 %4133, %v942_v40   ;;  %v494_v40 = vmul.f32 0.5, %v4897_v27  ;;  %v941_v27 = vld [vmem:[%s8856_s5 + $0x18] sm:$0xff]  ;;  %s8978_s5 = smov 84  }
 0x1cd   : > { %v5114_v38 = vpop.permute.xlu0 %1096  ;;  %v5116_v57 = vpop.permute.xlu1 %1124  ;;  %v799_v47 = vmul.f32 %v4240_v61, %v719_v0 }
 0x1ce   : > { %v894_v35 = vmul.f32 %v878_v53, %v494_v40  ;;  %v5168_v53 = vld [vmem:[%s8496_s4 + $0x18] sm:$0xff] }
 0x1cf   : > { %1637 = vrot.lane.b32.xlu1 %v4983_v39, %s8881_s23  ;;  %v815_v55 = vsub.f32 1.0, %v799_v47  ;;  %v4426_v47 = vmov 2  }
 0x1d0   : > { %1624 = vperm.xlu0 %4133, %v940_v2   ;;  %v797_v2 = vmul.f32 %v4238_v44, %v717_v42  ;;  %v5154_v14 = vmul.f32 %v4761_v54, %v894_v35 }
 0x1d1   : > { %v5125_v10 = vpop.permute.xlu0 %1635  ;;  %v5127_v12 = vpop.permute.xlu1 %1145  ;;  %v847_v0 = vsub.f32 0.0, %v815_v55 }
 0x1d2   : > { %8882 = vst [vmem:[#allocation32_spill] sm:$0xff] %v5125_v10  ;;  %v813_v10 = vsub.f32 1.0, %v797_v2 }
 0x1d3   : > { %1684 = vrot.lane.b32.xlu1 %v4965_v34, %s8883_s26 }
 0x1d4   : > { %1646 = vperm.xlu0 %4133, %v5136_v7   ;;  %v845_v42 = vsub.f32 0.0, %v813_v10 }
 0x1d5   : > { %v5139_v59 = vpop.permute.xlu0 %1682  ;;  %v5141_v15 = vpop.permute.xlu1 %1149 }
 0x1d6   : > { %8884 = vst [vmem:[#allocation33_spill] sm:$0xff] %v5139_v59  ;;  %8885 = vst [vmem:[#allocation34_spill] sm:$0xff] %v5141_v15  ;;  %v844_v59 = vsub.f32 0.0, %v812_v13  ;;  %v861_v2 = vsel %vm829_vm11, %v813_v10, %v845_v42 }
 0x1d7   : > { %1688 = vrot.lane.b32.xlu1 %v4983_v39, %s8883_s26  ;;  %v877_v61 = vadd.f32 1.0, %v861_v2 }
 0x1d8   : > { %2455 = vperm.xlu0 %4133, %v941_v27   ;;  %v860_v40 = vsel %vm828_vm10, %v812_v13, %v844_v59  ;;  %v492_v27 = vmul.f32 0.5, %v4928_v3  ;;  %v493_v13 = vmul.f32 0.5, %v4940_v37  ;;  %vm8819_vm10 = vcmask 1043456  }
 0x1d9   : > { %v5149_v26 = vpop.permute.xlu0 %1686  ;;  %v5151_v6 = vpop.permute.xlu1 %1170  ;;  %v876_v35 = vadd.f32 1.0, %v860_v40  ;;  %v863_v40 = vsel %vm831_vm12, %v815_v55, %v847_v0 }
 0x1da   : > { %8886 = vst [vmem:[#allocation35_spill] sm:$0xff] %v5149_v26  ;;  %8887 = vst [vmem:[#allocation36_spill] sm:$0xff] %v5151_v6  ;;  %v4431_v26 = vmov 4  }
 0x1db   : > { %1709 = vrot.lane.b32.xlu1 %v4965_v34, %s8619_s18  ;;  %v892_v10 = vmul.f32 %v876_v35, %v492_v27  ;;  %v879_v27 = vadd.f32 1.0, %v863_v40 }
 0x1dc   : > { %2466 = vrot.lane.b32.xlu0 %v5154_v14, %s8597_s21  ;;  %s8934_s21 = smov 108  }
 0x1dd   : > { %v5161_v16 = vpop.permute.xlu0 %1711  ;;  %v5163_v8 = vpop.permute.xlu1 %1174 }
 0x1de   : > { %8888 = vst [vmem:[#allocation37_spill] sm:$0xff] %v5161_v16  ;;  %8889 = vst [vmem:[#allocation38_spill] sm:$0xff] %v5163_v8 }
 0x1df   : > { %1713 = vrot.lane.b32.xlu1 %v4983_v39, %s8619_s18  ;;  %s8625_s18 = smov 47  }
 0x1e0   : > { %2477 = vperm.xlu0 %4133, %v5168_v53  }
 0x1e1   : > { %v5174_v52 = vpop.permute.xlu0 %1736  ;;  %v5176_v44 = vpop.permute.xlu1 %1195 }
 0x1e2   : > { %8890 = vst [vmem:[#allocation39_spill] sm:$0xff] %v5174_v52  ;;  %8891 = vst [vmem:[#allocation40_spill] sm:$0xff] %v5176_v44  ;;  %v495_v52 = vmul.f32 0.5, %v4956_v33 }
 0x1e3   : > { %1734 = vrot.lane.b32.xlu1 %v4965_v34, %s8606_s19 }
 0x1e4   : > { %4135 = vset.pattern.permute.xlu0 %v4426_v47  ;;  %v5201_v47 = vmul.f32 %v4739_v51, %v892_v10  ;;  %v895_v2 = vmul.f32 %v879_v27, %v495_v52 }
 0x1e5   : > { %1157 = vperm.xlu0 %4135, %v5185_v41   ;;  %v5188_v59 = vpop.permute.xlu0 %1761  ;;  %v5190_v3 = vpop.permute.xlu1 %1199 }
 0x1e6   : > { %8892 = vst [vmem:[#allocation41_spill] sm:$0xff] %v5188_v59  ;;  %8893 = vst [vmem:[#allocation42_spill] sm:$0xff] %v5190_v3  ;;  %v893_v59 = vmul.f32 %v877_v61, %v493_v13  ;;  %v5224_v10 = vmul.f32 %v4839_v60, %v895_v2  ;;  %v4429_v2 = vmov 3  }
 0x1e7   : > { %1738 = vrot.lane.b32.xlu1 %v4983_v39, %s8606_s19  ;;  %s8613_s19 = smov 63  }
 0x1e8   : > { %v5213_v35 = vmul.f32 %v4826_v9, %v893_v59 }
 0x1e9   : > { %1696 = vperm.xlu0 %4135, %v5136_v7   ;;  %v5196_v30 = vpop.permute.xlu0 %1786  ;;  %v5198_v42 = vpop.permute.xlu1 %1220 }
 0x1ea   : > { %8894 = vst [vmem:[#allocation43_spill] sm:$0xff] %v5196_v30  ;;  %8895 = vst [vmem:[#allocation44_spill] sm:$0xff] %v5198_v42  ;;  %v1071_v30 = vadd.f32 1.0, %v5185_v41  ;;  %v4440_v42 = vmov 9  }
 0x1eb   : > { %1759 = vrot.lane.b32.xlu1 %v4965_v34, %s8583_s20 }
 0x1ed   : > { %2513 = vrot.lane.b32.xlu0 %v5201_v47, %s8569_s13  ;;  %v5208_v37 = vpop.permute.xlu0 %1810  ;;  %v5210_v55 = vpop.permute.xlu1 %1224 }
 0x1ee   : > { %8896 = vst [vmem:[#allocation45_spill] sm:$0xff] %v5208_v37  ;;  %8897 = vst [vmem:[#allocation46_spill] sm:$0xff] %v5210_v55 }
 0x1ef   : > { %1763 = vrot.lane.b32.xlu1 %v4983_v39, %s8583_s20  ;;  %s8591_s20 = smov 65  }
 0x1f1   : > { %2490 = vrot.lane.b32.xlu0 %v5213_v35, %s8593_s17  ;;  %v5219_v33 = vpop.permute.xlu0 %1834  ;;  %v5221_v0 = vpop.permute.xlu1 %1245 }
 0x1f2   : > { %8898 = vst [vmem:[#allocation47_spill] sm:$0xff] %v5219_v33  ;;  %8899 = vst [vmem:[#allocation48_spill] sm:$0xff] %v5221_v0 }
 0x1f3   : > { %1784 = vrot.lane.b32.xlu1 %v4965_v34, %s8567_s22 }
 0x1f5   : > { %2494 = vrot.lane.b32.xlu0 %v5224_v10, %s8593_s17  ;;  %v5230_v52 = vpop.permute.xlu0 %1858  ;;  %v5232_v59 = vpop.permute.xlu1 %1249  ;;  %s8604_s17 = smov 64  }
 0x1f6   : > { %8900 = vst [vmem:[#allocation49_spill] sm:$0xff] %v5230_v52  ;;  %8901 = vst [vmem:[#allocation50_spill] sm:$0xff] %v5232_v59 }
 0x1f7   : > { %1788 = vrot.lane.b32.xlu1 %v4983_v39, %s8567_s22  ;;  %s8577_s22 = smov 66  }
 0x1f9   : > { %2517 = vrot.lane.b32.xlu0 %v5154_v14, %s8569_s13  ;;  %v5238_v13 = vpop.permute.xlu0 %1883  ;;  %v5240_v61 = vpop.permute.xlu1 %1270  ;;  %s8913_s13 = smov 20  }
 0x1fa   : > { %8902 = vst [vmem:[#allocation51_spill] sm:$0xff] %v5238_v13  ;;  %8903 = vst [vmem:[#allocation52_spill] sm:$0xff] %v5240_v61 }
 0x1fb   : > { %1808 = vrot.lane.b32.xlu1 %v4965_v34, %s8904_s24 }
 0x1fd   : > { %2527 = vperm.xlu0 %4135, %v5168_v53   ;;  %v5245_v40 = vpop.permute.xlu0 %1908  ;;  %v5247_v27 = vpop.permute.xlu1 %1274 }
 0x1fe   : > { %8905 = vst [vmem:[#allocation53_spill] sm:$0xff] %v5245_v40  ;;  %8906 = vst [vmem:[#allocation54_spill] sm:$0xff] %v5247_v27 }
 0x1ff   : > { %1812 = vrot.lane.b32.xlu1 %v4983_v39, %s8904_s24 }
 0x201   : > { %4137 = vset.pattern.permute.xlu0 %v4429_v2  ;;  %v5251_v52 = vpop.permute.xlu0 %1932  ;;  %v5253_v33 = vpop.permute.xlu1 %1631 }
 0x202   : > { %8907 = vst [vmem:[#allocation55_spill] sm:$0xff] %v5251_v52  ;;  %8908 = vst [vmem:[#allocation56_spill] sm:$0xff] %v5253_v33  ;;  %1182 = vperm.xlu0 %4137, %v5185_v41  }
 0x203   : > { %1832 = vrot.lane.b32.xlu1 %v4965_v34, %s8866_s10 }
 0x205   : > { %v5258_v13 = vpop.permute.xlu0 %1956  ;;  %v5260_v37 = vpop.permute.xlu1 %1657 }
 0x206   : > { %8909 = vst [vmem:[#allocation57_spill] sm:$0xff] %v5258_v13  ;;  %8910 = vst [vmem:[#allocation58_spill] sm:$0xff] %v5260_v37  ;;  %1721 = vperm.xlu0 %4137, %v5136_v7  }
 0x207   : > { %1836 = vrot.lane.b32.xlu1 %v4983_v39, %s8866_s10 }
 0x209   : > { %v5265_v40 = vpop.permute.xlu0 %1981  ;;  %v5267_v2 = vpop.permute.xlu1 %1661 }
 0x20a   : > { %8911 = vst [vmem:[#allocation59_spill] sm:$0xff] %v5265_v40  ;;  %8912 = vst [vmem:[#allocation60_spill] sm:$0xff] %v5267_v2  ;;  %2542 = vrot.lane.b32.xlu0 %v5154_v14, %s8577_s22  ;;  %s8918_s22 = smov 2  }
 0x20b   : > { %1856 = vrot.lane.b32.xlu1 %v4965_v34, %s8913_s13 }
 0x20d   : > { %v5273_v52 = vpop.permute.xlu0 %1659  ;;  %v5275_v13 = vpop.permute.xlu1 %1707 }
 0x20e   : > { %8914 = vst [vmem:[#allocation61_spill] sm:$0xff] %v5273_v52  ;;  %8915 = vst [vmem:[#allocation62_spill] sm:$0xff] %v5275_v13  ;;  %2552 = vperm.xlu0 %4137, %v5168_v53  }
 0x20f   : > { %1860 = vrot.lane.b32.xlu1 %v4983_v39, %s8913_s13 }
 0x211   : > { %v5281_v40 = vpop.permute.xlu0 %1663  ;;  %v5283_v16 = vpop.permute.xlu1 %1732 }
 0x212   : > { %8916 = vst [vmem:[#allocation63_spill] sm:$0xff] %v5281_v40  ;;  %8917 = vst [vmem:[#allocation64_spill] sm:$0xff] %v5283_v16  ;;  %4138 = vset.pattern.permute.xlu0 %v4431_v26 }
 0x213   : > { %1074 = vperm.xlu0 %4138, %v1071_v30   ;;  %1881 = vrot.lane.b32.xlu1 %v4965_v34, %s8918_s22 }
 0x215   : > { %v5287_v37 = vpop.permute.xlu0 %2006  ;;  %v5289_v13 = vpop.permute.xlu1 %1757 }
 0x216   : > { %8919 = vst [vmem:[#allocation65_spill] sm:$0xff] %v5287_v37  ;;  %8920 = vst [vmem:[#allocation66_spill] sm:$0xff] %v5289_v13 }
 0x217   : > { %1746 = vperm.xlu0 %4138, %v5136_v7   ;;  %1885 = vrot.lane.b32.xlu1 %v4983_v39, %s8918_s22 }
 0x219   : > { %v5294_v33 = vpop.permute.xlu0 %2030  ;;  %v5296_v40 = vpop.permute.xlu1 %1782 }
 0x21a   : > { %8921 = vst [vmem:[#allocation67_spill] sm:$0xff] %v5294_v33  ;;  %8922 = vst [vmem:[#allocation68_spill] sm:$0xff] %v5296_v40  ;;  %v4433_v33 = vmov 5  }
 0x21b   : > { %2567 = vrot.lane.b32.xlu0 %v5154_v14, %s8591_s20  ;;  %1906 = vrot.lane.b32.xlu1 %v4965_v34, %s8872_s25  ;;  %s8930_s20 = smov 126  }
 0x21d   : > { %v5302_v26 = vpop.permute.xlu1 %1806  ;;  %v5304_v30 = vpop.permute.xlu0 %2054 }
 0x21e   : > { %8923 = vst [vmem:[#allocation69_spill] sm:$0xff] %v5302_v26  ;;  %8924 = vst [vmem:[#allocation70_spill] sm:$0xff] %v5304_v30 }
 0x21f   : > { %2577 = vperm.xlu0 %4138, %v5168_v53   ;;  %1910 = vrot.lane.b32.xlu1 %v4983_v39, %s8872_s25 }
 0x221   : > { %v5309_v37 = vpop.permute.xlu1 %1830  ;;  %v5311_v40 = vpop.permute.xlu0 %2078 }
 0x222   : > { %8925 = vst [vmem:[#allocation71_spill] sm:$0xff] %v5309_v37  ;;  %8926 = vst [vmem:[#allocation72_spill] sm:$0xff] %v5311_v40 }
 0x223   : > { %4139 = vset.pattern.permute.xlu0 %v4433_v33  ;;  %1930 = vrot.lane.b32.xlu1 %v4965_v34, %s8875_s12 }
 0x224   : > { %1207 = vperm.xlu0 %4139, %v5185_v41  }
 0x225   : > { %v5316_v13 = vpop.permute.xlu1 %1854  ;;  %v5323_v26 = vpop.permute.xlu0 %2103 }
 0x226   : > { %8927 = vst [vmem:[#allocation73_spill] sm:$0xff] %v5316_v13  ;;  %8929 = vst [vmem:[#allocation75_spill] sm:$0xff] %v5323_v26  ;;  %v4435_v26 = vmov 6  }
 0x227   : > { %1934 = vrot.lane.b32.xlu1 %v4983_v39, %s8875_s12 }
 0x228   : > { %1771 = vperm.xlu0 %4139, %v5136_v7  }
 0x229   : > { %v5321_v30 = vpop.permute.xlu1 %1879  ;;  %v5331_v40 = vpop.permute.xlu0 %2128 }
 0x22a   : > { %8928 = vst [vmem:[#allocation74_spill] sm:$0xff] %v5321_v30  ;;  %8932 = vst [vmem:[#allocation77_spill] sm:$0xff] %v5331_v40 }
 0x22b   : > { %1954 = vrot.lane.b32.xlu1 %v4965_v34, %s8930_s20 }
 0x22c   : > { %2592 = vrot.lane.b32.xlu0 %v5154_v14, %s8604_s17  ;;  %s8939_s17 = smov 107  }
 0x22d   : > { %v5329_v33 = vpop.permute.xlu1 %1904  ;;  %v5343_v37 = vpop.permute.xlu0 %2153 }
 0x22e   : > { %8931 = vst [vmem:[#allocation76_spill] sm:$0xff] %v5329_v33  ;;  %8936 = vst [vmem:[#allocation80_spill] sm:$0xff] %v5343_v37 }
 0x22f   : > { %1958 = vrot.lane.b32.xlu1 %v4983_v39, %s8930_s20 }
 0x230   : > { %2602 = vperm.xlu0 %4139, %v5168_v53  }
 0x231   : > { %v5336_v13 = vpop.permute.xlu1 %1928  ;;  %v5350_v33 = vpop.permute.xlu0 %2178 }
 0x232   : > { %8933 = vst [vmem:[#allocation78_spill] sm:$0xff] %v5336_v13  ;;  %8938 = vst [vmem:[#allocation82_spill] sm:$0xff] %v5350_v33  ;;  %v4437_v33 = vmov 7  }
 0x233   : > { %1979 = vrot.lane.b32.xlu1 %v4965_v34, %s8934_s21 }
 0x234   : > { %4140 = vset.pattern.permute.xlu0 %v4435_v26 }
 0x235   : > { %1232 = vperm.xlu0 %4140, %v5185_v41   ;;  %v5341_v30 = vpop.permute.xlu1 %1952  ;;  %v5361_v37 = vpop.permute.xlu0 %2203 }
 0x236   : > { %8935 = vst [vmem:[#allocation79_spill] sm:$0xff] %v5341_v30  ;;  %8941 = vst [vmem:[#allocation84_spill] sm:$0xff] %v5361_v37 }
 0x237   : > { %1983 = vrot.lane.b32.xlu1 %v4983_v39, %s8934_s21 }
 0x239   : > { %1795 = vperm.xlu0 %4140, %v5136_v7   ;;  %v5348_v40 = vpop.permute.xlu1 %1977 }
 0x23a   : > { %8937 = vst [vmem:[#allocation81_spill] sm:$0xff] %v5348_v40 }
 0x23b   : > { %2002 = vrot.lane.b32.xlu1 %v4862_v49, %s8939_s17 }
 0x23d   : > { %2617 = vrot.lane.b32.xlu0 %v5154_v14, %s8613_s19  ;;  %v5356_v26 = vpop.permute.xlu1 %1633  ;;  %s8945_s19 = smov 106  }
 0x23e   : > { %8940 = vst [vmem:[#allocation83_spill] sm:$0xff] %v5356_v26 }
 0x23f   : > { %2004 = vrot.lane.b32.xlu1 %v4965_v34, %s8939_s17 }
 0x241   : > { %2627 = vperm.xlu0 %4140, %v5168_v53   ;;  %v5363_v30 = vpop.permute.xlu1 %1637 }
 0x242   : > { %8942 = vst [vmem:[#allocation85_spill] sm:$0xff] %v5363_v30 }
 0x243   : > { %2008 = vrot.lane.b32.xlu1 %v4983_v39, %s8939_s17 }
 0x245   : > { %4141 = vset.pattern.permute.xlu0 %v4437_v33  ;;  %v5367_v40 = vpop.permute.xlu1 %1684  ;;  %v5383_v33 = vadd.f32 %v4649_v24, %v4643_v21 }
 0x246   : > { %8943 = vst [vmem:[#allocation86_spill] sm:$0xff] %v5367_v40  ;;  %1257 = vperm.xlu0 %4141, %v5185_v41   ;;  %v5370_v13 = vpop.permute.xlu0 %2213  ;;  %v5387_v40 = vadd.f32 %v4651_v25, %v4643_v21  ;;  %v5408_v25 = vadd.f32 %v4645_v22, %v4643_v21 }
 0x247   : > { %8944 = vst [vmem:[#allocation87_spill] sm:$0xff] %v5370_v13  ;;  %2026 = vrot.lane.b32.xlu1 %v4862_v49, %s8945_s19  ;;  %v5398_v26 = vmul.f32 0.70710677, %v5383_v33 }
 0x248   : > { %v5401_v24 = vmul.f32 0.70710677, %v5387_v40  ;;  %v5423_v27 = vmul.f32 0.70710677, %v5408_v25 }
 0x249   : > { %v5374_v16 = vpop.permute.xlu1 %1688  ;;  %vm817_vm13 = vcmp.ge.f32.partialorder %v5398_v26, 0.0 }
 0x24a   : > { %8946 = vst [vmem:[#allocation88_spill] sm:$0xff] %v5374_v16  ;;  %1819 = vperm.xlu0 %4141, %v5136_v7   ;;  %v5418_v52 = vand.u32 2147483647, %v5401_v24  ;;  %vm819_vm14 = vcmp.ge.f32.partialorder %v5401_v24, 0.0  ;;  %vm816_vm15 = vcmp.ge.f32.partialorder %v5423_v27, 0.0  ;;  %v481_v24 = vmul.f32 0.5, %v5383_v33 }
 0x24b   : > { %v5377_v37 = vpop.permute.xlu0 %945  ;;  %2028 = vrot.lane.b32.xlu1 %v4965_v34, %s8945_s19  ;;  %v2443_v33 = vadd.f32 1.0, %v5168_v53 }
 0x24d   : > { %v5389_v13 = vpop.permute.xlu1 %1709 }
 0x24e   : > { %8947 = vst [vmem:[#allocation89_spill] sm:$0xff] %v5389_v13  ;;  %2642 = vrot.lane.b32.xlu0 %v5154_v14, %s8625_s18  ;;  %s8951_s18 = smov 105  }
 0x24f   : > { %v5393_v16 = vpop.permute.xlu0 %1624  ;;  %2032 = vrot.lane.b32.xlu1 %v4983_v39, %s8945_s19 }
 0x250   : > { %8948 = vst [vmem:[#allocation90_spill] sm:$0xff] %v5393_v16  ;;  %v5415_v16 = vand.u32 2147483647, %v5398_v26 }
 0x251   : > { %v5403_v30 = vpop.permute.xlu1 %1713 }
 0x252   : > { %8949 = vst [vmem:[#allocation91_spill] sm:$0xff] %v5403_v30  ;;  %2652 = vperm.xlu0 %4141, %v5168_v53   ;;  %v4439_v30 = vmov 8   ;;  %v529_v61 = vmul.f32 0.3275911, %v5415_v16 }
 0x253   : > { %v5410_v13 = vpop.permute.xlu0 %1646  ;;  %2050 = vrot.lane.b32.xlu1 %v4862_v49, %s8951_s18 }
 0x254   : > { %8950 = vst [vmem:[#allocation92_spill] sm:$0xff] %v5410_v13  ;;  %v5430_v13 = vadd.f32 %v4647_v23, %v4643_v21  ;;  %v545_v21 = vadd.f32 1.0, %v529_v61 }
 0x255   : > { %v5420_v2 = vpop.permute.xlu1 %1734 }
 0x256   : > { %8952 = vst [vmem:[#allocation93_spill] sm:$0xff] %v5420_v2  ;;  %4142 = vset.pattern.permute.xlu0 %v4439_v30  ;;  %v531_v2 = vmul.f32 0.3275911, %v5418_v52  ;;  %v5439_v30 = vand.u32 2147483647, %v5423_v27  ;;  %4241 = vrcp.f32 %v545_v21 }
 0x257   : > { %1282 = vperm.xlu0 %4142, %v5185_v41   ;;  %v5426_v22 = vpop.permute.xlu0 %2455  ;;  %2052 = vrot.lane.b32.xlu1 %v4965_v34, %s8951_s18 }
 0x258   : > { %8953 = vst [vmem:[#allocation94_spill] sm:$0xff] %v5426_v22  ;;  %v5445_v22 = vmul.f32 0.70710677, %v5430_v13  ;;  %v547_v23 = vadd.f32 1.0, %v531_v2  ;;  %v528_v55 = vmul.f32 0.3275911, %v5439_v30 }
 0x259   : > { %v5436_v59 = vpop.permute.xlu1 %1738  ;;  %v720_v15 = vsub.f32 0.0, %v5439_v30 }
 0x25a   : > { %8954 = vst [vmem:[#allocation95_spill] sm:$0xff] %v5436_v59  ;;  %v5457_v17 = vand.u32 2147483647, %v5445_v22  ;;  %4243 = vrcp.f32 %v547_v23  ;;  %v544_v61 = vadd.f32 1.0, %v528_v55  ;;  %vm818_vm0 = vcmp.ge.f32.partialorder %v5445_v22, 0.0 }
 0x25b   : > { %1843 = vperm.xlu0 %4142, %v5136_v7   ;;  %v5442_v41 = vpop.permute.xlu0 %2466  ;;  %2056 = vrot.lane.b32.xlu1 %v4983_v39, %s8951_s18 }
 0x25c   : > { %8955 = vst [vmem:[#allocation96_spill] sm:$0xff] %v5442_v41  ;;  %v530_v2 = vmul.f32 0.3275911, %v5457_v17  ;;  %4245 = vrcp.f32 %v544_v61 }
 0x25d   : > { %v5449_v0 = vpop.permute.xlu1 %1759 }
 0x25e   : > { %8956 = vst [vmem:[#allocation97_spill] sm:$0xff] %v5449_v0  ;;  %v546_v18 = vadd.f32 1.0, %v530_v2 }
 0x25f   : > { %2667 = vrot.lane.b32.xlu0 %v5154_v14, %s8881_s23  ;;  %v5454_v59 = vpop.permute.xlu0 %2477  ;;  %2074 = vrot.lane.b32.xlu1 %v4862_v49, %s8958_s0 }
 0x260   : > { %8957 = vst [vmem:[#allocation98_spill] sm:$0xff] %v5454_v59  ;;  %v5478_v23 = vpop.eup %4241  ;;  %4247 = vrcp.f32 %v546_v18 }
 0x261   : > { %v5461_v41 = vpop.permute.xlu1 %1763  ;;  %v577_v61 = vmul.f32 1.0614054, %v5478_v23 }
 0x262   : > { %8959 = vst [vmem:[#allocation99_spill] sm:$0xff] %v5461_v41 }
 0x263   : > { %2676 = vperm.xlu0 %4142, %v5168_v53   ;;  %2076 = vrot.lane.b32.xlu1 %v4965_v34, %s8958_s0 }
 0x264   : > { %v5467_v0 = vpop.permute.xlu0 %1157  ;;  %v5480_v41 = vpop.eup %4243 }
 0x265   : > { %8960 = vst [vmem:[#allocation100_spill] sm:$0xff] %v5467_v0  ;;  %v5469_v59 = vpop.permute.xlu1 %1784 }
 0x266   : > { %8961 = vst [vmem:[#allocation101_spill] sm:$0xff] %v5469_v59  ;;  %v579_v59 = vmul.f32 1.0614054, %v5480_v41 }
 0x267   : > { %4143 = vset.pattern.permute.xlu0 %v4440_v42  ;;  %2080 = vrot.lane.b32.xlu1 %v4983_v39, %s8958_s0 }
 0x268   : > { %1868 = vperm.xlu0 %4143, %v5136_v7   ;;  %v5474_v55 = vpop.permute.xlu0 %1696  ;;  %v595_v3 = vadd.f32 -1.4531521, %v579_v59 }
 0x269   : > { %8962 = vst [vmem:[#allocation102_spill] sm:$0xff] %v5474_v55  ;;  %v5476_v21 = vpop.permute.xlu1 %1788  ;;  %v593_v55 = vadd.f32 -1.4531521, %v577_v61 }
 0x26a   : > { %8963 = vst [vmem:[#allocation103_spill] sm:$0xff] %v5476_v21  ;;  %v5497_v21 = vpop.eup %4245  ;;  %v611_v61 = vmul.f32 %v5480_v41, %v595_v3  ;;  %v723_v3 = vsub.f32 0.0, %v5418_v52 }
 0x26b   : > { %2099 = vrot.lane.b32.xlu1 %v4862_v49, %s8964_s1  ;;  %v5507_v44 = vpop.eup %4247 }
 0x26c   : > { %2691 = vrot.lane.b32.xlu0 %v5154_v14, %s8965_s2  ;;  %v5486_v42 = vpop.permute.xlu0 %2513  ;;  %v627_v11 = vadd.f32 1.4214138, %v611_v61 }
 0x26d   : > { %8966 = vst [vmem:[#allocation104_spill] sm:$0xff] %v5486_v42  ;;  %v5489_v2 = vpop.permute.xlu1 %1808  ;;  %v576_v42 = vmul.f32 1.0614054, %v5497_v21 }
 0x26e   : > { %8967 = vst [vmem:[#allocation105_spill] sm:$0xff] %v5489_v2  ;;  %v4441_v2 = vmov 10   ;;  %v643_v61 = vmul.f32 %v5480_v41, %v627_v11 }
 0x26f   : > { %2101 = vrot.lane.b32.xlu1 %v4965_v34, %s8964_s1  ;;  %v592_v59 = vadd.f32 -1.4531521, %v576_v42 }
 0x270   : > { %2700 = vperm.xlu0 %4143, %v5168_v53   ;;  %v5495_v18 = vpop.permute.xlu0 %2490 }
 0x271   : > { %8968 = vst [vmem:[#allocation106_spill] sm:$0xff] %v5495_v18  ;;  %v5499_v0 = vpop.permute.xlu1 %1812  ;;  %v609_v18 = vmul.f32 %v5478_v23, %v593_v55  ;;  %v721_v55 = vsub.f32 0.0, %v5415_v16 }
 0x272   : > { %8969 = vst [vmem:[#allocation107_spill] sm:$0xff] %v5499_v0 }
 0x273   : > { %2105 = vrot.lane.b32.xlu1 %v4983_v39, %s8964_s1 }
 0x274   : > { %4144 = vset.pattern.permute.xlu0 %v4441_v2  ;;  %v5504_v19 = vpop.permute.xlu0 %2494  ;;  %v578_v2 = vmul.f32 1.0614054, %v5507_v44 }
 0x275   : > { %8970 = vst [vmem:[#allocation108_spill] sm:$0xff] %v5504_v19  ;;  %1893 = vperm.xlu0 %4144, %v5136_v7   ;;  %v5510_v20 = vpop.permute.xlu1 %1832  ;;  %v625_v19 = vadd.f32 1.4214138, %v609_v18 }
 0x276   : > { %8971 = vst [vmem:[#allocation109_spill] sm:$0xff] %v5510_v20  ;;  %v608_v20 = vmul.f32 %v5497_v21, %v592_v59  ;;  %v739_v59 = vmul.f32 %v723_v3, %v5418_v52 }
 0x277   : > { %2124 = vrot.lane.b32.xlu1 %v4862_v49, %s8972_s3  ;;  %v641_v6 = vmul.f32 %v5478_v23, %v625_v19 }
 0x278   : > { %v5515_v0 = vpop.permute.xlu0 %2517  ;;  %v624_v4 = vadd.f32 1.4214138, %v608_v20  ;;  %v659_v20 = vadd.f32 -0.28449672, %v643_v61  ;;  %v758_v52 = vmul.f32 1.442695, %v739_v59 }
 0x279   : > { %8973 = vst [vmem:[#allocation110_spill] sm:$0xff] %v5515_v0  ;;  %2715 = vrot.lane.b32.xlu0 %v5154_v14, %s8883_s26  ;;  %v5520_v8 = vpop.permute.xlu1 %1836  ;;  %v594_v0 = vadd.f32 -1.4531521, %v578_v2  ;;  %v657_v19 = vadd.f32 -0.28449672, %v641_v6 }
 0x27a   : > { %8974 = vst [vmem:[#allocation111_spill] sm:$0xff] %v5520_v8  ;;  %v737_v8 = vmul.f32 %v721_v55, %v5415_v16  ;;  %v640_v16 = vmul.f32 %v5497_v21, %v624_v4  ;;  %v736_v55 = vmul.f32 %v720_v15, %v5439_v30  ;;  %v675_v4 = vmul.f32 %v5480_v41, %v659_v20 }
 0x27b   : > { %2126 = vrot.lane.b32.xlu1 %v4965_v34, %s8972_s3  ;;  %v610_v2 = vmul.f32 %v5507_v44, %v594_v0  ;;  %v673_v6 = vmul.f32 %v5478_v23, %v657_v19 }
 0x27c   : > { %v5527_v42 = vpop.permute.xlu0 %2527  ;;  %v754_v11 = vmul.f32 1.442695, %v737_v8  ;;  %v656_v8 = vadd.f32 -0.28449672, %v640_v16  ;;  %v752_v15 = vmul.f32 1.442695, %v736_v55 }
 0x27d   : > { %8975 = vst [vmem:[#allocation112_spill] sm:$0xff] %v5527_v42  ;;  %2724 = vperm.xlu0 %4144, %v5168_v53   ;;  %v5531_v18 = vpop.permute.xlu1 %1856  ;;  %v4442_v42 = vmov 11   ;;  %v626_v0 = vadd.f32 1.4214138, %v610_v2  ;;  %v689_v2 = vadd.f32 0.2548296, %v673_v6 }
 0x27e   : > { %8976 = vst [vmem:[#allocation113_spill] sm:$0xff] %v5531_v18  ;;  %4249 = vpow2.f32 %v754_v11  ;;  %v691_v11 = vadd.f32 0.2548296, %v675_v4  ;;  %v672_v20 = vmul.f32 %v5497_v21, %v656_v8 }
 0x27f   : > { %2130 = vrot.lane.b32.xlu1 %v4983_v39, %s8972_s3  ;;  %4251 = vpow2.f32 %v758_v52  ;;  %v642_v30 = vmul.f32 %v5507_v44, %v626_v0  ;;  %v705_v0 = vmul.f32 %v5478_v23, %v689_v2 }
 0x280   : > { %4253 = vpow2.f32 %v752_v15  ;;  %v688_v6 = vadd.f32 0.2548296, %v672_v20 }
 0x281   : > { %4145 = vset.pattern.permute.xlu0 %v4442_v42  ;;  %v5540_v45 = vpop.permute.xlu0 %1182  ;;  %v5542_v18 = vpop.permute.xlu1 %1860  ;;  %v722_v42 = vsub.f32 0.0, %v5457_v17  ;;  %v658_v16 = vadd.f32 -0.28449672, %v642_v30 }
 0x282   : > { %8977 = vst [vmem:[#allocation114_spill] sm:$0xff] %v5542_v18  ;;  %1917 = vperm.xlu0 %4145, %v5136_v7  }
 0x283   : > { %2149 = vrot.lane.b32.xlu1 %v4862_v49, %s8978_s5  ;;  %v738_v59 = vmul.f32 %v722_v42, %v5457_v17  ;;  %v707_v17 = vmul.f32 %v5480_v41, %v691_v11  ;;  %v8987_v42 = vmov 12   ;;  %v674_v8 = vmul.f32 %v5507_v44, %v658_v16 }
 0x284   : > { %v704_v41 = vmul.f32 %v5497_v21, %v688_v6  ;;  %v4443_v16 = vmov 15  }
 0x285   : > { %v5549_v3 = vpop.permute.xlu0 %1721  ;;  %v5553_v18 = vpop.permute.xlu1 %1881  ;;  %v756_v55 = vmul.f32 1.442695, %v738_v59  ;;  %v690_v11 = vadd.f32 0.2548296, %v674_v8 }
 0x286   : > { %8979 = vst [vmem:[#allocation115_spill] sm:$0xff] %v5549_v3  ;;  %8980 = vst [vmem:[#allocation116_spill] sm:$0xff] %v5553_v18  ;;  %2739 = vrot.lane.b32.xlu0 %v5154_v14, %s8981_s14 }
 0x287   : > { %2151 = vrot.lane.b32.xlu1 %v4965_v34, %s8978_s5  ;;  %4255 = vpow2.f32 %v756_v55  ;;  %v706_v21 = vmul.f32 %v5507_v44, %v690_v11 }
 0x288   : > { %v4250_v4 = vpop.eup %4249 }
 0x289   : > { %v5561_v61 = vpop.permute.xlu0 %2542  ;;  %v5564_v19 = vpop.permute.xlu1 %1885  ;;  %v785_v30 = vmul.f32 %v4250_v4, %v705_v0 }
 0x28a   : > { %8982 = vst [vmem:[#allocation117_spill] sm:$0xff] %v5561_v61  ;;  %8983 = vst [vmem:[#allocation118_spill] sm:$0xff] %v5564_v19  ;;  %2748 = vperm.xlu0 %4145, %v5168_v53   ;;  %v4252_v15 = vpop.eup %4251 }
 0x28b   : > { %2155 = vrot.lane.b32.xlu1 %v4983_v39, %s8978_s5  ;;  %v787_v2 = vmul.f32 %v4252_v15, %v707_v17  ;;  %v801_v20 = vsub.f32 1.0, %v785_v30  ;;  %v4254_v0 = vpop.eup %4253 }
 0x28d   : > { %v5570_v52 = vpop.permute.xlu0 %2552  ;;  %v5573_v61 = vpop.permute.xlu1 %1906  ;;  %v803_v4 = vsub.f32 1.0, %v787_v2  ;;  %v833_v17 = vsub.f32 0.0, %v801_v20 }
 0x28e   : > { %8984 = vst [vmem:[#allocation119_spill] sm:$0xff] %v5570_v52  ;;  %8985 = vst [vmem:[#allocation120_spill] sm:$0xff] %v5573_v61  ;;  %2763 = vrot.lane.b32.xlu0 %v5154_v14, %s8986_s29  ;;  %v784_v52 = vmul.f32 %v4254_v0, %v704_v41 }
 0x28f   : > { %4146 = vset.pattern.permute.xlu0 %v8987_v42  ;;  %2174 = vrot.lane.b32.xlu1 %v4862_v49, %s8988_s11  ;;  %v835_v15 = vsub.f32 0.0, %v803_v4  ;;  %v849_v41 = vsel %vm817_vm13, %v801_v20, %v833_v17  ;;  %v483_v17 = vmul.f32 0.5, %v5387_v40  ;;  %v4323_v40 = vld [vmem:[%s8498_s6] sm:$0xff]  }
 0x291   : > { %v5582_v23 = vpop.permute.xlu1 %1910  ;;  %v4256_v30 = vpop.eup %4255  ;;  %v851_v0 = vsel %vm819_vm14, %v803_v4, %v835_v15 }
 0x292   : > { %8989 = vst [vmem:[#allocation121_spill] sm:$0xff] %v5582_v23  ;;  %2772 = vperm.xlu0 %4146, %v5168_v53   ;;  %v5585_v59 = vpop.permute.xlu0 %1074  ;;  %v786_v2 = vmul.f32 %v4256_v30, %v706_v21  ;;  %v865_v21 = vadd.f32 1.0, %v849_v41  ;;  %v867_v30 = vadd.f32 1.0, %v851_v0 }
 0x293   : > { %2176 = vrot.lane.b32.xlu1 %v4965_v34, %s8988_s11 }
 0x294   : > { %v881_v15 = vmul.f32 %v865_v21, %v481_v24 }
 0x295   : > { %v5590_v42 = vpop.permute.xlu1 %1930 }
 0x296   : > { %8990 = vst [vmem:[#allocation122_spill] sm:$0xff] %v5590_v42  ;;  %4147 = vset.pattern.permute.xlu0 %v4443_v16  ;;  %v5592_v55 = vpop.permute.xlu0 %1746  ;;  %v800_v16 = vsub.f32 1.0, %v784_v52  ;;  %v802_v52 = vsub.f32 1.0, %v786_v2  ;;  %v883_v2 = vmul.f32 %v867_v30, %v483_v17  ;;  %v919_v21 = vmul.f32 %v4826_v9, %v881_v15 }
 0x297   : > { %8991 = vst [vmem:[#allocation123_spill] sm:$0xff] %v5592_v55  ;;  %1991 = vperm.xlu0 %4147, %v5136_v7   ;;  %2180 = vrot.lane.b32.xlu1 %v4983_v39, %s8988_s11 }
 0x298   : > { %v921_v30 = vmul.f32 %v4839_v60, %v883_v2 }
 0x299   : > { %v5598_v6 = vpop.permute.xlu1 %1934 }
 0x29a   : > { %8992 = vst [vmem:[#allocation124_spill] sm:$0xff] %v5598_v6  ;;  %v5600_v8 = vpop.permute.xlu0 %2567  ;;  %v832_v6 = vsub.f32 0.0, %v800_v16 }
 0x29b   : > { %8993 = vst [vmem:[#allocation125_spill] sm:$0xff] %v5600_v8  ;;  %2846 = vperm.xlu0 %4147, %v5168_v53   ;;  %2199 = vrot.lane.b32.xlu1 %v4862_v49, %s8994_s16  ;;  %v4444_v8 = vmov 16  }
 0x29c   : > { %v848_v4 = vsel %vm816_vm15, %v800_v16, %v832_v6  ;;  %v480_v6 = vmul.f32 0.5, %v5408_v25  ;;  %v482_v25 = vmul.f32 0.5, %v5430_v13 }
 0x29d   : > { %v5607_v44 = vpop.permute.xlu1 %1954  ;;  %v864_v27 = vadd.f32 1.0, %v848_v4  ;;  %v949_v4 = vmul.f32 %v5377_v37, %v919_v21 }
 0x29e   : > { %8995 = vst [vmem:[#allocation126_spill] sm:$0xff] %v5607_v44  ;;  %v5609_v11 = vpop.permute.xlu0 %2577  ;;  %v9029_v44 = vld [vmem:[#allocation44_spill] sm:$0xff] }
 0x29f   : > { %8996 = vst [vmem:[#allocation127_spill] sm:$0xff] %v5609_v11  ;;  %4150 = vset.pattern.permute.xlu0 %v4444_v8  ;;  %2201 = vrot.lane.b32.xlu1 %v4965_v34, %s8994_s16  ;;  %v834_v8 = vsub.f32 0.0, %v802_v52  ;;  %v880_v22 = vmul.f32 %v864_v27, %v480_v6  ;;  %v9007_v27 = vlaneseq }
 0x2a0   : > { %2015 = vperm.xlu0 %4150, %v5136_v7  }
 0x2a1   : > { %v5614_v26 = vpop.permute.xlu1 %1958  ;;  %v850_v16 = vsel %vm818_vm0, %v802_v52, %v834_v8  ;;  %v918_v60 = vmul.f32 %v4739_v51, %v880_v22  ;;  %v5650_v52 = vadd.f32 %v4913_v36, %v949_v4 }
 0x2a2   : > { %8997 = vst [vmem:[#allocation128_spill] sm:$0xff] %v5614_v26  ;;  %v866_v11 = vadd.f32 1.0, %v850_v16  ;;  %v9020_v26 = vld [vmem:[#allocation36_spill] sm:$0xff] }
 0x2a3   : > { %v5618_v20 = vpop.permute.xlu0 %1207  ;;  %2205 = vrot.lane.b32.xlu1 %v4983_v39, %s8994_s16  ;;  %v948_v13 = vmul.f32 %v5377_v37, %v918_v60 }
 0x2a4   : > { %2787 = vrot.lane.b32.xlu0 %v5154_v14, %s8717_s27  ;;  %v882_v15 = vmul.f32 %v866_v11, %v482_v25  ;;  %v5669_v11 = vmul.f32 0.70710677, %v5650_v52  ;;  %s9058_s27 = smov 64  }
 0x2a5   : > { %v5625_v41 = vpop.permute.xlu1 %1979 }
 0x2a6   : > { %8998 = vst [vmem:[#allocation129_spill] sm:$0xff] %v5625_v41  ;;  %v4447_v41 = vmov 17   ;;  %v920_v6 = vmul.f32 %v4761_v54, %v882_v15  ;;  %v5688_v54 = vand.u32 2147483647, %v5669_v11  ;;  %v4449_v15 = vmov 18  }
 0x2a7   : > { %v5627_v0 = vpop.permute.xlu0 %1771  ;;  %2332 = vrot.lane.b32.xlu1 %v4323_v40, %s4446_s15  ;;  %v951_v40 = vmul.f32 %v5377_v37, %v921_v30  ;;  %v5680_v30 = vadd.f32 %v4913_v36, %v948_v13  ;;  %s9011_s15 = smov 68   ;;  %vm1046_vm9 = vcmp.ge.f32.partialorder %v5669_v11, 0.0 }
 0x2a8   : > { %8999 = vst [vmem:[#allocation130_spill] sm:$0xff] %v5627_v0  ;;  %2870 = vperm.xlu0 %4150, %v5168_v53   ;;  %v950_v22 = vmul.f32 %v5377_v37, %v920_v6  ;;  %v974_v6 = vmul.f32 0.3275911, %v5688_v54 }
 0x2a9   : > { %v5638_v24 = vpop.permute.xlu1 %1983  ;;  %v5655_v2 = vadd.f32 %v4913_v36, %v951_v40  ;;  %v5699_v37 = vmul.f32 0.70710677, %v5680_v30 }
 0x2aa   : > { %9000 = vst [vmem:[#allocation131_spill] sm:$0xff] %v5638_v24 }
 0x2ab   : > { %v5641_v17 = vpop.permute.xlu0 %2592  ;;  %2446 = vperm.xlu1 %4134, %v2443_v33   ;;  %v5666_v33 = vand.u32 127, %v9007_v27  ;;  %v5673_v16 = vmul.f32 0.70710677, %v5655_v2  ;;  %vm1045_vm12 = vcmp.ge.f32.partialorder %v5699_v37, 0.0 }
 0x2ac   : > { %9001 = vst [vmem:[#allocation132_spill] sm:$0xff] %v5641_v17  ;;  %4151 = vset.pattern.permute.xlu0 %v4447_v41  ;;  %v9005_v41 = vmov 1   ;;  %v1078_v17 = vmul.f32 %v5585_v59, %v4836_v56 }
 0x2ad   : > { %2039 = vperm.xlu0 %4151, %v5136_v7   ;;  %v5646_v9 = vpop.permute.xlu1 %2002  ;;  %vm1100_vm1 = vcmp.lt.s32.totalorder %v5666_v33, 23  ;;  %v5691_v40 = vand.u32 2147483647, %v5673_v16  ;;  %vm1126_vm2 = vcmp.lt.s32.totalorder %v5666_v33, 22  ;;  %vm1151_vm3 = vcmp.lt.s32.totalorder %v5666_v33, 21 }
 0x2ae   : > { %9002 = vst [vmem:[#allocation133_spill] sm:$0xff] %v5646_v9  ;;  %v1103_v60 = vsel %vm1100_vm1, %v5014_v5, %v5105_v46  ;;  %v1102_v27 = vsel %vm1100_vm1, %v5105_v46, %v5025_v1  ;;  %vm8777_vm4 = vcmp.lt.s32.totalorder %v5666_v33, 1  ;;  %vm8776_vm5 = vcmp.lt.s32.totalorder %v5666_v33, 127 }
 0x2af   : > { %v5652_v8 = vpop.permute.xlu0 %2602  ;;  %2462 = vrot.lane.b32.xlu1 %v5201_v47, %s9004_s8  ;;  %vm1226_vm6 = vcmp.lt.s32.totalorder %v5666_v33, 107  ;;  %vm1251_vm7 = vcmp.lt.s32.totalorder %v5666_v33, 106  ;;  %vm1276_vm8 = vcmp.lt.s32.totalorder %v5666_v33, 105  ;;  %vm1048_vm14 = vcmp.ge.f32.partialorder %v5673_v16, 0.0 }
 0x2b0   : > { %9003 = vst [vmem:[#allocation134_spill] sm:$0xff] %v5652_v8  ;;  %4136 = vset.pattern.permute.xlu1 %v9005_v41  ;;  %v5708_v41 = vadd.f32 %v4913_v36, %v950_v22  ;;  %v976_v36 = vmul.f32 0.3275911, %v5691_v40  ;;  %v1111_v22 = vmul.f32 %v4942_v62, %v1103_v60  ;;  %v1128_v8 = vsel %vm1126_vm2, %v5107_v48, %v5023_v32 }
 0x2b1   : > { %2812 = vrot.lane.b32.xlu0 %v5154_v14, %s8709_s30  ;;  %v5663_v51 = vpop.permute.xlu1 %2004  ;;  %v1104_v60 = vsel %vm1100_vm1, %v5114_v38, %v5014_v5  ;;  %v1130_v5 = vsel %vm1126_vm2, %v5116_v57, %v5012_v63  ;;  %s9043_s30 = smov 23  }
 0x2b2   : > { %9006 = vst [vmem:[#allocation135_spill] sm:$0xff] %v5663_v51  ;;  %v978_v51 = vadd.f32 1.0, %v974_v6  ;;  %v1110_v6 = vmul.f32 %v4942_v62, %v1104_v60 }
 0x2b3   : > { %2464 = vrot.lane.b32.xlu1 %v5213_v35, %s9004_s8 }
 0x2b4   : > { %v5677_v21 = vpop.permute.xlu0 %1232  ;;  %4257 = vrcp.f32 %v978_v51 }
 0x2b5   : > { %2894 = vperm.xlu0 %4151, %v5168_v53   ;;  %v5684_v4 = vpop.permute.xlu1 %2008 }
 0x2b6   : > { %9008 = vst [vmem:[#allocation136_spill] sm:$0xff] %v5684_v4  ;;  %v1112_v4 = vmul.f32 %v4942_v62, %v1102_v27  ;;  %v1101_v27 = vsel %vm1100_vm1, %v5025_v1, %v5114_v38  ;;  %v980_v1 = vadd.f32 1.0, %v976_v36  ;;  %v1077_v38 = vmul.f32 %v5585_v59, %v4756_v31 }
 0x2b7   : > { %2468 = vrot.lane.b32.xlu1 %v5224_v10, %s9004_s8  ;;  %s9014_s8 = smov 24   ;;  %v1113_v36 = vmul.f32 %v4942_v62, %v1101_v27  ;;  %v1135_v31 = vmul.f32 %v4962_v28, %v1130_v5 }
 0x2b8   : > { %v5695_v25 = vpop.permute.xlu0 %1795  ;;  %4259 = vrcp.f32 %v980_v1  ;;  %v9021_v1 = vld [vmem:[#allocation23_spill] sm:$0xff] }
 0x2b9   : > { %9009 = vst [vmem:[#allocation137_spill] sm:$0xff] %v5695_v25  ;;  %4152 = vset.pattern.permute.xlu0 %v4449_v15  ;;  %v5705_v13 = vpop.permute.xlu1 %2026  ;;  %v1129_v15 = vsel %vm1126_vm2, %v5012_v63, %v5107_v48  ;;  %v5749_v48 = vmul.f32 0.70710677, %v5708_v41 }
 0x2ba   : > { %9010 = vst [vmem:[#allocation138_spill] sm:$0xff] %v5705_v13  ;;  %2063 = vperm.xlu0 %4152, %v5136_v7   ;;  %v5737_v13 = vand.u32 2147483647, %v5699_v37  ;;  %v1136_v56 = vmul.f32 %v4962_v28, %v1129_v15  ;;  %v1127_v15 = vsel %vm1126_vm2, %v5023_v32, %v5116_v57  ;;  %v1087_v32 = vadd.f32 %v4925_v50, %v1078_v17  ;;  %v9018_v17 = vld [vmem:[#allocation34_spill] sm:$0xff] }
 0x2bb   : > { %2488 = vrot.lane.b32.xlu1 %v5201_v47, %s9011_s15  ;;  %v1138_v60 = vmul.f32 %v4962_v28, %v1127_v15  ;;  %vm1047_vm15 = vcmp.ge.f32.partialorder %v5749_v48, 0.0 }
 0x2bc   : > { %v5726_v46 = vpop.permute.xlu0 %2617  ;;  %v973_v57 = vmul.f32 0.3275911, %v5737_v13  ;;  %v1115_v51 = vadd.f32 %v1111_v22, %v1087_v32  ;;  %v9023_v22 = vld [vmem:[#allocation38_spill] sm:$0xff] }
 0x2bd   : > { %9012 = vst [vmem:[#allocation139_spill] sm:$0xff] %v5726_v46  ;;  %v1080_v46 = vmul.f32 %v5585_v59, %v4846_v29  ;;  %v5746_v9 = vpop.permute.xlu1 %2028  ;;  %v5763_v29 = vmul.f32 %v4962_v28, %v1128_v8  ;;  %v1079_v8 = vmul.f32 %v5585_v59, %v4768_v58  ;;  %v5795_v58 = vsel %vm1151_vm3, %v5127_v12, %v5036_v43  ;;  %v9017_v59 = vld [vmem:[#allocation21_spill] sm:$0xff] }
 0x2be   : > { %9013 = vst [vmem:[#allocation140_spill] sm:$0xff] %v5746_v9  ;;  %2837 = vrot.lane.b32.xlu0 %v5154_v14, %s9014_s8  ;;  %v1154_v62 = vsel %vm1151_vm3, %v9017_v59, %v5127_v12  ;;  %v1086_v28 = vadd.f32 %v4925_v50, %v1077_v38  ;;  %v1155_v27 = vsel %vm1151_vm3, %v9018_v17, %v9017_v59  ;;  %v977_v15 = vadd.f32 1.0, %v973_v57  ;;  %v9024_v57 = vld [vmem:[#allocation24_spill] sm:$0xff] }
 0x2bf   : > { %2492 = vrot.lane.b32.xlu1 %v5154_v14, %s9011_s15  ;;  %v1089_v9 = vadd.f32 %v4925_v50, %v1080_v46  ;;  %v1152_v46 = vsel %vm1151_vm3, %v5036_v43, %v9018_v17  ;;  %v1088_v12 = vadd.f32 %v4925_v50, %v1079_v8  ;;  %v1180_v32 = vsel %vm8777_vm4, %v9023_v22, %v9021_v1  ;;  %v9025_v59 = vld [vmem:[#allocation40_spill] sm:$0xff]  ;;  %s9031_s15 = smov 67  }
 0x2c0   : > { %v5774_v63 = vpop.permute.xlu0 %2627  ;;  %v4450_v17 = vmov 19   ;;  %v1114_v23 = vadd.f32 %v1110_v6, %v1086_v28  ;;  %4261 = vrcp.f32 %v977_v15 }
 0x2c1   : > { %9015 = vst [vmem:[#allocation141_spill] sm:$0xff] %v5774_v63  ;;  %v5785_v24 = vpop.permute.xlu1 %2032  ;;  %v5788_v63 = vand.u32 2147483647, %v5749_v48  ;;  %v1117_v38 = vadd.f32 %v1113_v36, %v1089_v9  ;;  %v9026_v9 = vld [vmem:[#allocation25_spill] sm:$0xff]  ;;  %v1116_v61 = vadd.f32 %v1112_v4, %v1088_v12  ;;  %v9036_v12 = vld [vmem:[#allocation28_spill] sm:$0xff] }
 0x2c2   : > { %9016 = vst [vmem:[#allocation142_spill] sm:$0xff] %v5785_v24  ;;  %2918 = vperm.xlu0 %4152, %v5168_v53   ;;  %v9019_v24 = vld [vmem:[#allocation22_spill] sm:$0xff]  ;;  %v1204_v36 = vsel %vm8776_vm5, %v9026_v9, %v9025_v59  ;;  %v1139_v55 = vadd.f32 %v1135_v31, %v1114_v23 }
 0x2c3   : > { %2502 = vperm.xlu1 %4136, %v5168_v53   ;;  %v5819_v43 = vsel %vm8777_vm4, %v9020_v26, %v9019_v24  ;;  %v1179_v53 = vsel %vm8777_vm4, %v9021_v1, %v9020_v26  ;;  %v975_v50 = vmul.f32 0.3275911, %v5788_v63  ;;  %v1177_v8 = vsel %vm8777_vm4, %v9019_v24, %v9023_v22  ;;  %v9028_v22 = vld [vmem:[#allocation26_spill] sm:$0xff] }
 0x2c4   : > { %v1203_v26 = vsel %vm8776_vm5, %v9025_v59, %v9024_v57  ;;  %v1228_v0 = vsel %vm1226_vm6, %v9029_v44, %v9028_v22  ;;  %v9030_v59 = vld [vmem:[#allocation27_spill] sm:$0xff]  ;;  %v1142_v28 = vadd.f32 %v1138_v60, %v1117_v38  ;;  %v9040_v38 = vld [vmem:[#allocation100_spill] sm:$0xff] }
 0x2c5   : > { %v5813_v5 = vpop.permute.xlu0 %1257  ;;  %v5825_v25 = vpop.permute.xlu1 %2050  ;;  %v979_v4 = vadd.f32 1.0, %v975_v50  ;;  %v1161_v50 = vmul.f32 %v9040_v38, %v1154_v62  ;;  %v9044_v62 = vld [vmem:[#allocation31_spill] sm:$0xff]  ;;  %v1160_v3 = vmul.f32 %v9040_v38, %v1155_v27  ;;  %v5941_v27 = vld [vmem:[%s8496_s4 + $0x18] sm:$0xff] }
 0x2c6   : > { %9022 = vst [vmem:[#allocation21_spill] sm:$0xff] %v5825_v25  ;;  %4153 = vset.pattern.permute.xlu0 %v4450_v17  ;;  %v9027_v25 = vld [vmem:[#allocation42_spill] sm:$0xff]  ;;  %v1229_v17 = vsel %vm1226_vm6, %v9030_v59, %v9029_v44 }
 0x2c7   : > { %v1202_v24 = vsel %vm8776_vm5, %v9024_v57, %v9027_v25  ;;  %v1205_v1 = vsel %vm8776_vm5, %v9027_v25, %v9026_v9  ;;  %2088 = vperm.xlu0 %4153, %v5136_v7   ;;  %v1140_v57 = vadd.f32 %v1136_v56, %v1115_v51  ;;  %2515 = vrot.lane.b32.xlu1 %v5213_v35, %s9031_s15  ;;  %v9033_v25 = vld [vmem:[#allocation46_spill] sm:$0xff]  ;;  %v9035_v56 = vmov 13   ;;  %v9037_v51 = vld [vmem:[#allocation48_spill] sm:$0xff]  ;;  %v9038_v9 = vld [vmem:[#allocation29_spill] sm:$0xff] }
 0x2c8   : > { %v1227_v6 = vsel %vm1226_vm6, %v9028_v22, %v9033_v25  ;;  %v1230_v7 = vsel %vm1226_vm6, %v9033_v25, %v9030_v59  ;;  %4148 = vset.pattern.permute.xlu1 %v9035_v56  ;;  %v1253_v15 = vsel %vm1251_vm7, %v9037_v51, %v9036_v12  ;;  %v1254_v22 = vsel %vm1251_vm7, %v9038_v9, %v9037_v51  ;;  %v9041_v25 = vld [vmem:[#allocation30_spill] sm:$0xff]  ;;  %v9042_v56 = vld [vmem:[#allocation52_spill] sm:$0xff] }
 0x2c9   : > { %v5863_v19 = vpop.permute.xlu0 %1819  ;;  %v5873_v44 = vpop.permute.xlu1 %2052  ;;  %v1163_v51 = vmul.f32 %v9040_v38, %v1152_v46  ;;  %v5910_v42 = vsel %vm1276_vm8, %v9044_v62, %v9042_v56  ;;  %v1141_v46 = vadd.f32 %v5763_v29, %v1116_v61  ;;  %v1165_v23 = vadd.f32 %v1161_v50, %v1140_v57 }
 0x2ca   : > { %9032 = vst [vmem:[#allocation34_spill] sm:$0xff] %v5863_v19  ;;  %9034 = vst [vmem:[#allocation22_spill] sm:$0xff] %v5873_v44  ;;  %v9039_v19 = vld [vmem:[#allocation50_spill] sm:$0xff]  ;;  %v5899_v44 = vsel %vm1276_vm8, %v9042_v56, %v9041_v25  ;;  %4263 = vrcp.f32 %v979_v4  ;;  %v1162_v61 = vmul.f32 %v9040_v38, %v5795_v58  ;;  %v1186_v29 = vmul.f32 %v5540_v45, %v1179_v53 }
 0x2cb   : > { %v5888_v60 = vsel %vm1251_vm7, %v9036_v12, %v9039_v19  ;;  %v1255_v59 = vsel %vm1251_vm7, %v9039_v19, %v9038_v9  ;;  %2861 = vrot.lane.b32.xlu0 %v5154_v14, %s9043_s30  ;;  %v5904_v12 = vpop.eup %4257  ;;  %v9045_v19 = vld [vmem:[#allocation54_spill] sm:$0xff]  ;;  %2519 = vrot.lane.b32.xlu1 %v5224_v10, %s9031_s15  ;;  %v1167_v39 = vadd.f32 %v1163_v51, %v1142_v28  ;;  %s9064_s15 = smov 63  }
 0x2cc   : > { %v5916_v9 = vsel %vm1276_vm8, %v9041_v25, %v9045_v19  ;;  %v5923_v18 = vpop.eup %4259  ;;  %v1280_v56 = vsel %vm1276_vm8, %v9045_v19, %v9044_v62  ;;  %v1211_v57 = vmul.f32 %v5618_v20, %v1203_v26  ;;  %v1188_v50 = vmul.f32 %v5540_v45, %v1177_v8 }
 0x2cd   : > { %v5921_v31 = vpop.permute.xlu0 %2642  ;;  %v5930_v25 = vpop.permute.xlu1 %2056  ;;  %v1213_v34 = vmul.f32 %v5618_v20, %v1205_v1  ;;  %v986_v28 = vmul.f32 1.0614054, %v5904_v12  ;;  %v1166_v4 = vadd.f32 %v1162_v61, %v1141_v46  ;;  %v1190_v58 = vadd.f32 %v1186_v29, %v1165_v23 }
 0x2ce   : > { %9046 = vst [vmem:[#allocation36_spill] sm:$0xff] %v5921_v31  ;;  %v1164_v31 = vadd.f32 %v1160_v3, %v1139_v55  ;;  %v1236_v53 = vmul.f32 %v5677_v21, %v1228_v0  ;;  %v988_v3 = vmul.f32 1.0614054, %v5923_v18  ;;  %v1185_v55 = vmul.f32 %v5540_v45, %v1180_v32  ;;  %v5956_v62 = vpop.eup %4261 }
 0x2cf   : > { %2942 = vperm.xlu0 %4153, %v5941_v27   ;;  %2538 = vrot.lane.b32.xlu1 %v5201_v47, %s9047_s9  ;;  %v1192_v26 = vadd.f32 %v1188_v50, %v1167_v39  ;;  %v1210_v1 = vmul.f32 %v5618_v20, %v1204_v36  ;;  %v1238_v38 = vmul.f32 %v5677_v21, %v1230_v7  ;;  %v4451_v36 = vmov 20  }
 0x2d0   : > { %v1187_v0 = vmul.f32 %v5540_v45, %v5819_v43  ;;  %v1212_v19 = vmul.f32 %v5618_v20, %v1202_v24  ;;  %v1215_v46 = vadd.f32 %v1211_v57, %v1190_v58  ;;  %v1261_v23 = vmul.f32 %v5813_v5, %v1253_v15  ;;  %v5970_v45 = vld [vmem:[%s8496_s4 + $0x10] sm:$0xff] }
 0x2d1   : > { %v5948_v8 = vpop.permute.xlu0 %2652  ;;  %v5954_v51 = vpop.permute.xlu1 %2074  ;;  %v1189_v61 = vadd.f32 %v1185_v55, %v1164_v31  ;;  %v1217_v29 = vadd.f32 %v1213_v34, %v1192_v26  ;;  %v1235_v39 = vmul.f32 %v5677_v21, %v1229_v17  ;;  %v1263_v32 = vmul.f32 %v5813_v5, %v1255_v59 }
 0x2d2   : > { %9048 = vst [vmem:[#allocation23_spill] sm:$0xff] %v5948_v8  ;;  %9049 = vst [vmem:[#allocation38_spill] sm:$0xff] %v5954_v51  ;;  %v1191_v7 = vadd.f32 %v1187_v0, %v1166_v4  ;;  %v1237_v50 = vmul.f32 %v5677_v21, %v1227_v6  ;;  %v1240_v8 = vadd.f32 %v1236_v53, %v1215_v46  ;;  %v990_v34 = vadd.f32 -1.4531521, %v986_v28 }
 0x2d3   : > { %4154 = vset.pattern.permute.xlu0 %v4451_v36  ;;  %2540 = vrot.lane.b32.xlu1 %v5213_v35, %s9047_s9  ;;  %v1214_v20 = vadd.f32 %v1210_v1, %v1189_v61  ;;  %v1242_v43 = vadd.f32 %v1238_v38, %v1217_v29  ;;  %v1260_v24 = vmul.f32 %v5813_v5, %v1254_v22  ;;  %v985_v21 = vmul.f32 1.0614054, %v5956_v62 }
 0x2d4   : > { %2113 = vperm.xlu0 %4154, %v5970_v45   ;;  %v1216_v6 = vadd.f32 %v1212_v19, %v1191_v7  ;;  %v1262_v59 = vmul.f32 %v5813_v5, %v5888_v60  ;;  %v1265_v31 = vadd.f32 %v1261_v23, %v1240_v8  ;;  %v5980_v4 = vpop.eup %4263  ;;  %v992_v46 = vadd.f32 -1.4531521, %v988_v3 }
 0x2d5   : > { %v5974_v17 = vpop.permute.xlu1 %2076  ;;  %v1239_v58 = vadd.f32 %v1235_v39, %v1214_v20  ;;  %v1267_v28 = vadd.f32 %v1263_v32, %v1242_v43  ;;  %v987_v38 = vmul.f32 1.0614054, %v5980_v4  ;;  %v994_v23 = vmul.f32 %v5904_v12, %v990_v34 }
 0x2d6   : > { %9050 = vst [vmem:[#allocation24_spill] sm:$0xff] %v5974_v17  ;;  %v1283_v15 = vpop.permute.xlu0 %1282  ;;  %v1241_v22 = vadd.f32 %v1237_v50, %v1216_v6  ;;  %v996_v43 = vmul.f32 %v5923_v18, %v992_v46 }
 0x2d7   : > { %v1286_v57 = vmul.f32 %v1283_v15, %v5899_v44  ;;  %v1285_v53 = vmul.f32 %v1283_v15, %v5910_v42  ;;  %v1288_v55 = vmul.f32 %v1283_v15, %v1280_v56  ;;  %v1287_v26 = vmul.f32 %v1283_v15, %v5916_v9  ;;  %2544 = vrot.lane.b32.xlu1 %v5224_v10, %s9047_s9  ;;  %s9052_s9 = smov 65  }
 0x2d8   : > { %2885 = vrot.lane.b32.xlu0 %v5154_v14, %s8904_s24  ;;  %v1264_v5 = vadd.f32 %v1260_v24, %v1239_v58  ;;  %v1266_v42 = vadd.f32 %v1262_v59, %v1241_v22  ;;  %v989_v9 = vadd.f32 -1.4531521, %v985_v21  ;;  %v991_v50 = vadd.f32 -1.4531521, %v987_v38 }
 0x2d9   : > { %v5984_v1 = vadd.f32 %v1286_v57, %v1265_v31  ;;  %v5990_v44 = vadd.f32 %v1288_v55, %v1267_v28  ;;  %v5992_v60 = vpop.permute.xlu1 %2080  ;;  %v998_v24 = vadd.f32 1.4214138, %v994_v23  ;;  %v4452_v21 = vmov 21  }
 0x2da   : > { %9051 = vst [vmem:[#allocation40_spill] sm:$0xff] %v5992_v60  ;;  %v5994_v8 = vpop.permute.xlu0 %1843  ;;  %v6003_v19 = vadd.f32 %v1285_v53, %v1264_v5  ;;  %v6012_v29 = vadd.f32 %v1287_v26, %v1266_v42  ;;  %v993_v7 = vmul.f32 %v5956_v62, %v989_v9  ;;  %v1022_v59 = vsub.f32 0.0, %v5688_v54 }
 0x2db   : > { %v5997_v56 = vmul.f32 0.70710677, %v5984_v1  ;;  %v6001_v0 = vmul.f32 0.70710677, %v5990_v44  ;;  %2563 = vrot.lane.b32.xlu1 %v5201_v47, %s9052_s9  ;;  %v1021_v55 = vsub.f32 0.0, %v5737_v13  ;;  %v995_v22 = vmul.f32 %v5980_v4, %v991_v50 }
 0x2dc   : > { %2967 = vperm.xlu0 %4154, %v5941_v27   ;;  %v6025_v20 = vmul.f32 0.70710677, %v6003_v19  ;;  %v6031_v6 = vmul.f32 0.70710677, %v6012_v29  ;;  %v997_v53 = vadd.f32 1.4214138, %v993_v7  ;;  %v1002_v42 = vmul.f32 %v5904_v12, %v998_v24 }
 0x2dd   : > { %v6007_v61 = vand.u32 2147483647, %v5997_v56  ;;  %v6015_v39 = vand.u32 2147483647, %v6001_v0  ;;  %v6017_v32 = vpop.permute.xlu1 %2099  ;;  %v1000_v5 = vadd.f32 1.4214138, %v996_v43  ;;  %v1026_v46 = vmul.f32 %v1022_v59, %v5688_v54 }
 0x2de   : > { %9053 = vst [vmem:[#allocation25_spill] sm:$0xff] %v6017_v32  ;;  %v6019_v36 = vpop.permute.xlu0 %2667  ;;  %v6040_v28 = vand.u32 2147483647, %v6025_v20  ;;  %v6049_v9 = vand.u32 2147483647, %v6031_v6  ;;  %v1024_v38 = vsub.f32 0.0, %v5691_v40  ;;  %v1001_v43 = vmul.f32 %v5956_v62, %v997_v53 }
 0x2df   : > { %9054 = vst [vmem:[#allocation42_spill] sm:$0xff] %v6019_v36  ;;  %v1306_v3 = vmul.f32 0.3275911, %v6007_v61  ;;  %v1308_v34 = vmul.f32 0.3275911, %v6015_v39  ;;  %2565 = vrot.lane.b32.xlu1 %v5213_v35, %s9052_s9  ;;  %v1023_v7 = vsub.f32 0.0, %v5788_v63  ;;  %v1025_v54 = vmul.f32 %v1021_v55, %v5737_v13 }
 0x2e0   : > { %4155 = vset.pattern.permute.xlu0 %v4452_v21  ;;  %v1305_v26 = vmul.f32 0.3275911, %v6040_v28  ;;  %v999_v24 = vadd.f32 1.4214138, %v995_v22  ;;  %v1006_v21 = vadd.f32 -0.28449672, %v1002_v42 }
 0x2e1   : > { %v1310_v15 = vadd.f32 1.0, %v1306_v3  ;;  %v1312_v31 = vadd.f32 1.0, %v1308_v34  ;;  %2138 = vperm.xlu0 %4155, %v5970_v45   ;;  %v6035_v57 = vpop.permute.xlu1 %2101  ;;  %v1307_v34 = vmul.f32 0.3275911, %v6049_v9  ;;  %v1354_v59 = vsub.f32 0.0, %v6007_v61 }
 0x2e2   : > { %9055 = vst [vmem:[#allocation26_spill] sm:$0xff] %v6035_v57  ;;  %v6037_v58 = vpop.permute.xlu0 %2676  ;;  %v1309_v3 = vadd.f32 1.0, %v1305_v26  ;;  %v1028_v26 = vmul.f32 %v1024_v38, %v5691_v40  ;;  %v1027_v53 = vmul.f32 %v1023_v7, %v5788_v63  ;;  %v1356_v22 = vsub.f32 0.0, %v6015_v39  ;;  %v9173_v57 = vld [vmem:[#allocation126_spill] sm:$0xff] }
 0x2e3   : > { %9056 = vst [vmem:[#allocation44_spill] sm:$0xff] %v6037_v58  ;;  %4265 = vrcp.f32 %v1310_v15  ;;  %2569 = vrot.lane.b32.xlu1 %v5224_v10, %s9052_s9  ;;  %v1004_v15 = vmul.f32 %v5923_v18, %v1000_v5  ;;  %v1031_v58 = vmul.f32 1.442695, %v1026_v46  ;;  %v1005_v13 = vadd.f32 -0.28449672, %v1001_v43  ;;  %s4455_s9 = smov 19  }
 0x2e4   : > { %4267 = vrcp.f32 %v1312_v31  ;;  %v1311_v31 = vadd.f32 1.0, %v1307_v34  ;;  %v1003_v55 = vmul.f32 %v5980_v4, %v999_v24  ;;  %v1029_v34 = vmul.f32 1.442695, %v1025_v54 }
 0x2e5   : > { %2909 = vrot.lane.b32.xlu0 %v5154_v14, %s8866_s10  ;;  %v6055_v23 = vpop.permute.xlu1 %2105  ;;  %4269 = vrcp.f32 %v1309_v3  ;;  %v1008_v42 = vadd.f32 -0.28449672, %v1004_v15  ;;  %v1010_v3 = vmul.f32 %v5904_v12, %v1006_v21  ;;  %v1358_v38 = vmul.f32 %v1354_v59, %v6007_v61 }
 0x2e6   : > { %9057 = vst [vmem:[#allocation27_spill] sm:$0xff] %v6055_v23  ;;  %4271 = vrcp.f32 %v1311_v31  ;;  %v1035_v46 = vmul.f32 1.442695, %v1028_v26  ;;  %v4453_v7 = vmov 22   ;;  %v1033_v15 = vmul.f32 1.442695, %v1027_v53 }
 0x2e7   : > { %v6058_v50 = vpop.permute.xlu0 %1868  ;;  %2588 = vrot.lane.b32.xlu1 %v5201_v47, %s9058_s27  ;;  %4273 = vpow2.f32 %v1031_v58  ;;  %v1360_v21 = vmul.f32 %v1356_v22, %v6015_v39  ;;  %v1009_v59 = vmul.f32 %v5956_v62, %v1005_v13  ;;  %v1007_v31 = vadd.f32 -0.28449672, %v1003_v55 }
 0x2e8   : > { %v1012_v26 = vmul.f32 %v5923_v18, %v1008_v42  ;;  %4275 = vpow2.f32 %v1029_v34  ;;  %v1353_v39 = vsub.f32 0.0, %v6040_v28  ;;  %vm1378_vm11 = vcmp.ge.f32.partialorder %v5997_v56, 0.0 }
 0x2e9   : > { %2992 = vperm.xlu0 %4155, %v5941_v27   ;;  %v6069_v36 = vpop.permute.xlu1 %2124  ;;  %4277 = vpow2.f32 %v1035_v46  ;;  %v1367_v13 = vmul.f32 1.442695, %v1360_v21  ;;  %v1013_v42 = vadd.f32 0.2548296, %v1009_v59  ;;  %vm1380_vm13 = vcmp.ge.f32.partialorder %v6001_v0, 0.0 }
 0x2ea   : > { %9059 = vst [vmem:[#allocation46_spill] sm:$0xff] %v6069_v36  ;;  %4279 = vpow2.f32 %v1033_v15  ;;  %v1357_v21 = vmul.f32 %v1353_v39, %v6040_v28  ;;  %v1296_v11 = vmul.f32 0.5, %v5990_v44  ;;  %vm1377_vm0 = vcmp.ge.f32.partialorder %v6025_v20, 0.0 }
 0x2eb   : > { %v6073_v5 = vpop.permute.xlu0 %2691  ;;  %2590 = vrot.lane.b32.xlu1 %v5213_v35, %s9058_s27 }
 0x2ec   : > { %9060 = vst [vmem:[#allocation28_spill] sm:$0xff] %v6073_v5  ;;  %v1363_v5 = vmul.f32 1.442695, %v1358_v38 }
 0x2ed   : > { %v6077_v40 = vpop.eup %4265  ;;  %4156 = vset.pattern.permute.xlu0 %v4453_v7  ;;  %v6084_v43 = vpop.permute.xlu1 %2126  ;;  %v1014_v7 = vadd.f32 0.2548296, %v1010_v3  ;;  %v1011_v3 = vmul.f32 %v5980_v4, %v1007_v31 }
 0x2ee   : > { %v6082_v63 = vpop.eup %4267  ;;  %9061 = vst [vmem:[#allocation48_spill] sm:$0xff] %v6084_v43  ;;  %v1318_v24 = vmul.f32 1.0614054, %v6077_v40  ;;  %2163 = vperm.xlu0 %4156, %v5970_v45   ;;  %4281 = vpow2.f32 %v1363_v5  ;;  %v1017_v5 = vmul.f32 %v5956_v62, %v1013_v42 }
 0x2ef   : > { %v6089_v54 = vpop.permute.xlu0 %2700  ;;  %v1320_v61 = vmul.f32 1.0614054, %v6082_v63  ;;  %2594 = vrot.lane.b32.xlu1 %v5224_v10, %s9058_s27  ;;  %v6100_v36 = vpop.eup %4269  ;;  %4283 = vpow2.f32 %v1367_v13  ;;  %v1015_v15 = vadd.f32 0.2548296, %v1011_v3  ;;  %s9070_s27 = smov 47  }
 0x2f0   : > { %9062 = vst [vmem:[#allocation29_spill] sm:$0xff] %v6089_v54  ;;  %v1322_v58 = vadd.f32 -1.4531521, %v1318_v24  ;;  %v1317_v46 = vmul.f32 1.0614054, %v6100_v36  ;;  %v6114_v59 = vpop.eup %4271 }
 0x2f1   : > { %v1324_v53 = vadd.f32 -1.4531521, %v1320_v61  ;;  %v6097_v22 = vpop.permute.xlu1 %2130  ;;  %v1016_v24 = vadd.f32 0.2548296, %v1012_v26  ;;  %v1355_v61 = vsub.f32 0.0, %v6049_v9  ;;  %v4274_v26 = vpop.eup %4273 }
 0x2f2   : > { %9063 = vst [vmem:[#allocation50_spill] sm:$0xff] %v6097_v22  ;;  %v1326_v54 = vmul.f32 %v6077_v40, %v1322_v58  ;;  %2933 = vrot.lane.b32.xlu0 %v5154_v14, %s8913_s13  ;;  %v1018_v58 = vmul.f32 %v5904_v12, %v1014_v7  ;;  %v1321_v22 = vadd.f32 -1.4531521, %v1317_v46  ;;  %v4276_v42 = vpop.eup %4275 }
 0x2f3   : > { %v1328_v55 = vmul.f32 %v6082_v63, %v1324_v53  ;;  %2613 = vrot.lane.b32.xlu1 %v5201_v47, %s9064_s15  ;;  %v1359_v13 = vmul.f32 %v1355_v61, %v6049_v9  ;;  %v6135_v43 = vmul.f32 %v4276_v42, %v1017_v5  ;;  %v4278_v23 = vpop.eup %4277 }
 0x2f4   : > { %v6106_v34 = vpop.permute.xlu0 %1893  ;;  %v1330_v38 = vadd.f32 1.4214138, %v1326_v54  ;;  %v1325_v7 = vmul.f32 %v6100_v36, %v1321_v22  ;;  %v6130_v62 = vmul.f32 %v4274_v26, %v1018_v58 }
 0x2f5   : > { %v6116_v31 = vpop.permute.xlu1 %2149  ;;  %v1332_v53 = vadd.f32 1.4214138, %v1328_v55  ;;  %v1361_v55 = vmul.f32 1.442695, %v1357_v21  ;;  %v1019_v21 = vmul.f32 %v5980_v4, %v1015_v15  ;;  %v4280_v15 = vpop.eup %4279  ;;  %v1041_v42 = vsub.f32 1.0, %v6135_v43 }
 0x2f6   : > { %9065 = vst [vmem:[#allocation100_spill] sm:$0xff] %v6116_v31  ;;  %v1334_v54 = vmul.f32 %v6077_v40, %v1330_v38  ;;  %3016 = vperm.xlu0 %4156, %v5941_v27   ;;  %v1319_v31 = vmul.f32 1.0614054, %v6114_v59  ;;  %v1020_v38 = vmul.f32 %v5923_v18, %v1016_v24  ;;  %v1042_v4 = vsub.f32 1.0, %v6130_v62 }
 0x2f7   : > { %v1336_v12 = vmul.f32 %v6082_v63, %v1332_v53  ;;  %2615 = vrot.lane.b32.xlu1 %v5213_v35, %s9064_s15  ;;  %v1329_v53 = vadd.f32 1.4214138, %v1325_v7  ;;  %4285 = vpow2.f32 %v1361_v55 }
 0x2f8   : > { %v6121_v28 = vpop.permute.xlu0 %2715  ;;  %v1338_v39 = vadd.f32 -0.28449672, %v1334_v54  ;;  %v1323_v22 = vadd.f32 -1.4531521, %v1319_v31  ;;  %v1365_v31 = vmul.f32 1.442695, %v1359_v13  ;;  %v6146_v5 = vmul.f32 %v4278_v23, %v1020_v38  ;;  %v4282_v7 = vpop.eup %4281 }
 0x2f9   : > { %9066 = vst [vmem:[#allocation30_spill] sm:$0xff] %v6121_v28  ;;  %v6132_v3 = vpop.permute.xlu1 %2151  ;;  %v1340_v54 = vadd.f32 -0.28449672, %v1336_v12  ;;  %v4454_v28 = vmov 23   ;;  %v1333_v61 = vmul.f32 %v6100_v36, %v1329_v53 }
 0x2fa   : > { %9067 = vst [vmem:[#allocation52_spill] sm:$0xff] %v6132_v3  ;;  %v1342_v46 = vmul.f32 %v6077_v40, %v1338_v39  ;;  %4157 = vset.pattern.permute.xlu0 %v4454_v28  ;;  %v1327_v58 = vmul.f32 %v6114_v59, %v1323_v22  ;;  %4287 = vpow2.f32 %v1365_v31  ;;  %v1044_v43 = vsub.f32 1.0, %v6146_v5 }
 0x2fb   : > { %2188 = vperm.xlu0 %4157, %v5970_v45   ;;  %v1344_v24 = vmul.f32 %v6082_v63, %v1340_v54  ;;  %2619 = vrot.lane.b32.xlu1 %v5224_v10, %s9064_s15  ;;  %v1337_v39 = vadd.f32 -0.28449672, %v1333_v61  ;;  %v1050_v54 = vsub.f32 0.0, %v1042_v4  ;;  %s4456_s15 = smov 3  }
 0x2fc   : > { %v6139_v18 = vpop.permute.xlu0 %2724  ;;  %v1346_v9 = vadd.f32 0.2548296, %v1342_v46  ;;  %v1331_v12 = vadd.f32 1.4214138, %v1327_v58  ;;  %v6153_v46 = vmul.f32 %v4280_v15, %v1019_v21 }
 0x2fd   : > { %9068 = vst [vmem:[#allocation31_spill] sm:$0xff] %v6139_v18  ;;  %v6149_v45 = vpop.permute.xlu1 %2155  ;;  %v1348_v28 = vadd.f32 0.2548296, %v1344_v24  ;;  %v1341_v13 = vmul.f32 %v6100_v36, %v1337_v39  ;;  %v1049_v24 = vsub.f32 0.0, %v1041_v42  ;;  %v9126_v18 = vld [vmem:[#allocation95_spill] sm:$0xff] }
 0x2fe   : > { %9069 = vst [vmem:[#allocation54_spill] sm:$0xff] %v6149_v45  ;;  %v1350_v26 = vmul.f32 %v6077_v40, %v1346_v9  ;;  %v1335_v38 = vmul.f32 %v6114_v59, %v1331_v12  ;;  %v4284_v40 = vpop.eup %4283  ;;  %v1043_v61 = vsub.f32 1.0, %v6153_v46  ;;  %v1294_v12 = vmul.f32 0.5, %v5984_v1 }
 0x2ff   : > { %2957 = vrot.lane.b32.xlu0 %v5154_v14, %s4455_s9  ;;  %v1352_v55 = vmul.f32 %v6082_v63, %v1348_v28  ;;  %2638 = vrot.lane.b32.xlu1 %v5201_v47, %s9070_s27  ;;  %v1345_v9 = vadd.f32 0.2548296, %v1341_v13  ;;  %v1052_v28 = vsub.f32 0.0, %v1044_v43 }
 0x300   : > { %v1370_v23 = vmul.f32 %v4282_v7, %v1350_v26  ;;  %v1339_v63 = vadd.f32 -0.28449672, %v1335_v38  ;;  %v4457_v38 = vmov 25  }
 0x301   : > { %v6162_v62 = vpop.permute.xlu0 %1917  ;;  %v6165_v53 = vpop.permute.xlu1 %2174  ;;  %v1372_v21 = vmul.f32 %v4284_v40, %v1352_v55  ;;  %v1349_v15 = vmul.f32 %v6100_v36, %v1345_v9  ;;  %v1053_v40 = vsel %vm1045_vm12, %v1041_v42, %v1049_v24  ;;  %vm8735_vm12 = vcmp.lt.s32.totalorder %v5666_v33, 45 }
 0x302   : > { %9071 = vst [vmem:[#allocation143_spill] sm:$0xff] %v6165_v53  ;;  %v1374_v22 = vsub.f32 1.0, %v1370_v23  ;;  %v1343_v26 = vmul.f32 %v6114_v59, %v1339_v63  ;;  %v4286_v39 = vpop.eup %4285  ;;  %v1054_v23 = vsel %vm1046_vm9, %v1042_v4, %v1050_v54  ;;  %v1051_v54 = vsub.f32 0.0, %v1043_v61 }
 0x303   : > { %3040 = vperm.xlu0 %4157, %v5941_v27   ;;  %2640 = vrot.lane.b32.xlu1 %v5213_v35, %s9070_s27  ;;  %v1376_v5 = vsub.f32 1.0, %v1372_v21  ;;  %v1369_v55 = vmul.f32 %v4286_v39, %v1349_v15  ;;  %v1058_v15 = vadd.f32 1.0, %v1054_v23  ;;  %v1057_v16 = vadd.f32 1.0, %v1053_v40 }
 0x304   : > { %v1382_v31 = vsub.f32 0.0, %v1374_v22  ;;  %v1347_v56 = vadd.f32 0.2548296, %v1343_v26  ;;  %v4288_v63 = vpop.eup %4287  ;;  %v1055_v26 = vsel %vm1047_vm15, %v1043_v61, %v1051_v54  ;;  %v961_v23 = vmul.f32 0.5, %v5680_v30 }
 0x305   : > { %v6172_v58 = vpop.permute.xlu0 %2739  ;;  %v1384_v46 = vsub.f32 0.0, %v1376_v5  ;;  %v6184_v13 = vpop.permute.xlu1 %2176  ;;  %v1373_v21 = vsub.f32 1.0, %v1369_v55  ;;  %vm1379_vm9 = vcmp.ge.f32.partialorder %v6031_v6, 0.0  ;;  %v1059_v30 = vadd.f32 1.0, %v1055_v26 }
 0x306   : > { %9072 = vst [vmem:[#allocation144_spill] sm:$0xff] %v6172_v58  ;;  %v1386_v7 = vsel %vm1378_vm11, %v1374_v22, %v1382_v31  ;;  %9073 = vst [vmem:[#allocation145_spill] sm:$0xff] %v6184_v13  ;;  %v1351_v9 = vmul.f32 %v6114_v59, %v1347_v56  ;;  %v962_v31 = vmul.f32 0.5, %v5650_v52  ;;  %v1056_v59 = vsel %vm1048_vm14, %v1044_v43, %v1052_v28 }
 0x307   : > { %2982 = vrot.lane.b32.xlu0 %v5154_v14, %s4456_s15  ;;  %v1390_v36 = vadd.f32 1.0, %v1386_v7  ;;  %2644 = vrot.lane.b32.xlu1 %v5224_v10, %s9070_s27  ;;  %v1388_v4 = vsel %vm1380_vm13, %v1376_v5, %v1384_v46  ;;  %v1381_v37 = vsub.f32 0.0, %v1373_v21  ;;  %v1293_v7 = vmul.f32 0.5, %v6003_v19  ;;  %s9186_s27 = smov 25  }
 0x308   : > { %4158 = vset.pattern.permute.xlu0 %v4457_v38  ;;  %v1392_v0 = vadd.f32 1.0, %v1388_v4  ;;  %v1371_v42 = vmul.f32 %v4288_v63, %v1351_v9  ;;  %v1060_v20 = vadd.f32 1.0, %v1056_v59  ;;  %v1062_v43 = vmul.f32 %v1058_v15, %v962_v31 }
 0x309   : > { %v6188_v1 = vpop.permute.xlu0 %2748  ;;  %v1394_v22 = vmul.f32 %v1390_v36, %v1294_v12  ;;  %v1385_v48 = vsel %vm1377_vm0, %v1373_v21, %v1381_v37  ;;  %v6204_v12 = vpop.permute.xlu1 %2180  ;;  %v4458_v28 = vmov 26   ;;  %v1061_v55 = vmul.f32 %v1057_v16, %v961_v23  ;;  %v4326_v23 = vld [vmem:[%s8498_s6] sm:$0xff]  }
 0x30a   : > { %9074 = vst [vmem:[#allocation146_spill] sm:$0xff] %v6188_v1  ;;  %v1396_v5 = vmul.f32 %v1392_v0, %v1296_v11  ;;  %v1375_v39 = vsub.f32 1.0, %v1371_v42  ;;  %9076 = vst [vmem:[#allocation148_spill] sm:$0xff] %v6204_v12  ;;  %v1389_v46 = vadd.f32 1.0, %v1385_v48  ;;  %v964_v38 = vmul.f32 0.5, %v5655_v2 }
 0x30b   : > { %3064 = vperm.xlu0 %4158, %v5941_v27   ;;  %v1398_v44 = vpack.c.bf16 %v1394_v22, %v1394_v22  ;;  %2663 = vrot.lane.b32.xlu1 %v5201_v47, %s8881_s23  ;;  %v1295_v4 = vmul.f32 0.5, %v6012_v29  ;;  %v963_v54 = vmul.f32 0.5, %v5708_v41  ;;  %v1066_v6 = vpack.c.bf16 %v1062_v43, %v1062_v43 }
 0x30c   : > { %v1400_v52 = vpack.c.bf16 %v1396_v5, %v1396_v5  ;;  %v1383_v36 = vsub.f32 0.0, %v1375_v39  ;;  %v1393_v61 = vmul.f32 %v1389_v46, %v1293_v7  ;;  %v1064_v22 = vmul.f32 %v1060_v20, %v964_v38 }
 0x30d   : > { %v6200_v24 = vpop.permute.xlu0 %2763  ;;  %3941 = vmatprep.subr.msk.bf16.mxu0 %vm8819_vm10, %v1398_v44  ;;  %v6220_v0 = vpop.permute.xlu1 %2199  ;;  %v1065_v63 = vpack.c.bf16 %v1061_v55, %v1061_v55  ;;  %v1063_v31 = vmul.f32 %v1059_v30, %v963_v54  ;;  %vm8818_vm11 = vcmask 64512   ;;  %v9080_v44 = vld [vmem:[#allocation15_spill] sm:$0xff]  ;;  %v4459_v16 = vmov 27   ;;  %v9095_v54 = vld [vmem:[#allocation14_spill] sm:$0xff] }
 0x30e   : > { %9075 = vst [vmem:[#allocation147_spill] sm:$0xff] %v6200_v24  ;;  %3943 = vmatprep.subr.msk.bf16.mxu1 %vm8819_vm10, %v1400_v52  ;;  %v1387_v56 = vsel %vm1379_vm9, %v1375_v39, %v1383_v36  ;;  %v1397_v11 = vpack.c.bf16 %v1393_v61, %v1393_v61  ;;  %9078 = vst [vmem:[#allocation150_spill] sm:$0xff] %v6220_v0  ;;  %v1068_v15 = vpack.c.bf16 %v1064_v22, %v1064_v22  ;;  %v9083_v26 = vmov 0   ;;  %v9120_v24 = vld [vmem:[#allocation91_spill] sm:$0xff]  ;;  %v9149_v0 = vld [vmem:[#allocation73_spill] sm:$0xff] }
 0x30f   : > { %3007 = vrot.lane.b32.xlu0 %v5154_v14, %s8918_s22  ;;  %2665 = vrot.lane.b32.xlu1 %v5213_v35, %s8881_s23  ;;  %v1391_v40 = vadd.f32 1.0, %v1387_v56  ;;  %v1515_v5 = vsel %vm8819_vm10, %v1065_v63, 0  ;;  %v1067_v37 = vpack.c.bf16 %v1063_v31, %v1063_v31  ;;  %v4460_v7 = vmov 28   ;;  %v9093_v56 = vld [vmem:[#allocation18_spill] sm:$0xff]  ;;  %v9098_v63 = vld [vmem:[#allocation60_spill] sm:$0xff]  ;;  %v9099_v31 = vld [vmem:[#allocation61_spill] sm:$0xff] }
 0x310   : > { %4159 = vset.pattern.permute.xlu0 %v4458_v28  ;;  %v1414_v21 = vsel %vm8819_vm10, %v1397_v11, 0  ;;  %v4461_v43 = vmov 29   ;;  %v1618_v38 = vmul.f32 %v9093_v56, %v4862_v49  ;;  %v9094_v11 = vld [vmem:[#allocation13_spill] sm:$0xff]  ;;  %v1619_v22 = vmul.f32 %v9093_v56, %v9095_v54 }
 0x311   : > { %v6214_v19 = vpop.permute.xlu0 %2772  ;;  %v1395_v9 = vmul.f32 %v1391_v40, %v1295_v4  ;;  %1426 = vmatpush1.bf16.msra.mxu0 %v1414_v21  ;;  %v6239_v59 = vpop.permute.xlu1 %2201  ;;  %v1521_v52 = vsel %vm8819_vm10, %v1067_v37, 0  ;;  %v1620_v4 = vmul.f32 %v9093_v56, %v9094_v11  ;;  %v4463_v40 = vmov 30   ;;  %v9103_v37 = vld [vmem:[#allocation63_spill] sm:$0xff] }
 0x312   : > { %9077 = vst [vmem:[#allocation149_spill] sm:$0xff] %v6214_v19  ;;  %3945 = vmatprep.subr.msk.bf16.mxu0 %vm8819_vm10, %v1066_v6  ;;  %9082 = vst [vmem:[#allocation152_spill] sm:$0xff] %v6239_v59  ;;  %v9096_v6 = vld [vmem:[#allocation16_spill] sm:$0xff]  ;;  %vm1639_vm13 = vcmp.lt.s32.totalorder %v5666_v33, 46  ;;  %vm1690_vm14 = vcmp.lt.s32.totalorder %v5666_v33, 44  ;;  %v1667_v49 = vsel %vm8735_vm12, %v9099_v31, %v9098_v63  ;;  %vm1715_vm15 = vcmp.lt.s32.totalorder %v5666_v33, 43 }
 0x313   : > { %3088 = vperm.xlu0 %4159, %v5941_v27   ;;  %2669 = vrot.lane.b32.xlu1 %v5224_v10, %s8881_s23  ;;  %v1399_v29 = vpack.c.bf16 %v1395_v9, %v1395_v9  ;;  %v1621_v21 = vmul.f32 %v9093_v56, %v9096_v6  ;;  %vm8744_vm0 = vcmp.lt.s32.totalorder %v5666_v33, 42  ;;  %v9106_v56 = vld [vmem:[#allocation32_spill] sm:$0xff]  ;;  %v9107_v11 = vld [vmem:[#allocation83_spill] sm:$0xff]  ;;  %vm1765_vm9 = vcmp.lt.s32.totalorder %v5666_v33, 24  ;;  %s9179_s23 = smov 41  }
 0x314   : > { %3942 = vmatmul.mubr.msk.bf16.vlgmr.msra.gmra.mrb[8].mxu0 %vm8818_vm11, %v9080_v44 }
 0x315   : > { %v1420_v41 = vsel %vm8819_vm10, %v1399_v29, 0  ;;  %1527 = vmatpush1.bf16.msra.mxu0 %v1515_v5  ;;  %1558 = vmatprep.mubr.bf16.mxu0 %v9083_v26  ;;  %v6253_v39 = vpop.permute.xlu1 %2205  ;;  %v9100_v29 = vld [vmem:[#allocation56_spill] sm:$0xff] }
 0x316   : > { %v6225_v2 = vpop.permute.xlu0 %1991  ;;  %1469 = vmatpush1.bf16.msra.mxu1 %v1420_v41  ;;  %9085 = vst [vmem:[#allocation154_spill] sm:$0xff] %v6253_v39  ;;  %v9101_v41 = vld [vmem:[#allocation85_spill] sm:$0xff]  ;;  %v1642_v54 = vsel %vm1639_vm13, %v9100_v29, %v9107_v11 }
 0x317   : > { %9079 = vst [vmem:[#allocation151_spill] sm:$0xff] %v6225_v2  ;;  %3031 = vrot.lane.b32.xlu0 %v5154_v14, %s8872_s25  ;;  %2687 = vrot.lane.b32.xlu1 %v5201_v47, %s8965_s2  ;;  %v1640_v6 = vsel %vm1639_vm13, %v9106_v56, %v9101_v41 }
 0x318   : > { %3947 = vmatprep.subr.msk.bf16.mxu1 %vm8819_vm10, %v1068_v15  ;;  %4160 = vset.pattern.permute.xlu0 %v4459_v16  ;;  %v1643_v15 = vsel %vm1639_vm13, %v9101_v41, %v9100_v29  ;;  %v1666_v16 = vsel %vm8735_vm12, %v9098_v63, %v9103_v37  ;;  %v9108_v63 = vld [vmem:[#allocation90_spill] sm:$0xff] }
 0x319   : > { %3944 = vmatmul.mubr.msk.bf16.vlgmr.msra.gmra.mrb[8].mxu1 %vm8818_vm11, %v9080_v44  ;;  %v6267_v36 = vpop.permute.xlu1 %2332  ;;  %v9102_v44 = vld [vmem:[#allocation58_spill] sm:$0xff]  ;;  %v1630_v41 = vadd.f32 %v9108_v63, %v1621_v21  ;;  %v9114_v21 = vld [vmem:[#allocation88_spill] sm:$0xff] }
 0x31a   : > { %v6236_v42 = vpop.permute.xlu0 %2846  ;;  %1570 = vmatpush1.bf16.msra.mxu1 %v1521_v52  ;;  %1601 = vmatprep.mubr.bf16.mxu1 %v9083_v26  ;;  %9087 = vst [vmem:[#allocation156_spill] sm:$0xff] %v6267_v36  ;;  %v1668_v5 = vsel %vm8735_vm12, %v9102_v44, %v9099_v31  ;;  %v1669_v52 = vsel %vm8735_vm12, %v9103_v37, %v9102_v44  ;;  %vm8763_vm12 = vcmp.lt.s32.totalorder %v5666_v33, 20  ;;  %v9148_v36 = vld [vmem:[#allocation113_spill] sm:$0xff] }
 0x31b   : > { %9081 = vst [vmem:[#allocation15_spill] sm:$0xff] %v6236_v42  ;;  %3113 = vperm.xlu0 %4160, %v5941_v27   ;;  %2689 = vrot.lane.b32.xlu1 %v5213_v35, %s8965_s2  ;;  %v1627_v31 = vadd.f32 %v9108_v63, %v1618_v38  ;;  %v1629_v38 = vadd.f32 %v9108_v63, %v1620_v4 }
 0x31c   : > { %v6553_v39 = vsel %vm8763_vm12, %v9149_v0, %v9148_v36 }
 0x31f   : > { %v6249_v48 = vpop.permute.xlu0 %2015  ;;  %3055 = vrot.lane.b32.xlu0 %v5154_v14, %s8875_s12  ;;  %2693 = vrot.lane.b32.xlu1 %v5224_v10, %s8965_s2  ;;  %s4462_s2 = smov 125  }
 0x320   : > { %9084 = vst [vmem:[#allocation153_spill] sm:$0xff] %v6249_v48  ;;  %4161 = vset.pattern.permute.xlu0 %v4460_v7  ;;  %3946 = vmatmul.mubr.msk.bf16.vlgmr.msra.gmra.mrb[8].mxu0 %vm8818_vm11, %v4326_v23  ;;  %v9104_v7 = vld [vmem:[#allocation92_spill] sm:$0xff] }
 0x321   : > { %2381 = vmatprep.mubr.bf16.mxu0 %v9083_v26  ;;  %v1652_v37 = vmul.f32 %v9104_v7, %v1640_v6 }
 0x323   : > { %v6257_v46 = vpop.permute.xlu0 %2787  ;;  %3138 = vperm.xlu0 %4161, %v5941_v27   ;;  %2711 = vrot.lane.b32.xlu1 %v5201_v47, %s8883_s26 }
 0x324   : > { %9086 = vst [vmem:[#allocation155_spill] sm:$0xff] %v6257_v46 }
 0x325   : > { %3948 = vmatmul.mubr.msk.bf16.vlgmr.msra.gmra.mrb[8].mxu1 %vm8818_vm11, %v4326_v23  ;;  %v1649_v23 = vmul.f32 %v9104_v7, %v1643_v15  ;;  %v1650_v15 = vmul.f32 %v9104_v7, %v1642_v54 }
 0x326   : > { %2424 = vmatprep.mubr.bf16.mxu1 %v9083_v26 }
 0x327   : > { %3079 = vrot.lane.b32.xlu0 %v5154_v14, %s8930_s20  ;;  %v6271_v20 = vpop.permute.xlu0 %2870  ;;  %2713 = vrot.lane.b32.xlu1 %v5213_v35, %s8883_s26 }
 0x328   : > { %9088 = vst [vmem:[#allocation157_spill] sm:$0xff] %v6271_v20  ;;  %4162 = vset.pattern.permute.xlu0 %v4461_v43  ;;  %v9110_v20 = vld [vmem:[#allocation19_spill] sm:$0xff] }
 0x329   : > { %v1675_v42 = vmul.f32 %v9110_v20, %v1668_v5  ;;  %v1674_v29 = vmul.f32 %v9110_v20, %v1669_v52  ;;  %v4465_v5 = vmov 31   ;;  %v9111_v52 = vld [vmem:[#allocation35_spill] sm:$0xff] }
 0x32a   : > { %v6276_v61 = vpop.permute.xlu1 %2446 }
 0x32b   : > { %9089 = vst [vmem:[#allocation158_spill] sm:$0xff] %v6276_v61  ;;  %3162 = vperm.xlu0 %4162, %v5941_v27   ;;  %2717 = vrot.lane.b32.xlu1 %v5224_v10, %s8883_s26  ;;  %s4464_s26 = smov 109   ;;  %v9136_v61 = vld [vmem:[#allocation103_spill] sm:$0xff] }
 0x32c   : > { %v6282_v28 = vpop.permute.xlu0 %2039 }
 0x32d   : > { %9090 = vst [vmem:[#allocation159_spill] sm:$0xff] %v6282_v28  ;;  %v9160_v28 = vld [vmem:[#allocation118_spill] sm:$0xff] }
 0x32e   : > { %v6284_v55 = vpop.permute.xlu1 %2462 }
 0x32f   : > { %9091 = vst [vmem:[#allocation160_spill] sm:$0xff] %v6284_v55  ;;  %3103 = vrot.lane.b32.xlu0 %v5154_v14, %s4462_s2  ;;  %2735 = vrot.lane.b32.xlu1 %v5201_v47, %s8981_s14 }
 0x330   : > { %v6291_v30 = vpop.permute.xlu0 %2812  ;;  %4163 = vset.pattern.permute.xlu0 %v4463_v40  ;;  %v1641_v40 = vsel %vm1639_vm13, %v9107_v11, %v9106_v56  ;;  %v1628_v11 = vadd.f32 %v9108_v63, %v1619_v22  ;;  %v1653_v56 = vadd.f32 %v1649_v23, %v1627_v31  ;;  %v9112_v22 = vld [vmem:[#allocation86_spill] sm:$0xff]  ;;  %v1691_v23 = vsel %vm1690_vm14, %v9111_v52, %v9114_v21 }
 0x331   : > { %9092 = vst [vmem:[#allocation161_spill] sm:$0xff] %v6291_v30  ;;  %v1651_v44 = vmul.f32 %v9104_v7, %v1641_v40  ;;  %v1676_v30 = vmul.f32 %v9110_v20, %v1667_v49  ;;  %v1677_v49 = vmul.f32 %v9110_v20, %v1666_v16  ;;  %v1692_v7 = vsel %vm1690_vm14, %v9112_v22, %v9111_v52  ;;  %v9113_v40 = vld [vmem:[#allocation33_spill] sm:$0xff]  ;;  %v9119_v52 = vld [vmem:[#allocation62_spill] sm:$0xff] }
 0x332   : > { %v6303_v9 = vpop.permute.xlu1 %2464  ;;  %v1693_v4 = vsel %vm1690_vm14, %v9113_v40, %v9112_v22  ;;  %v1694_v20 = vsel %vm1690_vm14, %v9114_v21, %v9113_v40  ;;  %v1654_v16 = vadd.f32 %v1650_v15, %v1628_v11  ;;  %v1656_v63 = vadd.f32 %v1652_v37, %v1630_v41  ;;  %v9118_v22 = vld [vmem:[#allocation89_spill] sm:$0xff]  ;;  %v9121_v37 = vld [vmem:[#allocation39_spill] sm:$0xff]  ;;  %v9123_v41 = vld [vmem:[#allocation64_spill] sm:$0xff] }
 0x333   : > { %9097 = vst [vmem:[#allocation18_spill] sm:$0xff] %v6303_v9  ;;  %3186 = vperm.xlu0 %4163, %v5941_v27   ;;  %2737 = vrot.lane.b32.xlu1 %v5213_v35, %s8981_s14  ;;  %v1655_v6 = vadd.f32 %v1651_v44, %v1629_v38  ;;  %v1718_v19 = vsel %vm1715_vm15, %v9119_v52, %v9118_v22  ;;  %v9122_v11 = vld [vmem:[#allocation93_spill] sm:$0xff] }
 0x334   : > { %v6331_v43 = vpop.permute.xlu0 %2894  ;;  %v1719_v44 = vsel %vm1715_vm15, %v9120_v24, %v9119_v52  ;;  %v6405_v38 = vsel %vm8744_vm0, %v9122_v11, %v9121_v37  ;;  %v1743_v40 = vsel %vm8744_vm0, %v9123_v41, %v9122_v11  ;;  %v1678_v21 = vadd.f32 %v1674_v29, %v1653_v56  ;;  %v9137_v9 = vld [vmem:[#allocation45_spill] sm:$0xff] }
 0x335   : > { %9105 = vst [vmem:[#allocation13_spill] sm:$0xff] %v6331_v43  ;;  %v1679_v29 = vadd.f32 %v1675_v42, %v1654_v16  ;;  %v1680_v56 = vadd.f32 %v1676_v30, %v1655_v6  ;;  %v9131_v30 = vld [vmem:[#allocation99_spill] sm:$0xff]  ;;  %v9133_v6 = vld [vmem:[#allocation101_spill] sm:$0xff] }
 0x336   : > { %v6349_v43 = vpop.permute.xlu1 %2468  ;;  %v9132_v16 = vld [vmem:[#allocation43_spill] sm:$0xff] }
 0x337   : > { %9109 = vst [vmem:[#allocation14_spill] sm:$0xff] %v6349_v43  ;;  %3128 = vrot.lane.b32.xlu0 %v5154_v14, %s4464_s26  ;;  %2741 = vrot.lane.b32.xlu1 %v5224_v10, %s8981_s14  ;;  %v6478_v55 = vsel %vm1100_vm1, %v9132_v16, %v9136_v61  ;;  %s4473_s14 = smov 87  }
 0x338   : > { %4164 = vset.pattern.permute.xlu0 %v4465_v5  ;;  %v9117_v5 = vld [vmem:[#allocation37_spill] sm:$0xff] }
 0x339   : > { %v6375_v54 = vpop.permute.xlu0 %2063  ;;  %v1717_v46 = vsel %vm1715_vm15, %v9118_v22, %v9117_v5  ;;  %v1716_v15 = vsel %vm1715_vm15, %v9117_v5, %v9120_v24  ;;  %v9124_v5 = vld [vmem:[#allocation102_spill] sm:$0xff] }
 0x33a   : > { %9115 = vst [vmem:[#allocation16_spill] sm:$0xff] %v6375_v54  ;;  %v6382_v31 = vpop.permute.xlu1 %2488  ;;  %v1699_v22 = vmul.f32 %v9124_v5, %v1694_v20  ;;  %v1700_v24 = vmul.f32 %v9124_v5, %v1693_v4  ;;  %v1701_v52 = vmul.f32 %v9124_v5, %v1692_v7  ;;  %v1702_v1 = vmul.f32 %v9124_v5, %v1691_v23  ;;  %v9128_v4 = vld [vmem:[#allocation41_spill] sm:$0xff] }
 0x33b   : > { %9116 = vst [vmem:[#allocation60_spill] sm:$0xff] %v6382_v31  ;;  %3210 = vperm.xlu0 %4164, %v5941_v27   ;;  %2759 = vrot.lane.b32.xlu1 %v5201_v47, %s8986_s29  ;;  %v6423_v31 = vsel %vm8744_vm0, %v9121_v37, %v9126_v18  ;;  %v1681_v20 = vadd.f32 %v1677_v49, %v1656_v63  ;;  %v9129_v23 = vld [vmem:[#allocation97_spill] sm:$0xff]  ;;  %v9134_v37 = vld [vmem:[#allocation68_spill] sm:$0xff] }
 0x33c   : > { %v1744_v7 = vsel %vm8744_vm0, %v9126_v18, %v9123_v41  ;;  %v6435_v5 = vsel %vm1765_vm9, %v9129_v23, %v9128_v4  ;;  %v6447_v49 = vsel %vm1765_vm9, %v9128_v4, %v9131_v30  ;;  %v6461_v63 = vsel %vm1100_vm1, %v9133_v6, %v9132_v16 }
 0x33d   : > { %v6417_v58 = vpop.permute.xlu0 %2837  ;;  %v6467_v41 = vsel %vm1100_vm1, %v9134_v37, %v9133_v6  ;;  %vm8779_vm0 = vcmp.lt.s32.totalorder %v5666_v33, 2  ;;  %v4466_v4 = vmov 32   ;;  %v6484_v6 = vsel %vm1100_vm1, %v9136_v61, %v9134_v37  ;;  %v9143_v37 = vld [vmem:[#allocation47_spill] sm:$0xff] }
 0x33e   : > { %9125 = vst [vmem:[#allocation61_spill] sm:$0xff] %v6417_v58  ;;  %v6425_v11 = vpop.permute.xlu1 %2492  ;;  %v9130_v58 = vld [vmem:[#allocation66_spill] sm:$0xff] }
 0x33f   : > { %9127 = vst [vmem:[#allocation56_spill] sm:$0xff] %v6425_v11  ;;  %v6441_v42 = vsel %vm1765_vm9, %v9130_v58, %v9129_v23  ;;  %3153 = vrot.lane.b32.xlu0 %v5154_v14, %s8934_s21  ;;  %v6455_v18 = vsel %vm1765_vm9, %v9131_v30, %v9130_v58  ;;  %2761 = vrot.lane.b32.xlu1 %v5213_v35, %s8986_s29 }
 0x340   : > { %4165 = vset.pattern.permute.xlu0 %v4466_v4  ;;  %v1703_v58 = vadd.f32 %v1699_v22, %v1678_v21  ;;  %v1704_v23 = vadd.f32 %v1700_v24, %v1679_v29  ;;  %v1705_v30 = vadd.f32 %v1701_v52, %v1680_v56  ;;  %v1706_v11 = vadd.f32 %v1702_v1, %v1681_v20  ;;  %v9138_v4 = vld [vmem:[#allocation105_spill] sm:$0xff]  ;;  %v9141_v52 = vld [vmem:[#allocation107_spill] sm:$0xff] }
 0x341   : > { %v6472_v43 = vpop.permute.xlu0 %2918  ;;  %v6490_v21 = vsel %vm1126_vm2, %v9138_v4, %v9137_v9  ;;  %v9139_v1 = vld [vmem:[#allocation69_spill] sm:$0xff]  ;;  %v6504_v61 = vsel %vm1126_vm2, %v9137_v9, %v9141_v52  ;;  %v9142_v56 = vld [vmem:[#allocation115_spill] sm:$0xff] }
 0x342   : > { %9135 = vst [vmem:[#allocation85_spill] sm:$0xff] %v6472_v43  ;;  %v6496_v22 = vsel %vm1126_vm2, %v9139_v1, %v9138_v4  ;;  %v6498_v24 = vpop.permute.xlu1 %2502  ;;  %v6510_v29 = vsel %vm1126_vm2, %v9141_v52, %v9139_v1  ;;  %v1724_v20 = vmul.f32 %v9142_v56, %v1719_v44  ;;  %v1725_v16 = vmul.f32 %v9142_v56, %v1718_v19  ;;  %v9144_v4 = vld [vmem:[#allocation109_spill] sm:$0xff]  ;;  %v9145_v9 = vld [vmem:[#allocation71_spill] sm:$0xff] }
 0x343   : > { %9140 = vst [vmem:[#allocation58_spill] sm:$0xff] %v6498_v24  ;;  %3234 = vperm.xlu0 %4165, %v5941_v27   ;;  %v6519_v43 = vsel %vm1151_vm3, %v9144_v4, %v9143_v37  ;;  %v6525_v24 = vsel %vm1151_vm3, %v9145_v9, %v9144_v4  ;;  %v9146_v1 = vld [vmem:[#allocation111_spill] sm:$0xff]  ;;  %2765 = vrot.lane.b32.xlu1 %v5224_v10, %s8986_s29  ;;  %v9147_v52 = vld [vmem:[#allocation49_spill] sm:$0xff]  ;;  %s4471_s29 = smov 103  }
 0x344   : > { %v6531_v44 = vsel %vm1151_vm3, %v9143_v37, %v9146_v1  ;;  %v6537_v19 = vsel %vm1151_vm3, %v9146_v1, %v9145_v9  ;;  %v6545_v4 = vsel %vm8763_vm12, %v9148_v36, %v9147_v52  ;;  %v1726_v26 = vmul.f32 %v9142_v56, %v1717_v46  ;;  %v9150_v9 = vld [vmem:[#allocation114_spill] sm:$0xff]  ;;  %v9151_v46 = vld [vmem:[#allocation51_spill] sm:$0xff] }
 0x345   : > { %v1727_v37 = vmul.f32 %v9142_v56, %v1716_v15  ;;  %v6559_v1 = vsel %vm8763_vm12, %v9147_v52, %v9150_v9  ;;  %v6565_v59 = vsel %vm8763_vm12, %v9150_v9, %v9149_v0  ;;  %v9152_v15 = vld [vmem:[#allocation116_spill] sm:$0xff]  ;;  %v1728_v53 = vadd.f32 %v1724_v20, %v1703_v58  ;;  %v9155_v52 = vld [vmem:[#allocation74_spill] sm:$0xff]  ;;  %v9156_v0 = vld [vmem:[#allocation55_spill] sm:$0xff] }
 0x346   : > { %v6571_v56 = vsel %vm8779_vm0, %v9152_v15, %v9151_v46  ;;  %v6573_v36 = vpop.permute.xlu0 %2088  ;;  %v6575_v12 = vpop.permute.xlu1 %2515  ;;  %v1729_v13 = vadd.f32 %v1725_v16, %v1704_v23  ;;  %v6581_v45 = vsel %vm8779_vm0, %v9155_v52, %v9152_v15  ;;  %v9157_v9 = vld [vmem:[#allocation122_spill] sm:$0xff]  ;;  %v9159_v23 = vld [vmem:[#allocation123_spill] sm:$0xff]  ;;  %vm8778_vm12 = vcmp.lt.s32.totalorder %v5666_v33, 126 }
 0x347   : > { %9153 = vst [vmem:[#allocation63_spill] sm:$0xff] %v6573_v36  ;;  %9154 = vst [vmem:[#allocation92_spill] sm:$0xff] %v6575_v12  ;;  %v1937_v3 = vsel %vm8776_vm5, %v9157_v9, %v9156_v0  ;;  %3177 = vrot.lane.b32.xlu0 %v5154_v14, %s8939_s17  ;;  %v9158_v36 = vld [vmem:[#allocation78_spill] sm:$0xff]  ;;  %v1749_v20 = vmul.f32 %v9159_v23, %v1744_v7  ;;  %v1750_v16 = vmul.f32 %v9159_v23, %v1743_v40  ;;  %v4467_v15 = vmov 33   ;;  %v9161_v40 = vld [vmem:[#allocation53_spill] sm:$0xff] }
 0x348   : > { %v1938_v58 = vsel %vm8776_vm5, %v9158_v36, %v9157_v9  ;;  %2797 = vperm.xlu1 %4148, %v5941_v27   ;;  %4166 = vset.pattern.permute.xlu0 %v4467_v15  ;;  %v1730_v12 = vadd.f32 %v1726_v26, %v1705_v30  ;;  %v1731_v54 = vadd.f32 %v1727_v37, %v1706_v11  ;;  %v9162_v9 = vld [vmem:[#allocation120_spill] sm:$0xff]  ;;  %v9164_v30 = vld [vmem:[#allocation121_spill] sm:$0xff] }
 0x349   : > { %v6601_v48 = vsel %vm8779_vm0, %v9151_v46, %v9160_v28  ;;  %v6607_v7 = vsel %vm8779_vm0, %v9160_v28, %v9155_v52  ;;  %v6613_v27 = vsel %vm8777_vm4, %v9162_v9, %v9161_v40  ;;  %v9163_v26 = vld [vmem:[#allocation76_spill] sm:$0xff]  ;;  %v6625_v37 = vsel %vm8777_vm4, %v9161_v40, %v9164_v30  ;;  %v9167_v15 = vld [vmem:[#allocation17_spill] sm:$0xff] }
 0x34a   : > { %v6619_v11 = vsel %vm8777_vm4, %v9163_v26, %v9162_v9  ;;  %v6631_v28 = vsel %vm8777_vm4, %v9164_v30, %v9163_v26  ;;  %v6633_v46 = vpop.permute.xlu0 %2861  ;;  %v6635_v52 = vpop.permute.xlu1 %2519  ;;  %v6638_v32 = vmul.f32 %v9167_v15, %v1938_v58  ;;  %v6641_v9 = vmul.f32 %v9167_v15, %v1937_v3  ;;  %v6650_v26 = vld [vmem:[%s8496_s4 + $0x18] sm:$0xff] }
 0x34b   : > { %9165 = vst [vmem:[#allocation32_spill] sm:$0xff] %v6633_v46  ;;  %9166 = vst [vmem:[#allocation83_spill] sm:$0xff] %v6635_v52  ;;  %v1751_v40 = vmul.f32 %v9159_v23, %v6405_v38  ;;  %v1752_v2 = vmul.f32 %v9159_v23, %v6423_v31  ;;  %3258 = vperm.xlu0 %4166, %v6650_v26   ;;  %v1753_v30 = vadd.f32 %v1749_v20, %v1728_v53  ;;  %v9169_v58 = vld [vmem:[#allocation124_spill] sm:$0xff]  ;;  %v9170_v52 = vld [vmem:[#allocation130_spill] sm:$0xff] }
 0x34c   : > { %9168 = vst [vmem:[#allocation90_spill] sm:$0xff] %v6638_v32  ;;  %v1754_v46 = vadd.f32 %v1750_v16, %v1729_v13  ;;  %v1936_v3 = vsel %vm8776_vm5, %v9156_v0, %v9169_v58  ;;  %v1775_v38 = vmul.f32 %v9170_v52, %v6441_v42  ;;  %v9171_v32 = vmov 14   ;;  %v9172_v23 = vld [vmem:[#allocation57_spill] sm:$0xff]  ;;  %v9174_v0 = vld [vmem:[#allocation79_spill] sm:$0xff] }
 0x34d   : > { %4149 = vset.pattern.permute.xlu1 %v9171_v32  ;;  %v1939_v31 = vsel %vm8776_vm5, %v9169_v58, %v9158_v36  ;;  %v1962_v53 = vsel %vm8778_vm12, %v9173_v57, %v9172_v23  ;;  %v1776_v13 = vmul.f32 %v9170_v52, %v6435_v5  ;;  %v1963_v32 = vsel %vm8778_vm12, %v9174_v0, %v9173_v57  ;;  %v9175_v20 = vld [vmem:[#allocation137_spill] sm:$0xff] }
 0x34e   : > { %2822 = vperm.xlu1 %4149, %v6650_v26   ;;  %v1774_v42 = vmul.f32 %v9170_v52, %v6455_v18  ;;  %v1777_v36 = vmul.f32 %v9170_v52, %v6447_v49  ;;  %v1799_v16 = vmul.f32 %v9175_v20, %v6467_v41  ;;  %v6681_v58 = vpop.permute.xlu1 %2538  ;;  %v6683_v60 = vpop.permute.xlu0 %2942  ;;  %v1755_v5 = vadd.f32 %v1751_v40, %v1730_v12  ;;  %v9177_v52 = vld [vmem:[#allocation34_spill] sm:$0xff] }
 0x34f   : > { %9176 = vst [vmem:[#allocation19_spill] sm:$0xff] %v6683_v60  ;;  %v1756_v51 = vadd.f32 %v1752_v2, %v1731_v54  ;;  %v6686_v17 = vmul.f32 %v9167_v15, %v1936_v3  ;;  %v1800_v57 = vmul.f32 %v9175_v20, %v6461_v63  ;;  %3201 = vrot.lane.b32.xlu0 %v5154_v14, %s8945_s19  ;;  %v4468_v2 = vmov 34   ;;  %v9178_v54 = vld [vmem:[#allocation20_spill] sm:$0xff] }
 0x350   : > { %v6693_v49 = vmul.f32 %v9167_v15, %v1939_v31  ;;  %v1779_v18 = vadd.f32 %v1775_v38, %v1754_v46  ;;  %v1801_v41 = vmul.f32 %v9175_v20, %v6478_v55  ;;  %v1823_v12 = vmul.f32 %v9177_v52, %v6496_v22  ;;  %4167 = vset.pattern.permute.xlu0 %v4468_v2 }
 0x351   : > { %v6700_v40 = vmul.f32 %v9178_v54, %v1963_v32  ;;  %v6703_v63 = vmul.f32 %v9178_v54, %v1962_v53  ;;  %vm8780_vm5 = vcmp.lt.s32.totalorder %v5666_v33, 108  ;;  %v1780_v3 = vadd.f32 %v1776_v13, %v1755_v5 }
 0x352   : > { %v1824_v46 = vmul.f32 %v9177_v52, %v6490_v21  ;;  %2783 = vrot.lane.b32.xlu1 %v5201_v47, %s9179_s23  ;;  %v1778_v55 = vadd.f32 %v1774_v42, %v1753_v30  ;;  %v1781_v15 = vadd.f32 %v1777_v36, %v1756_v51  ;;  %v1803_v22 = vadd.f32 %v1799_v16, %v1779_v18  ;;  %v6712_v31 = vpop.permute.xlu1 %2540 }
 0x353   : > { %v1825_v38 = vmul.f32 %v9177_v52, %v6504_v61  ;;  %v1798_v53 = vmul.f32 %v9175_v20, %v6484_v6  ;;  %v1804_v32 = vadd.f32 %v1800_v57, %v1780_v3  ;;  %v1847_v13 = vmul.f32 %v5994_v8, %v6525_v24  ;;  %3283 = vperm.xlu0 %4167, %v6650_v26   ;;  %v6721_v30 = vpop.permute.xlu0 %2113 }
 0x354   : > { %v1848_v21 = vmul.f32 %v5994_v8, %v6519_v43  ;;  %v1805_v51 = vadd.f32 %v1801_v41, %v1781_v15  ;;  %v1822_v61 = vmul.f32 %v9177_v52, %v6510_v29  ;;  %v1827_v42 = vadd.f32 %v1823_v12, %v1803_v22  ;;  %v9180_v43 = vld [vmem:[#allocation128_spill] sm:$0xff] }
 0x355   : > { %v1849_v36 = vmul.f32 %v5994_v8, %v6531_v44  ;;  %v1828_v6 = vadd.f32 %v1824_v46, %v1804_v32  ;;  %v1872_v20 = vmul.f32 %v6058_v50, %v6553_v39  ;;  %v1873_v24 = vmul.f32 %v6058_v50, %v6545_v4  ;;  %v9184_v32 = vld [vmem:[#allocation129_spill] sm:$0xff] }
 0x356   : > { %2785 = vrot.lane.b32.xlu1 %v5213_v35, %s9179_s23  ;;  %v1961_v16 = vsel %vm8778_vm12, %v9172_v23, %v9180_v43  ;;  %v1964_v29 = vsel %vm8778_vm12, %v9180_v43, %v9174_v0  ;;  %v1829_v44 = vadd.f32 %v1825_v38, %v1805_v51  ;;  %v1874_v39 = vmul.f32 %v6058_v50, %v6559_v1  ;;  %v6743_v5 = vpop.permute.xlu1 %2544  ;;  %v9185_v51 = vld [vmem:[#allocation81_spill] sm:$0xff] }
 0x357   : > { %v1802_v4 = vadd.f32 %v1798_v53, %v1778_v55  ;;  %v1846_v57 = vmul.f32 %v5994_v8, %v6537_v19  ;;  %v1851_v18 = vadd.f32 %v1847_v13, %v1827_v42  ;;  %v1852_v41 = vadd.f32 %v1848_v21, %v1828_v6  ;;  %3225 = vrot.lane.b32.xlu0 %v5154_v14, %s8951_s18  ;;  %v6749_v23 = vpop.permute.xlu0 %2885 }
 0x358   : > { %9181 = vst [vmem:[#allocation35_spill] sm:$0xff] %v6749_v23  ;;  %vm8785_vm4 = vcmp.lt.s32.totalorder %v5666_v33, 104  ;;  %v1853_v0 = vadd.f32 %v1849_v36, %v1829_v44  ;;  %v1897_v52 = vmul.f32 %v6106_v34, %v6581_v45  ;;  %v1898_v1 = vmul.f32 %v6106_v34, %v6571_v56  ;;  %v9272_v23 = vld [vmem:[#allocation98_spill] sm:$0xff] }
 0x359   : > { %v1899_v12 = vmul.f32 %v6106_v34, %v6601_v48  ;;  %v4469_v8 = vmov 35   ;;  %v1826_v19 = vadd.f32 %v1822_v61, %v1802_v4  ;;  %vm8784_vm12 = vcmp.lt.s32.totalorder %v5666_v33, 86  ;;  %v9191_v4 = vld [vmem:[#allocation136_spill] sm:$0xff] }
 0x35a   : > { %4168 = vset.pattern.permute.xlu0 %v4469_v8  ;;  %v1871_v2 = vmul.f32 %v6058_v50, %v6565_v59  ;;  %v1876_v3 = vadd.f32 %v1872_v20, %v1851_v18  ;;  %v1877_v46 = vadd.f32 %v1873_v24, %v1852_v41  ;;  %2789 = vrot.lane.b32.xlu1 %v5224_v10, %s9179_s23  ;;  %v6769_v15 = vpop.permute.xlu1 %2563  ;;  %vm2132_vm0 = vcmp.lt.s32.totalorder %v5666_v33, 85  ;;  %v9192_v41 = vld [vmem:[#allocation67_spill] sm:$0xff] }
 0x35b   : > { %v1878_v45 = vadd.f32 %v1874_v39, %v1853_v0  ;;  %v1921_v56 = vmul.f32 %v6162_v62, %v6619_v11  ;;  %v1922_v48 = vmul.f32 %v6162_v62, %v6613_v27  ;;  %v1923_v55 = vmul.f32 %v6162_v62, %v6625_v37  ;;  %3308 = vperm.xlu0 %4168, %v6650_v26   ;;  %v6776_v53 = vpop.permute.xlu0 %2967  ;;  %v9183_v11 = vld [vmem:[#allocation59_spill] sm:$0xff]  ;;  %v9193_v0 = vld [vmem:[#allocation140_spill] sm:$0xff] }
 0x35c   : > { %v1971_v22 = vmul.f32 %v9178_v54, %v1961_v16  ;;  %v1972_v50 = vmul.f32 %v9178_v54, %v1964_v29  ;;  %v1850_v59 = vadd.f32 %v1846_v57, %v1826_v19  ;;  %v1896_v38 = vmul.f32 %v6106_v34, %v6607_v7  ;;  %9182 = vst [vmem:[#allocation86_spill] sm:$0xff] %v6776_v53  ;;  %v9187_v7 = vld [vmem:[#allocation131_spill] sm:$0xff]  ;;  %v9188_v16 = vld [vmem:[#allocation65_spill] sm:$0xff] }
 0x35d   : > { %v1987_v27 = vsel %vm8780_vm5, %v9184_v32, %v9183_v11  ;;  %v1901_v37 = vadd.f32 %v1897_v52, %v1876_v3  ;;  %v1902_v13 = vadd.f32 %v1898_v1, %v1877_v46  ;;  %v1903_v21 = vadd.f32 %v1899_v12, %v1878_v45  ;;  %v9190_v29 = vld [vmem:[#allocation133_spill] sm:$0xff]  ;;  %v9194_v1 = vld [vmem:[#allocation138_spill] sm:$0xff] }
 0x35e   : > { %v1988_v54 = vsel %vm8780_vm5, %v9185_v51, %v9184_v32  ;;  %v1875_v61 = vadd.f32 %v1871_v2, %v1850_v59  ;;  %v1920_v34 = vmul.f32 %v6162_v62, %v6631_v28  ;;  %2808 = vrot.lane.b32.xlu1 %v5201_v47, %s9186_s27  ;;  %v1986_v42 = vsel %vm8780_vm5, %v9183_v11, %v9187_v7  ;;  %v6795_v24 = vpop.permute.xlu1 %2565  ;;  %v9189_v62 = vld [vmem:[#allocation135_spill] sm:$0xff]  ;;  %v9195_v2 = vld [vmem:[#allocation142_spill] sm:$0xff]  ;;  %v9198_v59 = vld [vmem:[#allocation21_spill] sm:$0xff] }
 0x35f   : > { %v1925_v36 = vadd.f32 %v1921_v56, %v1901_v37  ;;  %v1926_v6 = vadd.f32 %v1922_v48, %v1902_v13  ;;  %v1927_v20 = vadd.f32 %v1923_v55, %v1903_v21  ;;  %v1989_v43 = vsel %vm8780_vm5, %v9187_v7, %v9185_v51  ;;  %3249 = vrot.lane.b32.xlu0 %v5154_v14, %s8958_s0  ;;  %v9196_v45 = vld [vmem:[#allocation70_spill] sm:$0xff]  ;;  %v9202_v7 = vld [vmem:[#allocation40_spill] sm:$0xff] }
 0x360   : > { %v2011_v28 = vsel %vm1226_vm6, %v9189_v62, %v9188_v16  ;;  %v2012_v44 = vsel %vm1226_vm6, %v9190_v29, %v9189_v62  ;;  %v1900_v39 = vadd.f32 %v1896_v38, %v1875_v61  ;;  %v2010_v57 = vsel %vm1226_vm6, %v9188_v16, %v9191_v4  ;;  %v6829_v8 = vpop.permute.xlu0 %2138  ;;  %v9197_v56 = vld [vmem:[#allocation22_spill] sm:$0xff]  ;;  %v9199_v61 = vld [vmem:[#allocation72_spill] sm:$0xff] }
 0x361   : > { %v2013_v18 = vsel %vm1226_vm6, %v9191_v4, %v9190_v29  ;;  %v2035_v52 = vsel %vm1251_vm7, %v9193_v0, %v9192_v41  ;;  %v6827_v12 = vsel %vm1251_vm7, %v9194_v1, %v9193_v0  ;;  %v4470_v19 = vmov 36   ;;  %v9206_v29 = vld [vmem:[#allocation90_spill] sm:$0xff]  ;;  %v9207_v4 = vld [vmem:[#allocation151_spill] sm:$0xff] }
 0x362   : > { %4169 = vset.pattern.permute.xlu0 %v4470_v19  ;;  %v2034_v3 = vsel %vm1251_vm7, %v9192_v41, %v9195_v2  ;;  %v2037_v46 = vsel %vm1251_vm7, %v9195_v2, %v9194_v1  ;;  %v2059_v48 = vsel %vm1276_vm8, %v9197_v56, %v9196_v45  ;;  %v1924_v55 = vadd.f32 %v1920_v34, %v1900_v39  ;;  %v6855_v13 = vpop.permute.xlu1 %2569  ;;  %v9200_v34 = vld [vmem:[#allocation24_spill] sm:$0xff]  ;;  %v9208_v19 = vld [vmem:[#allocation25_spill] sm:$0xff] }
 0x363   : > { %2810 = vrot.lane.b32.xlu1 %v5213_v35, %s9186_s27  ;;  %v6849_v38 = vsel %vm1276_vm8, %v9198_v59, %v9197_v56  ;;  %vm8823_vm5 = vcmp.lt.s32.totalorder %v5666_v33, 84  ;;  %v1949_v11 = vadd.f32 %v6641_v9, %v1925_v36  ;;  %v1950_v32 = vadd.f32 %v6686_v17, %v1926_v6  ;;  %v9201_v17 = vld [vmem:[#allocation38_spill] sm:$0xff]  ;;  %3332 = vperm.xlu0 %4169, %v6650_v26   ;;  %v9203_v6 = vld [vmem:[#allocation75_spill] sm:$0xff] }
 0x364   : > { %v1951_v37 = vadd.f32 %v6693_v49, %v1927_v20  ;;  %v2058_v21 = vsel %vm1276_vm8, %v9196_v45, %v5930_v25  ;;  %v2061_v51 = vsel %vm1276_vm8, %v5930_v25, %v9198_v59  ;;  %v2084_v9 = vsel %vm8785_vm4, %v9200_v34, %v9199_v61  ;;  %v9204_v20 = vld [vmem:[#allocation26_spill] sm:$0xff]  ;;  %v6890_v62 = vpop.permute.xlu0 %2909 }
 0x365   : > { %v6873_v49 = vsel %vm8785_vm4, %v9201_v17, %v9200_v34  ;;  %v2083_v36 = vsel %vm8785_vm4, %v9199_v61, %v9202_v7  ;;  %v2086_v25 = vsel %vm8785_vm4, %v9202_v7, %v9201_v17  ;;  %v6888_v16 = vsel %vm8784_vm12, %v9204_v20, %v9203_v6  ;;  %9205 = vst [vmem:[#allocation33_spill] sm:$0xff] %v6890_v62  ;;  %v9210_v17 = vld [vmem:[#allocation27_spill] sm:$0xff] }
 0x366   : > { %v1948_v39 = vadd.f32 %v9206_v29, %v1924_v55  ;;  %v1995_v41 = vmul.f32 %v9207_v4, %v1987_v27  ;;  %v1996_v0 = vmul.f32 %v9207_v4, %v1986_v42  ;;  %v1997_v1 = vmul.f32 %v9207_v4, %v1989_v43  ;;  %v6905_v55 = vpop.permute.xlu1 %2588  ;;  %v9209_v42 = vld [vmem:[#allocation153_spill] sm:$0xff] }
 0x367   : > { %2814 = vrot.lane.b32.xlu1 %v5224_v10, %s9186_s27  ;;  %v6902_v2 = vsel %vm8784_vm12, %v9208_v19, %v9204_v20  ;;  %v1974_v45 = vadd.f32 %v6703_v63, %v1949_v11  ;;  %v1975_v56 = vadd.f32 %v1971_v22, %v1950_v32  ;;  %v1976_v59 = vadd.f32 %v1972_v50, %v1951_v37  ;;  %v9211_v50 = vld [vmem:[#allocation77_spill] sm:$0xff] }
 0x368   : > { %v1994_v27 = vmul.f32 %v9207_v4, %v1988_v54  ;;  %v2019_v61 = vmul.f32 %v9209_v42, %v2011_v28  ;;  %v2020_v43 = vmul.f32 %v9209_v42, %v2010_v57  ;;  %v2021_v34 = vmul.f32 %v9209_v42, %v2013_v18  ;;  %3273 = vrot.lane.b32.xlu0 %v5154_v14, %s4471_s29  ;;  %v9212_v54 = vld [vmem:[#allocation48_spill] sm:$0xff]  ;;  %v9213_v57 = vld [vmem:[#allocation46_spill] sm:$0xff]  ;;  %v6933_v11 = vpop.permute.xlu0 %2992  ;;  %v9215_v4 = vld [vmem:[#allocation159_spill] sm:$0xff] }
 0x369   : > { %v2108_v63 = vsel %vm8784_vm12, %v9203_v6, %v9210_v17  ;;  %v2111_v22 = vsel %vm8784_vm12, %v9210_v17, %v9208_v19  ;;  %v6925_v28 = vsel %vm2132_vm0, %v9212_v54, %v9211_v50  ;;  %v6931_v18 = vsel %vm2132_vm0, %v9213_v57, %v9212_v54  ;;  %9214 = vst [vmem:[#allocation88_spill] sm:$0xff] %v6933_v11 }
 0x36a   : > { %v4472_v32 = vmov 37   ;;  %v1973_v37 = vadd.f32 %v6700_v40, %v1948_v39  ;;  %v1999_v7 = vadd.f32 %v1995_v41, %v1974_v45  ;;  %v2000_v6 = vadd.f32 %v1996_v0, %v1975_v56  ;;  %v6942_v53 = vpop.permute.xlu1 %2590  ;;  %v9218_v45 = vld [vmem:[#allocation80_spill] sm:$0xff] }
 0x36b   : > { %4170 = vset.pattern.permute.xlu0 %v4472_v32  ;;  %v2001_v20 = vadd.f32 %v1997_v1, %v1976_v59  ;;  %2833 = vrot.lane.b32.xlu1 %v5201_v47, %s9014_s8  ;;  %v2018_v29 = vmul.f32 %v9209_v42, %v2012_v44  ;;  %v2043_v19 = vmul.f32 %v9215_v4, %v2035_v52  ;;  %vm8787_vm12 = vcmp.lt.s32.totalorder %v5666_v33, 83  ;;  %v9216_v44 = vld [vmem:[#allocation16_spill] sm:$0xff] }
 0x36c   : > { %v2044_v17 = vmul.f32 %v9215_v4, %v2034_v3  ;;  %v2045_v54 = vmul.f32 %v9215_v4, %v2037_v46  ;;  %v1998_v11 = vadd.f32 %v1994_v27, %v1973_v37  ;;  %v2023_v32 = vadd.f32 %v2019_v61, %v1999_v7  ;;  %3356 = vperm.xlu0 %4170, %v6650_v26   ;;  %v9217_v46 = vld [vmem:[#allocation50_spill] sm:$0xff]  ;;  %v9219_v56 = vld [vmem:[#allocation52_spill] sm:$0xff] }
 0x36d   : > { %v2024_v60 = vadd.f32 %v2020_v43, %v2000_v6  ;;  %v2025_v40 = vadd.f32 %v2021_v34, %v2001_v20  ;;  %v2042_v39 = vmul.f32 %v9215_v4, %v6827_v12  ;;  %v2067_v41 = vmul.f32 %v9216_v44, %v2059_v48  ;;  %v6965_v48 = vpop.permute.xlu0 %2163  ;;  %v9220_v43 = vld [vmem:[#allocation63_spill] sm:$0xff] }
 0x36e   : > { %v2068_v52 = vmul.f32 %v9216_v44, %v2058_v21  ;;  %v2069_v3 = vmul.f32 %v9216_v44, %v2061_v51  ;;  %v2133_v0 = vsel %vm2132_vm0, %v9211_v50, %v9217_v46  ;;  %v2136_v1 = vsel %vm2132_vm0, %v9217_v46, %v9213_v57  ;;  %v6968_v42 = vpop.permute.xlu1 %2594 }
 0x36f   : > { %v2159_v12 = vsel %vm8823_vm5, %v9219_v56, %v9218_v45  ;;  %2835 = vrot.lane.b32.xlu1 %v5213_v35, %s9014_s8  ;;  %vm8786_vm4 = vcmp.lt.s32.totalorder %v5666_v33, 82  ;;  %v2022_v21 = vadd.f32 %v2018_v29, %v1998_v11  ;;  %v2047_v51 = vadd.f32 %v2043_v19, %v2023_v32  ;;  %v9222_v29 = vld [vmem:[#allocation100_spill] sm:$0xff]  ;;  %v9223_v19 = vld [vmem:[#allocation54_spill] sm:$0xff] }
 0x370   : > { %v2048_v59 = vadd.f32 %v2044_v17, %v2024_v60  ;;  %v2049_v27 = vadd.f32 %v2045_v54, %v2025_v40  ;;  %v2066_v61 = vmul.f32 %v9216_v44, %v6849_v38  ;;  %v2092_v34 = vmul.f32 %v9220_v43, %v2084_v9  ;;  %3298 = vrot.lane.b32.xlu0 %v5154_v14, %s4473_s14 }
 0x371   : > { %v2093_v50 = vmul.f32 %v9220_v43, %v2083_v36  ;;  %v2094_v57 = vmul.f32 %v9220_v43, %v2086_v25  ;;  %v2046_v37 = vadd.f32 %v2042_v39, %v2022_v21  ;;  %v2071_v11 = vadd.f32 %v2067_v41, %v2047_v51  ;;  %v6985_v25 = vpop.permute.xlu0 %2933  ;;  %v9226_v51 = vld [vmem:[#allocation145_spill] sm:$0xff] }
 0x372   : > { %v2072_v7 = vadd.f32 %v2068_v52, %v2048_v59  ;;  %v2073_v60 = vadd.f32 %v2069_v3, %v2049_v27  ;;  %v4474_v6 = vmov 38   ;;  %v2091_v20 = vmul.f32 %v9220_v43, %v6873_v49  ;;  %9221 = vst [vmem:[#allocation37_spill] sm:$0xff] %v6985_v25  ;;  %v9227_v27 = vld [vmem:[#allocation143_spill] sm:$0xff]  ;;  %v9228_v43 = vld [vmem:[#allocation148_spill] sm:$0xff]  ;;  %v9268_v25 = vld [vmem:[#allocation158_spill] sm:$0xff] }
 0x373   : > { %4171 = vset.pattern.permute.xlu0 %v4474_v6  ;;  %v2117_v38 = vmul.f32 %v6721_v30, %v6888_v16  ;;  %v2118_v9 = vmul.f32 %v6721_v30, %v2108_v63  ;;  %v2119_v36 = vmul.f32 %v6721_v30, %v2111_v22  ;;  %2839 = vrot.lane.b32.xlu1 %v5224_v10, %s9014_s8  ;;  %v6999_v63 = vpop.permute.xlu1 %2613  ;;  %v9231_v6 = vld [vmem:[#allocation154_spill] sm:$0xff]  ;;  %s4487_s8 = smov 59  }
 0x374   : > { %v2160_v4 = vsel %vm8823_vm5, %v9222_v29, %v9219_v56  ;;  %v2158_v49 = vsel %vm8823_vm5, %v9218_v45, %v9223_v19  ;;  %v2161_v16 = vsel %vm8823_vm5, %v9223_v19, %v9222_v29  ;;  %v2070_v22 = vadd.f32 %v2066_v61, %v2046_v37  ;;  %3380 = vperm.xlu0 %4171, %v6650_v26  }
 0x375   : > { %v2096_v17 = vadd.f32 %v2092_v34, %v2071_v11  ;;  %v2097_v54 = vadd.f32 %v2093_v50, %v2072_v7  ;;  %v2098_v32 = vadd.f32 %v2094_v57, %v2073_v60  ;;  %v2116_v40 = vmul.f32 %v6721_v30, %v6902_v2  ;;  %v7010_v56 = vpop.permute.xlu0 %3016  ;;  %v9229_v11 = vld [vmem:[#allocation84_spill] sm:$0xff] }
 0x376   : > { %v2142_v39 = vmul.f32 %v6829_v8, %v6925_v28  ;;  %v2143_v44 = vmul.f32 %v6829_v8, %v2133_v0  ;;  %v2144_v41 = vmul.f32 %v6829_v8, %v2136_v1  ;;  %v2095_v52 = vadd.f32 %v2091_v20, %v2070_v22  ;;  %9224 = vst [vmem:[#allocation89_spill] sm:$0xff] %v7010_v56  ;;  %v9225_v1 = vld [vmem:[#allocation82_spill] sm:$0xff]  ;;  %v9230_v7 = vld [vmem:[#allocation152_spill] sm:$0xff] }
 0x377   : > { %v2121_v3 = vadd.f32 %v2117_v38, %v2096_v17  ;;  %v2122_v46 = vadd.f32 %v2118_v9, %v2097_v54  ;;  %v2123_v45 = vadd.f32 %v2119_v36, %v2098_v32  ;;  %2857 = vrot.lane.b32.xlu1 %v5201_v47, %s9043_s30  ;;  %v2141_v21 = vmul.f32 %v6829_v8, %v6931_v18  ;;  %v7017_v0 = vpop.permute.xlu1 %2615  ;;  %v9232_v38 = vld [vmem:[#allocation150_spill] sm:$0xff] }
 0x378   : > { %v2167_v30 = vmul.f32 %v6965_v48, %v2159_v12  ;;  %v2168_v2 = vmul.f32 %v6965_v48, %v2158_v49  ;;  %v2169_v28 = vmul.f32 %v6965_v48, %v2161_v16  ;;  %v2184_v59 = vsel %vm8787_vm12, %v9226_v51, %v9225_v1  ;;  %3323 = vrot.lane.b32.xlu0 %v5154_v14, %s8964_s1 }
 0x379   : > { %v2185_v61 = vsel %vm8787_vm12, %v9227_v27, %v9226_v51  ;;  %v2183_v8 = vsel %vm8787_vm12, %v9225_v1, %v9228_v43  ;;  %v2186_v18 = vsel %vm8787_vm12, %v9228_v43, %v9227_v27  ;;  %v2120_v12 = vadd.f32 %v2116_v40, %v2095_v52 }
 0x37a   : > { %v2146_v34 = vadd.f32 %v2142_v39, %v2121_v3  ;;  %v2147_v50 = vadd.f32 %v2143_v44, %v2122_v46  ;;  %v2148_v57 = vadd.f32 %v2144_v41, %v2123_v45  ;;  %v4475_v37 = vmov 39   ;;  %v2189_v22 = vpop.permute.xlu0 %2188  ;;  %v9233_v44 = vld [vmem:[#allocation87_spill] sm:$0xff] }
 0x37b   : > { %4172 = vset.pattern.permute.xlu0 %v4475_v37  ;;  %v2209_v60 = vsel %vm8786_vm4, %v9230_v7, %v9229_v11  ;;  %v2208_v20 = vsel %vm8786_vm4, %v9229_v11, %v9231_v6  ;;  %v2211_v9 = vsel %vm8786_vm4, %v9231_v6, %v9232_v38  ;;  %v2166_v36 = vmul.f32 %v6965_v48, %v2160_v4  ;;  %v7052_v17 = vpop.permute.xlu1 %2619 }
 0x37c   : > { %2859 = vrot.lane.b32.xlu1 %v5213_v35, %s9043_s30  ;;  %v2145_v29 = vadd.f32 %v2141_v21, %v2120_v12  ;;  %v2171_v19 = vadd.f32 %v2167_v30, %v2146_v34  ;;  %v2172_v49 = vadd.f32 %v2168_v2, %v2147_v50  ;;  %v2173_v16 = vadd.f32 %v2169_v28, %v2148_v57 }
 0x37d   : > { %v2191_v54 = vmul.f32 %v2189_v22, %v2185_v61  ;;  %v2192_v32 = vmul.f32 %v2189_v22, %v2184_v59  ;;  %v2193_v40 = vmul.f32 %v2189_v22, %v2183_v8  ;;  %v2194_v39 = vmul.f32 %v2189_v22, %v2186_v18  ;;  %3404 = vperm.xlu0 %4172, %v6650_v26  }
 0x37e   : > { %v2217_v41 = vmul.f32 %v9233_v44, %v2209_v60  ;;  %v2218_v48 = vmul.f32 %v9233_v44, %v2208_v20  ;;  %v2219_v4 = vmul.f32 %v9233_v44, %v2211_v9  ;;  %v2170_v52 = vadd.f32 %v2166_v36, %v2145_v29 }
 0x37f   : > { %v2196_v3 = vadd.f32 %v2192_v32, %v2171_v19  ;;  %v2197_v46 = vadd.f32 %v2193_v40, %v2172_v49  ;;  %v2198_v45 = vadd.f32 %v2194_v39, %v2173_v16  ;;  %v2210_v21 = vsel %vm8786_vm4, %v9232_v38, %v9230_v7  ;;  %v7064_v30 = vpop.permute.xlu1 %2638 }
 0x380   : > { %2863 = vrot.lane.b32.xlu1 %v5224_v10, %s9043_s30  ;;  %v2195_v2 = vadd.f32 %v2191_v54, %v2170_v52  ;;  %v4476_v59 = vmov 40   ;;  %v2216_v27 = vmul.f32 %v9233_v44, %v2210_v21  ;;  %v4477_v20 = vmov 41   ;;  %s4486_s30 = smov 60  }
 0x381   : > { %3347 = vrot.lane.b32.xlu0 %v5154_v14, %s8972_s3  ;;  %v7068_v28 = vadd.f32 %v2217_v41, %v2196_v3  ;;  %v7070_v1 = vadd.f32 %v2219_v4, %v2198_v45  ;;  %v7072_v51 = vadd.f32 %v2218_v48, %v2197_v46  ;;  %v4478_v32 = vmov 42  }
 0x382   : > { %4173 = vset.pattern.permute.xlu0 %v4476_v59  ;;  %v7090_v34 = vadd.f32 %v2216_v27, %v2195_v2  ;;  %vm2596_vm5 = vcmp.lt.s32.totalorder %v5666_v33, 64 }
 0x383   : > { %v7078_v61 = vmul.f32 0.70710677, %v7068_v28  ;;  %v7081_v43 = vmul.f32 0.70710677, %v7070_v1  ;;  %v7083_v8 = vpop.permute.xlu1 %2640  ;;  %v7086_v18 = vmul.f32 0.70710677, %v7072_v51 }
 0x384   : > { %2881 = vrot.lane.b32.xlu1 %v5201_v47, %s8904_s24  ;;  %v7101_v6 = vmul.f32 0.70710677, %v7090_v34 }
 0x385   : > { %3428 = vperm.xlu0 %4173, %v6650_v26   ;;  %v2233_v12 = vand.u32 2147483647, %v7078_v61  ;;  %v2235_v50 = vand.u32 2147483647, %v7081_v43  ;;  %v2234_v37 = vand.u32 2147483647, %v7086_v18 }
 0x386   : > { %v2232_v19 = vand.u32 2147483647, %v7101_v6  ;;  %vm2309_vm4 = vcmp.ge.f32.partialorder %v7078_v61, 0.0  ;;  %vm2311_vm12 = vcmp.ge.f32.partialorder %v7081_v43, 0.0 }
 0x387   : > { %v2237_v57 = vmul.f32 0.3275911, %v2233_v12  ;;  %v7096_v11 = vpop.permute.xlu1 %2644  ;;  %v2239_v7 = vmul.f32 0.3275911, %v2235_v50  ;;  %v2238_v9 = vmul.f32 0.3275911, %v2234_v37 }
 0x388   : > { %2883 = vrot.lane.b32.xlu1 %v5213_v35, %s8904_s24  ;;  %v2236_v49 = vmul.f32 0.3275911, %v2232_v19  ;;  %v2285_v22 = vsub.f32 0.0, %v2233_v12  ;;  %v2287_v40 = vsub.f32 0.0, %v2235_v50  ;;  %v2286_v48 = vsub.f32 0.0, %v2234_v37 }
 0x389   : > { %3371 = vrot.lane.b32.xlu0 %v5154_v14, %s8978_s5  ;;  %v2241_v60 = vadd.f32 1.0, %v2237_v57  ;;  %v2243_v38 = vadd.f32 1.0, %v2239_v7  ;;  %v2242_v29 = vadd.f32 1.0, %v2238_v9 }
 0x38a   : > { %4174 = vset.pattern.permute.xlu0 %v4477_v20  ;;  %v2240_v54 = vadd.f32 1.0, %v2236_v49  ;;  %v2289_v41 = vmul.f32 %v2285_v22, %v2233_v12  ;;  %v2291_v3 = vmul.f32 %v2287_v40, %v2235_v50  ;;  %v2290_v57 = vmul.f32 %v2286_v48, %v2234_v37 }
 0x38b   : > { %4289 = vrcp.f32 %v2241_v60  ;;  %v7105_v36 = vpop.permute.xlu1 %2663  ;;  %v4479_v12 = vmov 43   ;;  %v2284_v20 = vsub.f32 0.0, %v2232_v19 }
 0x38c   : > { %2887 = vrot.lane.b32.xlu1 %v5224_v10, %s8904_s24  ;;  %4291 = vrcp.f32 %v2243_v38  ;;  %v2294_v59 = vmul.f32 1.442695, %v2289_v41  ;;  %v2298_v60 = vmul.f32 1.442695, %v2291_v3  ;;  %s4485_s24 = smov 61  }
 0x38d   : > { %3453 = vperm.xlu0 %4174, %v6650_v26   ;;  %4293 = vrcp.f32 %v2242_v29  ;;  %v2288_v41 = vmul.f32 %v2284_v20, %v2232_v19 }
 0x38e   : > { %4295 = vrcp.f32 %v2240_v54  ;;  %v2296_v54 = vmul.f32 1.442695, %v2290_v57  ;;  %v4481_v57 = vmov 44  }
 0x38f   : > { %v7111_v16 = vpop.permute.xlu1 %2665  ;;  %4297 = vpow2.f32 %v2294_v59 }
 0x390   : > { %2905 = vrot.lane.b32.xlu1 %v5201_v47, %s8866_s10  ;;  %4299 = vpow2.f32 %v2298_v60 }
 0x391   : > { %3395 = vrot.lane.b32.xlu0 %v5154_v14, %s8988_s11  ;;  %4301 = vpow2.f32 %v2296_v54 }
 0x392   : > { %4175 = vset.pattern.permute.xlu0 %v4478_v32 }
 0x393   : > { %v7117_v39 = vpop.permute.xlu1 %2669 }
 0x394   : > { %2907 = vrot.lane.b32.xlu1 %v5213_v35, %s8866_s10 }
 0x395   : > { %v4290_v44 = vpop.eup %4289  ;;  %3465 = vperm.xlu0 %4175, %v6650_v26  }
 0x396   : > { %v4292_v4 = vpop.eup %4291  ;;  %v2249_v52 = vmul.f32 1.0614054, %v4290_v44 }
 0x397   : > { %v2251_v46 = vmul.f32 1.0614054, %v4292_v4  ;;  %v7122_v45 = vpop.permute.xlu1 %2687  ;;  %v7124_v2 = vpop.eup %4293 }
 0x398   : > { %2911 = vrot.lane.b32.xlu1 %v5224_v10, %s8866_s10  ;;  %v2253_v21 = vadd.f32 -1.4531521, %v2249_v52  ;;  %v2250_v50 = vmul.f32 1.0614054, %v7124_v2  ;;  %v7133_v22 = vpop.eup %4295  ;;  %s4480_s10 = smov 81  }
 0x399   : > { %3419 = vrot.lane.b32.xlu0 %v5154_v14, %s8994_s16  ;;  %v2255_v27 = vadd.f32 -1.4531521, %v2251_v46  ;;  %v2248_v52 = vmul.f32 1.0614054, %v7133_v22 }
 0x39a   : > { %4176 = vset.pattern.permute.xlu0 %v4479_v12  ;;  %v2257_v7 = vmul.f32 %v4290_v44, %v2253_v21  ;;  %v2254_v49 = vadd.f32 -1.4531521, %v2250_v50 }
 0x39b   : > { %v2259_v38 = vmul.f32 %v4292_v4, %v2255_v27  ;;  %v7131_v9 = vpop.permute.xlu1 %2689  ;;  %v2252_v27 = vadd.f32 -1.4531521, %v2248_v52 }
 0x39c   : > { %2929 = vrot.lane.b32.xlu1 %v5201_v47, %s8913_s13  ;;  %v2261_v29 = vadd.f32 1.4214138, %v2257_v7  ;;  %v2258_v40 = vmul.f32 %v7124_v2, %v2254_v49  ;;  %v2292_v7 = vmul.f32 1.442695, %v2288_v41 }
 0x39d   : > { %3477 = vperm.xlu0 %4176, %v6650_v26   ;;  %v2263_v37 = vadd.f32 1.4214138, %v2259_v38  ;;  %v2256_v50 = vmul.f32 %v7133_v22, %v2252_v27  ;;  %v4482_v27 = vmov 47  }
 0x39e   : > { %v2265_v32 = vmul.f32 %v4290_v44, %v2261_v29  ;;  %v2262_v21 = vadd.f32 1.4214138, %v2258_v40  ;;  %4303 = vpow2.f32 %v2292_v7  ;;  %v4298_v40 = vpop.eup %4297 }
 0x39f   : > { %v2267_v48 = vmul.f32 %v4292_v4, %v2263_v37  ;;  %v7140_v3 = vpop.permute.xlu1 %2693  ;;  %v2260_v37 = vadd.f32 1.4214138, %v2256_v50  ;;  %v4300_v52 = vpop.eup %4299 }
 0x3a0   : > { %2931 = vrot.lane.b32.xlu1 %v5213_v35, %s8913_s13  ;;  %v2269_v46 = vadd.f32 -0.28449672, %v2265_v32  ;;  %v2266_v12 = vmul.f32 %v7124_v2, %v2262_v21  ;;  %v4302_v7 = vpop.eup %4301 }
 0x3a1   : > { %3443 = vrot.lane.b32.xlu0 %v5154_v14, %s4480_s10  ;;  %v2271_v59 = vadd.f32 -0.28449672, %v2267_v48  ;;  %v2264_v48 = vmul.f32 %v7133_v22, %v2260_v37 }
 0x3a2   : > { %4177 = vset.pattern.permute.xlu0 %v4481_v57  ;;  %v2273_v19 = vmul.f32 %v4290_v44, %v2269_v46  ;;  %v2270_v29 = vadd.f32 -0.28449672, %v2266_v12 }
 0x3a3   : > { %v2275_v60 = vmul.f32 %v4292_v4, %v2271_v59  ;;  %v7148_v20 = vpop.permute.xlu1 %2711 }
 0x3a4   : > { %2935 = vrot.lane.b32.xlu1 %v5224_v10, %s8913_s13  ;;  %v2277_v38 = vadd.f32 0.2548296, %v2273_v19  ;;  %v2274_v32 = vmul.f32 %v7124_v2, %v2270_v29  ;;  %v2268_v19 = vadd.f32 -0.28449672, %v2264_v48  ;;  %s4483_s13 = smov 62  }
 0x3a5   : > { %3489 = vperm.xlu0 %4177, %v6650_v26   ;;  %v2279_v49 = vadd.f32 0.2548296, %v2275_v60 }
 0x3a6   : > { %v2281_v54 = vmul.f32 %v4290_v44, %v2277_v38  ;;  %v2278_v59 = vadd.f32 0.2548296, %v2274_v32  ;;  %v2272_v60 = vmul.f32 %v7133_v22, %v2268_v19  ;;  %v4484_v32 = vmov 48  }
 0x3a7   : > { %v2283_v41 = vmul.f32 %v4292_v4, %v2279_v49  ;;  %v7155_v46 = vpop.permute.xlu1 %2713 }
 0x3a8   : > { %2953 = vrot.lane.b32.xlu1 %v5201_v47, %s4455_s9  ;;  %v2301_v21 = vmul.f32 %v4298_v40, %v2281_v54  ;;  %v2282_v12 = vmul.f32 %v7124_v2, %v2278_v59  ;;  %v2276_v37 = vadd.f32 0.2548296, %v2272_v60  ;;  %v2225_v40 = vmul.f32 0.5, %v7068_v28 }
 0x3a9   : > { %4180 = vset.pattern.permute.xlu0 %v4482_v27  ;;  %v2303_v57 = vmul.f32 %v4300_v52, %v2283_v41  ;;  %v4304_v52 = vpop.eup %4303  ;;  %v2227_v59 = vmul.f32 0.5, %v7070_v1 }
 0x3aa   : > { %3564 = vperm.xlu0 %4180, %v6650_v26   ;;  %v2305_v44 = vsub.f32 1.0, %v2301_v21  ;;  %v2302_v29 = vmul.f32 %v4302_v7, %v2282_v12  ;;  %v2280_v61 = vmul.f32 %v7133_v22, %v2276_v37  ;;  %v2226_v22 = vmul.f32 0.5, %v7072_v51 }
 0x3ab   : > { %v2307_v4 = vsub.f32 1.0, %v2303_v57  ;;  %v7162_v50 = vpop.permute.xlu1 %2717 }
 0x3ac   : > { %2955 = vrot.lane.b32.xlu1 %v5213_v35, %s4455_s9  ;;  %v2313_v38 = vsub.f32 0.0, %v2305_v44  ;;  %v2306_v54 = vsub.f32 1.0, %v2302_v29  ;;  %v2300_v19 = vmul.f32 %v4304_v52, %v2280_v61  ;;  %v9234_v29 = vmov 0   ;;  %v7217_v61 = vpop.permute.xlu0 %2957 }
 0x3ad   : > { %v2315_v49 = vsub.f32 0.0, %v2307_v4  ;;  %9236 = vst [vmem:[#allocation62_spill] sm:$0xff] %v7217_v61 }
 0x3ae   : > { %3504 = vrot.lane.b32.xlu0 %v5154_v14, %s4483_s13  ;;  %v2317_v2 = vsel %vm2309_vm4, %v2305_v44, %v2313_v38  ;;  %v2314_v57 = vsub.f32 0.0, %v2306_v54  ;;  %vm2310_vm4 = vcmp.ge.f32.partialorder %v7086_v18, 0.0 }
 0x3af   : > { %4181 = vset.pattern.permute.xlu0 %v4484_v32  ;;  %v2321_v41 = vadd.f32 1.0, %v2317_v2  ;;  %v2319_v48 = vsel %vm2311_vm12, %v2307_v4, %v2315_v49  ;;  %v7172_v21 = vpop.permute.xlu1 %2735  ;;  %v2304_v4 = vsub.f32 1.0, %v2300_v19  ;;  %vm2308_vm12 = vcmp.ge.f32.partialorder %v7101_v6, 0.0 }
 0x3b0   : > { %2959 = vrot.lane.b32.xlu1 %v5224_v10, %s4455_s9  ;;  %v2323_v27 = vadd.f32 1.0, %v2319_v48  ;;  %v2318_v12 = vsel %vm2310_vm4, %v2306_v54, %v2314_v57  ;;  %v2224_v49 = vmul.f32 0.5, %v7090_v34  ;;  %v4328_v57 = vld [vmem:[%s8498_s6] sm:$0xff]   ;;  %vm2470_vm4 = vcmp.lt.s32.totalorder %v5666_v33, 69 }
 0x3b1   : > { %v2325_v43 = vmul.f32 %v2321_v41, %v2225_v40  ;;  %v2322_v7 = vadd.f32 1.0, %v2318_v12  ;;  %v2312_v18 = vsub.f32 0.0, %v2304_v4  ;;  %v9235_v41 = vld [vmem:[#allocation156_spill] sm:$0xff] }
 0x3b2   : > { %3589 = vperm.xlu0 %4181, %v6650_v26   ;;  %v2327_v44 = vmul.f32 %v2323_v27, %v2227_v59  ;;  %v7227_v27 = vpop.permute.xlu0 %3040 }
 0x3b3   : > { %v2329_v28 = vpack.c.bf16 %v2325_v43, %v2325_v43  ;;  %v7180_v60 = vpop.permute.xlu1 %2737  ;;  %v2326_v38 = vmul.f32 %v2322_v7, %v2226_v22  ;;  %v2316_v51 = vsel %vm2308_vm12, %v2304_v4, %v2312_v18  ;;  %9237 = vst [vmem:[#allocation91_spill] sm:$0xff] %v7227_v27  ;;  %vm2496_vm12 = vcmp.lt.s32.totalorder %v5666_v33, 68 }
 0x3b4   : > { %2978 = vrot.lane.b32.xlu1 %v5201_v47, %s4456_s15  ;;  %v2331_v1 = vpack.c.bf16 %v2327_v44, %v2327_v44  ;;  %v2320_v37 = vadd.f32 1.0, %v2316_v51 }
 0x3b5   : > { %3949 = vmatprep.subr.msk.bf16.mxu0 %vm8819_vm10, %v2329_v28  ;;  %v2330_v26 = vpack.c.bf16 %v2326_v38, %v2326_v38 }
 0x3b6   : > { %3951 = vmatprep.subr.msk.bf16.mxu1 %vm8819_vm10, %v2331_v1  ;;  %3529 = vrot.lane.b32.xlu0 %v5154_v14, %s4485_s24  ;;  %v2324_v32 = vmul.f32 %v2320_v37, %v2224_v49 }
 0x3b7   : > { %4183 = vset.pattern.permute.xlu0 %v9234_v29  ;;  %v7191_v2 = vpop.permute.xlu1 %2741  ;;  %v2344_v54 = vsel %vm8819_vm10, %v2330_v26, 0 }
 0x3b8   : > { %2980 = vrot.lane.b32.xlu1 %v5213_v35, %s4456_s15  ;;  %2393 = vmatpush1.bf16.msra.mxu1 %v2344_v54  ;;  %v2328_v6 = vpack.c.bf16 %v2324_v32, %v2324_v32 }
 0x3ba   : > { %3550 = vrot.lane.b32.xlu0 %v5201_v47, %s4486_s30  ;;  %v2338_v34 = vsel %vm8819_vm10, %v2328_v6, 0  ;;  %vm2546_vm10 = vcmp.lt.s32.totalorder %v5666_v33, 66 }
 0x3bb   : > { %v7198_v40 = vpop.permute.xlu1 %2759  ;;  %3952 = vmatmul.mubr.msk.bf16.vlgmr.msra.gmra.mrb[8].mxu1 %vm8818_vm11, %v9235_v41  ;;  %2350 = vmatpush1.bf16.msra.mxu0 %v2338_v34 }
 0x3bc   : > { %2984 = vrot.lane.b32.xlu1 %v5224_v10, %s4456_s15  ;;  %3800 = vmatprep.mubr.bf16.mxu1 %v9234_v29 }
 0x3be   : > { %3554 = vrot.lane.b32.xlu0 %v5154_v14, %s4486_s30  ;;  %3950 = vmatmul.mubr.msk.bf16.vlgmr.msra.gmra.mrb[8].mxu0 %vm8818_vm11, %v9235_v41  ;;  %vm2521_vm11 = vcmp.lt.s32.totalorder %v5666_v33, 67 }
 0x3bf   : > { %v7208_v48 = vpop.permute.xlu1 %2761  ;;  %3757 = vmatprep.mubr.bf16.mxu0 %v9234_v29  ;;  %v4488_v29 = vmov 45  }
 0x3c0   : > { %3003 = vrot.lane.b32.xlu1 %v5201_v47, %s8918_s22 }
 0x3c1   : > { %4178 = vset.pattern.permute.xlu1 %v4488_v29  ;;  %v7335_v29 = vpop.permute.xlu0 %2982 }
 0x3c2   : > { %3575 = vrot.lane.b32.xlu0 %v5201_v47, %s4487_s8  ;;  %9259 = vst [vmem:[#allocation111_spill] sm:$0xff] %v7335_v29 }
 0x3c3   : > { %v7219_v52 = vpop.permute.xlu1 %2765 }
 0x3c4   : > { %3005 = vrot.lane.b32.xlu1 %v5213_v35, %s8918_s22 }
 0x3c6   : > { %3579 = vrot.lane.b32.xlu0 %v5154_v14, %s4487_s8 }
 0x3c7   : > { %v7225_v59 = vpop.permute.xlu1 %2797 }
 0x3c8   : > { %3009 = vrot.lane.b32.xlu1 %v5224_v10, %s8918_s22  ;;  %s296_s22 = sand.u32 1, %s4384_s28  }
 0x3c9   : > { %s8451_s27 = scalar_lea.sflag [#allocation3], %s296_s22 }
 0x3ca   : > { %3708 = vrot.lane.b32.xlu0 %v4328_v57, %s8958_s0 }
 0x3cc   : > { %3027 = vrot.lane.b32.xlu1 %v5201_v47, %s8872_s25 }
 0x3cd   : > { %v7235_v43 = vpop.permute.xlu1 %2822 }
 0x3ce   : > { %9238 = vst [vmem:[#allocation39_spill] sm:$0xff] %v7235_v43 }
 0x3d0   : > { %3029 = vrot.lane.b32.xlu1 %v5213_v35, %s8872_s25 }
 0x3d1   : > { %v7239_v19 = vpop.permute.xlu1 %2783 }
 0x3d4   : > { %3033 = vrot.lane.b32.xlu1 %v5224_v10, %s8872_s25  ;;  %s3927_s25 = sshll.u32 %s296_s22, 6 }
 0x3d5   : > { %v7243_v44 = vpop.permute.xlu1 %2785 }
 0x3d8   : > { %3051 = vrot.lane.b32.xlu1 %v5201_v47, %s8875_s12 }
 0x3d9   : > { %v7247_v12 = vpop.permute.xlu1 %2789 }
 0x3dc   : > { %3053 = vrot.lane.b32.xlu1 %v5213_v35, %s8875_s12 }
 0x3dd   : > { %v7251_v28 = vpop.permute.xlu1 %2808 }
 0x3de   : > { %9239 = vst [vmem:[#allocation93_spill] sm:$0xff] %v7251_v28 }
 0x3e0   : > { %3057 = vrot.lane.b32.xlu1 %v5224_v10, %s8875_s12  ;;  %s9429_s12 = sld [smem:[#allocation8_spill]] }
 0x3e1   : > { %v7255_v22 = vpop.permute.xlu1 %2810 }
 0x3e4   : > { %3075 = vrot.lane.b32.xlu1 %v5201_v47, %s8930_s20 }
 0x3e5   : > { %v7259_v7 = vpop.permute.xlu1 %2814 }
 0x3e6   : > { %9240 = vst [vmem:[#allocation64_spill] sm:$0xff] %v7259_v7  ;;  %v9288_v7 = vld [vmem:[#allocation117_spill] sm:$0xff] }
 0x3e8   : > { %3077 = vrot.lane.b32.xlu1 %v5213_v35, %s8930_s20 }
 0x3e9   : > { %v7263_v4 = vpop.permute.xlu1 %2833 }
 0x3ea   : > { %9241 = vst [vmem:[#allocation102_spill] sm:$0xff] %v7263_v4 }
 0x3ec   : > { %3081 = vrot.lane.b32.xlu1 %v5224_v10, %s8930_s20 }
 0x3ed   : > { %v7267_v1 = vpop.permute.xlu1 %2835 }
 0x3ee   : > { %9242 = vst [vmem:[#allocation95_spill] sm:$0xff] %v7267_v1  ;;  %v9285_v1 = vld [vmem:[#allocation108_spill] sm:$0xff] }
 0x3f0   : > { %3099 = vrot.lane.b32.xlu1 %v5201_v47, %s4462_s2 }
 0x3f1   : > { %v7271_v38 = vpop.permute.xlu1 %2839 }
 0x3f2   : > { %9243 = vst [vmem:[#allocation41_spill] sm:$0xff] %v7271_v38 }
 0x3f4   : > { %3101 = vrot.lane.b32.xlu1 %v5213_v35, %s4462_s2 }
 0x3f5   : > { %v7275_v18 = vpop.permute.xlu1 %2857 }
 0x3f6   : > { %9244 = vst [vmem:[#allocation97_spill] sm:$0xff] %v7275_v18 }
 0x3f8   : > { %3105 = vrot.lane.b32.xlu1 %v5224_v10, %s4462_s2 }
 0x3f9   : > { %v7279_v26 = vpop.permute.xlu1 %2859 }
 0x3fa   : > { %9245 = vst [vmem:[#allocation66_spill] sm:$0xff] %v7279_v26  ;;  %v9278_v26 = vld [vmem:[#allocation56_spill] sm:$0xff] }
 0x3fc   : > { %3124 = vrot.lane.b32.xlu1 %v5201_v47, %s4464_s26 }
 0x3fd   : > { %v7283_v51 = vpop.permute.xlu1 %2863 }
 0x3fe   : > { %9246 = vst [vmem:[#allocation99_spill] sm:$0xff] %v7283_v51 }
 0x400   : > { %3126 = vrot.lane.b32.xlu1 %v5213_v35, %s4464_s26 }
 0x401   : > { %v7287_v49 = vpop.permute.xlu1 %2881 }
 0x402   : > { %9247 = vst [vmem:[#allocation43_spill] sm:$0xff] %v7287_v49 }
 0x404   : > { %3130 = vrot.lane.b32.xlu1 %v5224_v10, %s4464_s26  ;;  %s9431_s26 = sld [smem:[#allocation167_spill]] }
 0x405   : > { %v7291_v37 = vpop.permute.xlu1 %2883 }
 0x406   : > { %9248 = vst [vmem:[#allocation101_spill] sm:$0xff] %v7291_v37  ;;  %v9274_v37 = vld [vmem:[#allocation94_spill] sm:$0xff] }
 0x408   : > { %3149 = vrot.lane.b32.xlu1 %v5201_v47, %s8934_s21 }
 0x409   : > { %v7295_v54 = vpop.permute.xlu1 %2887 }
 0x40a   : > { %9249 = vst [vmem:[#allocation68_spill] sm:$0xff] %v7295_v54  ;;  %v2452_v54 = vmul.f32 %v9268_v25, %v5224_v10 }
 0x40c   : > { %3151 = vrot.lane.b32.xlu1 %v5213_v35, %s8934_s21 }
 0x40d   : > { %v7299_v32 = vpop.permute.xlu1 %2905 }
 0x40e   : > { %9250 = vst [vmem:[#allocation103_spill] sm:$0xff] %v7299_v32 }
 0x410   : > { %3155 = vrot.lane.b32.xlu1 %v5224_v10, %s8934_s21 }
 0x411   : > { %v7303_v6 = vpop.permute.xlu1 %2907 }
 0x412   : > { %9251 = vst [vmem:[#allocation45_spill] sm:$0xff] %v7303_v6  ;;  %v2449_v6 = vmul.f32 %v9268_v25, %v5201_v47 }
 0x414   : > { %3173 = vrot.lane.b32.xlu1 %v5201_v47, %s8939_s17 }
 0x415   : > { %v7307_v41 = vpop.permute.xlu1 %2911 }
 0x416   : > { %9252 = vst [vmem:[#allocation105_spill] sm:$0xff] %v7307_v41  ;;  %v9269_v41 = vld [vmem:[#allocation96_spill] sm:$0xff] }
 0x418   : > { %3175 = vrot.lane.b32.xlu1 %v5213_v35, %s8939_s17 }
 0x419   : > { %v7311_v34 = vpop.permute.xlu1 %2929 }
 0x41a   : > { %9253 = vst [vmem:[#allocation69_spill] sm:$0xff] %v7311_v34 }
 0x41c   : > { %3179 = vrot.lane.b32.xlu1 %v5224_v10, %s8939_s17 }
 0x41d   : > { %v7315_v57 = vpop.permute.xlu1 %2931 }
 0x41e   : > { %9254 = vst [vmem:[#allocation107_spill] sm:$0xff] %v7315_v57  ;;  %v7343_v57 = vpop.permute.xlu0 %3064 }
 0x41f   : > { %9262 = vst [vmem:[#allocation73_spill] sm:$0xff] %v7343_v57 }
 0x420   : > { %3197 = vrot.lane.b32.xlu1 %v5201_v47, %s8945_s19 }
 0x421   : > { %v7319_v27 = vpop.permute.xlu1 %2935 }
 0x422   : > { %9255 = vst [vmem:[#allocation115_spill] sm:$0xff] %v7319_v27 }
 0x424   : > { %3199 = vrot.lane.b32.xlu1 %v5213_v35, %s8945_s19 }
 0x425   : > { %v7323_v56 = vpop.permute.xlu1 %2953 }
 0x426   : > { %9256 = vst [vmem:[#allocation47_spill] sm:$0xff] %v7323_v56 }
 0x428   : > { %3203 = vrot.lane.b32.xlu1 %v5224_v10, %s8945_s19  ;;  %s3963_s19 = sshll.u32 %s9429_s12, 10 }
 0x429   : > { %v7327_v61 = vpop.permute.xlu1 %2955  ;;  %s8445_s23 = scalar_lea.hbm %s9431_s26, %s3963_s19 }
 0x42a   : > { %9257 = vst [vmem:[#allocation109_spill] sm:$0xff] %v7327_v61 }
 0x42c   : > { %3221 = vrot.lane.b32.xlu1 %v5201_v47, %s8951_s18 }
 0x42d   : > { %v7331_v34 = vpop.permute.xlu1 %2959 }
 0x42e   : > { %9258 = vst [vmem:[#allocation71_spill] sm:$0xff] %v7331_v34  ;;  %v7351_v34 = vpop.permute.xlu0 %3007 }
 0x42f   : > { %9264 = vst [vmem:[#allocation51_spill] sm:$0xff] %v7351_v34 }
 0x430   : > { %3223 = vrot.lane.b32.xlu1 %v5213_v35, %s8951_s18 }
 0x431   : > { %v7337_v27 = vpop.permute.xlu1 %2978 }
 0x432   : > { %9260 = vst [vmem:[#allocation49_spill] sm:$0xff] %v7337_v27  ;;  %v9266_v27 = vld [vmem:[#allocation18_spill] sm:$0xff]  ;;  %v7372_v32 = vpop.permute.xlu0 %3088 }
 0x433   : > { %v2472_v34 = vsel %vm2470_vm4, %v9266_v27, %v9269_v41  ;;  %9271 = vst [vmem:[#allocation55_spill] sm:$0xff] %v7372_v32 }
 0x434   : > { %3227 = vrot.lane.b32.xlu1 %v5224_v10, %s8951_s18  ;;  %s298_s18 = scalar_lea.vmem [#allocation2], %s3927_s25 }
 0x435   : > { %v7341_v56 = vpop.permute.xlu1 %2980  ;;  %s3861_s20 = sshll.u32 %s298_s18, 4  ;;  %s8447_s20 = int_to_ptr.vmem [resolvable:$true] %s3861_s20 }
 0x436   : > { %9261 = vst [vmem:[#allocation113_spill] sm:$0xff] %v7341_v56  ;;  %v9267_v56 = vld [vmem:[#allocation160_spill] sm:$0xff] }
 0x437   : > { %v2473_v57 = vsel %vm2470_vm4, %v9267_v56, %v9266_v27  ;;  %v9273_v27 = vld [vmem:[#allocation14_spill] sm:$0xff] }
 0x438   : > { %3245 = vrot.lane.b32.xlu1 %v5201_v47, %s8958_s0  ;;  %v2481_v49 = vmul.f32 %v9272_v23, %v2473_v57  ;;  %v2471_v51 = vsel %vm2470_vm4, %v9269_v41, %v9273_v27 }
 0x439   : > { %v7347_v61 = vpop.permute.xlu1 %2984 }
 0x43a   : > { %9263 = vst [vmem:[#allocation114_spill] sm:$0xff] %v7347_v61  ;;  %v2450_v61 = vmul.f32 %v9268_v25, %v5213_v35 }
 0x43c   : > { %3247 = vrot.lane.b32.xlu1 %v5213_v35, %s8958_s0  ;;  %v2459_v32 = vadd.f32 %v9274_v37, %v2450_v61  ;;  %v2461_v61 = vadd.f32 %v9274_v37, %v2452_v54 }
 0x43d   : > { %v7354_v29 = vpop.permute.xlu1 %3003 }
 0x43e   : > { %9265 = vst [vmem:[#allocation116_spill] sm:$0xff] %v7354_v29  ;;  %v2451_v29 = vmul.f32 %v9268_v25, %v5154_v14  ;;  %v2482_v14 = vmul.f32 %v9272_v23, %v2472_v34  ;;  %v2485_v41 = vadd.f32 %v2481_v49, %v2459_v32  ;;  %v9280_v49 = vld [vmem:[#allocation58_spill] sm:$0xff] }
 0x43f   : > { %v9281_v32 = vld [vmem:[#allocation110_spill] sm:$0xff] }
 0x440   : > { %3251 = vrot.lane.b32.xlu1 %v5224_v10, %s8958_s0  ;;  %v2460_v25 = vadd.f32 %v9274_v37, %v2451_v29  ;;  %v9276_v29 = vld [vmem:[#allocation106_spill] sm:$0xff] }
 0x441   : > { %v7368_v62 = vpop.permute.xlu1 %3005  ;;  %v2498_v38 = vsel %vm2496_vm12, %v9276_v29, %v9278_v26 }
 0x442   : > { %9270 = vst [vmem:[#allocation74_spill] sm:$0xff] %v7368_v62  ;;  %v2474_v62 = vsel %vm2470_vm4, %v9273_v27, %v9267_v56  ;;  %v2458_v56 = vadd.f32 %v9274_v37, %v2449_v6  ;;  %vm2571_vm4 = vcmp.lt.s32.totalorder %v5666_v33, 65  ;;  %v2486_v34 = vadd.f32 %v2482_v14, %v2460_v25  ;;  %v7413_v6 = vpop.permute.xlu0 %3031  ;;  %v9283_v14 = vld [vmem:[#allocation104_spill] sm:$0xff] }
 0x443   : > { %v2480_v57 = vmul.f32 %v9272_v23, %v2474_v62  ;;  %v2483_v27 = vmul.f32 %v9272_v23, %v2471_v51  ;;  %9279 = vst [vmem:[#allocation78_spill] sm:$0xff] %v7413_v6  ;;  %v2507_v54 = vmul.f32 %v9280_v49, %v2498_v38  ;;  %v9282_v23 = vld [vmem:[#allocation92_spill] sm:$0xff]  ;;  %v2497_v38 = vsel %vm2496_vm12, %v9278_v26, %v9285_v1  ;;  %v9286_v6 = vld [vmem:[#allocation83_spill] sm:$0xff] }
 0x444   : > { %3269 = vrot.lane.b32.xlu1 %v5201_v47, %s4471_s29  ;;  %v2523_v51 = vsel %vm2521_vm11, %v9282_v23, %v9281_v32  ;;  %v2524_v25 = vsel %vm2521_vm11, %v9283_v14, %v9282_v23  ;;  %v2525_v43 = vsel %vm2521_vm11, %v9286_v6, %v9283_v14  ;;  %v9287_v23 = vld [vmem:[#allocation112_spill] sm:$0xff] }
 0x445   : > { %v7392_v18 = vpop.permute.xlu1 %3009  ;;  %v2487_v26 = vadd.f32 %v2483_v27, %v2461_v61  ;;  %v2531_v14 = vmul.f32 %v9287_v23, %v2524_v25  ;;  %v2530_v28 = vmul.f32 %v9287_v23, %v2525_v43  ;;  %v9289_v27 = vld [vmem:[#allocation119_spill] sm:$0xff]  ;;  %v7474_v43 = vsel %vm2571_vm4, %v6769_v15, %v6795_v24 }
 0x446   : > { %9275 = vst [vmem:[#allocation122_spill] sm:$0xff] %v7392_v18  ;;  %v9277_v18 = vld [vmem:[#allocation60_spill] sm:$0xff] }
 0x447   : > { %v2499_v62 = vsel %vm2496_vm12, %v9277_v18, %v9276_v29  ;;  %v2484_v29 = vadd.f32 %v2480_v57, %v2458_v56  ;;  %v2508_v56 = vmul.f32 %v9280_v49, %v2497_v38  ;;  %v2511_v38 = vadd.f32 %v2507_v54, %v2486_v34 }
 0x448   : > { %3271 = vrot.lane.b32.xlu1 %v5213_v35, %s4471_s29  ;;  %v2506_v37 = vmul.f32 %v9280_v49, %v2499_v62  ;;  %v2500_v62 = vsel %vm2496_vm12, %v9285_v1, %v9277_v18  ;;  %v2522_v18 = vsel %vm2521_vm11, %v9281_v32, %v9286_v6  ;;  %v2549_v1 = vsel %vm2546_vm10, %v6681_v58, %v6712_v31 }
 0x449   : > { %v7425_v4 = vpop.permute.xlu1 %3027  ;;  %v2505_v57 = vmul.f32 %v9280_v49, %v2500_v62  ;;  %v2548_v49 = vsel %vm2546_vm10, %v6712_v31, %v9288_v7  ;;  %v2550_v6 = vsel %vm2546_vm10, %v6743_v5, %v6681_v58  ;;  %v2533_v61 = vmul.f32 %v9287_v23, %v2522_v18 }
 0x44a   : > { %9284 = vst [vmem:[#allocation123_spill] sm:$0xff] %v7425_v4  ;;  %v2532_v4 = vmul.f32 %v9287_v23, %v2523_v51  ;;  %v2510_v62 = vadd.f32 %v2506_v37, %v2485_v41  ;;  %v2556_v51 = vmul.f32 %v9289_v27, %v2549_v1  ;;  %v2547_v31 = vsel %vm2546_vm10, %v9288_v7, %v6743_v5  ;;  %v7476_v41 = vpop.permute.xlu0 %3113  ;;  %v9290_v7 = vld [vmem:[#allocation125_spill] sm:$0xff]  ;;  %v9291_v23 = vld [vmem:[#allocation127_spill] sm:$0xff] }
 0x44b   : > { %v2509_v58 = vadd.f32 %v2505_v57, %v2484_v29  ;;  %v2512_v34 = vadd.f32 %v2508_v56, %v2487_v26  ;;  %v2557_v37 = vmul.f32 %v9289_v27, %v2548_v49  ;;  %vm2621_vm11 = vcmp.lt.s32.totalorder %v5666_v33, 63 }
 0x44c   : > { %3275 = vrot.lane.b32.xlu1 %v5224_v10, %s4471_s29  ;;  %v2535_v54 = vadd.f32 %v2531_v14, %v2510_v62  ;;  %v2536_v25 = vadd.f32 %v2532_v4, %v2511_v38  ;;  %v2555_v5 = vmul.f32 %v9289_v27, %v2550_v6  ;;  %v7487_v18 = vsel %vm2571_vm4, %v6795_v24, %v9290_v7  ;;  %v9292_v38 = vld [vmem:[#allocation132_spill] sm:$0xff]  ;;  %s4330_s29 = scalar_lea.vmem %s8447_s20, 1024 }
 0x44d   : > { %v7462_v32 = vpop.permute.xlu1 %3029  ;;  %v2558_v1 = vmul.f32 %v9289_v27, %v2547_v31  ;;  %v2581_v29 = vmul.f32 %v9291_v23, %v7474_v43  ;;  %v7496_v57 = vsel %vm2571_vm4, %v9290_v7, %v6855_v13  ;;  %v7502_v4 = vsel %vm2571_vm4, %v6855_v13, %v6769_v15  ;;  %p4331_p11 = scmp.ne.s32.totalorder %s8447_s20, %s4330_s29 }
 0x44e   : > { %v2534_v24 = vadd.f32 %v2530_v28, %v2509_v58  ;;  %v2537_v26 = vadd.f32 %v2533_v61, %v2512_v34  ;;  %v2560_v14 = vadd.f32 %v2556_v51, %v2535_v54  ;;  %vm2646_vm10 = vcmp.lt.s32.totalorder %v5666_v33, 47  ;;  %v9296_v54 = vld [vmem:[#allocation134_spill] sm:$0xff] }
 0x44f   : > { %v2561_v49 = vadd.f32 %v2557_v37, %v2536_v25  ;;  %v2582_v62 = vmul.f32 %v9291_v23, %v7487_v18  ;;  %v7515_v15 = vsel %vm2596_vm5, %v6942_v53, %v9292_v38  ;;  %v7521_v13 = vsel %vm2596_vm5, %v6905_v55, %v6942_v53  ;;  %v7539_v53 = vpop.permute.xlu0 %3055  ;;  %p4332_p12 = pnand %p4331_p11, %p4576_p5 }
 0x450   : > { %3294 = vrot.lane.b32.xlu1 %v5201_v47, %s4473_s14  ;;  %v2580_v28 = vmul.f32 %v9291_v23, %v7502_v4  ;;  %v2583_v6 = vmul.f32 %v9291_v23, %v7496_v57  ;;  %v7531_v61 = vsel %vm2596_vm5, %v9292_v38, %v6968_v42  ;;  %v7537_v27 = vsel %vm2596_vm5, %v6968_v42, %v6905_v55  ;;  %v9297_v42 = vld [vmem:[#allocation139_spill] sm:$0xff] }
 0x451   : > { %v7504_v56 = vpop.permute.xlu1 %3033  ;;  %9293 = vst [vmem:[#allocation118_spill] sm:$0xff] %v7531_v61  ;;  %9294 = vst [vmem:[#allocation53_spill] sm:$0xff] %v7537_v27  ;;  %v2559_v51 = vadd.f32 %v2555_v5, %v2534_v24  ;;  %v2562_v31 = vadd.f32 %v2558_v1, %v2537_v26  ;;  %v2585_v58 = vadd.f32 %v2581_v29, %v2560_v14  ;;  %vm9307_vm5 = vcmp.lt.s32.totalorder %v5666_v33, 45  ;;  %p4333_p13 = pneg %p4332_p12 }
 0x452   : > { %v7545_v34 = vsel %vm2621_vm11, %v6999_v63, %v7017_v0  ;;  %v2606_v25 = vmul.f32 %v9296_v54, %v7521_v13  ;;  %v2607_v55 = vmul.f32 %v9296_v54, %v7515_v15  ;;  %v7557_v5 = vsel %vm2621_vm11, %v7017_v0, %v9297_v42  ;;  %vm9308_vm12 = vmmov %vm9307_vm5 }
 0x453   : > { %9295 = vst [vmem:[#allocation120_spill] sm:$0xff] %v7545_v34  ;;  %9298 = vst [vmem:[#allocation76_spill] sm:$0xff] %v7557_v5  ;;  %v7563_v7 = vsel %vm2621_vm11, %v7052_v17, %v6999_v63  ;;  %v2586_v1 = vadd.f32 %v2582_v62, %v2561_v49  ;;  %v2605_v23 = vmul.f32 %v9296_v54, %v7537_v27  ;;  %v9301_v63 = vld [vmem:[#allocation141_spill] sm:$0xff] }
 0x454   : > { %3296 = vrot.lane.b32.xlu1 %v5213_v35, %s4473_s14  ;;  %9299 = vst [vmem:[#allocation121_spill] sm:$0xff] %v7563_v7  ;;  %v2608_v29 = vmul.f32 %v9296_v54, %v7531_v61  ;;  %v7575_v0 = vsel %vm2621_vm11, %v9297_v42, %v7052_v17  ;;  %v2584_v24 = vadd.f32 %v2580_v28, %v2559_v51  ;;  %v9302_v54 = vld [vmem:[#allocation36_spill] sm:$0xff]  ;;  %vm9310_vm4 = vmmov %vm9307_vm5  ;;  %vm2791_vm11 = vcmp.lt.s32.totalorder %v5666_v33, 41 }
 0x455   : > { %v7547_v37 = vpop.permute.xlu1 %3051  ;;  %9300 = vst [vmem:[#allocation17_spill] sm:$0xff] %v7575_v0  ;;  %v2587_v26 = vadd.f32 %v2583_v6, %v2562_v31  ;;  %v2631_v14 = vmul.f32 %v9301_v63, %v7545_v34  ;;  %v2649_v49 = vsel %vm2646_vm10, %v7064_v30, %v7083_v8  ;;  %v2632_v62 = vmul.f32 %v9301_v63, %v7557_v5  ;;  %v7599_v5 = vpop.permute.xlu0 %3138 }
 0x456   : > { %v2630_v38 = vmul.f32 %v9301_v63, %v7563_v7  ;;  %v2648_v17 = vsel %vm2646_vm10, %v7083_v8, %v9302_v54  ;;  %v2650_v28 = vsel %vm2646_vm10, %v7096_v11, %v7064_v30  ;;  %v2610_v51 = vadd.f32 %v2606_v25, %v2585_v58  ;;  %v9303_v8 = vld [vmem:[#allocation23_spill] sm:$0xff] }
 0x457   : > { %v2611_v31 = vadd.f32 %v2607_v55, %v2586_v1  ;;  %v2633_v42 = vmul.f32 %v9301_v63, %v7575_v0  ;;  %v2609_v7 = vadd.f32 %v2605_v23, %v2584_v24  ;;  %v2612_v34 = vadd.f32 %v2608_v29, %v2587_v26  ;;  %v9304_v55 = vld [vmem:[#allocation42_spill] sm:$0xff] }
 0x458   : > { %3300 = vrot.lane.b32.xlu1 %v5224_v10, %s4473_s14  ;;  %v2656_v27 = vmul.f32 %v9303_v8, %v2649_v49  ;;  %v2647_v30 = vsel %vm2646_vm10, %v9302_v54, %v7096_v11  ;;  %v2657_v58 = vmul.f32 %v9303_v8, %v2648_v17  ;;  %v2655_v25 = vmul.f32 %v9303_v8, %v2650_v28  ;;  %v9366_v0 = vld [vmem:[#allocation74_spill] sm:$0xff]  ;;  %s4490_s14 = smov [#allocation2]  }
 0x459   : > { %v7595_v6 = vpop.permute.xlu1 %3053  ;;  %v2672_v1 = vsel %vm1639_vm13, %v7111_v16, %v9304_v55  ;;  %v2673_v23 = vsel %vm1639_vm13, %v7105_v36, %v7111_v16  ;;  %v2635_v29 = vadd.f32 %v2631_v14, %v2610_v51  ;;  %v2636_v24 = vadd.f32 %v2632_v62, %v2611_v31  ;;  %v9305_v16 = vld [vmem:[#allocation44_spill] sm:$0xff]  ;;  %v7645_v31 = vpop.permute.xlu0 %3079 }
 0x45a   : > { %v2634_v26 = vadd.f32 %v2630_v38, %v2609_v7  ;;  %v2637_v11 = vadd.f32 %v2633_v42, %v2612_v34  ;;  %v2658_v49 = vmul.f32 %v9303_v8, %v2647_v30  ;;  %v2671_v54 = vsel %vm1639_vm13, %v9304_v55, %v7117_v39  ;;  %v9306_v34 = vld [vmem:[#allocation28_spill] sm:$0xff] }
 0x45b   : > { %v2674_v17 = vsel %vm1639_vm13, %v7117_v39, %v7105_v36  ;;  %v2680_v7 = vmul.f32 %v9305_v16, %v2673_v23  ;;  %v2681_v14 = vmul.f32 %v9305_v16, %v2672_v1  ;;  %v2696_v62 = vsel %vm9307_vm5, %v7131_v9, %v9306_v34  ;;  %vm9309_vm13 = vmmov %vm9307_vm5  ;;  %v9312_v1 = vld [vmem:[#allocation30_spill] sm:$0xff] }
 0x45c   : > { %3319 = vrot.lane.b32.xlu1 %v5201_v47, %s8964_s1  ;;  %v2697_v38 = vsel %vm9308_vm12, %v7122_v45, %v7131_v9  ;;  %v2660_v28 = vadd.f32 %v2656_v27, %v2635_v29  ;;  %v2661_v51 = vadd.f32 %v2657_v58, %v2636_v24  ;;  %v2659_v36 = vadd.f32 %v2655_v25, %v2634_v26 }
 0x45d   : > { %v7618_v63 = vpop.permute.xlu1 %3057  ;;  %v2698_v39 = vsel %vm9309_vm13, %v7140_v3, %v7122_v45  ;;  %v2679_v42 = vmul.f32 %v9305_v16, %v2674_v17  ;;  %v2682_v8 = vmul.f32 %v9305_v16, %v2671_v54  ;;  %v2695_v30 = vsel %vm9310_vm4, %v9306_v34, %v7140_v3  ;;  %v9311_v45 = vld [vmem:[#allocation29_spill] sm:$0xff] }
 0x45e   : > { %v2721_v9 = vsel %vm1690_vm14, %v7148_v20, %v7155_v46  ;;  %v2662_v58 = vadd.f32 %v2658_v49, %v2637_v11  ;;  %v2704_v25 = vmul.f32 %v9311_v45, %v2697_v38  ;;  %v2705_v55 = vmul.f32 %v9311_v45, %v2696_v62  ;;  %v9313_v49 = vld [vmem:[#allocation31_spill] sm:$0xff]  ;;  %v7686_v38 = vpop.permute.xlu0 %3162 }
 0x45f   : > { %v2720_v23 = vsel %vm1690_vm14, %v7155_v46, %v9312_v1  ;;  %v2684_v3 = vadd.f32 %v2680_v7, %v2660_v28  ;;  %v2685_v29 = vadd.f32 %v2681_v14, %v2661_v51  ;;  %v2703_v24 = vmul.f32 %v9311_v45, %v2698_v39  ;;  %v9315_v39 = vld [vmem:[#allocation146_spill] sm:$0xff] }
 0x460   : > { %3321 = vrot.lane.b32.xlu1 %v5213_v35, %s8964_s1  ;;  %v2722_v26 = vsel %vm1690_vm14, %v7162_v50, %v7148_v20  ;;  %v2706_v11 = vmul.f32 %v9311_v45, %v2695_v30  ;;  %v2728_v54 = vmul.f32 %v9313_v49, %v2721_v9  ;;  %v2719_v46 = vsel %vm1690_vm14, %v9312_v1, %v7162_v50  ;;  %v9314_v50 = vld [vmem:[#allocation144_spill] sm:$0xff] }
 0x461   : > { %v7657_v27 = vpop.permute.xlu1 %3075  ;;  %v2745_v17 = vsel %vm1715_vm15, %v7172_v21, %v7180_v60  ;;  %v2683_v16 = vadd.f32 %v2679_v42, %v2659_v36  ;;  %v2686_v7 = vadd.f32 %v2682_v8, %v2662_v58  ;;  %v2729_v14 = vmul.f32 %v9313_v49, %v2720_v23 }
 0x462   : > { %v2708_v34 = vadd.f32 %v2704_v25, %v2684_v3  ;;  %v2709_v62 = vadd.f32 %v2705_v55, %v2685_v29  ;;  %v2727_v28 = vmul.f32 %v9313_v49, %v2722_v26  ;;  %v2744_v51 = vsel %vm1715_vm15, %v7180_v60, %v9314_v50  ;;  %v9316_v55 = vld [vmem:[#allocation147_spill] sm:$0xff] }
 0x463   : > { %v2730_v36 = vmul.f32 %v9313_v49, %v2719_v46  ;;  %v2752_v42 = vmul.f32 %v9315_v39, %v2745_v17  ;;  %v2743_v8 = vsel %vm1715_vm15, %v9314_v50, %v7191_v2  ;;  %v2746_v30 = vsel %vm1715_vm15, %v7191_v2, %v7172_v21  ;;  %v9321_v46 = vld [vmem:[#allocation149_spill] sm:$0xff] }
 0x464   : > { %3325 = vrot.lane.b32.xlu1 %v5224_v10, %s8964_s1  ;;  %v2707_v9 = vadd.f32 %v2703_v24, %v2683_v16  ;;  %v2710_v58 = vadd.f32 %v2706_v11, %v2686_v7  ;;  %v2732_v60 = vadd.f32 %v2728_v54, %v2708_v34  ;;  %vm2816_vm14 = vcmp.lt.s32.totalorder %v5666_v33, 25  ;;  %v7733_v54 = vpop.permute.xlu0 %3103  ;;  %v9322_v7 = vld [vmem:[#allocation155_spill] sm:$0xff] }
 0x465   : > { %v7684_v20 = vpop.permute.xlu1 %3077  ;;  %v2733_v45 = vadd.f32 %v2729_v14, %v2709_v62  ;;  %v2753_v25 = vmul.f32 %v9315_v39, %v2744_v51  ;;  %vm9317_vm10 = vcmp.lt.s32.totalorder %v5666_v33, 42  ;;  %v2751_v21 = vmul.f32 %v9315_v39, %v2746_v30  ;;  %v9324_v30 = vld [vmem:[#allocation161_spill] sm:$0xff] }
 0x466   : > { %v2768_v1 = vsel %vm9317_vm10, %v7208_v48, %v9316_v55  ;;  %vm9318_vm5 = vmmov %vm9317_vm10  ;;  %v2754_v2 = vmul.f32 %v9315_v39, %v2743_v8  ;;  %v2734_v26 = vadd.f32 %v2730_v36, %v2710_v58  ;;  %v2756_v11 = vadd.f32 %v2752_v42, %v2732_v60  ;;  %v9323_v39 = vld [vmem:[#allocation93_spill] sm:$0xff] }
 0x467   : > { %v2769_v23 = vsel %vm9318_vm5, %v7198_v40, %v7208_v48  ;;  %vm9319_vm15 = vmmov %vm9318_vm5  ;;  %v2731_v48 = vadd.f32 %v2727_v28, %v2707_v9  ;;  %v2794_v49 = vsel %vm2791_vm11, %v7239_v19, %v7243_v44  ;;  %v2777_v16 = vmul.f32 %v9321_v46, %v2768_v1  ;;  %v9325_v9 = vld [vmem:[#allocation64_spill] sm:$0xff] }
 0x468   : > { %3343 = vrot.lane.b32.xlu1 %v5201_v47, %s8972_s3  ;;  %v2767_v29 = vsel %vm9319_vm15, %v9316_v55, %v7219_v52  ;;  %vm9320_vm12 = vmmov %vm9318_vm5  ;;  %v2776_v17 = vmul.f32 %v9321_v46, %v2769_v23  ;;  %v2757_v14 = vadd.f32 %v2753_v25, %v2733_v45  ;;  %v2792_v28 = vsel %vm2791_vm11, %v9322_v7, %v7247_v12  ;;  %v9326_v23 = vld [vmem:[#allocation39_spill] sm:$0xff] }
 0x469   : > { %v7715_v3 = vpop.permute.xlu1 %3081  ;;  %v2770_v24 = vsel %vm9320_vm12, %v7219_v52, %v7198_v40  ;;  %v2793_v40 = vsel %vm2791_vm11, %v7243_v44, %v9322_v7  ;;  %v2795_v52 = vsel %vm2791_vm11, %v7247_v12, %v7239_v19  ;;  %v2778_v62 = vmul.f32 %v9321_v46, %v2767_v29 }
 0x46a   : > { %v2775_v34 = vmul.f32 %v9321_v46, %v2770_v24  ;;  %v2755_v51 = vadd.f32 %v2751_v21, %v2731_v48  ;;  %v2758_v36 = vadd.f32 %v2754_v2, %v2734_v26  ;;  %v2801_v44 = vmul.f32 %v7225_v59, %v2794_v49  ;;  %v9327_v26 = vld [vmem:[#allocation61_spill] sm:$0xff]  ;;  %v9329_v49 = vld [vmem:[#allocation102_spill] sm:$0xff] }
 0x46b   : > { %v2819_v19 = vsel %vm2816_vm14, %v9323_v39, %v7255_v22  ;;  %v2802_v42 = vmul.f32 %v7225_v59, %v2793_v40  ;;  %v2800_v8 = vmul.f32 %v7225_v59, %v2795_v52  ;;  %v2818_v12 = vsel %vm2816_vm14, %v7255_v22, %v9324_v30  ;;  %v7778_v22 = vpop.permute.xlu0 %3186 }
 0x46c   : > { %3345 = vrot.lane.b32.xlu1 %v5213_v35, %s8972_s3  ;;  %v2820_v58 = vsel %vm2816_vm14, %v9325_v9, %v9323_v39  ;;  %v2780_v60 = vadd.f32 %v2776_v17, %v2756_v11  ;;  %v2781_v45 = vadd.f32 %v2777_v16, %v2757_v14  ;;  %v2803_v25 = vmul.f32 %v7225_v59, %v2792_v28  ;;  %v9328_v11 = vld [vmem:[#allocation95_spill] sm:$0xff]  ;;  %v9330_v14 = vld [vmem:[#allocation41_spill] sm:$0xff]  ;;  %v9333_v39 = vld [vmem:[#allocation66_spill] sm:$0xff] }
 0x46d   : > { %v7751_v50 = vpop.permute.xlu1 %3099  ;;  %v2779_v55 = vadd.f32 %v2775_v34, %v2755_v51  ;;  %v2782_v1 = vadd.f32 %v2778_v62, %v2758_v36  ;;  %v2826_v21 = vmul.f32 %v9326_v23, %v2819_v19  ;;  %v2817_v2 = vsel %vm2816_vm14, %v9324_v30, %v9325_v9  ;;  %v9331_v28 = vld [vmem:[#allocation15_spill] sm:$0xff] }
 0x46e   : > { %v2827_v24 = vmul.f32 %v9326_v23, %v2818_v12  ;;  %v2825_v48 = vmul.f32 %v9326_v23, %v2820_v58  ;;  %v2842_v59 = vsel %vm1765_vm9, %v9328_v11, %v9327_v26  ;;  %v2843_v46 = vsel %vm1765_vm9, %v9329_v49, %v9328_v11 }
 0x46f   : > { %v2805_v17 = vadd.f32 %v2801_v44, %v2780_v60  ;;  %v2806_v16 = vadd.f32 %v2802_v42, %v2781_v45  ;;  %v2804_v7 = vadd.f32 %v2800_v8, %v2779_v55  ;;  %v2807_v40 = vadd.f32 %v2803_v25, %v2782_v1  ;;  %v9332_v44 = vld [vmem:[#allocation32_spill] sm:$0xff]  ;;  %v9334_v42 = vld [vmem:[#allocation97_spill] sm:$0xff]  ;;  %v9335_v60 = vld [vmem:[#allocation99_spill] sm:$0xff] }
 0x470   : > { %3349 = vrot.lane.b32.xlu1 %v5224_v10, %s8972_s3  ;;  %v2828_v52 = vmul.f32 %v9326_v23, %v2817_v2  ;;  %v2841_v34 = vsel %vm1765_vm9, %v9327_v26, %v9330_v14  ;;  %v2844_v62 = vsel %vm1765_vm9, %v9330_v14, %v9329_v49  ;;  %v2850_v51 = vmul.f32 %v9331_v28, %v2843_v46  ;;  %v9336_v23 = vld [vmem:[#allocation101_spill] sm:$0xff]  ;;  %v9339_v49 = vld [vmem:[#allocation35_spill] sm:$0xff]  ;;  %v9340_v14 = vld [vmem:[#allocation68_spill] sm:$0xff] }
 0x471   : > { %v7776_v29 = vpop.permute.xlu1 %3101  ;;  %v2851_v36 = vmul.f32 %v9331_v28, %v2842_v59  ;;  %v2866_v19 = vsel %vm1100_vm1, %v9333_v39, %v9332_v44  ;;  %v2867_v8 = vsel %vm1100_vm1, %v9334_v42, %v9333_v39  ;;  %v2830_v12 = vadd.f32 %v2826_v21, %v2805_v17  ;;  %v9337_v21 = vld [vmem:[#allocation43_spill] sm:$0xff]  ;;  %v9338_v26 = vld [vmem:[#allocation157_spill] sm:$0xff] }
 0x472   : > { %v2831_v9 = vadd.f32 %v2827_v24, %v2806_v16  ;;  %v2829_v58 = vadd.f32 %v2825_v48, %v2804_v7  ;;  %v2868_v45 = vsel %vm1100_vm1, %v9335_v60, %v9334_v42  ;;  %v2849_v25 = vmul.f32 %v9331_v28, %v2844_v62  ;;  %v7829_v24 = vpop.permute.xlu0 %3128 }
 0x473   : > { %v2852_v55 = vmul.f32 %v9331_v28, %v2841_v34  ;;  %v2865_v1 = vsel %vm1100_vm1, %v9332_v44, %v9335_v60  ;;  %v2891_v2 = vsel %vm1126_vm2, %v9337_v21, %v9336_v23  ;;  %v2832_v48 = vadd.f32 %v2828_v52, %v2807_v40  ;;  %v9341_v52 = vld [vmem:[#allocation13_spill] sm:$0xff] }
 0x474   : > { %3367 = vrot.lane.b32.xlu1 %v5201_v47, %s8978_s5  ;;  %v2874_v11 = vmul.f32 %v9338_v26, %v2867_v8  ;;  %v2875_v59 = vmul.f32 %v9338_v26, %v2866_v19  ;;  %v2890_v46 = vsel %vm1126_vm2, %v9336_v23, %v9339_v49  ;;  %v2854_v17 = vadd.f32 %v2850_v51, %v2830_v12  ;;  %v9342_v51 = vld [vmem:[#allocation45_spill] sm:$0xff] }
 0x475   : > { %v7811_v30 = vpop.permute.xlu1 %3105  ;;  %v2855_v16 = vadd.f32 %v2851_v36, %v2831_v9  ;;  %v2873_v7 = vmul.f32 %v9338_v26, %v2868_v45  ;;  %v2892_v34 = vsel %vm1126_vm2, %v9340_v14, %v9337_v21  ;;  %v2876_v40 = vmul.f32 %v9338_v26, %v2865_v1  ;;  %v9343_v36 = vld [vmem:[#allocation103_spill] sm:$0xff]  ;;  %v9344_v45 = vld [vmem:[#allocation33_spill] sm:$0xff] }
 0x476   : > { %v2898_v28 = vmul.f32 %v9341_v52, %v2891_v2  ;;  %v2889_v44 = vsel %vm1126_vm2, %v9339_v49, %v9340_v14  ;;  %v2915_v39 = vsel %vm1151_vm3, %v9343_v36, %v9342_v51  ;;  %v2853_v19 = vadd.f32 %v2849_v25, %v2829_v58  ;;  %v9345_v21 = vld [vmem:[#allocation85_spill] sm:$0xff]  ;;  %v9348_v14 = vld [vmem:[#allocation107_spill] sm:$0xff] }
 0x477   : > { %v2856_v42 = vadd.f32 %v2852_v55, %v2832_v48  ;;  %v2899_v8 = vmul.f32 %v9341_v52, %v2890_v46  ;;  %vm2961_vm1 = vcmp.lt.s32.totalorder %v5666_v33, 19  ;;  %v2878_v12 = vadd.f32 %v2874_v11, %v2854_v17  ;;  %v9346_v26 = vld [vmem:[#allocation105_spill] sm:$0xff]  ;;  %v7875_v48 = vpop.permute.xlu0 %3210 }
 0x478   : > { %3369 = vrot.lane.b32.xlu1 %v5213_v35, %s8978_s5  ;;  %v2879_v9 = vadd.f32 %v2875_v59, %v2855_v16  ;;  %v2897_v60 = vmul.f32 %v9341_v52, %v2892_v34  ;;  %v2914_v1 = vsel %vm1151_vm3, %v9342_v51, %v9344_v45  ;;  %v2900_v23 = vmul.f32 %v9341_v52, %v2889_v44  ;;  %v9347_v16 = vld [vmem:[#allocation37_spill] sm:$0xff]  ;;  %v9352_v44 = vld [vmem:[#allocation115_spill] sm:$0xff] }
 0x479   : > { %v7842_v62 = vpop.permute.xlu1 %3124  ;;  %v2922_v2 = vmul.f32 %v9345_v21, %v2915_v39  ;;  %v2913_v58 = vsel %vm1151_vm3, %v9344_v45, %v9346_v26  ;;  %v2916_v25 = vsel %vm1151_vm3, %v9346_v26, %v9343_v36  ;;  %v2877_v11 = vadd.f32 %v2873_v7, %v2853_v19  ;;  %v9350_v52 = vld [vmem:[#allocation69_spill] sm:$0xff] }
 0x47a   : > { %v2880_v59 = vadd.f32 %v2876_v40, %v2856_v42  ;;  %v2902_v49 = vadd.f32 %v2898_v28, %v2878_v12  ;;  %vm2986_vm2 = vcmp.lt.s32.totalorder %v5666_v33, 3  ;;  %v2903_v46 = vadd.f32 %v2899_v8, %v2879_v9  ;;  %v9355_v8 = vld [vmem:[#allocation109_spill] sm:$0xff]  ;;  %v9356_v12 = vld [vmem:[#allocation47_spill] sm:$0xff] }
 0x47b   : > { %v2923_v17 = vmul.f32 %v9345_v21, %v2914_v1  ;;  %vm9349_vm9 = vcmp.lt.s32.totalorder %v5666_v33, 20  ;;  %v2921_v40 = vmul.f32 %v9345_v21, %v2916_v25  ;;  %v2924_v28 = vmul.f32 %v9345_v21, %v2913_v58  ;;  %v9357_v1 = vld [vmem:[#allocation19_spill] sm:$0xff]  ;;  %v9358_v58 = vld [vmem:[#allocation62_spill] sm:$0xff] }
 0x47c   : > { %3373 = vrot.lane.b32.xlu1 %v5224_v10, %s8978_s5  ;;  %v2938_v34 = vsel %vm9349_vm9, %v9348_v14, %v9347_v16  ;;  %vm9351_vm3 = vmmov %vm9349_vm9  ;;  %v2901_v39 = vadd.f32 %v2897_v60, %v2877_v11  ;;  %v2904_v19 = vadd.f32 %v2900_v23, %v2880_v59  ;;  %v2926_v42 = vadd.f32 %v2922_v2, %v2902_v49  ;;  %v9359_v60 = vld [vmem:[#allocation71_spill] sm:$0xff] }
 0x47d   : > { %v7873_v55 = vpop.permute.xlu1 %3126  ;;  %v2939_v7 = vsel %vm9351_vm3, %v9350_v52, %v9348_v14  ;;  %vm9353_vm13 = vmmov %vm9351_vm3  ;;  %v2964_v9 = vsel %vm2961_vm1, %v9356_v12, %v9355_v8  ;;  %v2947_v26 = vmul.f32 %v9357_v1, %v2938_v34  ;;  %v2963_v25 = vsel %vm2961_vm1, %v9355_v8, %v9358_v58  ;;  %v9362_v8 = vld [vmem:[#allocation49_spill] sm:$0xff] }
 0x47e   : > { %v2937_v51 = vsel %vm9353_vm13, %v9347_v16, %v9352_v44  ;;  %vm9354_vm4 = vmmov %vm9351_vm3  ;;  %v2946_v21 = vmul.f32 %v9357_v1, %v2939_v7  ;;  %v2965_v23 = vsel %vm2961_vm1, %v9359_v60, %v9356_v12  ;;  %v2927_v2 = vadd.f32 %v2923_v17, %v2903_v46  ;;  %v7923_v16 = vpop.permute.xlu0 %3153 }
 0x47f   : > { %v2940_v36 = vsel %vm9354_vm4, %v9352_v44, %v9350_v52  ;;  %v2948_v59 = vmul.f32 %v9357_v1, %v2937_v51  ;;  %v2962_v49 = vsel %vm2961_vm1, %v9358_v58, %v9359_v60  ;;  %v2925_v14 = vadd.f32 %v2921_v40, %v2901_v39  ;;  %v9360_v52 = vld [vmem:[#allocation86_spill] sm:$0xff]  ;;  %v9361_v44 = vld [vmem:[#allocation113_spill] sm:$0xff] }
 0x480   : > { %3391 = vrot.lane.b32.xlu1 %v5201_v47, %s8988_s11  ;;  %v2945_v11 = vmul.f32 %v9357_v1, %v2940_v36  ;;  %v2928_v34 = vadd.f32 %v2924_v28, %v2904_v19  ;;  %v2971_v7 = vmul.f32 %v9360_v52, %v2964_v9  ;;  %v2989_v46 = vsel %vm2986_vm2, %v9362_v8, %v9361_v44  ;;  %v9363_v36 = vld [vmem:[#allocation111_spill] sm:$0xff]  ;;  %v9364_v1 = vld [vmem:[#allocation114_spill] sm:$0xff] }
 0x481   : > { %v7903_v45 = vpop.permute.xlu1 %3130  ;;  %v2972_v17 = vmul.f32 %v9360_v52, %v2963_v25  ;;  %v2970_v51 = vmul.f32 %v9360_v52, %v2965_v23  ;;  %v2988_v12 = vsel %vm2986_vm2, %v9361_v44, %v9363_v36  ;;  %v2990_v40 = vsel %vm2986_vm2, %v9364_v1, %v9362_v8  ;;  %v9365_v23 = vld [vmem:[#allocation88_spill] sm:$0xff] }
 0x482   : > { %v2950_v39 = vadd.f32 %v2946_v21, %v2926_v42  ;;  %v2951_v19 = vadd.f32 %v2947_v26, %v2927_v2  ;;  %v2973_v9 = vmul.f32 %v9360_v52, %v2962_v49  ;;  %v2987_v58 = vsel %vm2986_vm2, %v9363_v36, %v9364_v1  ;;  %v9367_v8 = vld [vmem:[#allocation116_spill] sm:$0xff]  ;;  %v9369_v2 = vld [vmem:[#allocation51_spill] sm:$0xff]  ;;  %v9371_v52 = vld [vmem:[#allocation122_spill] sm:$0xff] }
 0x483   : > { %v2949_v25 = vadd.f32 %v2945_v11, %v2925_v14  ;;  %v2952_v60 = vadd.f32 %v2948_v59, %v2928_v34  ;;  %v2996_v44 = vmul.f32 %v9365_v23, %v2989_v46  ;;  %vm9368_vm11 = vcmp.lt.s32.totalorder %v5666_v33, 2 }
 0x484   : > { %3393 = vrot.lane.b32.xlu1 %v5213_v35, %s8988_s11  ;;  %v3013_v42 = vsel %vm9368_vm11, %v9367_v8, %v9366_v0  ;;  %v2997_v21 = vmul.f32 %v9365_v23, %v2988_v12  ;;  %v2995_v26 = vmul.f32 %v9365_v23, %v2990_v40  ;;  %vm9370_vm14 = vmmov %vm9368_vm11  ;;  %vm3107_vm5 = vcmp.lt.s32.totalorder %v5666_v33, 125  ;;  %v7968_v12 = vpop.permute.xlu0 %3234  ;;  %v9373_v40 = vld [vmem:[#allocation89_spill] sm:$0xff] }
 0x485   : > { %v7940_v28 = vpop.permute.xlu1 %3149  ;;  %v3012_v49 = vsel %vm9370_vm14, %v9366_v0, %v9369_v2  ;;  %vm9372_vm10 = vmmov %vm9368_vm11  ;;  %v2975_v59 = vadd.f32 %v2971_v7, %v2950_v39  ;;  %v2976_v14 = vadd.f32 %v2972_v17, %v2951_v19  ;;  %v2974_v34 = vadd.f32 %v2970_v51, %v2949_v25  ;;  %v9377_v39 = vld [vmem:[#allocation78_spill] sm:$0xff] }
 0x486   : > { %v3014_v11 = vsel %vm9372_vm10, %v9371_v52, %v9367_v8  ;;  %v2998_v46 = vmul.f32 %v9365_v23, %v2987_v58  ;;  %v2977_v1 = vadd.f32 %v2973_v9, %v2952_v60  ;;  %v3020_v61 = vmul.f32 %v9373_v40, %v3013_v42  ;;  %vm9374_vm15 = vmmov %vm9372_vm10  ;;  %v9375_v8 = vld [vmem:[#allocation123_spill] sm:$0xff] }
 0x487   : > { %v3011_v0 = vsel %vm9374_vm15, %v9369_v2, %v9371_v52  ;;  %vm9376_vm12 = vcmp.lt.s32.totalorder %v5666_v33, 1  ;;  %v3021_v17 = vmul.f32 %v9373_v40, %v3012_v49  ;;  %v3019_v51 = vmul.f32 %v9373_v40, %v3014_v11  ;;  %v9381_v49 = vld [vmem:[#allocation91_spill] sm:$0xff] }
 0x488   : > { %3397 = vrot.lane.b32.xlu1 %v5224_v10, %s8988_s11  ;;  %v3037_v7 = vsel %vm9376_vm12, %v9375_v8, %v7462_v32  ;;  %vm9378_vm1 = vmmov %vm9376_vm12  ;;  %v3000_v58 = vadd.f32 %v2996_v44, %v2975_v59  ;;  %v3001_v25 = vadd.f32 %v2997_v21, %v2976_v14  ;;  %v2999_v60 = vadd.f32 %v2995_v26, %v2974_v34 }
 0x489   : > { %v7966_v36 = vpop.permute.xlu1 %3151  ;;  %v3036_v19 = vsel %vm9378_vm1, %v7462_v32, %v9377_v39  ;;  %vm9379_vm2 = vmmov %vm9378_vm1  ;;  %v3002_v42 = vadd.f32 %v2998_v46, %v2977_v1  ;;  %v3022_v2 = vmul.f32 %v9373_v40, %v3011_v0  ;;  %v3044_v52 = vmul.f32 %v9381_v49, %v3037_v7  ;;  %v8016_v1 = vpop.permute.xlu0 %3177  ;;  %v9385_v40 = vld [vmem:[#allocation73_spill] sm:$0xff] }
 0x48a   : > { %v3038_v9 = vsel %vm9379_vm2, %v7504_v56, %v9375_v8  ;;  %vm9380_vm9 = vmmov %vm9378_vm1  ;;  %vm9382_vm3 = vcmp.lt.s32.totalorder %v5666_v33, 127  ;;  %v3045_v44 = vmul.f32 %v9381_v49, %v3036_v19  ;;  %v3024_v59 = vadd.f32 %v3020_v61, %v3000_v58 }
 0x48b   : > { %v3035_v23 = vsel %vm9380_vm9, %v9377_v39, %v7504_v56  ;;  %v3061_v32 = vsel %vm9382_vm3, %v7547_v37, %v7595_v6  ;;  %v3043_v21 = vmul.f32 %v9381_v49, %v3038_v9  ;;  %vm9383_vm13 = vmmov %vm9382_vm3  ;;  %v3025_v14 = vadd.f32 %v3021_v17, %v3001_v25  ;;  %v9389_v9 = vld [vmem:[#allocation55_spill] sm:$0xff] }
 0x48c   : > { %3415 = vrot.lane.b32.xlu1 %v5201_v47, %s8994_s16  ;;  %v3060_v56 = vsel %vm9383_vm13, %v7595_v6, %v7539_v53  ;;  %vm9384_vm4 = vmmov %vm9382_vm3  ;;  %v3023_v34 = vadd.f32 %v3019_v51, %v2999_v60  ;;  %v3046_v46 = vmul.f32 %v9381_v49, %v3035_v23  ;;  %v3067_v0 = vmul.f32 %v9385_v40, %v3061_v32 }
 0x48d   : > { %v8001_v11 = vpop.permute.xlu1 %3155  ;;  %v3059_v26 = vsel %vm9384_vm4, %v7539_v53, %v7618_v63  ;;  %vm9386_vm11 = vmmov %vm9382_vm3  ;;  %vm9387_vm14 = vcmp.lt.s32.totalorder %v5666_v33, 126  ;;  %v3068_v8 = vmul.f32 %v9385_v40, %v3060_v56  ;;  %vm3132_vm15 = vcmp.lt.s32.totalorder %v5666_v33, 109 }
 0x48e   : > { %v3062_v6 = vsel %vm9386_vm11, %v7618_v63, %v7547_v37  ;;  %v3084_v53 = vsel %vm9387_vm14, %v7684_v20, %v7645_v31  ;;  %vm9388_vm10 = vmmov %vm9387_vm14  ;;  %v3069_v7 = vmul.f32 %v9385_v40, %v3059_v26  ;;  %v3026_v51 = vadd.f32 %v3022_v2, %v3002_v42 }
 0x48f   : > { %v3085_v61 = vsel %vm9388_vm10, %v7657_v27, %v7684_v20  ;;  %v3048_v39 = vadd.f32 %v3044_v52, %v3024_v59  ;;  %v3049_v37 = vadd.f32 %v3045_v44, %v3025_v14  ;;  %v3047_v63 = vadd.f32 %v3043_v21, %v3023_v34  ;;  %vm9390_vm12 = vmmov %vm9388_vm10  ;;  %v8055_v21 = vpop.permute.xlu0 %3258 }
 0x490   : > { %3417 = vrot.lane.b32.xlu1 %v5213_v35, %s8994_s16  ;;  %v3070_v19 = vmul.f32 %v9385_v40, %v3062_v6  ;;  %v3091_v58 = vmul.f32 %v9389_v9, %v3085_v61  ;;  %v3092_v20 = vmul.f32 %v9389_v9, %v3084_v53  ;;  %v3110_v25 = vsel %vm3107_vm5, %v7751_v50, %v7776_v29  ;;  %vm9391_vm1 = vmmov %vm9388_vm10 }
 0x491   : > { %v3174_v17 = vpop.permute.xlu1 %3173  ;;  %v3050_v60 = vadd.f32 %v3046_v46, %v3026_v51  ;;  %v3071_v23 = vadd.f32 %v3067_v0, %v3047_v63  ;;  %v3109_v42 = vsel %vm3107_vm5, %v7776_v29, %v7733_v54  ;;  %v3072_v2 = vadd.f32 %v3068_v8, %v3048_v39 }
 0x492   : > { %v3073_v49 = vadd.f32 %v3069_v7, %v3049_v37  ;;  %v3083_v52 = vsel %vm9390_vm12, %v7645_v31, %v7715_v3  ;;  %v3086_v32 = vsel %vm9391_vm1, %v7715_v3, %v7657_v27  ;;  %v3116_v56 = vmul.f32 %v7476_v41, %v3110_v25 }
 0x493   : > { %v3134_v29 = vsel %vm3132_vm15, %v7873_v55, %v7829_v24  ;;  %v3135_v31 = vsel %vm3132_vm15, %v7842_v62, %v7873_v55  ;;  %v3074_v27 = vadd.f32 %v3070_v19, %v3050_v60  ;;  %v3095_v3 = vadd.f32 %v3091_v58, %v3071_v23  ;;  %v3202_v37 = vpop.permute.xlu0 %3201 }
 0x494   : > { %3421 = vrot.lane.b32.xlu1 %v5224_v10, %s8994_s16  ;;  %v3096_v59 = vadd.f32 %v3092_v20, %v3072_v2  ;;  %v3117_v14 = vmul.f32 %v7476_v41, %v3109_v42  ;;  %v3093_v34 = vmul.f32 %v9389_v9, %v3083_v52  ;;  %v3094_v46 = vmul.f32 %v9389_v9, %v3086_v32 }
 0x495   : > { %v3176_v44 = vpop.permute.xlu1 %3175  ;;  %v3108_v55 = vsel %vm3107_vm5, %v7733_v54, %v7811_v30  ;;  %v3111_v40 = vsel %vm3107_vm5, %v7811_v30, %v7751_v50  ;;  %v3141_v0 = vmul.f32 %v7599_v5, %v3135_v31  ;;  %v3142_v6 = vmul.f32 %v7599_v5, %v3134_v29 }
 0x496   : > { %v3183_v26 = vsel %vm1226_vm6, %v3174_v17, %v3176_v44  ;;  %vm9392_vm2 = vcmp.lt.s32.totalorder %v5666_v33, 108  ;;  %v3120_v8 = vadd.f32 %v3116_v56, %v3095_v3  ;;  %v3133_v50 = vsel %vm3132_vm15, %v7829_v24, %v7903_v45 }
 0x497   : > { %v3158_v53 = vsel %vm9392_vm2, %v7966_v36, %v7923_v16  ;;  %vm9393_vm9 = vmmov %vm9392_vm2  ;;  %v3136_v30 = vsel %vm3132_vm15, %v7903_v45, %v7842_v62  ;;  %v3121_v51 = vadd.f32 %v3117_v14, %v3096_v59  ;;  %v3119_v39 = vmul.f32 %v7476_v41, %v3111_v40  ;;  %v8129_v29 = vpop.permute.xlu0 %3283 }
 0x498   : > { %3439 = vrot.lane.b32.xlu1 %v5201_v47, %s4480_s10  ;;  %v3159_v61 = vsel %vm9393_vm9, %v7940_v28, %v7966_v36  ;;  %v3118_v36 = vmul.f32 %v7476_v41, %v3108_v55  ;;  %v3182_v24 = vsel %vm1226_vm6, %v3176_v44, %v8016_v1  ;;  %v3097_v63 = vadd.f32 %v3093_v34, %v3073_v49  ;;  %vm9394_vm5 = vmmov %vm9392_vm2 }
 0x499   : > { %v3180_v54 = vpop.permute.xlu1 %3179  ;;  %v3098_v19 = vadd.f32 %v3094_v46, %v3074_v27  ;;  %v3165_v62 = vmul.f32 %v7686_v38, %v3159_v61  ;;  %v3166_v45 = vmul.f32 %v7686_v38, %v3158_v53  ;;  %v3146_v9 = vadd.f32 %v3142_v6, %v3121_v51  ;;  %vm9395_vm3 = vmmov %vm9392_vm2 }
 0x49a   : > { %v3184_v7 = vsel %vm1226_vm6, %v3180_v54, %v3174_v17  ;;  %v3145_v17 = vadd.f32 %v3141_v0, %v3120_v8  ;;  %v3143_v58 = vmul.f32 %v7599_v5, %v3133_v50  ;;  %v3144_v20 = vmul.f32 %v7599_v5, %v3136_v30 }
 0x49b   : > { %v3157_v41 = vsel %vm9394_vm5, %v7923_v16, %v8001_v11  ;;  %v3160_v60 = vsel %vm9395_vm3, %v8001_v11, %v7940_v28  ;;  %v3189_v23 = vmul.f32 %v7778_v22, %v3183_v26  ;;  %v3190_v42 = vmul.f32 %v7778_v22, %v3182_v24 }
 0x49c   : > { %3441 = vrot.lane.b32.xlu1 %v5213_v35, %s4480_s10  ;;  %v3122_v2 = vadd.f32 %v3118_v36, %v3097_v63  ;;  %v3123_v5 = vadd.f32 %v3119_v39, %v3098_v19  ;;  %v3169_v49 = vadd.f32 %v3165_v62, %v3145_v17  ;;  %v3170_v52 = vadd.f32 %v3166_v45, %v3146_v9 }
 0x49d   : > { %v3198_v25 = vpop.permute.xlu1 %3197  ;;  %v3181_v16 = vsel %vm1226_vm6, %v8016_v1, %v3180_v54  ;;  %v3167_v56 = vmul.f32 %v7686_v38, %v3157_v41  ;;  %v3168_v28 = vmul.f32 %v7686_v38, %v3160_v60  ;;  %v4329_v1 = vld [vmem:[%s8496_s4 + $0x18] sm:$0xff]  ;;  %v3192_v38 = vmul.f32 %v7778_v22, %v3184_v7  ;;  %v3226_v7 = vpop.permute.xlu0 %3225 }
 0x49e   : > { %v3147_v32 = vadd.f32 %v3143_v58, %v3122_v2  ;;  %v3148_v44 = vadd.f32 %v3144_v20, %v3123_v5  ;;  %v3193_v31 = vadd.f32 %v3189_v23, %v3169_v49  ;;  %v3194_v26 = vadd.f32 %v3190_v42, %v3170_v52 }
 0x49f   : > { %v3191_v59 = vmul.f32 %v7778_v22, %v3181_v16  ;;  %v4489_v54 = vmov 46   ;;  %v9396_v24 = vmov 0   ;;  %vm9397_vm6 = vcmp.lt.s32.totalorder %v5666_v33, 104 }
 0x4a0   : > { %3445 = vrot.lane.b32.xlu1 %v5224_v10, %s4480_s10  ;;  %v3171_v46 = vadd.f32 %v3167_v56, %v3147_v32  ;;  %v3172_v55 = vadd.f32 %v3168_v28, %v3148_v44  ;;  %vm9400_vm13 = vmmov %vm9397_vm6  ;;  %vm3277_vm4 = vcmp.lt.s32.totalorder %v5666_v33, 103  ;;  %vm3302_vm11 = vcmp.lt.s32.totalorder %v5666_v33, 87  ;;  %s4334_s10 = sshll.u32 %s4490_s14, 4  ;;  %s4335_s10 = int_to_ptr.vmem [resolvable:$false] %s4334_s10 }
 0x4a1   : > { %v3200_v11 = vpop.permute.xlu1 %3199  ;;  %v8151_v63 = vpop.permute.xlu0 %3308  ;;  %vm9401_vm14 = vcmp.lt.s32.totalorder %v5666_v33, 86  ;;  %vm9405_vm1 = vcmp.lt.s32.totalorder %v5666_v33, 84  ;;  %vm9409_vm5 = vcmp.lt.s32.totalorder %v5666_v33, 83  ;;  %p4337_p0 = scmp.lt.s32.totalorder %s8447_s20, %s4335_s10 }
 0x4a2   : > { %v3206_v27 = vsel %vm1251_vm7, %v3200_v11, %v3202_v37  ;;  %v3207_v3 = vsel %vm1251_vm7, %v3198_v25, %v3200_v11  ;;  %v3195_v8 = vadd.f32 %v3191_v59, %v3171_v46  ;;  %v3196_v50 = vadd.f32 %v3192_v38, %v3172_v55  ;;  %vm9402_vm10 = vmmov %vm9401_vm14 }
 0x4a3   : > { %v3213_v14 = vmul.f32 %v7875_v48, %v3207_v3  ;;  %v3214_v34 = vmul.f32 %v7875_v48, %v3206_v27  ;;  %vm9403_vm15 = vmmov %vm9402_vm10 }
 0x4a4   : > { %3514 = vperm.xlu1 %4178, %v4329_v1   ;;  %vm9404_vm12 = vmmov %vm9402_vm10 }
 0x4a5   : > { %v3217_v40 = vadd.f32 %v3213_v14, %v3193_v31  ;;  %v3218_v0 = vadd.f32 %v3214_v34, %v3194_v26  ;;  %v3204_v6 = vpop.permute.xlu1 %3203  ;;  %v3250_v23 = vpop.permute.xlu0 %3249  ;;  %vm9406_vm2 = vmmov %vm9405_vm1 }
 0x4a6   : > { %v3205_v53 = vsel %vm1251_vm7, %v3202_v37, %v3204_v6  ;;  %v3208_v61 = vsel %vm1251_vm7, %v3204_v6, %v3198_v25  ;;  %vm9398_vm7 = vmmov %vm9397_vm6 }
 0x4a7   : > { %v3215_v22 = vmul.f32 %v7875_v48, %v3205_v53  ;;  %v3216_v30 = vmul.f32 %v7875_v48, %v3208_v61  ;;  %vm9410_vm3 = vmmov %vm9409_vm5 }
 0x4a8   : > { %4179 = vset.pattern.permute.xlu1 %v4489_v54 }
 0x4a9   : > { %3539 = vperm.xlu1 %4179, %v4329_v1   ;;  %v3219_v51 = vadd.f32 %v3215_v22, %v3195_v8  ;;  %v3220_v36 = vadd.f32 %v3216_v30, %v3196_v50  ;;  %v3222_v39 = vpop.permute.xlu1 %3221  ;;  %v8171_v52 = vpop.permute.xlu0 %3332 }
 0x4ad   : > { %3500 = vrot.lane.b32.xlu1 %v5201_v47, %s4483_s13  ;;  %v3224_v37 = vpop.permute.xlu1 %3223  ;;  %v3274_v3 = vpop.permute.xlu0 %3273 }
 0x4ae   : > { %4182 = vset.pattern.permute.xlu1 %v9396_v24  ;;  %v3230_v19 = vsel %vm1276_vm8, %v3224_v37, %v3226_v7  ;;  %v3231_v62 = vsel %vm1276_vm8, %v3222_v39, %v3224_v37 }
 0x4af   : > { %v3237_v48 = vmul.f32 %v7968_v12, %v3231_v62  ;;  %v3238_v45 = vmul.f32 %v7968_v12, %v3230_v19 }
 0x4b1   : > { %3502 = vrot.lane.b32.xlu1 %v5213_v35, %s4483_s13  ;;  %v3241_v17 = vadd.f32 %v3237_v48, %v3217_v40  ;;  %v3242_v9 = vadd.f32 %v3238_v45, %v3218_v0  ;;  %v3228_v58 = vpop.permute.xlu1 %3227  ;;  %v8192_v34 = vpop.permute.xlu0 %3356 }
 0x4b2   : > { %v3229_v20 = vsel %vm1276_vm8, %v3226_v7, %v3228_v58  ;;  %v3232_v25 = vsel %vm1276_vm8, %v3228_v58, %v3222_v39  ;;  %vm9399_vm8 = vmmov %vm9397_vm6 }
 0x4b3   : > { %v3239_v41 = vmul.f32 %v7968_v12, %v3229_v20  ;;  %v3240_v60 = vmul.f32 %v7968_v12, %v3232_v25 }
 0x4b5   : > { %3506 = vrot.lane.b32.xlu1 %v5224_v10, %s4483_s13  ;;  %v3243_v42 = vadd.f32 %v3239_v41, %v3219_v51  ;;  %v3244_v2 = vadd.f32 %v3240_v60, %v3220_v36  ;;  %v3246_v5 = vpop.permute.xlu1 %3245  ;;  %v3299_v22 = vpop.permute.xlu0 %3298  ;;  %s4336_s13 = scalar_lea.vmem %s4335_s10, 2048 }
 0x4b6   : > { %p4338_p1 = scmp.lt.s32.totalorder %s4336_s13, %s4330_s29 }
 0x4b8   : > { %p4339_p2 = por %p4338_p1, %p4337_p0 }
 0x4b9   : > { %3525 = vrot.lane.b32.xlu1 %v5201_v47, %s4485_s24  ;;  %v3248_v49 = vpop.permute.xlu1 %3247  ;;  %v3381_v39 = vpop.permute.xlu0 %3380 }
 0x4ba   : > { %v3254_v16 = vsel %vm9397_vm6, %v3248_v49, %v3250_v23  ;;  %v3255_v32 = vsel %vm9398_vm7, %v3246_v5, %v3248_v49  ;;  %vm3447_vm6 = vcmp.lt.s32.totalorder %v5666_v33, 81  ;;  %vm9411_vm7 = vcmp.lt.s32.totalorder %v5666_v33, 82  ;;  %p4340_p3 = pnand %p4339_p2, %p4333_p13 }
 0x4bb   : > { %v3261_v12 = vmul.f32 %v8055_v21, %v3255_v32  ;;  %v3262_v44 = vmul.f32 %v8055_v21, %v3254_v16 }
 0x4bd   : > { %3527 = vrot.lane.b32.xlu1 %v5213_v35, %s4485_s24  ;;  %v3265_v56 = vadd.f32 %v3261_v12, %v3241_v17  ;;  %v3266_v28 = vadd.f32 %v3262_v44, %v3242_v9  ;;  %v3252_v11 = vpop.permute.xlu1 %3251 }
 0x4be   : > { %v3253_v47 = vsel %vm9399_vm8, %v3250_v23, %v3252_v11  ;;  %v3256_v31 = vsel %vm9400_vm13, %v3252_v11, %v3246_v5  ;;  %vm9412_vm8 = vmmov %vm9411_vm7 }
 0x4bf   : > { %v3263_v26 = vmul.f32 %v8055_v21, %v3253_v47  ;;  %v3264_v27 = vmul.f32 %v8055_v21, %v3256_v31  ;;  %vm9413_vm13 = vmmov %vm9410_vm3 }
 0x4c1   : > { %3531 = vrot.lane.b32.xlu1 %v5224_v10, %s4485_s24  ;;  %v3267_v1 = vadd.f32 %v3263_v26, %v3243_v42  ;;  %v3268_v59 = vadd.f32 %v3264_v27, %v3244_v2  ;;  %v3270_v38 = vpop.permute.xlu1 %3269 }
 0x4c5   : > { %3552 = vrot.lane.b32.xlu1 %v5213_v35, %s4486_s30  ;;  %v3272_v14 = vpop.permute.xlu1 %3271 }
 0x4c6   : > { %v3279_v46 = vsel %vm3277_vm4, %v3272_v14, %v3274_v3  ;;  %v3280_v55 = vsel %vm3277_vm4, %v3270_v38, %v3272_v14 }
 0x4c7   : > { %v3286_v40 = vmul.f32 %v8129_v29, %v3280_v55  ;;  %v3287_v21 = vmul.f32 %v8129_v29, %v3279_v46 }
 0x4c9   : > { %3556 = vrot.lane.b32.xlu1 %v5224_v10, %s4486_s30  ;;  %v3290_v0 = vadd.f32 %v3286_v40, %v3265_v56  ;;  %v3291_v6 = vadd.f32 %v3287_v21, %v3266_v28  ;;  %v3276_v53 = vpop.permute.xlu1 %3275 }
 0x4ca   : > { %v3278_v61 = vsel %vm3277_vm4, %v3274_v3, %v3276_v53  ;;  %v3281_v54 = vsel %vm3277_vm4, %v3276_v53, %v3270_v38  ;;  %vm9414_vm4 = vmmov %vm9410_vm3 }
 0x4cb   : > { %v3288_v8 = vmul.f32 %v8129_v29, %v3278_v61  ;;  %v3289_v50 = vmul.f32 %v8129_v29, %v3281_v54 }
 0x4cd   : > { %3577 = vrot.lane.b32.xlu1 %v5213_v35, %s4487_s8  ;;  %v3292_v30 = vadd.f32 %v3288_v8, %v3267_v1  ;;  %v3293_v7 = vadd.f32 %v3289_v50, %v3268_v59  ;;  %v3295_v51 = vpop.permute.xlu1 %3294 }
 0x4d1   : > { %3581 = vrot.lane.b32.xlu1 %v5224_v10, %s4487_s8  ;;  %v3297_v36 = vpop.permute.xlu1 %3296  ;;  %v3324_v10 = vpop.permute.xlu0 %3323 }
 0x4d2   : > { %v3304_v24 = vsel %vm3302_vm11, %v3297_v36, %v3299_v22  ;;  %v3305_v37 = vsel %vm3302_vm11, %v3295_v51, %v3297_v36 }
 0x4d3   : > { %v3311_v19 = vmul.f32 %v8151_v63, %v3305_v37  ;;  %v3312_v29 = vmul.f32 %v8151_v63, %v3304_v24 }
 0x4d5   : > { %v3315_v62 = vadd.f32 %v3311_v19, %v3290_v0  ;;  %v3316_v48 = vadd.f32 %v3312_v29, %v3291_v6  ;;  %v3301_v35 = vpop.permute.xlu1 %3300  ;;  %v8209_v23 = vpop.permute.xlu0 %3404 }
 0x4d6   : > { %v3303_v45 = vsel %vm3302_vm11, %v3299_v22, %v3301_v35  ;;  %v3306_v17 = vsel %vm3302_vm11, %v3301_v35, %v3295_v51  ;;  %vm9415_vm11 = vmmov %vm9411_vm7 }
 0x4d7   : > { %v3313_v9 = vmul.f32 %v8151_v63, %v3303_v45  ;;  %v3314_v58 = vmul.f32 %v8151_v63, %v3306_v17 }
 0x4d9   : > { %v3317_v20 = vadd.f32 %v3313_v9, %v3292_v30  ;;  %v3318_v25 = vadd.f32 %v3314_v58, %v3293_v7  ;;  %v3320_v41 = vpop.permute.xlu1 %3319  ;;  %v3348_v11 = vpop.permute.xlu0 %3347 }
 0x4dd   : > { %v3322_v60 = vpop.permute.xlu1 %3321  ;;  %v8223_v3 = vpop.permute.xlu0 %3428 }
 0x4de   : > { %v3328_v42 = vsel %vm9401_vm14, %v3322_v60, %v3324_v10  ;;  %v3329_v2 = vsel %vm9402_vm10, %v3320_v41, %v3322_v60  ;;  %v3819_v60 = vld [vmem:[%s8499_s7] sm:$0xff]  ;;  %vm9416_vm14 = vmmov %vm9411_vm7  ;;  %vm3508_vm10 = vcmp.lt.s32.totalorder %v5666_v33, 62 }
 0x4df   : > { %v3335_v5 = vmul.f32 %v8171_v52, %v3329_v2  ;;  %v3336_v49 = vmul.f32 %v8171_v52, %v3328_v42  ;;  %v3820_v42 = vld [vmem:[%s8499_s7 + $0x8] sm:$0xff]  ;;  %3823 = vperm.xlu1 %4182, %v3819_v60  }
 0x4e0   : > { %3828 = vperm.xlu0 %4183, %v3820_v42  }
 0x4e1   : > { %v3339_v16 = vadd.f32 %v3335_v5, %v3315_v62  ;;  %v3340_v32 = vadd.f32 %v3336_v49, %v3316_v48  ;;  %v3326_v63 = vpop.permute.xlu1 %3325  ;;  %v3372_v53 = vpop.permute.xlu0 %3371 }
 0x4e2   : > { %v3327_v12 = vsel %vm9403_vm15, %v3324_v10, %v3326_v63  ;;  %v3330_v44 = vsel %vm9404_vm12, %v3326_v63, %v3320_v41  ;;  %vm3533_vm15 = vcmp.lt.s32.totalorder %v5666_v33, 61  ;;  %vm3558_vm12 = vcmp.lt.s32.totalorder %v5666_v33, 60 }
 0x4e3   : > { %v3337_v56 = vmul.f32 %v8171_v52, %v3327_v12  ;;  %v3338_v28 = vmul.f32 %v8171_v52, %v3330_v44 }
 0x4e5   : > { %v3341_v47 = vadd.f32 %v3337_v56, %v3317_v20  ;;  %v3342_v31 = vadd.f32 %v3338_v28, %v3318_v25  ;;  %v3344_v26 = vpop.permute.xlu1 %3343  ;;  %v8237_v22 = vpop.permute.xlu0 %3453 }
 0x4e9   : > { %v3346_v27 = vpop.permute.xlu1 %3345  ;;  %v3396_v35 = vpop.permute.xlu0 %3395 }
 0x4ea   : > { %v3352_v1 = vsel %vm2132_vm0, %v3346_v27, %v3348_v11  ;;  %v3353_v59 = vsel %vm2132_vm0, %v3344_v26, %v3346_v27 }
 0x4eb   : > { %v3359_v38 = vmul.f32 %v8192_v34, %v3353_v59  ;;  %v3360_v14 = vmul.f32 %v8192_v34, %v3352_v1 }
 0x4ed   : > { %v3363_v46 = vadd.f32 %v3359_v38, %v3339_v16  ;;  %v3364_v55 = vadd.f32 %v3360_v14, %v3340_v32  ;;  %v3350_v52 = vpop.permute.xlu1 %3349  ;;  %v8247_v10 = vpop.permute.xlu0 %3465 }
 0x4ee   : > { %v3351_v40 = vsel %vm2132_vm0, %v3348_v11, %v3350_v52  ;;  %v3354_v21 = vsel %vm2132_vm0, %v3350_v52, %v3344_v26  ;;  %vm9407_vm0 = vmmov %vm9405_vm1  ;;  %v3468_v42 = vmul.f32 %v8247_v10, %v7474_v43 }
 0x4ef   : > { %v3361_v0 = vmul.f32 %v8192_v34, %v3351_v40  ;;  %v3362_v6 = vmul.f32 %v8192_v34, %v3354_v21  ;;  %vm9408_vm9 = vmmov %vm9407_vm0 }
 0x4f1   : > { %v3365_v61 = vadd.f32 %v3361_v0, %v3341_v47  ;;  %v3366_v54 = vadd.f32 %v3362_v6, %v3342_v31  ;;  %v3368_v8 = vpop.permute.xlu1 %3367  ;;  %v3420_v25 = vpop.permute.xlu0 %3419 }
 0x4f5   : > { %v3370_v50 = vpop.permute.xlu1 %3369 }
 0x4f6   : > { %v3376_v30 = vsel %vm9405_vm1, %v3370_v50, %v3372_v53  ;;  %v3377_v7 = vsel %vm9406_vm2, %v3368_v8, %v3370_v50  ;;  %vm3583_vm1 = vcmp.lt.s32.totalorder %v5666_v33, 59 }
 0x4f7   : > { %v3383_v51 = vmul.f32 %v3381_v39, %v3377_v7  ;;  %v3384_v36 = vmul.f32 %v3381_v39, %v3376_v30 }
 0x4f9   : > { %v3387_v24 = vadd.f32 %v3383_v51, %v3363_v46  ;;  %v3388_v37 = vadd.f32 %v3384_v36, %v3364_v55  ;;  %v3374_v19 = vpop.permute.xlu1 %3373 }
 0x4fa   : > { %v3375_v34 = vsel %vm9407_vm0, %v3372_v53, %v3374_v19  ;;  %v3378_v29 = vsel %vm9408_vm9, %v3374_v19, %v3368_v8 }
 0x4fb   : > { %v3385_v62 = vmul.f32 %v3381_v39, %v3375_v34  ;;  %v3386_v48 = vmul.f32 %v3381_v39, %v3378_v29  ;;  %v8255_v39 = vpop.permute.xlu0 %3477 }
 0x4fd   : > { %v3389_v45 = vadd.f32 %v3385_v62, %v3365_v61  ;;  %v3390_v17 = vadd.f32 %v3386_v48, %v3366_v54  ;;  %v3392_v9 = vpop.permute.xlu1 %3391 }
 0x4ff   : > { %v3444_v49 = vpop.permute.xlu0 %3443 }
 0x501   : > { %v3394_v58 = vpop.permute.xlu1 %3393 }
 0x502   : > { %v3400_v26 = vsel %vm9409_vm5, %v3394_v58, %v3396_v35  ;;  %v3401_v27 = vsel %vm9410_vm3, %v3392_v9, %v3394_v58  ;;  %vm9423_vm3 = vcmask 1043456  }
 0x503   : > { %v8257_v63 = vpop.permute.xlu0 %3489  ;;  %v3407_v59 = vmul.f32 %v8209_v23, %v3401_v27  ;;  %v3408_v38 = vmul.f32 %v8209_v23, %v3400_v26  ;;  %v3471_v27 = vmul.f32 %v8247_v10, %v7502_v4 }
 0x505   : > { %v3398_v20 = vpop.permute.xlu1 %3397  ;;  %v3411_v54 = vadd.f32 %v3407_v59, %v3387_v24  ;;  %v3412_v8 = vadd.f32 %v3408_v38, %v3388_v37 }
 0x506   : > { %v3399_v21 = vsel %vm9413_vm13, %v3396_v35, %v3398_v20  ;;  %v3402_v0 = vsel %vm9414_vm4, %v3398_v20, %v3392_v9  ;;  %vm9427_vm13 = vmmov %vm9423_vm3 }
 0x507   : > { %v8259_v44 = vpop.permute.xlu0 %3564  ;;  %v3409_v36 = vmul.f32 %v8209_v23, %v3399_v21  ;;  %v3410_v19 = vmul.f32 %v8209_v23, %v3402_v0  ;;  %v9420_v0 = vld [vmem:[#allocation76_spill] sm:$0xff] }
 0x509   : > { %v3416_v41 = vpop.permute.xlu1 %3415 }
 0x50b   : > { %v8263_v28 = vpop.permute.xlu0 %3504 }
 0x50d   : > { %v3418_v2 = vpop.permute.xlu1 %3417 }
 0x50e   : > { %v3424_v14 = vsel %vm9411_vm7, %v3418_v2, %v3420_v25  ;;  %v3425_v46 = vsel %vm9412_vm8, %v3416_v41, %v3418_v2  ;;  %v3469_v2 = vmul.f32 %v8247_v10, %v7487_v18  ;;  %v3470_v18 = vmul.f32 %v8247_v10, %v7496_v57  ;;  %v9419_v10 = vld [vmem:[#allocation120_spill] sm:$0xff]  ;;  %vm9426_vm8 = vmmov %vm9423_vm3 }
 0x50f   : > { %v8269_v31 = vpop.permute.xlu0 %3589  ;;  %v3431_v6 = vmul.f32 %v8223_v3, %v3425_v46  ;;  %v3432_v53 = vmul.f32 %v8223_v3, %v3424_v14  ;;  %v3492_v21 = vmul.f32 %v8257_v63, %v9419_v10  ;;  %vm9425_vm7 = vcmask 64512  }
 0x510   : > { %vm9428_vm4 = vmmov %vm9425_vm7 }
 0x511   : > { %v3422_v5 = vpop.permute.xlu1 %3421  ;;  %v3435_v34 = vadd.f32 %v3431_v6, %v3411_v54  ;;  %v3436_v29 = vadd.f32 %v3432_v53, %v3412_v8  ;;  %v3493_v6 = vmul.f32 %v8257_v63, %v9420_v0 }
 0x512   : > { %v3423_v50 = vsel %vm9415_vm11, %v3420_v25, %v3422_v5  ;;  %v3426_v30 = vsel %vm9416_vm14, %v3422_v5, %v3416_v41  ;;  %v3413_v25 = vadd.f32 %v3409_v36, %v3389_v45  ;;  %v3414_v41 = vadd.f32 %v3410_v19, %v3390_v17 }
 0x513   : > { %v8286_v40 = vpop.permute.xlu0 %3529  ;;  %v3433_v48 = vmul.f32 %v8223_v3, %v3423_v50  ;;  %v3434_v35 = vmul.f32 %v8223_v3, %v3426_v30  ;;  %v3480_v45 = vmul.f32 %v8255_v39, %v7521_v13  ;;  %v9417_v13 = vld [vmem:[#allocation118_spill] sm:$0xff]  ;;  %v9421_v50 = vld [vmem:[#allocation17_spill] sm:$0xff] }
 0x514   : > { %v3482_v46 = vmul.f32 %v8255_v39, %v9417_v13  ;;  %v3494_v30 = vmul.f32 %v8257_v63, %v9421_v50 }
 0x515   : > { %v3440_v16 = vpop.permute.xlu1 %3439 }
 0x517   : > { %v8310_v9 = vpop.permute.xlu0 %3550 }
 0x519   : > { %v3442_v32 = vpop.permute.xlu1 %3441 }
 0x51a   : > { %v3449_v55 = vsel %vm3447_vm6, %v3442_v32, %v3444_v49  ;;  %v3450_v52 = vsel %vm3447_vm6, %v3440_v16, %v3442_v32 }
 0x51b   : > { %v3456_v7 = vmul.f32 %v8237_v22, %v3450_v52  ;;  %v3457_v51 = vmul.f32 %v8237_v22, %v3449_v55  ;;  %v3555_v17 = vpop.permute.xlu0 %3554  ;;  %v9418_v52 = vld [vmem:[#allocation53_spill] sm:$0xff] }
 0x51c   : > { %v3483_v4 = vmul.f32 %v8255_v39, %v9418_v52 }
 0x51d   : > { %v3446_v12 = vpop.permute.xlu1 %3445  ;;  %v3460_v58 = vadd.f32 %v3456_v7, %v3435_v34  ;;  %v3461_v20 = vadd.f32 %v3457_v51, %v3436_v29 }
 0x51e   : > { %v3448_v24 = vsel %vm3447_vm6, %v3444_v49, %v3446_v12  ;;  %v3451_v37 = vsel %vm3447_vm6, %v3446_v12, %v3440_v16  ;;  %v3437_v49 = vadd.f32 %v3433_v48, %v3413_v25  ;;  %v3438_v16 = vadd.f32 %v3434_v35, %v3414_v41  ;;  %v9422_v25 = vld [vmem:[#allocation121_spill] sm:$0xff]  ;;  %vm9424_vm6 = vmmov %vm9423_vm3 }
 0x51f   : > { %v3458_v23 = vmul.f32 %v8237_v22, %v3448_v24  ;;  %v3459_v60 = vmul.f32 %v8237_v22, %v3451_v37  ;;  %v3472_v3 = vadd.f32 %v3468_v42, %v3460_v58  ;;  %v3473_v32 = vadd.f32 %v3469_v2, %v3461_v20  ;;  %v3576_v7 = vpop.permute.xlu0 %3575 }
 0x520   : > { %v3481_v22 = vmul.f32 %v8255_v39, %v7515_v15  ;;  %v3495_v41 = vmul.f32 %v8257_v63, %v9422_v25 }
 0x521   : > { %v3462_v12 = vadd.f32 %v3458_v23, %v3437_v49  ;;  %v3463_v26 = vadd.f32 %v3459_v60, %v3438_v16  ;;  %v3484_v59 = vadd.f32 %v3480_v45, %v3472_v3 }
 0x522   : > { %v3485_v38 = vadd.f32 %v3481_v22, %v3473_v32 }
 0x523   : > { %v8261_v56 = vpop.permute.xlu1 %3514  ;;  %v3474_v55 = vadd.f32 %v3470_v18, %v3462_v12  ;;  %v3475_v57 = vadd.f32 %v3471_v27, %v3463_v26  ;;  %v3496_v51 = vadd.f32 %v3492_v21, %v3484_v59  ;;  %v3580_v16 = vpop.permute.xlu0 %3579 }
 0x524   : > { %v3497_v36 = vadd.f32 %v3493_v6, %v3485_v38 }
 0x525   : > { %v3486_v19 = vadd.f32 %v3482_v46, %v3474_v55  ;;  %v3487_v34 = vadd.f32 %v3483_v4, %v3475_v57 }
 0x527   : > { %v3498_v2 = vadd.f32 %v3494_v30, %v3486_v19 }
 0x528   : > { %v8265_v11 = vpop.permute.xlu1 %3539 }
 0x52c   : > { %v8267_v47 = vpop.permute.xlu1 %3500 }
 0x530   : > { %v3503_v1 = vpop.permute.xlu1 %3502 }
 0x531   : > { %v3510_v14 = vsel %vm3508_vm10, %v3503_v1, %v8263_v28  ;;  %v3511_v15 = vsel %vm3508_vm10, %v8267_v47, %v3503_v1 }
 0x532   : > { %v3517_v54 = vmul.f32 %v8261_v56, %v3511_v15  ;;  %v3518_v1 = vmul.f32 %v8261_v56, %v3510_v14 }
 0x534   : > { %v8294_v61 = vpop.permute.xlu1 %3506  ;;  %v3521_v23 = vadd.f32 %v3517_v54, %v3496_v51  ;;  %v3522_v60 = vadd.f32 %v3518_v1, %v3497_v36 }
 0x535   : > { %v3509_v37 = vsel %vm3508_vm10, %v8263_v28, %v8294_v61  ;;  %v3512_v48 = vsel %vm3508_vm10, %v8294_v61, %v8267_v47 }
 0x536   : > { %v3519_v49 = vmul.f32 %v8261_v56, %v3509_v37  ;;  %v3520_v63 = vmul.f32 %v8261_v56, %v3512_v48 }
 0x538   : > { %v3526_v62 = vpop.permute.xlu1 %3525  ;;  %v3523_v59 = vadd.f32 %v3519_v49, %v3498_v2 }
 0x53c   : > { %v3528_v5 = vpop.permute.xlu1 %3527 }
 0x53d   : > { %v3535_v8 = vsel %vm3533_vm15, %v3528_v5, %v8286_v40  ;;  %v3536_v39 = vsel %vm3533_vm15, %v3526_v62, %v3528_v5  ;;  %v3499_v5 = vadd.f32 %v3495_v41, %v3487_v34 }
 0x53e   : > { %v3542_v35 = vmul.f32 %v8265_v11, %v3536_v39  ;;  %v3543_v58 = vmul.f32 %v8265_v11, %v3535_v8 }
 0x53f   : > { %v3524_v38 = vadd.f32 %v3520_v63, %v3499_v5 }
 0x540   : > { %v3532_v43 = vpop.permute.xlu1 %3531  ;;  %v3546_v3 = vadd.f32 %v3542_v35, %v3521_v23  ;;  %v3547_v32 = vadd.f32 %v3543_v58, %v3522_v60 }
 0x541   : > { %v3534_v28 = vsel %vm3533_vm15, %v8286_v40, %v3532_v43  ;;  %v3537_v42 = vsel %vm3533_vm15, %v3532_v43, %v3526_v62 }
 0x542   : > { %v3544_v26 = vmul.f32 %v8265_v11, %v3534_v28  ;;  %v3545_v45 = vmul.f32 %v8265_v11, %v3537_v42 }
 0x544   : > { %v3553_v53 = vpop.permute.xlu1 %3552  ;;  %v3548_v46 = vadd.f32 %v3544_v26, %v3523_v59  ;;  %v3549_v55 = vadd.f32 %v3545_v45, %v3524_v38 }
 0x545   : > { %v3560_v29 = vsel %vm3558_vm12, %v3553_v53, %v3555_v17  ;;  %v3561_v24 = vsel %vm3558_vm12, %v8310_v9, %v3553_v53 }
 0x546   : > { %v3567_v47 = vmul.f32 %v8259_v44, %v3561_v24  ;;  %v3568_v61 = vmul.f32 %v8259_v44, %v3560_v29 }
 0x548   : > { %v3557_v20 = vpop.permute.xlu1 %3556  ;;  %v3571_v43 = vadd.f32 %v3567_v47, %v3546_v3  ;;  %v3572_v18 = vadd.f32 %v3568_v61, %v3547_v32 }
 0x549   : > { %v3559_v12 = vsel %vm3558_vm12, %v3555_v17, %v3557_v20  ;;  %v3562_v40 = vsel %vm3558_vm12, %v3557_v20, %v8310_v9 }
 0x54a   : > { %v3569_v9 = vmul.f32 %v8259_v44, %v3559_v12  ;;  %v3570_v14 = vmul.f32 %v8259_v44, %v3562_v40 }
 0x54c   : > { %v3578_v62 = vpop.permute.xlu1 %3577  ;;  %v3573_v44 = vadd.f32 %v3569_v9, %v3548_v46  ;;  %v3574_v21 = vadd.f32 %v3570_v14, %v3549_v55 }
 0x54d   : > { %v3585_v22 = vsel %vm3583_vm1, %v3578_v62, %v3580_v16  ;;  %v3586_v56 = vsel %vm3583_vm1, %v3576_v7, %v3578_v62 }
 0x54e   : > { %v3592_v27 = vmul.f32 %v8269_v31, %v3586_v56  ;;  %v3593_v17 = vmul.f32 %v8269_v31, %v3585_v22 }
 0x550   : > { %v8394_v15 = vadd.f32 %v3592_v27, %v3571_v43  ;;  %v8396_v11 = vadd.f32 %v3593_v17, %v3572_v18  ;;  %v3582_v13 = vpop.permute.xlu1 %3581 }
 0x551   : > { %v3584_v57 = vsel %vm3583_vm1, %v3580_v16, %v3582_v13  ;;  %v3587_v52 = vsel %vm3583_vm1, %v3582_v13, %v3576_v7 }
 0x552   : > { %v8403_v4 = vmul.f32 0.70710677, %v8394_v15  ;;  %v8406_v10 = vmul.f32 0.70710677, %v8396_v11  ;;  %v3594_v0 = vmul.f32 %v8269_v31, %v3584_v57  ;;  %v3595_v6 = vmul.f32 %v8269_v31, %v3587_v52 }
 0x554   : > { %v3608_v53 = vand.u32 2147483647, %v8403_v4  ;;  %v3609_v54 = vand.u32 2147483647, %v8406_v10  ;;  %v8412_v1 = vadd.f32 %v3594_v0, %v3573_v44  ;;  %v8414_v33 = vadd.f32 %v3595_v6, %v3574_v21 }
 0x555   : > { %vm3684_vm2 = vcmp.ge.f32.partialorder %v8403_v4, 0.0  ;;  %vm3685_vm0 = vcmp.ge.f32.partialorder %v8406_v10, 0.0 }
 0x556   : > { %v3612_v8 = vmul.f32 0.3275911, %v3608_v53  ;;  %v3613_v39 = vmul.f32 0.3275911, %v3609_v54  ;;  %v8417_v50 = vmul.f32 0.70710677, %v8412_v1 }
 0x557   : > { %v8420_v30 = vmul.f32 0.70710677, %v8414_v33  ;;  %v3660_v37 = vsub.f32 0.0, %v3608_v53  ;;  %v3661_v48 = vsub.f32 0.0, %v3609_v54 }
 0x558   : > { %v3616_v7 = vadd.f32 1.0, %v3612_v8  ;;  %v3617_v51 = vadd.f32 1.0, %v3613_v39  ;;  %v3610_v31 = vand.u32 2147483647, %v8417_v50  ;;  %vm3686_vm9 = vcmp.ge.f32.partialorder %v8417_v50, 0.0 }
 0x559   : > { %v3611_v36 = vand.u32 2147483647, %v8420_v30  ;;  %v3664_v58 = vmul.f32 %v3660_v37, %v3608_v53  ;;  %v3665_v25 = vmul.f32 %v3661_v48, %v3609_v54  ;;  %vm3687_vm5 = vcmp.ge.f32.partialorder %v8420_v30, 0.0 }
 0x55a   : > { %4305 = vrcp.f32 %v3616_v7  ;;  %v3614_v19 = vmul.f32 0.3275911, %v3610_v31  ;;  %v3662_v41 = vsub.f32 0.0, %v3610_v31 }
 0x55b   : > { %4307 = vrcp.f32 %v3617_v51  ;;  %v3615_v34 = vmul.f32 0.3275911, %v3611_v36  ;;  %v3663_v60 = vsub.f32 0.0, %v3611_v36  ;;  %v3668_v47 = vmul.f32 1.442695, %v3664_v58 }
 0x55c   : > { %v3618_v29 = vadd.f32 1.0, %v3614_v19  ;;  %v3670_v5 = vmul.f32 1.442695, %v3665_v25  ;;  %v3666_v49 = vmul.f32 %v3662_v41, %v3610_v31 }
 0x55d   : > { %v3619_v24 = vadd.f32 1.0, %v3615_v34  ;;  %v3667_v3 = vmul.f32 %v3663_v60, %v3611_v36 }
 0x55e   : > { %4309 = vrcp.f32 %v3618_v29  ;;  %v3672_v22 = vmul.f32 1.442695, %v3666_v49 }
 0x55f   : > { %4311 = vrcp.f32 %v3619_v24  ;;  %v3674_v18 = vmul.f32 1.442695, %v3667_v3 }
 0x560   : > { %4313 = vpow2.f32 %v3668_v47 }
 0x561   : > { %4315 = vpow2.f32 %v3670_v5  ;;  %v3601_v5 = vmul.f32 0.5, %v8396_v11  ;;  %v3603_v11 = vmul.f32 0.5, %v8414_v33  ;;  %v3824_v33 = vpop.permute.xlu1 %3823 }
 0x562   : > { %4317 = vpow2.f32 %v3672_v22  ;;  %v3709_v22 = vpop.permute.xlu0 %3708 }
 0x563   : > { %4319 = vpow2.f32 %v3674_v18 }
 0x564   : > { %v4306_v35 = vpop.eup %4305 }
 0x565   : > { %v4308_v20 = vpop.eup %4307  ;;  %v3624_v23 = vmul.f32 1.0614054, %v4306_v35 }
 0x566   : > { %v3625_v28 = vmul.f32 1.0614054, %v4308_v20 }
 0x567   : > { %v3628_v42 = vadd.f32 -1.4531521, %v3624_v23 }
 0x568   : > { %v3629_v61 = vadd.f32 -1.4531521, %v3625_v28  ;;  %v4310_v2 = vpop.eup %4309  ;;  %v3600_v28 = vmul.f32 0.5, %v8394_v15 }
 0x569   : > { %v3632_v63 = vmul.f32 %v4306_v35, %v3628_v42  ;;  %v4312_v16 = vpop.eup %4311  ;;  %v3626_v12 = vmul.f32 1.0614054, %v4310_v2 }
 0x56a   : > { %v3633_v32 = vmul.f32 %v4308_v20, %v3629_v61  ;;  %v3627_v62 = vmul.f32 1.0614054, %v4312_v16  ;;  %v4314_v54 = vpop.eup %4313 }
 0x56b   : > { %v3636_v40 = vadd.f32 1.4214138, %v3632_v63  ;;  %v3630_v45 = vadd.f32 -1.4531521, %v3626_v12  ;;  %v4316_v7 = vpop.eup %4315  ;;  %v3602_v12 = vmul.f32 0.5, %v8412_v1 }
 0x56c   : > { %v3637_v26 = vadd.f32 1.4214138, %v3633_v32  ;;  %v3631_v43 = vadd.f32 -1.4531521, %v3627_v62  ;;  %v4318_v48 = vpop.eup %4317 }
 0x56d   : > { %v3640_v56 = vmul.f32 %v4306_v35, %v3636_v40  ;;  %v3634_v17 = vmul.f32 %v4310_v2, %v3630_v45  ;;  %v4320_v41 = vpop.eup %4319 }
 0x56e   : > { %v3641_v27 = vmul.f32 %v4308_v20, %v3637_v26  ;;  %v3635_v38 = vmul.f32 %v4312_v16, %v3631_v43 }
 0x56f   : > { %v3644_v59 = vadd.f32 -0.28449672, %v3640_v56  ;;  %v3638_v14 = vadd.f32 1.4214138, %v3634_v17 }
 0x570   : > { %v3645_v9 = vadd.f32 -0.28449672, %v3641_v27  ;;  %v3639_v46 = vadd.f32 1.4214138, %v3635_v38  ;;  %v3829_v27 = vpop.permute.xlu0 %3828 }
 0x571   : > { %v3648_v13 = vmul.f32 %v4306_v35, %v3644_v59  ;;  %v3642_v57 = vmul.f32 %v4310_v2, %v3638_v14 }
 0x572   : > { %v3649_v55 = vmul.f32 %v4308_v20, %v3645_v9  ;;  %v3643_v44 = vmul.f32 %v4312_v16, %v3639_v46 }
 0x573   : > { %v3652_v52 = vadd.f32 0.2548296, %v3648_v13  ;;  %v3646_v0 = vadd.f32 -0.28449672, %v3642_v57 }
 0x574   : > { %v3653_v21 = vadd.f32 0.2548296, %v3649_v55  ;;  %v3647_v53 = vadd.f32 -0.28449672, %v3643_v44 }
 0x575   : > { %v3656_v6 = vmul.f32 %v4306_v35, %v3652_v52  ;;  %v3650_v39 = vmul.f32 %v4310_v2, %v3646_v0 }
 0x576   : > { %v3657_v8 = vmul.f32 %v4308_v20, %v3653_v21  ;;  %v3651_v31 = vmul.f32 %v4312_v16, %v3647_v53 }
 0x577   : > { %v3676_v51 = vmul.f32 %v4314_v54, %v3656_v6  ;;  %v3654_v19 = vadd.f32 0.2548296, %v3650_v39 }
 0x578   : > { %v3677_v36 = vmul.f32 %v4316_v7, %v3657_v8  ;;  %v3655_v29 = vadd.f32 0.2548296, %v3651_v31 }
 0x579   : > { %v3680_v34 = vsub.f32 1.0, %v3676_v51  ;;  %v3658_v37 = vmul.f32 %v4310_v2, %v3654_v19 }
 0x57a   : > { %v3681_v24 = vsub.f32 1.0, %v3677_v36  ;;  %v3659_v25 = vmul.f32 %v4312_v16, %v3655_v29 }
 0x57b   : > { %v3688_v58 = vsub.f32 0.0, %v3680_v34  ;;  %v3678_v23 = vmul.f32 %v4318_v48, %v3658_v37 }
 0x57c   : > { %v3689_v35 = vsub.f32 0.0, %v3681_v24  ;;  %v3679_v60 = vmul.f32 %v4320_v41, %v3659_v25 }
 0x57d   : > { %v3692_v20 = vsel %vm3684_vm2, %v3680_v34, %v3688_v58  ;;  %v3682_v61 = vsub.f32 1.0, %v3678_v23 }
 0x57e   : > { %v3693_v42 = vsel %vm3685_vm0, %v3681_v24, %v3689_v35  ;;  %v3696_v47 = vadd.f32 1.0, %v3692_v20  ;;  %v3683_v49 = vsub.f32 1.0, %v3679_v60 }
 0x57f   : > { %v3697_v2 = vadd.f32 1.0, %v3693_v42  ;;  %v3690_v16 = vsub.f32 0.0, %v3682_v61 }
 0x580   : > { %v3700_v63 = vmul.f32 %v3696_v47, %v3600_v28  ;;  %v3691_v3 = vsub.f32 0.0, %v3683_v49 }
 0x581   : > { %v3701_v4 = vmul.f32 %v3697_v2, %v3601_v5  ;;  %v3694_v32 = vsel %vm3686_vm9, %v3682_v61, %v3690_v16 }
 0x582   : > { %v3704_v10 = vpack.c.bf16 %v3700_v63, %v3700_v63  ;;  %v3695_v40 = vsel %vm3687_vm5, %v3683_v49, %v3691_v3  ;;  %v3698_v62 = vadd.f32 1.0, %v3694_v32 }
 0x583   : > { %v3705_v15 = vpack.c.bf16 %v3701_v4, %v3701_v4  ;;  %v3699_v45 = vadd.f32 1.0, %v3695_v40 }
 0x584   : > { %v3714_v26 = vsel %vm9423_vm3, %v3704_v10, 0  ;;  %v3702_v50 = vmul.f32 %v3698_v62, %v3602_v12 }
 0x585   : > { %3953 = vmatprep.subr.msk.bf16.mxu0 %vm9424_vm6, %v3705_v15  ;;  %v3703_v30 = vmul.f32 %v3699_v45, %v3603_v11 }
 0x586   : > { %3726 = vmatpush1.bf16.msra.mxu0 %v3714_v26  ;;  %v3706_v56 = vpack.c.bf16 %v3702_v50, %v3702_v50 }
 0x587   : > { %v3707_v43 = vpack.c.bf16 %v3703_v30, %v3703_v30 }
 0x588   : > { %v3720_v1 = vsel %vm9426_vm8, %v3706_v56, 0 }
 0x589   : > { %3954 = vmatmul.mubr.msk.bf16.vlgmr.msra.gmra.mrb[8].mxu0 %vm9425_vm7, %v3709_v22  ;;  %3955 = vmatprep.subr.msk.bf16.mxu1 %vm9427_vm13, %v3707_v43 }
 0x58a   : > { %3769 = vmatpush1.bf16.msra.mxu1 %v3720_v1 }
 0x58d   : > { %3956 = vmatmul.mubr.msk.bf16.vlgmr.msra.gmra.mrb[8].mxu1 %vm9428_vm4, %v3709_v22 }
 0x65c   : > { %v3759_v18 = vpop.f32.mrb[8].mxu0 }
 0x65d   : > { %v3831_v17 = vadd.f32 %v3824_v33, %v3759_v18  ;;  %v3761_v59 = vpop.f32.mrb[9].mxu0 }
 0x65e   : > { %v3832_v38 = vadd.f32 %v3824_v33, %v3761_v59  ;;  %v3763_v9 = vpop.f32.mrb[10].mxu0 }
 0x65f   : > { %3839 = vst [vmem:[%s298_s18] sm:$0xff] %v3831_v17  ;;  %v3835_v14 = vadd.f32 %v3829_v27, %v3763_v9  ;;  %v3765_v13 = vpop.f32.mrb[11].mxu0 }
 0x660   : > { %3840 = vst [vmem:[%s298_s18 + $0x8] sm:$0xff] %v3832_v38  ;;  %v3836_v46 = vadd.f32 %v3829_v27, %v3765_v13  ;;  %v3802_v55 = vpop.f32.mrb[8].mxu1 }
 0x661   : > { %3843 = vst [vmem:[%s298_s18 + $0x20] sm:$0xff] %v3835_v14  ;;  %v3833_v57 = vadd.f32 %v3824_v33, %v3802_v55  ;;  %v3804_v52 = vpop.f32.mrb[9].mxu1 }
 0x662   : > { %3844 = vst [vmem:[%s298_s18 + $0x28] sm:$0xff] %v3836_v46  ;;  %v3834_v44 = vadd.f32 %v3824_v33, %v3804_v52  ;;  %v3806_v21 = vpop.f32.mrb[10].mxu1 }
 0x663   : > { %3841 = vst [vmem:[%s298_s18 + $0x10] sm:$0xff] %v3833_v57  ;;  %v3837_v0 = vadd.f32 %v3829_v27, %v3806_v21  ;;  %v3808_v6 = vpop.f32.mrb[11].mxu1 }
 0x664   : > { %3842 = vst [vmem:[%s298_s18 + $0x18] sm:$0xff] %v3834_v44  ;;  %v3838_v53 = vadd.f32 %v3829_v27, %v3808_v6 }
 0x665   : > { %3845 = vst [vmem:[%s298_s18 + $0x30] sm:$0xff] %v3837_v0 }
 0x666   : > { %3846 = vst [vmem:[%s298_s18 + $0x38] sm:$0xff] %v3838_v53 }
 0x667   : > { %4343 = shalt.err (!%p4340_p3)
}
 0x668   : > { %s4344_s24 = scalar_lea.hbm %s8445_s23, 1024  ;;  %s4348_s9 = scalar_lea.hbm %s9431_s26, 2048 }
 0x669   : > { %p4345_p4 = scmp.ne.s32.totalorder %s8445_s23, %s4344_s24  ;;  %p4349_p9 = scmp.lt.u32.totalorder %s8445_s23, %s9431_s26 }
 0x66a   : > { %p4350_p10 = scmp.lt.u32.totalorder %s4348_s9, %s4344_s24  ;;  %p4352_p12 = scmp.lt.u32.totalorder %s4344_s24, %s8445_s23 }
 0x66b   : > { %p4346_p7 = pnand %p4345_p4, %p4576_p5 }
 0x66c   : > { %p4351_p11 = por %p4350_p10, %p4349_p9 }
 0x66d   : > { %p4347_p8 = pneg %p4346_p7 }
 0x66e   : > { %p4353_p13 = por %p4352_p12, %p4351_p11 }
 0x670   : > { %p4354_p0 = pnand %p4353_p13, %p4347_p8 }
 0x672   : > { %4357 = shalt.err (!%p4354_p0)
}
 0x673   : > { %s4491_s1 = smov 512   ;;  %s4492_s3 = smov 32  }
 0x674   : > { %3988 = dma.vmem_to_hbm [thread:$0]  (%p4576_p5), %s8447_s20, 1024, %s8445_s23, %s8451_s27, %s4491_s1, %s4491_s1, %s4492_s3  }
 0x675 PF: > { %s9432_s5 = sld [smem:[#allocation7_spill]]  ;;  %s9433_s11 = sld [smem:[#allocation5_spill]] }
 0x67b   : > { %p3994_p1 = scmp.ge.s32.totalorder %s9432_s5, 2  ;;  %s3876_s22 = sand.u32 1, %s9433_s11  }
 0x67c   : > { %s3877_s25 = scalar_lea.sflag [#allocation3], %s3876_s22 }
 0x67d   : > { %p3991_p2 = pnand %p3994_p1, %p4580_p6 }
 0x67f   : > { %4375 = dma.done.wait (!%p3991_p2), %s3877_s25, 1024  }
 0x680   : > { %4377 = vsyncadd (!%p3991_p2), %s3877_s25, 4294966272  ;;  %s9435_s30 = sld [smem:[#allocation9_spill]]  ;;  %s9436_s12 = sld [smem:[#allocation6_spill]] }
 0x681   : > { %s9437_s29 = sld [smem:[#allocation10_spill]]  ;;  %s9438_s27 = smov %s4384_s28 }
 0x686   : > { %p18_p3 = scmp.ge.s32.totalorder %s9435_s30, 4   ;;  %s9439_s28 = smov %s9436_s12 }
 0x688   :  { %20 = sbr.rel (!%p18_p3) target bundleno = 10 (0xa), region = 87 }
 0x68f   :  { %3882 = vsyncpa [#allocation3], 1 }
 0x690   :  { %3884 = vsyncpa [#allocation3 + $0x1], 1 }

</bundles_post_ra>
